<compile_context>
chip_gen: v5e
topology: v5e:2x2
jax: 0.10.0
libtpu: 0.0.40
codegen_flags: <defaults>
</compile_context>

<pallas_src>
import functools

import jax
import jax.numpy as jnp
from jax.experimental import pallas as pl
from jax.experimental.pallas import tpu as pltpu


# ---------------------------------------------------------------------------
# Fused net_F kernel (one batch image per grid step)
# ---------------------------------------------------------------------------
def _netf_kernel(x_ref, mask_ref,
                 tw1_ref, tb1_ref, tw2_ref, tb2_ref,
                 mw1_ref, mb1_ref, mw2_ref, mb2_ref,
                 trimap_ref, alpha_ref,
                 xs_scr, h1_scr, hm_scr,
                 *, H, Wp):
    """Layouts (channel-major, pixels flattened row-major with pitch Wp%128==0):

      x_ref   : (1, 3, (H+3)*Wp) bf16   zero-padded input image
      mask    : (1, H*Wp)        f32    1.0 on real pixels, 0.0 on pad columns
      t/m w   : (3, Cout, 3*Cin) bf16   per-dy folded-K weights (dx-major cols)
      t/m b   : (Cout, 1)        f32
      outputs : (1, 3, H*Wp) / (1, 1, H*Wp) f32   (pad columns hold garbage,
                                                   sliced off by the wrapper)
      xs_scr  : (18, (H+2)*Wp) bf16  rows 0:9  = x tap slab  (3 dx x 3 ch)
                                      rows 9:18 = softmax tap slab
      h1_scr  : (48, (H+2)*Wp) bf16  t_net hidden tap slab (3 dx x 16 ch)
      hm_scr  : (48, (H+2)*Wp) bf16  m_net hidden tap slab
    """
    L = H * Wp                 # flat pixel count of the output grid
    M = (H + 2) * Wp           # flat length of a padded feature map
    OFF = Wp + 1               # flat position of pixel (0,0) inside a padded map

    mask = mask_ref[...]       # [1, L] f32

    def conv3(w_ref, b_ref, slab_ref, k):
        """3x3 'same' conv = 3 folded-K matmuls over the dx-stacked tap slab."""
        out = None
        for dy in range(3):
            rhs = slab_ref[0:k, dy * Wp:dy * Wp + L]          # 128-aligned slice
            p = jnp.dot(w_ref[dy], rhs, preferred_element_type=jnp.float32)
            out = p if out is None else out + p
        return out + b_ref[...]

    def store_taps(slab_ref, base, cin, val):
        """Write the masked interior into the 3 dx-shifted slots and zero only
        the two ~1-row border strips per slot (the conv zero-padding rows)."""
        v = val.astype(slab_ref.dtype)
        for dx in range(3):
            r0 = base + dx * cin
            s = OFF - dx
            slab_ref[r0:r0 + cin, 0:s] = jnp.zeros((cin, s), slab_ref.dtype)
            slab_ref[r0:r0 + cin, s:s + L] = v
            slab_ref[r0:r0 + cin, s + L:M] = jnp.zeros((cin, M - s - L),
                                                       slab_ref.dtype)

    # --- x tap slab: 3 dx-shifted copies of the (already zero-padded) image --
    for dx in range(3):
        xs_scr[dx * 3:(dx + 1) * 3, :] = x_ref[0, :, dx:dx + M]

    # --- t_net conv1: 3 -> 16, ReLU (mask keeps the slab padding zero) -------
    h1 = jnp.maximum(conv3(tw1_ref, tb1_ref, xs_scr, 9), 0.0) * mask
    store_taps(h1_scr, 0, 16, h1)

    # --- t_net conv2: 16 -> 3 (trimap logits) --------------------------------
    tri = conv3(tw2_ref, tb2_ref, h1_scr, 48)                 # [3, L] f32
    trimap_ref[0] = tri

    # --- exact softmax over the 3 trimap channels -----------------------------
    m = jnp.max(tri, axis=0, keepdims=True)
    e = jnp.exp(tri - m)
    sm = e / jnp.sum(e, axis=0, keepdims=True)                # [3, L] f32
    store_taps(xs_scr, 9, 3, sm * mask)

    # --- m_net conv1 on cat(x, softmax): single K=18 contraction, ReLU -------
    hm = jnp.maximum(conv3(mw1_ref, mb1_ref, xs_scr, 18), 0.0) * mask
    store_taps(hm_scr, 0, 16, hm)

    # --- m_net conv2: 16 -> 1 (alpha_r) + fused alpha epilogue ----------------
    alpha_r = conv3(mw2_ref, mb2_ref, hm_scr, 48)             # [1, L] f32
    alpha_ref[0] = sm[2:3, :] + sm[1:2, :] * alpha_r          # fg + unsure*alpha_r


# ---------------------------------------------------------------------------
# Wrapper
# ---------------------------------------------------------------------------
def net_f_forward(params, x):
    """x: [B, 3, H, W] f32 (NCHW). Returns (trimap [B,3,H,W], alpha_p [B,1,H,W])."""
    B, Cin, H, W = x.shape
    assert Cin == 3
    Wp = ((W + 2 + 127) // 128) * 128      # lane-aligned padded row pitch
    L = H * Wp
    M = (H + 2) * Wp
    FL = (H + 3) * Wp                      # 1 top + 2 bottom pad rows

    # Channel-major, spatially zero-padded, flattened with the aligned pitch.
    xp = jnp.pad(x, ((0, 0), (0, 0), (1, 2), (1, Wp - W - 1)))
    xcm = xp.reshape(B, 3, FL).astype(jnp.bfloat16)

    # 1.0 on real columns, 0.0 on the pad columns of every flattened row.
    mask = ((jnp.arange(L) % Wp) < W).astype(jnp.float32).reshape(1, L)

    def pack(w):
        # [Cout, Cin, 3, 3] -> [3(dy), Cout, 3(dx)*Cin], columns dx-major/ci-minor.
        co, ci = w.shape[0], w.shape[1]
        return jnp.transpose(w, (2, 0, 3, 1)).reshape(3, co, 3 * ci).astype(jnp.bfloat16)

    def col(b):
        return b.reshape(-1, 1).astype(jnp.float32)

    tw1, tb1 = pack(params["t_w1"]), col(params["t_b1"])
    tw2, tb2 = pack(params["t_w2"]), col(params["t_b2"])
    # m_net conv1: image half then softmax half, folded into one K=18 weight.
    mw1 = jnp.concatenate([pack(params["m_w1"][:, 0:3]),
                           pack(params["m_w1"][:, 3:6])], axis=-1)   # [3, 16, 18]
    mb1 = col(params["m_b1"])
    mw2, mb2 = pack(params["m_w2"]), col(params["m_b2"])

    def full_spec(a):                      # resident operand, constant index map
        nd = a.ndim
        return pl.BlockSpec(a.shape, lambda b, _n=nd: (0,) * _n)

    trimap_flat, alpha_flat = pl.pallas_call(
        functools.partial(_netf_kernel, H=H, Wp=Wp),
        out_shape=(jax.ShapeDtypeStruct((B, 3, L), jnp.float32),
                   jax.ShapeDtypeStruct((B, 1, L), jnp.float32)),
        grid=(B,),
        in_specs=[
            pl.BlockSpec((1, 3, FL), lambda b: (b, 0, 0)),   # padded image (bf16)
            full_spec(mask),
            full_spec(tw1), full_spec(tb1), full_spec(tw2), full_spec(tb2),
            full_spec(mw1), full_spec(mb1), full_spec(mw2), full_spec(mb2),
        ],
        out_specs=(pl.BlockSpec((1, 3, L), lambda b: (b, 0, 0)),
                   pl.BlockSpec((1, 1, L), lambda b: (b, 0, 0))),
        scratch_shapes=[pltpu.VMEM((18, M), jnp.bfloat16),   # x + softmax tap slab
                        pltpu.VMEM((48, M), jnp.bfloat16),   # t_net hidden tap slab
                        pltpu.VMEM((48, M), jnp.bfloat16)],  # m_net hidden tap slab
        compiler_params=pltpu.CompilerParams(
            dimension_semantics=("parallel",),
            # Safe on every generation (< 64 MiB v7x physical); v5e/v6e could go
            # higher once row tiling lands.
            vmem_limit_bytes=48 * 1024 * 1024),
    )(xcm, mask, tw1, tb1, tw2, tb2, mw1, mb1, mw2, mb2)

    # Drop the pad columns; already NCHW (reshape is free, slice is one copy).
    trimap = trimap_flat.reshape(B, 3, H, Wp)[:, :, :, :W]
    alpha_p = alpha_flat.reshape(B, 1, H, Wp)[:, :, :, :W]
    return trimap, alpha_p


# ---------------------------------------------------------------------------
# Stand-in parameters (see TODO at top of file)
# ---------------------------------------------------------------------------
def init_params(key):
    ks = jax.random.split(key, 8)
    return {
        # t_net (PSPNet stand-in): 3 -> 16 -> 3 (trimap logits)
        "t_w1": jax.random.normal(ks[0], (16, 3, 3, 3), jnp.float32) * 0.1,
        "t_b1": jax.random.normal(ks[1], (16,), jnp.float32) * 0.01,
        "t_w2": jax.random.normal(ks[2], (3, 16, 3, 3), jnp.float32) * 0.1,
        "t_b2": jax.random.normal(ks[3], (3,), jnp.float32) * 0.01,
        # m_net (M_net stand-in): 6 -> 16 -> 1 (alpha residual)
        "m_w1": jax.random.normal(ks[4], (16, 6, 3, 3), jnp.float32) * 0.1,
        "m_b1": jax.random.normal(ks[5], (16,), jnp.float32) * 0.01,
        "m_w2": jax.random.normal(ks[6], (1, 16, 3, 3), jnp.float32) * 0.1,
        "m_b2": jax.random.normal(ks[7], (1,), jnp.float32) * 0.01,
    }


def _reference_forward(params, x):
    """Pure-JAX/XLA reference of the same stand-in net (f32 end-to-end)."""
    def conv(v, w, b):
        y = jax.lax.conv_general_dilated(
            v, w, window_strides=(1, 1), padding=((1, 1), (1, 1)),
            dimension_numbers=("NCHW", "OIHW", "NCHW"),
            precision=jax.lax.Precision.HIGHEST)
        return y + b.reshape(1, -1, 1, 1)

    h1 = jax.nn.relu(conv(x, params["t_w1"], params["t_b1"]))
    tri = conv(h1, params["t_w2"], params["t_b2"])
    sm = jax.nn.softmax(tri, axis=1)
    hm = jax.nn.relu(conv(jnp.concatenate([x, sm], axis=1),
                          params["m_w1"], params["m_b1"]))
    alpha_r = conv(hm, params["m_w2"], params["m_b2"])
    return tri, sm[:, 2:3] + sm[:, 1:2] * alpha_r


if __name__ == "__main__":
    key = jax.random.PRNGKey(0)
    x = jax.random.normal(key, (2, 3, 16, 16), jnp.float32)   # NCHW RGB image
    params = init_params(jax.random.PRNGKey(42))

    trimap, alpha_p = jax.jit(net_f_forward)(params, x)
    jax.block_until_ready((trimap, alpha_p))

    assert trimap.shape == (2, 3, 16, 16)
    assert alpha_p.shape == (2, 1, 16, 16)

    # Loose parity check: the kernel uses bf16 matmul operands / bf16 slabs, so
    # ~1e-2-level deviations from the f32 reference are expected.
    tri_want, alpha_want = _reference_forward(params, x)
    assert float(jnp.max(jnp.abs(trimap - tri_want))) < 0.15
    assert float(jnp.max(jnp.abs(alpha_p - alpha_want))) < 0.15

    print("KERNEL_OK")
</pallas_src>

<mosaic_0001>
module attributes {stable_mosaic.version = 11 : i64} {
  func.func @_netf_kernel(%arg0: i32, %arg1: memref<1x3x2432xbf16, #tpu.memory_space<vmem>>, %arg2: memref<1x2048xf32, #tpu.memory_space<vmem>>, %arg3: memref<3x16x9xbf16, #tpu.memory_space<vmem>>, %arg4: memref<16x1xf32, #tpu.memory_space<vmem>>, %arg5: memref<3x3x48xbf16, #tpu.memory_space<vmem>>, %arg6: memref<3x1xf32, #tpu.memory_space<vmem>>, %arg7: memref<3x16x18xbf16, #tpu.memory_space<vmem>>, %arg8: memref<16x1xf32, #tpu.memory_space<vmem>>, %arg9: memref<3x1x48xbf16, #tpu.memory_space<vmem>>, %arg10: memref<1x1xf32, #tpu.memory_space<vmem>>, %arg11: memref<1x3x2048xf32, #tpu.memory_space<vmem>>, %arg12: memref<1x1x2048xf32, #tpu.memory_space<vmem>>, %arg13: memref<18x2304xbf16, #tpu.memory_space<vmem>>, %arg14: memref<48x2304xbf16, #tpu.memory_space<vmem>>, %arg15: memref<48x2304xbf16, #tpu.memory_space<vmem>>) attributes {dimension_semantics = [#tpu.dimension_semantics<parallel>], iteration_bounds = array<i64: 2>, scalar_prefetch = 0 : i64, scratch_operands = 3 : i64, tpu.core_type = #tpu.core_type<tc>, window_params = [{transform_indices = @transform_0, window_bounds = array<i64: 1, 3, 2432>}, {pipeline_mode = #tpu.pipeline_mode<synchronous>, transform_indices = @transform_1, window_bounds = array<i64: 1, 2048>}, {pipeline_mode = #tpu.pipeline_mode<synchronous>, transform_indices = @transform_2, window_bounds = array<i64: 3, 16, 9>}, {pipeline_mode = #tpu.pipeline_mode<synchronous>, transform_indices = @transform_3, window_bounds = array<i64: 16, 1>}, {pipeline_mode = #tpu.pipeline_mode<synchronous>, transform_indices = @transform_4, window_bounds = array<i64: 3, 3, 48>}, {pipeline_mode = #tpu.pipeline_mode<synchronous>, transform_indices = @transform_5, window_bounds = array<i64: 3, 1>}, {pipeline_mode = #tpu.pipeline_mode<synchronous>, transform_indices = @transform_6, window_bounds = array<i64: 3, 16, 18>}, {pipeline_mode = #tpu.pipeline_mode<synchronous>, transform_indices = @transform_7, window_bounds = array<i64: 16, 1>}, {pipeline_mode = #tpu.pipeline_mode<synchronous>, transform_indices = @transform_8, window_bounds = array<i64: 3, 1, 48>}, {pipeline_mode = #tpu.pipeline_mode<synchronous>, transform_indices = @transform_9, window_bounds = array<i64: 1, 1>}, {transform_indices = @transform_10, window_bounds = array<i64: 1, 3, 2048>}, {transform_indices = @transform_11, window_bounds = array<i64: 1, 1, 2048>}]} {
    %c0 = arith.constant 0 : index
    %c0_0 = arith.constant 0 : index
    %0 = vector.load %arg2[%c0, %c0_0] : memref<1x2048xf32, #tpu.memory_space<vmem>>, vector<1x2048xf32>
    %c0_1 = arith.constant 0 : index
    %c0_2 = arith.constant 0 : index
    %c0_3 = arith.constant 0 : index
    %1 = vector.load %arg1[%c0_1, %c0_2, %c0_3] : memref<1x3x2432xbf16, #tpu.memory_space<vmem>>, vector<1x3x2304xbf16>
    %2 = vector.shape_cast %1 : vector<1x3x2304xbf16> to vector<3x2304xbf16>
    %c0_4 = arith.constant 0 : index
    %c0_5 = arith.constant 0 : index
    %3 = vector.load %arg13[%c0_4, %c0_5] : memref<18x2304xbf16, #tpu.memory_space<vmem>>, vector<3x2304xbf16>
    tpu.vector_store %arg13[%c0_4, %c0_5], %2 {strides = array<i32>} : memref<18x2304xbf16, #tpu.memory_space<vmem>>, vector<3x2304xbf16>,
    %c0_6 = arith.constant 0 : index
    %c0_7 = arith.constant 0 : index
    %c1 = arith.constant 1 : index
    %4 = vector.load %arg1[%c0_6, %c0_7, %c1] : memref<1x3x2432xbf16, #tpu.memory_space<vmem>>, vector<1x3x2304xbf16>
    %5 = vector.shape_cast %4 : vector<1x3x2304xbf16> to vector<3x2304xbf16>
    %c3 = arith.constant 3 : index
    %c0_8 = arith.constant 0 : index
    %6 = vector.load %arg13[%c3, %c0_8] : memref<18x2304xbf16, #tpu.memory_space<vmem>>, vector<3x2304xbf16>
    tpu.vector_store %arg13[%c3, %c0_8], %5 {strides = array<i32>} : memref<18x2304xbf16, #tpu.memory_space<vmem>>, vector<3x2304xbf16>,
    %c0_9 = arith.constant 0 : index
    %c0_10 = arith.constant 0 : index
    %c2 = arith.constant 2 : index
    %7 = vector.load %arg1[%c0_9, %c0_10, %c2] : memref<1x3x2432xbf16, #tpu.memory_space<vmem>>, vector<1x3x2304xbf16>
    %8 = vector.shape_cast %7 : vector<1x3x2304xbf16> to vector<3x2304xbf16>
    %c6 = arith.constant 6 : index
    %c0_11 = arith.constant 0 : index
    %9 = vector.load %arg13[%c6, %c0_11] : memref<18x2304xbf16, #tpu.memory_space<vmem>>, vector<3x2304xbf16>
    tpu.vector_store %arg13[%c6, %c0_11], %8 {strides = array<i32>} : memref<18x2304xbf16, #tpu.memory_space<vmem>>, vector<3x2304xbf16>,
    %c0_12 = arith.constant 0 : index
    %c0_13 = arith.constant 0 : index
    %10 = vector.load %arg13[%c0_12, %c0_13] : memref<18x2304xbf16, #tpu.memory_space<vmem>>, vector<9x2048xbf16>
    %c0_14 = arith.constant 0 : index
    %c0_15 = arith.constant 0 : index
    %c0_16 = arith.constant 0 : index
    %11 = vector.load %arg3[%c0_14, %c0_15, %c0_16] : memref<3x16x9xbf16, #tpu.memory_space<vmem>>, vector<1x16x9xbf16>
    %12 = vector.shape_cast %11 : vector<1x16x9xbf16> to vector<16x9xbf16>
    %cst = arith.constant dense<0.000000e+00> : vector<16x2048xf32>
    %13 = tpu.matmul %12, %10, %cst {dimension_numbers = #tpu.dot_dimension_numbers<[1], [0], [0], [1], [0, 0, 1, 1], [], []>} : vector<16x9xbf16>, vector<9x2048xbf16>, vector<16x2048xf32> -> vector<16x2048xf32>
    %c0_17 = arith.constant 0 : index
    %c128 = arith.constant 128 : index
    %14 = vector.load %arg13[%c0_17, %c128] : memref<18x2304xbf16, #tpu.memory_space<vmem>>, vector<9x2048xbf16>
    %c1_18 = arith.constant 1 : index
    %c0_19 = arith.constant 0 : index
    %c0_20 = arith.constant 0 : index
    %15 = vector.load %arg3[%c1_18, %c0_19, %c0_20] : memref<3x16x9xbf16, #tpu.memory_space<vmem>>, vector<1x16x9xbf16>
    %16 = vector.shape_cast %15 : vector<1x16x9xbf16> to vector<16x9xbf16>
    %cst_21 = arith.constant dense<0.000000e+00> : vector<16x2048xf32>
    %17 = tpu.matmul %16, %14, %cst_21 {dimension_numbers = #tpu.dot_dimension_numbers<[1], [0], [0], [1], [0, 0, 1, 1], [], []>} : vector<16x9xbf16>, vector<9x2048xbf16>, vector<16x2048xf32> -> vector<16x2048xf32>
    %18 = arith.addf %13, %17 : vector<16x2048xf32>
    %c0_22 = arith.constant 0 : index
    %c256 = arith.constant 256 : index
    %19 = vector.load %arg13[%c0_22, %c256] : memref<18x2304xbf16, #tpu.memory_space<vmem>>, vector<9x2048xbf16>
    %c2_23 = arith.constant 2 : index
    %c0_24 = arith.constant 0 : index
    %c0_25 = arith.constant 0 : index
    %20 = vector.load %arg3[%c2_23, %c0_24, %c0_25] : memref<3x16x9xbf16, #tpu.memory_space<vmem>>, vector<1x16x9xbf16>
    %21 = vector.shape_cast %20 : vector<1x16x9xbf16> to vector<16x9xbf16>
    %cst_26 = arith.constant dense<0.000000e+00> : vector<16x2048xf32>
    %22 = tpu.matmul %21, %19, %cst_26 {dimension_numbers = #tpu.dot_dimension_numbers<[1], [0], [0], [1], [0, 0, 1, 1], [], []>} : vector<16x9xbf16>, vector<9x2048xbf16>, vector<16x2048xf32> -> vector<16x2048xf32>
    %23 = arith.addf %18, %22 : vector<16x2048xf32>
    %c0_27 = arith.constant 0 : index
    %c0_28 = arith.constant 0 : index
    %24 = vector.load %arg4[%c0_27, %c0_28] : memref<16x1xf32, #tpu.memory_space<vmem>>, vector<16x1xf32>
    %25 = vector.broadcast %24 : vector<16x1xf32> to vector<16x2048xf32>
    %26 = arith.addf %23, %25 : vector<16x2048xf32>
    %cst_29 = arith.constant 0.000000e+00 : f32
    %27 = vector.broadcast %cst_29 : f32 to vector<16x2048xf32>
    %28 = arith.maximumf %26, %27 : vector<16x2048xf32>
    %29 = vector.broadcast %0 : vector<1x2048xf32> to vector<16x2048xf32>
    %30 = arith.mulf %28, %29 : vector<16x2048xf32>
    %31 = arith.truncf %30 : vector<16x2048xf32> to vector<16x2048xbf16>
    %cst_30 = arith.constant 0.000000e+00 : bf16
    %32 = vector.broadcast %cst_30 : bf16 to vector<16x129xbf16>
    %c0_31 = arith.constant 0 : index
    %c0_32 = arith.constant 0 : index
    %33 = vector.load %arg14[%c0_31, %c0_32] : memref<48x2304xbf16, #tpu.memory_space<vmem>>, vector<16x129xbf16>
    tpu.vector_store %arg14[%c0_31, %c0_32], %32 {strides = array<i32>} : memref<48x2304xbf16, #tpu.memory_space<vmem>>, vector<16x129xbf16>,
    %c0_33 = arith.constant 0 : index
    %c129 = arith.constant 129 : index
    %34 = vector.load %arg14[%c0_33, %c129] : memref<48x2304xbf16, #tpu.memory_space<vmem>>, vector<16x2048xbf16>
    tpu.vector_store %arg14[%c0_33, %c129], %31 {strides = array<i32>} : memref<48x2304xbf16, #tpu.memory_space<vmem>>, vector<16x2048xbf16>,
    %cst_34 = arith.constant 0.000000e+00 : bf16
    %35 = vector.broadcast %cst_34 : bf16 to vector<16x127xbf16>
    %c0_35 = arith.constant 0 : index
    %c2177 = arith.constant 2177 : index
    %36 = vector.load %arg14[%c0_35, %c2177] : memref<48x2304xbf16, #tpu.memory_space<vmem>>, vector<16x127xbf16>
    tpu.vector_store %arg14[%c0_35, %c2177], %35 {strides = array<i32>} : memref<48x2304xbf16, #tpu.memory_space<vmem>>, vector<16x127xbf16>,
    %cst_36 = arith.constant 0.000000e+00 : bf16
    %37 = vector.broadcast %cst_36 : bf16 to vector<16x128xbf16>
    %c16 = arith.constant 16 : index
    %c0_37 = arith.constant 0 : index
    %38 = vector.load %arg14[%c16, %c0_37] : memref<48x2304xbf16, #tpu.memory_space<vmem>>, vector<16x128xbf16>
    tpu.vector_store %arg14[%c16, %c0_37], %37 {strides = array<i32>} : memref<48x2304xbf16, #tpu.memory_space<vmem>>, vector<16x128xbf16>,
    %c16_38 = arith.constant 16 : index
    %c128_39 = arith.constant 128 : index
    %39 = vector.load %arg14[%c16_38, %c128_39] : memref<48x2304xbf16, #tpu.memory_space<vmem>>, vector<16x2048xbf16>
    tpu.vector_store %arg14[%c16_38, %c128_39], %31 {strides = array<i32>} : memref<48x2304xbf16, #tpu.memory_space<vmem>>, vector<16x2048xbf16>,
    %cst_40 = arith.constant 0.000000e+00 : bf16
    %40 = vector.broadcast %cst_40 : bf16 to vector<16x128xbf16>
    %c16_41 = arith.constant 16 : index
    %c2176 = arith.constant 2176 : index
    %41 = vector.load %arg14[%c16_41, %c2176] : memref<48x2304xbf16, #tpu.memory_space<vmem>>, vector<16x128xbf16>
    tpu.vector_store %arg14[%c16_41, %c2176], %40 {strides = array<i32>} : memref<48x2304xbf16, #tpu.memory_space<vmem>>, vector<16x128xbf16>,
    %cst_42 = arith.constant 0.000000e+00 : bf16
    %42 = vector.broadcast %cst_42 : bf16 to vector<16x127xbf16>
    %c32 = arith.constant 32 : index
    %c0_43 = arith.constant 0 : index
    %43 = vector.load %arg14[%c32, %c0_43] : memref<48x2304xbf16, #tpu.memory_space<vmem>>, vector<16x127xbf16>
    tpu.vector_store %arg14[%c32, %c0_43], %42 {strides = array<i32>} : memref<48x2304xbf16, #tpu.memory_space<vmem>>, vector<16x127xbf16>,
    %c32_44 = arith.constant 32 : index
    %c127 = arith.constant 127 : index
    %44 = vector.load %arg14[%c32_44, %c127] : memref<48x2304xbf16, #tpu.memory_space<vmem>>, vector<16x2048xbf16>
    tpu.vector_store %arg14[%c32_44, %c127], %31 {strides = array<i32>} : memref<48x2304xbf16, #tpu.memory_space<vmem>>, vector<16x2048xbf16>,
    %cst_45 = arith.constant 0.000000e+00 : bf16
    %45 = vector.broadcast %cst_45 : bf16 to vector<16x129xbf16>
    %c32_46 = arith.constant 32 : index
    %c2175 = arith.constant 2175 : index
    %46 = vector.load %arg14[%c32_46, %c2175] : memref<48x2304xbf16, #tpu.memory_space<vmem>>, vector<16x129xbf16>
    tpu.vector_store %arg14[%c32_46, %c2175], %45 {strides = array<i32>} : memref<48x2304xbf16, #tpu.memory_space<vmem>>, vector<16x129xbf16>,
    %c0_47 = arith.constant 0 : index
    %c0_48 = arith.constant 0 : index
    %47 = vector.load %arg14[%c0_47, %c0_48] : memref<48x2304xbf16, #tpu.memory_space<vmem>>, vector<48x2048xbf16>
    %c0_49 = arith.constant 0 : index
    %c0_50 = arith.constant 0 : index
    %c0_51 = arith.constant 0 : index
    %48 = vector.load %arg5[%c0_49, %c0_50, %c0_51] : memref<3x3x48xbf16, #tpu.memory_space<vmem>>, vector<1x3x48xbf16>
    %49 = vector.shape_cast %48 : vector<1x3x48xbf16> to vector<3x48xbf16>
    %cst_52 = arith.constant dense<0.000000e+00> : vector<3x2048xf32>
    %50 = tpu.matmul %49, %47, %cst_52 {dimension_numbers = #tpu.dot_dimension_numbers<[1], [0], [0], [1], [0, 0, 1, 1], [], []>} : vector<3x48xbf16>, vector<48x2048xbf16>, vector<3x2048xf32> -> vector<3x2048xf32>
    %c0_53 = arith.constant 0 : index
    %c128_54 = arith.constant 128 : index
    %51 = vector.load %arg14[%c0_53, %c128_54] : memref<48x2304xbf16, #tpu.memory_space<vmem>>, vector<48x2048xbf16>
    %c1_55 = arith.constant 1 : index
    %c0_56 = arith.constant 0 : index
    %c0_57 = arith.constant 0 : index
    %52 = vector.load %arg5[%c1_55, %c0_56, %c0_57] : memref<3x3x48xbf16, #tpu.memory_space<vmem>>, vector<1x3x48xbf16>
    %53 = vector.shape_cast %52 : vector<1x3x48xbf16> to vector<3x48xbf16>
    %cst_58 = arith.constant dense<0.000000e+00> : vector<3x2048xf32>
    %54 = tpu.matmul %53, %51, %cst_58 {dimension_numbers = #tpu.dot_dimension_numbers<[1], [0], [0], [1], [0, 0, 1, 1], [], []>} : vector<3x48xbf16>, vector<48x2048xbf16>, vector<3x2048xf32> -> vector<3x2048xf32>
    %55 = arith.addf %50, %54 : vector<3x2048xf32>
    %c0_59 = arith.constant 0 : index
    %c256_60 = arith.constant 256 : index
    %56 = vector.load %arg14[%c0_59, %c256_60] : memref<48x2304xbf16, #tpu.memory_space<vmem>>, vector<48x2048xbf16>
    %c2_61 = arith.constant 2 : index
    %c0_62 = arith.constant 0 : index
    %c0_63 = arith.constant 0 : index
    %57 = vector.load %arg5[%c2_61, %c0_62, %c0_63] : memref<3x3x48xbf16, #tpu.memory_space<vmem>>, vector<1x3x48xbf16>
    %58 = vector.shape_cast %57 : vector<1x3x48xbf16> to vector<3x48xbf16>
    %cst_64 = arith.constant dense<0.000000e+00> : vector<3x2048xf32>
    %59 = tpu.matmul %58, %56, %cst_64 {dimension_numbers = #tpu.dot_dimension_numbers<[1], [0], [0], [1], [0, 0, 1, 1], [], []>} : vector<3x48xbf16>, vector<48x2048xbf16>, vector<3x2048xf32> -> vector<3x2048xf32>
    %60 = arith.addf %55, %59 : vector<3x2048xf32>
    %c0_65 = arith.constant 0 : index
    %c0_66 = arith.constant 0 : index
    %61 = vector.load %arg6[%c0_65, %c0_66] : memref<3x1xf32, #tpu.memory_space<vmem>>, vector<3x1xf32>
    %62 = vector.broadcast %61 : vector<3x1xf32> to vector<3x2048xf32>
    %63 = arith.addf %60, %62 : vector<3x2048xf32>
    %c0_67 = arith.constant 0 : index
    %c0_68 = arith.constant 0 : index
    %c0_69 = arith.constant 0 : index
    %64 = vector.load %arg11[%c0_67, %c0_68, %c0_69] : memref<1x3x2048xf32, #tpu.memory_space<vmem>>, vector<1x3x2048xf32>
    %65 = vector.shape_cast %64 : vector<1x3x2048xf32> to vector<3x2048xf32>
    %66 = vector.shape_cast %63 : vector<3x2048xf32> to vector<1x3x2048xf32>
    tpu.vector_store %arg11[%c0_67, %c0_68, %c0_69], %66 {strides = array<i32>} : memref<1x3x2048xf32, #tpu.memory_space<vmem>>, vector<1x3x2048xf32>,
    %cst_70 = arith.constant dense<0xFF800000> : vector<2048xf32>
    %67 = vector.multi_reduction <maximumf>, %63, %cst_70 [0] : vector<3x2048xf32> to vector<2048xf32>
    %68 = vector.shape_cast %67 : vector<2048xf32> to vector<1x2048xf32>
    %69 = vector.broadcast %68 : vector<1x2048xf32> to vector<3x2048xf32>
    %70 = arith.subf %63, %69 : vector<3x2048xf32>
    %71 = math.exp %70 : vector<3x2048xf32>
    %cst_71 = arith.constant dense<0.000000e+00> : vector<2048xf32>
    %72 = vector.multi_reduction <add>, %71, %cst_71 [0] : vector<3x2048xf32> to vector<2048xf32>
    %73 = vector.shape_cast %72 : vector<2048xf32> to vector<1x2048xf32>
    %74 = vector.broadcast %73 : vector<1x2048xf32> to vector<3x2048xf32>
    %75 = arith.divf %71, %74 : vector<3x2048xf32>
    %76 = vector.broadcast %0 : vector<1x2048xf32> to vector<3x2048xf32>
    %77 = arith.mulf %75, %76 : vector<3x2048xf32>
    %78 = arith.truncf %77 : vector<3x2048xf32> to vector<3x2048xbf16>
    %cst_72 = arith.constant 0.000000e+00 : bf16
    %79 = vector.broadcast %cst_72 : bf16 to vector<3x129xbf16>
    %c9 = arith.constant 9 : index
    %c0_73 = arith.constant 0 : index
    %80 = vector.load %arg13[%c9, %c0_73] : memref<18x2304xbf16, #tpu.memory_space<vmem>>, vector<3x129xbf16>
    tpu.vector_store %arg13[%c9, %c0_73], %79 {strides = array<i32>} : memref<18x2304xbf16, #tpu.memory_space<vmem>>, vector<3x129xbf16>,
    %c9_74 = arith.constant 9 : index
    %c129_75 = arith.constant 129 : index
    %81 = vector.load %arg13[%c9_74, %c129_75] : memref<18x2304xbf16, #tpu.memory_space<vmem>>, vector<3x2048xbf16>
    tpu.vector_store %arg13[%c9_74, %c129_75], %78 {strides = array<i32>} : memref<18x2304xbf16, #tpu.memory_space<vmem>>, vector<3x2048xbf16>,
    %cst_76 = arith.constant 0.000000e+00 : bf16
    %82 = vector.broadcast %cst_76 : bf16 to vector<3x127xbf16>
    %c9_77 = arith.constant 9 : index
    %c2177_78 = arith.constant 2177 : index
    %83 = vector.load %arg13[%c9_77, %c2177_78] : memref<18x2304xbf16, #tpu.memory_space<vmem>>, vector<3x127xbf16>
    tpu.vector_store %arg13[%c9_77, %c2177_78], %82 {strides = array<i32>} : memref<18x2304xbf16, #tpu.memory_space<vmem>>, vector<3x127xbf16>,
    %cst_79 = arith.constant 0.000000e+00 : bf16
    %84 = vector.broadcast %cst_79 : bf16 to vector<3x128xbf16>
    %c12 = arith.constant 12 : index
    %c0_80 = arith.constant 0 : index
    %85 = vector.load %arg13[%c12, %c0_80] : memref<18x2304xbf16, #tpu.memory_space<vmem>>, vector<3x128xbf16>
    tpu.vector_store %arg13[%c12, %c0_80], %84 {strides = array<i32>} : memref<18x2304xbf16, #tpu.memory_space<vmem>>, vector<3x128xbf16>,
    %c12_81 = arith.constant 12 : index
    %c128_82 = arith.constant 128 : index
    %86 = vector.load %arg13[%c12_81, %c128_82] : memref<18x2304xbf16, #tpu.memory_space<vmem>>, vector<3x2048xbf16>
    tpu.vector_store %arg13[%c12_81, %c128_82], %78 {strides = array<i32>} : memref<18x2304xbf16, #tpu.memory_space<vmem>>, vector<3x2048xbf16>,
    %cst_83 = arith.constant 0.000000e+00 : bf16
    %87 = vector.broadcast %cst_83 : bf16 to vector<3x128xbf16>
    %c12_84 = arith.constant 12 : index
    %c2176_85 = arith.constant 2176 : index
    %88 = vector.load %arg13[%c12_84, %c2176_85] : memref<18x2304xbf16, #tpu.memory_space<vmem>>, vector<3x128xbf16>
    tpu.vector_store %arg13[%c12_84, %c2176_85], %87 {strides = array<i32>} : memref<18x2304xbf16, #tpu.memory_space<vmem>>, vector<3x128xbf16>,
    %cst_86 = arith.constant 0.000000e+00 : bf16
    %89 = vector.broadcast %cst_86 : bf16 to vector<3x127xbf16>
    %c15 = arith.constant 15 : index
    %c0_87 = arith.constant 0 : index
    %90 = vector.load %arg13[%c15, %c0_87] : memref<18x2304xbf16, #tpu.memory_space<vmem>>, vector<3x127xbf16>
    tpu.vector_store %arg13[%c15, %c0_87], %89 {strides = array<i32>} : memref<18x2304xbf16, #tpu.memory_space<vmem>>, vector<3x127xbf16>,
    %c15_88 = arith.constant 15 : index
    %c127_89 = arith.constant 127 : index
    %91 = vector.load %arg13[%c15_88, %c127_89] : memref<18x2304xbf16, #tpu.memory_space<vmem>>, vector<3x2048xbf16>
    tpu.vector_store %arg13[%c15_88, %c127_89], %78 {strides = array<i32>} : memref<18x2304xbf16, #tpu.memory_space<vmem>>, vector<3x2048xbf16>,
    %cst_90 = arith.constant 0.000000e+00 : bf16
    %92 = vector.broadcast %cst_90 : bf16 to vector<3x129xbf16>
    %c15_91 = arith.constant 15 : index
    %c2175_92 = arith.constant 2175 : index
    %93 = vector.load %arg13[%c15_91, %c2175_92] : memref<18x2304xbf16, #tpu.memory_space<vmem>>, vector<3x129xbf16>
    tpu.vector_store %arg13[%c15_91, %c2175_92], %92 {strides = array<i32>} : memref<18x2304xbf16, #tpu.memory_space<vmem>>, vector<3x129xbf16>,
    %c0_93 = arith.constant 0 : index
    %c0_94 = arith.constant 0 : index
    %94 = vector.load %arg13[%c0_93, %c0_94] : memref<18x2304xbf16, #tpu.memory_space<vmem>>, vector<18x2048xbf16>
    %c0_95 = arith.constant 0 : index
    %c0_96 = arith.constant 0 : index
    %c0_97 = arith.constant 0 : index
    %95 = vector.load %arg7[%c0_95, %c0_96, %c0_97] : memref<3x16x18xbf16, #tpu.memory_space<vmem>>, vector<1x16x18xbf16>
    %96 = vector.shape_cast %95 : vector<1x16x18xbf16> to vector<16x18xbf16>
    %cst_98 = arith.constant dense<0.000000e+00> : vector<16x2048xf32>
    %97 = tpu.matmul %96, %94, %cst_98 {dimension_numbers = #tpu.dot_dimension_numbers<[1], [0], [0], [1], [0, 0, 1, 1], [], []>} : vector<16x18xbf16>, vector<18x2048xbf16>, vector<16x2048xf32> -> vector<16x2048xf32>
    %c0_99 = arith.constant 0 : index
    %c128_100 = arith.constant 128 : index
    %98 = vector.load %arg13[%c0_99, %c128_100] : memref<18x2304xbf16, #tpu.memory_space<vmem>>, vector<18x2048xbf16>
    %c1_101 = arith.constant 1 : index
    %c0_102 = arith.constant 0 : index
    %c0_103 = arith.constant 0 : index
    %99 = vector.load %arg7[%c1_101, %c0_102, %c0_103] : memref<3x16x18xbf16, #tpu.memory_space<vmem>>, vector<1x16x18xbf16>
    %100 = vector.shape_cast %99 : vector<1x16x18xbf16> to vector<16x18xbf16>
    %cst_104 = arith.constant dense<0.000000e+00> : vector<16x2048xf32>
    %101 = tpu.matmul %100, %98, %cst_104 {dimension_numbers = #tpu.dot_dimension_numbers<[1], [0], [0], [1], [0, 0, 1, 1], [], []>} : vector<16x18xbf16>, vector<18x2048xbf16>, vector<16x2048xf32> -> vector<16x2048xf32>
    %102 = arith.addf %97, %101 : vector<16x2048xf32>
    %c0_105 = arith.constant 0 : index
    %c256_106 = arith.constant 256 : index
    %103 = vector.load %arg13[%c0_105, %c256_106] : memref<18x2304xbf16, #tpu.memory_space<vmem>>, vector<18x2048xbf16>
    %c2_107 = arith.constant 2 : index
    %c0_108 = arith.constant 0 : index
    %c0_109 = arith.constant 0 : index
    %104 = vector.load %arg7[%c2_107, %c0_108, %c0_109] : memref<3x16x18xbf16, #tpu.memory_space<vmem>>, vector<1x16x18xbf16>
    %105 = vector.shape_cast %104 : vector<1x16x18xbf16> to vector<16x18xbf16>
    %cst_110 = arith.constant dense<0.000000e+00> : vector<16x2048xf32>
    %106 = tpu.matmul %105, %103, %cst_110 {dimension_numbers = #tpu.dot_dimension_numbers<[1], [0], [0], [1], [0, 0, 1, 1], [], []>} : vector<16x18xbf16>, vector<18x2048xbf16>, vector<16x2048xf32> -> vector<16x2048xf32>
    %107 = arith.addf %102, %106 : vector<16x2048xf32>
    %c0_111 = arith.constant 0 : index
    %c0_112 = arith.constant 0 : index
    %108 = vector.load %arg8[%c0_111, %c0_112] : memref<16x1xf32, #tpu.memory_space<vmem>>, vector<16x1xf32>
    %109 = vector.broadcast %108 : vector<16x1xf32> to vector<16x2048xf32>
    %110 = arith.addf %107, %109 : vector<16x2048xf32>
    %cst_113 = arith.constant 0.000000e+00 : f32
    %111 = vector.broadcast %cst_113 : f32 to vector<16x2048xf32>
    %112 = arith.maximumf %110, %111 : vector<16x2048xf32>
    %113 = vector.broadcast %0 : vector<1x2048xf32> to vector<16x2048xf32>
    %114 = arith.mulf %112, %113 : vector<16x2048xf32>
    %115 = arith.truncf %114 : vector<16x2048xf32> to vector<16x2048xbf16>
    %cst_114 = arith.constant 0.000000e+00 : bf16
    %116 = vector.broadcast %cst_114 : bf16 to vector<16x129xbf16>
    %c0_115 = arith.constant 0 : index
    %c0_116 = arith.constant 0 : index
    %117 = vector.load %arg15[%c0_115, %c0_116] : memref<48x2304xbf16, #tpu.memory_space<vmem>>, vector<16x129xbf16>
    tpu.vector_store %arg15[%c0_115, %c0_116], %116 {strides = array<i32>} : memref<48x2304xbf16, #tpu.memory_space<vmem>>, vector<16x129xbf16>,
    %c0_117 = arith.constant 0 : index
    %c129_118 = arith.constant 129 : index
    %118 = vector.load %arg15[%c0_117, %c129_118] : memref<48x2304xbf16, #tpu.memory_space<vmem>>, vector<16x2048xbf16>
    tpu.vector_store %arg15[%c0_117, %c129_118], %115 {strides = array<i32>} : memref<48x2304xbf16, #tpu.memory_space<vmem>>, vector<16x2048xbf16>,
    %cst_119 = arith.constant 0.000000e+00 : bf16
    %119 = vector.broadcast %cst_119 : bf16 to vector<16x127xbf16>
    %c0_120 = arith.constant 0 : index
    %c2177_121 = arith.constant 2177 : index
    %120 = vector.load %arg15[%c0_120, %c2177_121] : memref<48x2304xbf16, #tpu.memory_space<vmem>>, vector<16x127xbf16>
    tpu.vector_store %arg15[%c0_120, %c2177_121], %119 {strides = array<i32>} : memref<48x2304xbf16, #tpu.memory_space<vmem>>, vector<16x127xbf16>,
    %cst_122 = arith.constant 0.000000e+00 : bf16
    %121 = vector.broadcast %cst_122 : bf16 to vector<16x128xbf16>
    %c16_123 = arith.constant 16 : index
    %c0_124 = arith.constant 0 : index
    %122 = vector.load %arg15[%c16_123, %c0_124] : memref<48x2304xbf16, #tpu.memory_space<vmem>>, vector<16x128xbf16>
    tpu.vector_store %arg15[%c16_123, %c0_124], %121 {strides = array<i32>} : memref<48x2304xbf16, #tpu.memory_space<vmem>>, vector<16x128xbf16>,
    %c16_125 = arith.constant 16 : index
    %c128_126 = arith.constant 128 : index
    %123 = vector.load %arg15[%c16_125, %c128_126] : memref<48x2304xbf16, #tpu.memory_space<vmem>>, vector<16x2048xbf16>
    tpu.vector_store %arg15[%c16_125, %c128_126], %115 {strides = array<i32>} : memref<48x2304xbf16, #tpu.memory_space<vmem>>, vector<16x2048xbf16>,
    %cst_127 = arith.constant 0.000000e+00 : bf16
    %124 = vector.broadcast %cst_127 : bf16 to vector<16x128xbf16>
    %c16_128 = arith.constant 16 : index
    %c2176_129 = arith.constant 2176 : index
    %125 = vector.load %arg15[%c16_128, %c2176_129] : memref<48x2304xbf16, #tpu.memory_space<vmem>>, vector<16x128xbf16>
    tpu.vector_store %arg15[%c16_128, %c2176_129], %124 {strides = array<i32>} : memref<48x2304xbf16, #tpu.memory_space<vmem>>, vector<16x128xbf16>,
    %cst_130 = arith.constant 0.000000e+00 : bf16
    %126 = vector.broadcast %cst_130 : bf16 to vector<16x127xbf16>
    %c32_131 = arith.constant 32 : index
    %c0_132 = arith.constant 0 : index
    %127 = vector.load %arg15[%c32_131, %c0_132] : memref<48x2304xbf16, #tpu.memory_space<vmem>>, vector<16x127xbf16>
    tpu.vector_store %arg15[%c32_131, %c0_132], %126 {strides = array<i32>} : memref<48x2304xbf16, #tpu.memory_space<vmem>>, vector<16x127xbf16>,
    %c32_133 = arith.constant 32 : index
    %c127_134 = arith.constant 127 : index
    %128 = vector.load %arg15[%c32_133, %c127_134] : memref<48x2304xbf16, #tpu.memory_space<vmem>>, vector<16x2048xbf16>
    tpu.vector_store %arg15[%c32_133, %c127_134], %115 {strides = array<i32>} : memref<48x2304xbf16, #tpu.memory_space<vmem>>, vector<16x2048xbf16>,
    %cst_135 = arith.constant 0.000000e+00 : bf16
    %129 = vector.broadcast %cst_135 : bf16 to vector<16x129xbf16>
    %c32_136 = arith.constant 32 : index
    %c2175_137 = arith.constant 2175 : index
    %130 = vector.load %arg15[%c32_136, %c2175_137] : memref<48x2304xbf16, #tpu.memory_space<vmem>>, vector<16x129xbf16>
    tpu.vector_store %arg15[%c32_136, %c2175_137], %129 {strides = array<i32>} : memref<48x2304xbf16, #tpu.memory_space<vmem>>, vector<16x129xbf16>,
    %c0_138 = arith.constant 0 : index
    %c0_139 = arith.constant 0 : index
    %131 = vector.load %arg15[%c0_138, %c0_139] : memref<48x2304xbf16, #tpu.memory_space<vmem>>, vector<48x2048xbf16>
    %c0_140 = arith.constant 0 : index
    %c0_141 = arith.constant 0 : index
    %c0_142 = arith.constant 0 : index
    %132 = vector.load %arg9[%c0_140, %c0_141, %c0_142] : memref<3x1x48xbf16, #tpu.memory_space<vmem>>, vector<1x1x48xbf16>
    %133 = vector.shape_cast %132 : vector<1x1x48xbf16> to vector<1x48xbf16>
    %cst_143 = arith.constant dense<0.000000e+00> : vector<1x2048xf32>
    %134 = tpu.matmul %133, %131, %cst_143 {dimension_numbers = #tpu.dot_dimension_numbers<[1], [0], [0], [1], [0, 0, 1, 1], [], []>} : vector<1x48xbf16>, vector<48x2048xbf16>, vector<1x2048xf32> -> vector<1x2048xf32>
    %c0_144 = arith.constant 0 : index
    %c128_145 = arith.constant 128 : index
    %135 = vector.load %arg15[%c0_144, %c128_145] : memref<48x2304xbf16, #tpu.memory_space<vmem>>, vector<48x2048xbf16>
    %c1_146 = arith.constant 1 : index
    %c0_147 = arith.constant 0 : index
    %c0_148 = arith.constant 0 : index
    %136 = vector.load %arg9[%c1_146, %c0_147, %c0_148] : memref<3x1x48xbf16, #tpu.memory_space<vmem>>, vector<1x1x48xbf16>
    %137 = vector.shape_cast %136 : vector<1x1x48xbf16> to vector<1x48xbf16>
    %cst_149 = arith.constant dense<0.000000e+00> : vector<1x2048xf32>
    %138 = tpu.matmul %137, %135, %cst_149 {dimension_numbers = #tpu.dot_dimension_numbers<[1], [0], [0], [1], [0, 0, 1, 1], [], []>} : vector<1x48xbf16>, vector<48x2048xbf16>, vector<1x2048xf32> -> vector<1x2048xf32>
    %139 = arith.addf %134, %138 : vector<1x2048xf32>
    %c0_150 = arith.constant 0 : index
    %c256_151 = arith.constant 256 : index
    %140 = vector.load %arg15[%c0_150, %c256_151] : memref<48x2304xbf16, #tpu.memory_space<vmem>>, vector<48x2048xbf16>
    %c2_152 = arith.constant 2 : index
    %c0_153 = arith.constant 0 : index
    %c0_154 = arith.constant 0 : index
    %141 = vector.load %arg9[%c2_152, %c0_153, %c0_154] : memref<3x1x48xbf16, #tpu.memory_space<vmem>>, vector<1x1x48xbf16>
    %142 = vector.shape_cast %141 : vector<1x1x48xbf16> to vector<1x48xbf16>
    %cst_155 = arith.constant dense<0.000000e+00> : vector<1x2048xf32>
    %143 = tpu.matmul %142, %140, %cst_155 {dimension_numbers = #tpu.dot_dimension_numbers<[1], [0], [0], [1], [0, 0, 1, 1], [], []>} : vector<1x48xbf16>, vector<48x2048xbf16>, vector<1x2048xf32> -> vector<1x2048xf32>
    %144 = arith.addf %139, %143 : vector<1x2048xf32>
    %c0_156 = arith.constant 0 : index
    %c0_157 = arith.constant 0 : index
    %145 = vector.load %arg10[%c0_156, %c0_157] : memref<1x1xf32, #tpu.memory_space<vmem>>, vector<1x1xf32>
    %146 = vector.broadcast %145 : vector<1x1xf32> to vector<1x2048xf32>
    %147 = arith.addf %144, %146 : vector<1x2048xf32>
    %148 = vector.extract_strided_slice %75 {offsets = [2, 0], sizes = [1, 2048], strides = [1, 1]} : vector<3x2048xf32> to vector<1x2048xf32>
    %149 = vector.extract_strided_slice %75 {offsets = [1, 0], sizes = [1, 2048], strides = [1, 1]} : vector<3x2048xf32> to vector<1x2048xf32>
    %150 = arith.mulf %149, %147 : vector<1x2048xf32>
    %151 = arith.addf %148, %150 : vector<1x2048xf32>
    %c0_158 = arith.constant 0 : index
    %c0_159 = arith.constant 0 : index
    %c0_160 = arith.constant 0 : index
    %152 = vector.load %arg12[%c0_158, %c0_159, %c0_160] : memref<1x1x2048xf32, #tpu.memory_space<vmem>>, vector<1x1x2048xf32>
    %153 = vector.shape_cast %152 : vector<1x1x2048xf32> to vector<1x2048xf32>
    %154 = vector.shape_cast %151 : vector<1x2048xf32> to vector<1x1x2048xf32>
    tpu.vector_store %arg12[%c0_158, %c0_159, %c0_160], %154 {strides = array<i32>} : memref<1x1x2048xf32, #tpu.memory_space<vmem>>, vector<1x1x2048xf32>,
    return
  }
  func.func @transform_0(%arg0: i32) -> (i32, i32, i32) {
    %c0_i32 = arith.constant 0 : i32
    %c0_i32_0 = arith.constant 0 : i32
    %c0_i32_1 = arith.constant 0 : i32
    return %arg0, %c0_i32, %c0_i32_0 : i32, i32, i32
  }
  func.func @transform_1(%arg0: i32) -> (i32, i32) {
    %c0_i32 = arith.constant 0 : i32
    %c0_i32_0 = arith.constant 0 : i32
    %c0_i32_1 = arith.constant 0 : i32
    return %c0_i32, %c0_i32_0 : i32, i32
  }
  func.func @transform_2(%arg0: i32) -> (i32, i32, i32) {
    %c0_i32 = arith.constant 0 : i32
    %c0_i32_0 = arith.constant 0 : i32
    %c0_i32_1 = arith.constant 0 : i32
    %c0_i32_2 = arith.constant 0 : i32
    return %c0_i32, %c0_i32_0, %c0_i32_1 : i32, i32, i32
  }
  func.func @transform_3(%arg0: i32) -> (i32, i32) {
    %c0_i32 = arith.constant 0 : i32
    %c0_i32_0 = arith.constant 0 : i32
    %c0_i32_1 = arith.constant 0 : i32
    return %c0_i32, %c0_i32_0 : i32, i32
  }
  func.func @transform_4(%arg0: i32) -> (i32, i32, i32) {
    %c0_i32 = arith.constant 0 : i32
    %c0_i32_0 = arith.constant 0 : i32
    %c0_i32_1 = arith.constant 0 : i32
    %c0_i32_2 = arith.constant 0 : i32
    return %c0_i32, %c0_i32_0, %c0_i32_1 : i32, i32, i32
  }
  func.func @transform_5(%arg0: i32) -> (i32, i32) {
    %c0_i32 = arith.constant 0 : i32
    %c0_i32_0 = arith.constant 0 : i32
    %c0_i32_1 = arith.constant 0 : i32
    return %c0_i32, %c0_i32_0 : i32, i32
  }
  func.func @transform_6(%arg0: i32) -> (i32, i32, i32) {
    %c0_i32 = arith.constant 0 : i32
    %c0_i32_0 = arith.constant 0 : i32
    %c0_i32_1 = arith.constant 0 : i32
    %c0_i32_2 = arith.constant 0 : i32
    return %c0_i32, %c0_i32_0, %c0_i32_1 : i32, i32, i32
  }
  func.func @transform_7(%arg0: i32) -> (i32, i32) {
    %c0_i32 = arith.constant 0 : i32
    %c0_i32_0 = arith.constant 0 : i32
    %c0_i32_1 = arith.constant 0 : i32
    return %c0_i32, %c0_i32_0 : i32, i32
  }
  func.func @transform_8(%arg0: i32) -> (i32, i32, i32) {
    %c0_i32 = arith.constant 0 : i32
    %c0_i32_0 = arith.constant 0 : i32
    %c0_i32_1 = arith.constant 0 : i32
    %c0_i32_2 = arith.constant 0 : i32
    return %c0_i32, %c0_i32_0, %c0_i32_1 : i32, i32, i32
  }
  func.func @transform_9(%arg0: i32) -> (i32, i32) {
    %c0_i32 = arith.constant 0 : i32
    %c0_i32_0 = arith.constant 0 : i32
    %c0_i32_1 = arith.constant 0 : i32
    return %c0_i32, %c0_i32_0 : i32, i32
  }
  func.func @transform_10(%arg0: i32) -> (i32, i32, i32) {
    %c0_i32 = arith.constant 0 : i32
    %c0_i32_0 = arith.constant 0 : i32
    %c0_i32_1 = arith.constant 0 : i32
    return %arg0, %c0_i32, %c0_i32_0 : i32, i32, i32
  }
  func.func @transform_11(%arg0: i32) -> (i32, i32, i32) {
    %c0_i32 = arith.constant 0 : i32
    %c0_i32_0 = arith.constant 0 : i32
    %c0_i32_1 = arith.constant 0 : i32
    return %arg0, %c0_i32, %c0_i32_0 : i32, i32, i32
  }
}

</mosaic_0001>

<bundles_post_ra>
// kernel: net_f_forward.1
= control target key start
LH: loop header
LB: loop body
LE: loop exit
PB: predicated region body
PF: predicated region fallthrough
CT: control target
= control target key end

     0   :  { %s14094_s0 = inlined_call_operand.vmem [shape: bf16[2,3,2432], index: 0, kind: input, shape index: {}]   ;;  %s14095_s1 = inlined_call_operand.vmem [shape: f32[1,2048], index: 1, kind: input, shape index: {}]   ;;  %s14096_s2 = inlined_call_operand.vmem [shape: bf16[3,16,9], index: 2, kind: input, shape index: {}]   ;;  %s14097_s3 = inlined_call_operand.vmem [shape: f32[16,1], index: 3, kind: input, shape index: {}]   ;;  %s14098_s4 = inlined_call_operand.vmem [shape: bf16[3,3,48], index: 4, kind: input, shape index: {}]   ;;  %s14099_s5 = inlined_call_operand.vmem [shape: f32[3,1], index: 5, kind: input, shape index: {}]   ;;  %s14100_s6 = inlined_call_operand.vmem [shape: bf16[3,16,18], index: 6, kind: input, shape index: {}]   ;;  %s14101_s7 = inlined_call_operand.vmem [shape: f32[16,1], index: 7, kind: input, shape index: {}]   ;;  %s14102_s8 = inlined_call_operand.vmem [shape: bf16[3,1,48], index: 8, kind: input, shape index: {}]   ;;  %s14103_s9 = inlined_call_operand.<no memory space> [shape: f32[1,1], index: 9, kind: input, shape index: {}]   ;;  %s14104_s10 = inlined_call_operand.vmem [shape: f32[2,3,2048], index: 10, kind: output, shape index: {0}]   ;;  %s14105_s11 = inlined_call_operand.hbm [shape: f32[2,1,2048], index: 11, kind: output, shape index: {1}]  }
   0x1   :  { %14187 = sst [smem:[#allocation54_spill]] %s14094_s0  ;;  %v17_v0 = vstv %s14103_s9 }
   0x2   :  { %18 = vst [vmem:[#allocation5] sm:$0x1] %v17_v0 }
   0x3   :  { %19 = vsyncpa [#allocation7], 0 }
   0x4   :  { %21 = vsyncpa [#allocation7 + $0x1], 0  ;;  %s10917_s19 = smov 0   ;;  %s10919_s20 = smov 0  }
   0x5   :  { %s10921_s21 = smov 0   ;;  %s10923_s22 = smov 0  }
   0x6 LB: > { %s10938_s9 = sadd.s32 4294967295, %s10847_s22   ;;  %s8496_s23 = sadd.s32 4294967294, %s10847_s22   ;;  %s10847_s22 = sphi %s10923_s22, %s14630_s22   ;;  %s10843_s21 = sphi %s10921_s21, %s14629_s21   ;;  %s10839_s20 = sphi %s10919_s20, %s14628_s20   ;;  %s10835_s19 = sphi %s10917_s19, %s14627_s19  }
   0x7   : > { %s10942_s24 = sadd.s32 1, %s10847_s22   ;;  %s275_s25 = sadd.s32 1, %s10843_s21 }
   0x8   : > { %s272_s26 = ssub.s32 %s10847_s22, %s10942_s24  ;;  %p285_p0 = scmp.ne.s32.totalorder %s10843_s21, %s10839_s20 }
   0x9   : > { %p273_p1 = scmp.eq.s32.totalorder %s272_s26, 0  ;;  %p286_p2 = scmp.eq.s32.totalorder %s10938_s9, 1 }
   0xa   : > { %p291_p3 = scmp.ne.s32.totalorder %s10839_s20, %s10835_s19  ;;  %p292_p4 = scmp.eq.s32.totalorder %s8496_s23, 1 }
   0xb   : > { %s10953_s27 = scalar_select %p273_p1, %s10843_s21, %s275_s25  }
   0xc   : > { %p10955_p5 = por %p286_p2, %p285_p0  ;;  %p10959_p6 = por %p292_p4, %p291_p3 }
   0xd   : > { %p8499_p7 = scmp.ge.s32.totalorder %s10847_s22, 1  ;;  %p345_p8 = scmp.lt.s32.totalorder %s10847_s22, 3 }
   0xf   : > { %p346_p9 = pnand %p8499_p7, %p345_p8 }
  0x11   : > { %349 = sbr.rel (%p346_p9) target bundleno = 1989 (0x7c5), region = 60 }
  0x16   : > { %p390_p10 = scmp.lt.s32.totalorder %s10938_s9, 1  ;;  %s14190_s0 = sld [smem:[#allocation54_spill]]  ;;  %vm439_vm0 = vcmask 1041408   ;;  %vm440_vm1 = vsmask.f32 1280  ;;  %vm14142_vm2 = vcmask 1045508  }
  0x17   : > { %s10849_s16 = smov 127   ;;  %s10850_s17 = smov 126   ;;  %vm443_vm3 = vsmask.f32 5376  ;;  %vm441_vm4 = vmand %vm439_vm0, %vm440_vm1  ;;  %vm14128_vm7 = vcmask 1040384   ;;  %vm14134_vm9 = vcmask 1044484  }
  0x18   : > { %s10967_s30 = scalar_select %p390_p10, %s10938_s9, 1  ;;  %vm444_vm5 = vmand %vm14142_vm2, %vm443_vm3  ;;  %vm847_vm8 = vsmask.f32 256  ;;  %vm850_vm10 = vsmask.f32 4352  ;;  %vm14144_vm13 = vcmask 1043456  }
  0x19   : > { %vm11044_vm6 = vmor %vm444_vm5, %vm441_vm4  ;;  %vm783_vm14 = vcmask 1031168   ;;  %vm630_vm1 = vcmask 1042433   ;;  %vm631_vm3 = vsmask.f32 7942  ;;  %vm633_vm4 = vcmask 1046533   ;;  %s10853_s26 = smov 1  }
  0x1a   : > { %s10663_s12 = smul.u32 38, %s10967_s30  ;;  %vm848_vm11 = vmand %vm14128_vm7, %vm847_vm8  ;;  %vm634_vm5 = vsmask.f32 7958  ;;  %s10272_s14 = sshll.u32 %s10967_s30, 6 }
  0x1b   : > { %vm851_vm12 = vmand %vm14134_vm9, %vm850_vm10  ;;  %s12147_s18 = scalar_lea.vmem %s14104_s10, %s10272_s14  ;;  %s387_s14 = sand.u32 1, %s10839_s20  }
  0x1c   : > { %s10973_s15 = scalar_lea.vmem %s14190_s0, %s10663_s12  ;;  %vm11065_vm15 = vmor %vm851_vm12, %vm848_vm11  ;;  %vm14145_vm11 = vcmask 1039360   ;;  %s8394_s12 = scalar_lea.sflag [#allocation7], %s387_s14 }
  0x1d   : > { %v403_v1 = vld [vmem:[%s10973_s15] sm:$0xff]  ;;  %v404_v2 = vld [vmem:[%s10973_s15 + $0x8] sm:$0xff]  ;;  %v405_v4 = vld [vmem:[%s10973_s15 + $0x10] sm:$0xff]  ;;  %s10805_s30 = scalar_lea.hbm %s14105_s11, 32 }
  0x1e   : > { %409 = vst [vmem:[#allocation1] ss:$2 sm:$0xff] %v403_v1  ;;  %v407_v3 = vld [vmem:[%s10973_s15 + $0x20] sm:$0xf]  ;;  %v406_v22 = vld [vmem:[%s10973_s15 + $0x18] sm:$0xff]  ;;  %vm632_vm8 = vmand %vm630_vm1, %vm631_vm3  ;;  %vm991_vm1 = vcmask 1044480  }
  0x1f   : > { %412 = vst [vmem:[#allocation1 + $0x10] ss:$2 sm:$0xff] %v404_v2  ;;  %v477_v18 = vld [vmem:[%s10973_s15 + $0x20] sm:$0x3f]  ;;  %vm635_vm10 = vmand %vm633_vm4, %vm634_vm5  ;;  %vm14133_vm3 = vsmask.f32 7938 }
  0x20   : > { %415 = vst [vmem:[#allocation1 + $0x20] ss:$2 sm:$0xff] %v405_v4  ;;  %v668_v42 = vld [vmem:[%s10973_s15 + $0x20] sm:$0x3f]  ;;  %vm11088_vm12 = vmor %vm635_vm10, %vm632_vm8  ;;  %vm4573_vm4 = vcmask 5124   ;;  %vm986_vm10 = vcmask 72704  }
  0x21   : > { %418 = vst [vmem:[#allocation1 + $0x30] ss:$2 sm:$0xff] %v406_v22  ;;  %vm14143_vm5 = vsmask.f32 7954  ;;  %vm11140_vm8 = vmand %vm439_vm0, %vm14133_vm3  ;;  %s8500_s15 = sshll.u32 %s387_s14, 4 }
  0x25   : > { %v10979_v5 = vld.sshfl [vmem:[#allocation1] sm:$0xff pattern:$0x75643120]  ;;  %v10981_v6 = vld.sshfl [vmem:[#allocation1 + $0x8] sm:$0xff pattern:$0x75643120] }
  0x26   : > { %428 = vst [vmem:[#allocation1] ss:$2 sm:$0xff] %v407_v3  ;;  %v10983_v7 = vld.sshfl [vmem:[#allocation1 + $0x10] sm:$0xff pattern:$0x75643120] }
  0x27   : > { %v10985_v8 = vld.sshfl [vmem:[#allocation1 + $0x18] sm:$0xff pattern:$0x75643120]  ;;  %v10987_v9 = vld.sshfl [vmem:[#allocation1 + $0x20] sm:$0xff pattern:$0x75643120] }
  0x28   : > { %482 = vst [vmem:[#allocation1 + $0x10] ss:$2 sm:$0xff] %v404_v2  ;;  %v10989_v10 = vld.sshfl [vmem:[#allocation1 + $0x28] sm:$0xff pattern:$0x75643120] }
  0x29   : > { %485 = vst [vmem:[#allocation1 + $0x20] ss:$2 sm:$0xff] %v405_v4  ;;  %v11004_v39 = vld.sshfl [vmem:[#allocation1 + $0x30] sm:$0xff pattern:$0x75643120] }
  0x2a   : > { %v11006_v40 = vld.sshfl [vmem:[#allocation1 + $0x38] sm:$0xff pattern:$0x75643120] }
  0x2b   : > { %488 = vst [vmem:[#allocation1 + $0x30] ss:$2 sm:$0xff] %v406_v22 }
  0x2d   : > { %v10991_v11 = vld.sshfl [vmem:[#allocation1] sm:$0xff pattern:$0x75643120] }
  0x2e   : > { %479 = vst [vmem:[#allocation1] ss:$2 sm:$0xff] %v403_v1 }
  0x2f   : > { %v491_v12 = vld.sshfl [vmem:[#allocation1 + $0x10] sm:$0xff pattern:$0x75643120]  ;;  %v492_v13 = vld.sshfl [vmem:[#allocation1 + $0x18] sm:$0xff pattern:$0x75643120] }
  0x30   : > { %v515_v14 = vshrl.u32 %v491_v12, 16  ;;  %v518_v15 = vshll.u32 %v491_v12, 16  ;;  %673 = vst [vmem:[#allocation1 + $0x10] ss:$2 sm:$0xff] %v404_v2  ;;  %v522_v49 = vshrl.u32 %v492_v13, 16  ;;  %v525_v50 = vshll.u32 %v492_v13, 16 }
  0x31   : > { %v493_v19 = vld.sshfl [vmem:[#allocation1 + $0x20] sm:$0xff pattern:$0x75643120]  ;;  %v10994_v20 = vld.sshfl [vmem:[#allocation1 + $0x28] sm:$0xff pattern:$0x75643120] }
  0x32   : > { %v517_v16 = vrot.slane %v515_v14, 6  ;;  %v520_v17 = vrot.slane %v518_v15, 7  ;;  %676 = vst [vmem:[#allocation1 + $0x20] ss:$2 sm:$0xff] %v405_v4  ;;  %v524_v53 = vrot.slane %v522_v49, 6  ;;  %v527_v54 = vrot.slane %v525_v50, 7 }
  0x33   : > { %v495_v46 = vld.sshfl [vmem:[#allocation1 + $0x30] sm:$0xff pattern:$0x75643120]  ;;  %v496_v47 = vld.sshfl [vmem:[#allocation1 + $0x38] sm:$0xff pattern:$0x75643120] }
  0x34   : > { %v521_v21 = vor.u32 %v520_v17, %v517_v16  ;;  %679 = vst [vmem:[#allocation1 + $0x30] ss:$2 sm:$0xff] %v406_v22  ;;  %v528_v56 = vor.u32 %v527_v54, %v524_v53  ;;  %v529_v58 = vshrl.u32 %v493_v19, 16  ;;  %v532_v59 = vshll.u32 %v493_v19, 16  ;;  %v449_v53 = vld [vmem:[#allocation2 + $0x8] sm:$0x33] }
  0x35   : > { %v489_v23 = vld.sshfl [vmem:[#allocation1] sm:$0xff pattern:$0x75643120]  ;;  %v490_v24 = vld.sshfl [vmem:[#allocation1 + $0x8] sm:$0xff pattern:$0x75643120] }
  0x36   : > { %v501_v25 = vshrl.u32 %v489_v23, 16  ;;  %v504_v26 = vshll.u32 %v489_v23, 16  ;;  %575 = vrot.lane.b32.xlu1 %v521_v21, %s10849_s16  ;;  %498 = vst [vmem:[#allocation1] ss:$2 sm:$0xff] %v477_v18  ;;  %v508_v30 = vshrl.u32 %v490_v24, 16  ;;  %v511_v31 = vshll.u32 %v490_v24, 16 }
  0x37   : > { %v684_v27 = vld.sshfl [vmem:[#allocation1 + $0x10] sm:$0xff pattern:$0x75643120]  ;;  %v686_v55 = vld.sshfl [vmem:[#allocation1 + $0x18] sm:$0xff pattern:$0x75643120] }
  0x38   : > { %v503_v28 = vrot.slane %v501_v25, 6  ;;  %v506_v29 = vrot.slane %v504_v26, 7  ;;  %v704_v32 = vrot.slane %v684_v27, 5  ;;  %v510_v35 = vrot.slane %v508_v30, 6 }
  0x39   : > { %v513_v36 = vrot.slane %v511_v31, 7  ;;  %v705_v57 = vrot.slane %v686_v55, 5  ;;  %v531_v61 = vrot.slane %v529_v58, 6  ;;  %v534_v62 = vrot.slane %v532_v59, 7  ;;  %v452_v58 = vld [vmem:[#allocation2 + $0x10] sm:$0x33] }
  0x3a   : > { %v507_v33 = vor.u32 %v506_v29, %v503_v28  ;;  %v714_v34 = vrot.slane %v704_v32, 4  ;;  %v688_v63 = vld.sshfl [vmem:[#allocation1 + $0x20] sm:$0xff pattern:$0x75643120]  ;;  %v536_v2 = vshrl.u32 %v10994_v20, 16  ;;  %v539_v3 = vshll.u32 %v10994_v20, 16 }
  0x3b   : > { %v514_v41 = vor.u32 %v513_v36, %v510_v35  ;;  %v715_v60 = vrot.slane %v705_v57, 4  ;;  %v535_v0 = vor.u32 %v534_v62, %v531_v61  ;;  %v690_v14 = vld.sshfl [vmem:[#allocation1 + $0x28] sm:$0xff pattern:$0x75643120]  ;;  %v543_v17 = vshrl.u32 %v495_v46, 16 }
  0x3c   : > { %571 = vrot.lane.b32.xlu0 %v507_v33, %s10849_s16  ;;  %746 = vrot.lane.b32.xlu2 %v714_v34, %s10850_s17  ;;  %v538_v12 = vrot.slane %v536_v2, 6  ;;  %v541_v13 = vrot.slane %v539_v3, 7  ;;  %v707_v16 = vrot.slane %v690_v14, 5  ;;  %v546_v18 = vshll.u32 %v495_v46, 16  ;;  %v856_v62 = vld [vmem:[#allocation2 + $0x50] sm:$0x11] }
  0x3d   : > { %v10999_v37 = vld.sshfl [vmem:[#allocation1] sm:$0xff pattern:$0x75643120]  ;;  %v11001_v38 = vld.sshfl [vmem:[#allocation1 + $0x8] sm:$0xff pattern:$0x75643120] }
  0x3e   : > { %670 = vst [vmem:[#allocation1] ss:$2 sm:$0xff] %v403_v1  ;;  %v706_v1 = vrot.slane %v688_v63, 5  ;;  %v542_v15 = vor.u32 %v541_v13, %v538_v12  ;;  %v717_v19 = vrot.slane %v707_v16, 4  ;;  %v545_v20 = vrot.slane %v543_v17, 6 }
  0x3f   : > { %v548_v21 = vrot.slane %v546_v18, 7  ;;  %v692_v22 = vld.sshfl [vmem:[#allocation1 + $0x30] sm:$0xff pattern:$0x75643120]  ;;  %v550_v25 = vshrl.u32 %v496_v47, 16  ;;  %v553_v26 = vshll.u32 %v496_v47, 16 }
  0x40   : > { %v716_v4 = vrot.slane %v706_v1, 4  ;;  %v708_v24 = vrot.slane %v692_v22, 5  ;;  %v694_v30 = vld.sshfl [vmem:[#allocation1 + $0x38] sm:$0xff pattern:$0x75643120]  ;;  %v557_v33 = vshrl.u32 %v10999_v37, 16 }
  0x41   : > { %v549_v23 = vor.u32 %v548_v21, %v545_v20  ;;  %v552_v28 = vrot.slane %v550_v25, 6  ;;  %v555_v29 = vrot.slane %v553_v26, 7  ;;  %v560_v34 = vshll.u32 %v10999_v37, 16  ;;  %v458_v13 = vld [vmem:[#allocation2 + $0x20] sm:$0x33] }
  0x42   : > { %v718_v27 = vrot.slane %v708_v24, 4  ;;  %v559_v36 = vrot.slane %v557_v33, 6  ;;  %v567_v46 = vshll.u32 %v11001_v38, 16  ;;  %v459_v14 = vsel %vm11044_vm6, %v10987_v9, %v458_v13 }
  0x43   : > { %v556_v31 = vor.u32 %v555_v29, %v552_v28  ;;  %460 = vst [vmem:[#allocation2 + $0x20] sm:$0x33] %v459_v14 }
  0x44   : > { %573 = vrot.lane.b32.xlu0 %v514_v41, %s10849_s16  ;;  %v562_v41 = vrot.slane %v560_v34, 7 }
  0x45   : > { %v682_v43 = vld.sshfl [vmem:[#allocation1 + $0x8] sm:$0xff pattern:$0x75643120]  ;;  %v680_v44 = vld.sshfl [vmem:[#allocation1] sm:$0xff pattern:$0x75643120] }
  0x46   : > { %v703_v45 = vrot.slane %v682_v43, 5  ;;  %697 = vst [vmem:[#allocation1] ss:$2 sm:$0xff] %v668_v42  ;;  %v702_v48 = vrot.slane %v680_v44, 5  ;;  %v563_v43 = vor.u32 %v562_v41, %v559_v36 }
  0x48   : > { %724 = vrot.lane.b32.xlu1 %v703_v45, %s10850_s17  ;;  %v713_v51 = vrot.slane %v703_v45, 4  ;;  %v712_v52 = vrot.slane %v702_v48, 4  ;;  %v564_v45 = vshrl.u32 %v11001_v38, 16  ;;  %v446_v38 = vld [vmem:[#allocation2] sm:$0x33] }
  0x49   : > { %v447_v55 = vsel %vm11044_vm6, %v10979_v5, %v446_v38  ;;  %v453_v5 = vsel %vm11044_vm6, %v10983_v7, %v452_v58  ;;  %v853_v38 = vld [vmem:[#allocation2 + $0x48] sm:$0x11] }
  0x4a   : > { %744 = vrot.lane.b32.xlu2 %v713_v51, %s10850_s17  ;;  %v566_v47 = vrot.slane %v564_v45, 6  ;;  %448 = vst [vmem:[#allocation2] sm:$0x33] %v447_v55 }
  0x4b   : > { %454 = vst [vmem:[#allocation2 + $0x10] sm:$0x33] %v453_v5 }
  0x4c   : > { %722 = vrot.lane.b32.xlu0 %v702_v48, %s10850_s17  ;;  %v569_v48 = vrot.slane %v567_v46, 7 }
  0x4d   : > { %v698_v42 = vld.sshfl [vmem:[#allocation1] sm:$0xff pattern:$0x75643120]  ;;  %v700_v49 = vld.sshfl [vmem:[#allocation1 + $0x8] sm:$0xff pattern:$0x75643120] }
  0x4e   : > { %v710_v44 = vrot.slane %v698_v42, 5  ;;  %v570_v50 = vor.u32 %v569_v48, %v566_v47  ;;  %v711_v51 = vrot.slane %v700_v49, 5  ;;  %v10851_v48 = vmov 65535  }
  0x4f   : > { %v992_v49 = vsel %vm14144_vm13, 4294967295, %v10851_v48 }
  0x50   : > { %742 = vrot.lane.b32.xlu1 %v712_v52, %s10850_s17  ;;  %v720_v37 = vrot.slane %v710_v44, 4  ;;  %v721_v52 = vrot.slane %v711_v51, 4  ;;  %v11119_v58 = vsel %vm991_vm1, %v992_v49, 0  ;;  %vm11151_vm1 = vmand %vm4573_vm4, %vm14143_vm5  ;;  %v862_v49 = vld [vmem:[#allocation2 + $0x60] sm:$0x11]  ;;  %vm2423_vm4 = vcmask 1044472  }
  0x51   : > { %vm4576_vm0 = vmor %vm11151_vm1, %vm11140_vm8  ;;  %vm14124_vm1 = vcmask 1043464  }
  0x52   : > { %726 = vrot.lane.b32.xlu2 %v704_v32, %s10850_s17  ;;  %v709_v32 = vrot.slane %v694_v30, 5  ;;  %v461_v30 = vld [vmem:[#allocation2 + $0x28] sm:$0x33] }
  0x53   : > { %v462_v34 = vsel %vm11044_vm6, %v10989_v10, %v461_v30 }
  0x54   : > { %577 = vrot.lane.b32.xlu0 %v528_v56, %s10849_s16  ;;  %v719_v35 = vrot.slane %v709_v32, 4  ;;  %v450_v56 = vsel %vm11044_vm6, %v10981_v6, %v449_v53  ;;  %463 = vst [vmem:[#allocation2 + $0x28] sm:$0x33] %v462_v34 }
  0x55   : > { %451 = vst [vmem:[#allocation2 + $0x8] sm:$0x33] %v450_v56 }
  0x58   : > { %748 = vrot.lane.b32.xlu1 %v715_v60, %s10850_s17 }
  0x5a   : > { %728 = vrot.lane.b32.xlu2 %v705_v57, %s10850_s17 }
  0x5c   : > { %579 = vrot.lane.b32.xlu0 %v535_v0, %s10849_s16  ;;  %v640_v9 = vld [vmem:[#allocation2 + $0x8] sm:$0x66] }
  0x60   : > { %750 = vrot.lane.b32.xlu1 %v716_v4, %s10850_s17 }
  0x62   : > { %730 = vrot.lane.b32.xlu2 %v706_v1, %s10850_s17  ;;  %v455_v1 = vld [vmem:[#allocation2 + $0x18] sm:$0x33] }
  0x63   : > { %v456_v2 = vsel %vm11044_vm6, %v10985_v8, %v455_v1 }
  0x64   : > { %581 = vrot.lane.b32.xlu0 %v542_v15, %s10849_s16  ;;  %457 = vst [vmem:[#allocation2 + $0x18] sm:$0x33] %v456_v2  ;;  %v643_v2 = vld [vmem:[#allocation2 + $0x10] sm:$0x66] }
  0x68   : > { %752 = vrot.lane.b32.xlu1 %v717_v19, %s10850_s17 }
  0x6a   : > { %732 = vrot.lane.b32.xlu2 %v707_v16, %s10850_s17 }
  0x6c   : > { %583 = vrot.lane.b32.xlu0 %v549_v23, %s10849_s16  ;;  %v637_v23 = vld [vmem:[#allocation2] sm:$0x66] }
  0x70   : > { %754 = vrot.lane.b32.xlu1 %v718_v27, %s10850_s17 }
  0x72   : > { %734 = vrot.lane.b32.xlu2 %v708_v24, %s10850_s17 }
  0x74   : > { %585 = vrot.lane.b32.xlu0 %v556_v31, %s10849_s16 }
  0x78   : > { %756 = vrot.lane.b32.xlu1 %v719_v35, %s10850_s17 }
  0x7a   : > { %736 = vrot.lane.b32.xlu2 %v709_v32, %s10850_s17 }
  0x7c   : > { %587 = vrot.lane.b32.xlu0 %v563_v43, %s10849_s16 }
  0x80   : > { %758 = vrot.lane.b32.xlu1 %v720_v37, %s10850_s17 }
  0x82   : > { %738 = vrot.lane.b32.xlu2 %v710_v44, %s10850_s17 }
  0x84   : > { %589 = vrot.lane.b32.xlu0 %v570_v50, %s10849_s16  ;;  %v464_v50 = vld [vmem:[#allocation2 + $0x30] sm:$0x33] }
  0x88   : > { %760 = vrot.lane.b32.xlu1 %v721_v52, %s10850_s17  ;;  %v465_v52 = vsel %vm11044_vm6, %v11004_v39, %v464_v50 }
  0x89   : > { %466 = vst [vmem:[#allocation2 + $0x30] sm:$0x33] %v465_v52 }
  0x8a   : > { %740 = vrot.lane.b32.xlu2 %v711_v51, %s10850_s17  ;;  %s14040_s17 = scalar_lea.vmem [#allocation6], %s8500_s15 }
  0x8b   : > { %s8409_s23 = sshll.u32 %s14040_s17, 4  ;;  %s8410_s23 = int_to_ptr.vmem [resolvable:$true] %s8409_s23 }
  0x96   : > { %v11054_v57 = vpop.permute.xlu2 %746 }
  0x97   : > { %v774_v59 = vrot.slane %v11054_v57, 4 }
  0xa4   : > { %v11062_v6 = vpop.permute.xlu2 %744 }
  0xa5   : > { %v773_v60 = vrot.slane %v11062_v6, 4 }
  0xa7   : > { %v803_v63 = vsel %vm14144_vm13, %v773_v60, %v774_v59 }
  0xa8   : > { %v804_v7 = vsel %vm783_vm14, %v11062_v6, %v803_v63  ;;  %v11081_v12 = vpop.permute.xlu1 %575 }
  0xa9   : > { %v857_v0 = vsel %vm11065_vm15, %v804_v7, %v856_v62  ;;  %v593_v19 = vrot.slane %v11081_v12, 4 }
  0xaa   : > { %858 = vst [vmem:[#allocation2 + $0x50] sm:$0x11] %v857_v0 }
  0xac   : > { %v727_v3 = vpop.permute.xlu2 %726 }
  0xad   : > { %v764_v16 = vrot.slane %v727_v3, 4 }
  0xae   : > { %v572_v4 = vpop.permute.xlu0 %571 }
  0xaf   : > { %v591_v18 = vrot.slane %v572_v4, 4 }
  0xb1   : > { %v8514_v56 = vld [vmem:[#allocation2 + $0x4c] sm:$0x10]  ;;  %v10299_v1 = vld [vmem:[#allocation2 + $0x50] sm:$0x10] }
  0xb4   : > { %v729_v15 = vpop.permute.xlu2 %728 }
  0xb5   : > { %v765_v8 = vrot.slane %v729_v15, 4 }
  0xb6   : > { %v574_v17 = vpop.permute.xlu0 %573 }
  0xb7   : > { %v592_v20 = vrot.slane %v574_v17, 4  ;;  %v787_v21 = vsel %vm14144_vm13, %v764_v16, %v765_v8 }
  0xb8   : > { %v788_v24 = vsel %vm783_vm14, %v727_v3, %v787_v21 }
  0xb9   : > { %v602_v25 = vsel %vm14144_vm13, %v591_v18, %v592_v20  ;;  %v605_v26 = vsel %vm14144_vm13, %v592_v20, %v593_v19  ;;  %839 = vst [vmem:[#allocation2 + $0x10] sm:$0x88] %v788_v24  ;;  %v11136_v18 = vld [vmem:[%s14096_s2 + $0x8] sm:$0xff]  ;;  %v467_v20 = vld [vmem:[#allocation2 + $0x38] sm:$0x33] }
  0xba   : > { %v604_v27 = vsel %vm14145_vm11, %v572_v4, %v602_v25  ;;  %v606_v28 = vsel %vm14145_vm11, %v574_v17, %v605_v26  ;;  %v725_v29 = vpop.permute.xlu1 %724  ;;  %v859_v24 = vld [vmem:[#allocation2 + $0x58] sm:$0x11] }
  0xbb   : > { %v638_v31 = vsel %vm11088_vm12, %v604_v27, %v637_v23  ;;  %v641_v32 = vsel %vm11088_vm12, %v606_v28, %v640_v9  ;;  %v763_v33 = vrot.slane %v725_v29, 4 }
  0xbc   : > { %639 = vst [vmem:[#allocation2] sm:$0x66] %v638_v31  ;;  %v731_v35 = vpop.permute.xlu2 %730 }
  0xbd   : > { %642 = vst [vmem:[#allocation2 + $0x8] sm:$0x66] %v641_v32  ;;  %v785_v36 = vsel %vm14144_vm13, %v763_v33, %v764_v16  ;;  %v766_v41 = vrot.slane %v731_v35, 4 }
  0xbe   : > { %v786_v42 = vsel %vm783_vm14, %v725_v29, %v785_v36  ;;  %v723_v43 = vpop.permute.xlu0 %722  ;;  %v646_v29 = vld [vmem:[#allocation2 + $0x18] sm:$0x66] }
  0xbf   : > { %838 = vst [vmem:[#allocation2 + $0x8] sm:$0x88] %v786_v42  ;;  %v762_v44 = vrot.slane %v723_v43, 4  ;;  %v789_v45 = vsel %vm14144_vm13, %v765_v8, %v766_v41 }
  0xc0   : > { %v790_v46 = vsel %vm783_vm14, %v729_v15, %v789_v45 }
  0xc1   : > { %v782_v37 = vsel %vm14144_vm13, %v762_v44, %v763_v33  ;;  %840 = vst [vmem:[#allocation2 + $0x18] sm:$0x88] %v790_v46 }
  0xc2   : > { %v784_v10 = vsel %vm783_vm14, %v723_v43, %v782_v37  ;;  %v743_v47 = vpop.permute.xlu1 %742  ;;  %v470_v37 = vld [vmem:[#allocation2 + $0x40] sm:$0x33] }
  0xc3   : > { %837 = vst [vmem:[#allocation2] sm:$0x88] %v784_v10  ;;  %v772_v51 = vrot.slane %v743_v47, 4  ;;  %v471_v48 = vsel %vm11044_vm6, %v10991_v11, %v470_v37 }
  0xc4   : > { %v733_v53 = vpop.permute.xlu2 %732  ;;  %472 = vst [vmem:[#allocation2 + $0x40] sm:$0x33] %v471_v48 }
  0xc5   : > { %v801_v55 = vsel %vm14144_vm13, %v772_v51, %v773_v60  ;;  %v767_v5 = vrot.slane %v733_v53, 4 }
  0xc6   : > { %v802_v62 = vsel %vm783_vm14, %v743_v47, %v801_v55  ;;  %v578_v63 = vpop.permute.xlu0 %577  ;;  %v10290_v7 = vld [vmem:[#allocation2 + $0x8] sm:$0xf]  ;;  %v8520_v0 = vld [vmem:[#allocation2 + $0xc] sm:$0xf] }
  0xc7   : > { %v854_v39 = vsel %vm11065_vm15, %v802_v62, %v853_v38  ;;  %v594_v3 = vrot.slane %v578_v63, 4  ;;  %v8517_v4 = vor.u32 %v10290_v7, %v8514_v56  ;;  %v8521_v6 = vor.u32 %v10299_v1, %v8520_v0  ;;  %v649_v7 = vld [vmem:[#allocation2 + $0x20] sm:$0x66] }
  0xc8   : > { %855 = vst [vmem:[#allocation2 + $0x48] sm:$0x11] %v854_v39  ;;  %v791_v60 = vsel %vm14144_vm13, %v766_v41, %v767_v5 }
  0xc9   : > { %v607_v13 = vsel %vm14144_vm13, %v593_v19, %v594_v3  ;;  %v998_v14 = vand.u32 %v8517_v4, %v11119_v58  ;;  %v1001_v15 = vand.u32 %v8521_v6, %v11119_v58  ;;  %v792_v16 = vsel %vm783_vm14, %v731_v35, %v791_v60 }
  0xca   : > { %v608_v8 = vsel %vm14145_vm11, %v11081_v12, %v607_v13  ;;  %v749_v17 = vpop.permute.xlu1 %748  ;;  %841 = vst [vmem:[#allocation2 + $0x20] sm:$0x88] %v792_v16  ;;  %v14197_v19 = vmov 0  ;;  %v468_v12 = vsel %vm11044_vm6, %v11006_v40, %v467_v20  ;;  %v8512_v30 = vld [vmem:[#allocation2 + $0x4] sm:$0xf]  ;;  %vm14126_vm6 = vcmask 1035264  }
  0xcb   : > { %v14198_v19 = vsel %vm11140_vm8, 4294967295, %v14197_v19  ;;  %v644_v21 = vsel %vm11088_vm12, %v608_v8, %v643_v2  ;;  %v775_v23 = vrot.slane %v749_v17, 4  ;;  %1063 = vmatpush.bf16.msra.mxu1 %v998_v14  ;;  %1077 = vmatpush.bf16.msra.mxu2 %v1001_v15  ;;  %469 = vst [vmem:[#allocation2 + $0x38] sm:$0x33] %v468_v12  ;;  %v865_v15 = vld [vmem:[#allocation2 + $0x68] sm:$0x11] }
  0xcc   : > { %14199 = vst [vmem:[#allocation9_spill] sm:$0xff] %v14198_v19  ;;  %v735_v25 = vpop.permute.xlu2 %734 }
  0xcd   : > { %645 = vst [vmem:[#allocation2 + $0x10] sm:$0x66] %v644_v21  ;;  %v805_v26 = vsel %vm14144_vm13, %v774_v59, %v775_v23  ;;  %v768_v27 = vrot.slane %v735_v25, 4 }
  0xce   : > { %v806_v28 = vsel %vm783_vm14, %v11054_v57, %v805_v26  ;;  %v580_v40 = vpop.permute.xlu0 %579  ;;  %8575 = vmatmul.msk.bf16.vlgmr.msra.gmra.mxu1 %vm986_vm10, %v11136_v18  ;;  %8576 = vmatmul.msk.bf16.vlgmr.msra.gmra.mxu2 %vm986_vm10, %v11136_v18 }
  0xcf   : > { %v860_v59 = vsel %vm11065_vm15, %v806_v28, %v859_v24  ;;  %v595_v31 = vrot.slane %v580_v40, 4  ;;  %v10298_v32 = vld [vmem:[#allocation2 + $0x48] sm:$0x10]  ;;  %v793_v57 = vsel %vm14144_vm13, %v767_v5, %v768_v27  ;;  %v11171_v33 = vld [vmem:[#allocation2 + $0x44] sm:$0x10] }
  0xd0   : > { %861 = vst [vmem:[#allocation2 + $0x58] sm:$0x11] %v860_v59  ;;  %v8513_v34 = vor.u32 %v10298_v32, %v8512_v30  ;;  %v794_v35 = vsel %vm783_vm14, %v733_v53, %v793_v57  ;;  %v11174_v36 = vld [vmem:[#allocation2 + $0x48] sm:$0x10]  ;;  %v652_v28 = vld [vmem:[#allocation2 + $0x28] sm:$0x66] }
  0xd1   : > { %v4577_v41 = vld [vmem:[#allocation2 + $0x48] sm:$0x33]  ;;  %v609_v42 = vsel %vm14144_vm13, %v594_v3, %v595_v31  ;;  %842 = vst [vmem:[#allocation2 + $0x28] sm:$0x88] %v794_v35 }
  0xd2   : > { %v4578_v43 = vsel %vm4576_vm0, 0, %v4577_v41  ;;  %v610_v44 = vsel %vm14145_vm11, %v578_v63, %v609_v42  ;;  %v751_v45 = vpop.permute.xlu1 %750  ;;  %v995_v46 = vand.u32 %v8513_v34, %v11119_v58  ;;  %v868_v42 = vld [vmem:[#allocation2 + $0x70] sm:$0x11]  ;;  %vm14135_vm0 = vcmask 7168  }
  0xd3   : > { %4579 = vst [vmem:[#allocation2 + $0x48] sm:$0x33] %v4578_v43  ;;  %v647_v10 = vsel %vm11088_vm12, %v610_v44, %v646_v29  ;;  %v776_v47 = vrot.slane %v751_v45, 4 }
  0xd4   : > { %648 = vst [vmem:[#allocation2 + $0x18] sm:$0x66] %v647_v10  ;;  %1049 = vmatpush.bf16.msra.mxu0 %v995_v46  ;;  %v737_v50 = vpop.permute.xlu2 %736  ;;  %v10291_v55 = vld [vmem:[#allocation2 + $0x10] sm:$0xf]  ;;  %v8528_v56 = vld [vmem:[#allocation2 + $0x14] sm:$0xf] }
  0xd5   : > { %v807_v51 = vsel %vm14144_vm13, %v775_v23, %v776_v47  ;;  %v769_v52 = vrot.slane %v737_v50, 4 }
  0xd6   : > { %v808_v38 = vsel %vm783_vm14, %v749_v17, %v807_v51  ;;  %v582_v53 = vpop.permute.xlu0 %581 }
  0xd7   : > { %v863_v5 = vsel %vm11065_vm15, %v808_v38, %v862_v49  ;;  %v596_v62 = vrot.slane %v582_v53, 4  ;;  %8574 = vmatmul.msk.bf16.vlgmr.msra.gmra.mxu0 %vm986_vm10, %v11136_v18  ;;  %v8522_v11 = vld [vmem:[#allocation2 + $0x54] sm:$0x10]  ;;  %v10300_v54 = vld [vmem:[#allocation2 + $0x58] sm:$0x10]  ;;  %v795_v63 = vsel %vm14144_vm13, %v768_v27, %v769_v52 }
  0xd8   : > { %864 = vst [vmem:[#allocation2 + $0x60] sm:$0x11] %v863_v5  ;;  %v8525_v0 = vor.u32 %v10291_v55, %v8522_v11  ;;  %v8529_v1 = vor.u32 %v10300_v54, %v8528_v56  ;;  %v796_v39 = vsel %vm783_vm14, %v735_v25, %v795_v63  ;;  %v655_v38 = vld [vmem:[#allocation2 + $0x30] sm:$0x66] }
  0xd9   : > { %v611_v2 = vsel %vm14144_vm13, %v595_v31, %v596_v62  ;;  %843 = vst [vmem:[#allocation2 + $0x30] sm:$0x88] %v796_v39 }
  0xda   : > { %v612_v3 = vsel %vm14145_vm11, %v580_v40, %v611_v2  ;;  %v753_v4 = vpop.permute.xlu1 %752  ;;  %v1004_v6 = vand.u32 %v8525_v0, %v11119_v58  ;;  %v1007_v60 = vand.u32 %v8529_v1, %v11119_v58  ;;  %v871_v1 = vld [vmem:[#allocation2 + $0x78] sm:$0x11] }
  0xdb   : > { %v650_v13 = vsel %vm11088_vm12, %v612_v3, %v649_v7  ;;  %v777_v14 = vrot.slane %v753_v4, 4  ;;  %v10292_v23 = vld [vmem:[#allocation2 + $0x18] sm:$0xf]  ;;  %v8536_v12 = vld [vmem:[#allocation2 + $0x1c] sm:$0xf] }
  0xdc   : > { %651 = vst [vmem:[#allocation2 + $0x20] sm:$0x66] %v650_v13  ;;  %1091 = vmatpush.bf16.msra.mxu3 %v1004_v6  ;;  %1105 = vmatpush.bf16.msrb.mxu0 %v1007_v60  ;;  %v739_v16 = vpop.permute.xlu2 %738 }
  0xdd   : > { %v809_v8 = vsel %vm14144_vm13, %v776_v47, %v777_v14  ;;  %v770_v17 = vrot.slane %v739_v16, 4 }
  0xde   : > { %v810_v20 = vsel %vm783_vm14, %v751_v45, %v809_v8  ;;  %v584_v21 = vpop.permute.xlu0 %583 }
  0xdf   : > { %v866_v9 = vsel %vm11065_vm15, %v810_v20, %v865_v15  ;;  %v597_v24 = vrot.slane %v584_v21, 4  ;;  %8577 = vmatmul.msk.bf16.vlgmr.msra.gmra.mxu3 %vm986_vm10, %v11136_v18  ;;  %v8530_v25 = vld [vmem:[#allocation2 + $0x5c] sm:$0x10]  ;;  %v10301_v26 = vld [vmem:[#allocation2 + $0x60] sm:$0x10]  ;;  %v797_v27 = vsel %vm14144_vm13, %v769_v52, %v770_v17 }
  0xe0   : > { %867 = vst [vmem:[#allocation2 + $0x68] sm:$0x11] %v866_v9  ;;  %v8533_v29 = vor.u32 %v10292_v23, %v8530_v25  ;;  %v8537_v40 = vor.u32 %v10301_v26, %v8536_v12  ;;  %v798_v30 = vsel %vm783_vm14, %v737_v50, %v797_v27  ;;  %v874_v26 = vld [vmem:[#allocation2 + $0x80] sm:$0x11] }
  0xe1   : > { %v613_v59 = vsel %vm14144_vm13, %v596_v62, %v597_v24  ;;  %844 = vst [vmem:[#allocation2 + $0x38] sm:$0x88] %v798_v30 }
  0xe2   : > { %v614_v31 = vsel %vm14145_vm11, %v582_v53, %v613_v59  ;;  %v755_v32 = vpop.permute.xlu1 %754  ;;  %v1010_v57 = vand.u32 %v8533_v29, %v11119_v58  ;;  %v1013_v34 = vand.u32 %v8537_v40, %v11119_v58  ;;  %v8596_v59 = vld [vmem:[#allocation2] sm:$0xf] }
  0xe3   : > { %v653_v35 = vsel %vm11088_vm12, %v614_v31, %v652_v28  ;;  %v778_v41 = vrot.slane %v755_v32, 4  ;;  %v10293_v10 = vld [vmem:[#allocation2 + $0x20] sm:$0xf]  ;;  %v8544_v47 = vld [vmem:[#allocation2 + $0x24] sm:$0xf] }
  0xe4   : > { %654 = vst [vmem:[#allocation2 + $0x28] sm:$0x66] %v653_v35  ;;  %1119 = vmatpush.bf16.msrb.mxu1 %v1010_v57  ;;  %1133 = vmatpush.bf16.msrb.mxu2 %v1013_v34  ;;  %v741_v43 = vpop.permute.xlu2 %740  ;;  %v8597_v35 = vor.u32 %v11171_v33, %v8596_v59 }
  0xe5   : > { %v811_v44 = vsel %vm14144_vm13, %v777_v14, %v778_v41  ;;  %v771_v45 = vrot.slane %v741_v43, 4 }
  0xe6   : > { %v812_v46 = vsel %vm783_vm14, %v753_v4, %v811_v44  ;;  %v586_v37 = vpop.permute.xlu0 %585 }
  0xe7   : > { %v869_v48 = vsel %vm11065_vm15, %v812_v46, %v868_v42  ;;  %v598_v49 = vrot.slane %v586_v37, 4  ;;  %8578 = vmatmul.msk.bf16.vlgmr.msrb.gmra.mxu0 %vm986_vm10, %v11136_v18  ;;  %8579 = vmatmul.msk.bf16.vlgmr.msrb.gmra.mxu1 %vm986_vm10, %v11136_v18  ;;  %v8538_v50 = vld [vmem:[#allocation2 + $0x64] sm:$0x10]  ;;  %v10302_v51 = vld [vmem:[#allocation2 + $0x68] sm:$0x10]  ;;  %v799_v52 = vsel %vm14144_vm13, %v770_v17, %v771_v45 }
  0xe8   : > { %870 = vst [vmem:[#allocation2 + $0x70] sm:$0x11] %v869_v48  ;;  %8580 = vmatmul.msk.bf16.vlgmr.msrb.gmra.mxu2 %vm986_vm10, %v11136_v18  ;;  %v8541_v53 = vor.u32 %v10293_v10, %v8538_v50  ;;  %v8545_v55 = vor.u32 %v10302_v51, %v8544_v47  ;;  %v800_v56 = vsel %vm783_vm14, %v739_v16, %v799_v52  ;;  %v658_v16 = vld [vmem:[#allocation2 + $0x38] sm:$0x66]  ;;  %v8604_v50 = vld [vmem:[#allocation2 + $0x8] sm:$0xf] }
  0xe9   : > { %v615_v5 = vsel %vm14144_vm13, %v597_v24, %v598_v49  ;;  %845 = vst [vmem:[#allocation2 + $0x40] sm:$0x88] %v800_v56  ;;  %v1339_v48 = vand.u32 %v8597_v35, %v11119_v58  ;;  %v10282_v52 = vld [vmem:[#allocation2 + $0x4c] sm:$0x10]  ;;  %v10283_v56 = vld [vmem:[#allocation2 + $0x54] sm:$0x10] }
  0xea   : > { %v616_v62 = vsel %vm14145_vm11, %v584_v21, %v615_v5  ;;  %v757_v11 = vpop.permute.xlu1 %756  ;;  %v1016_v54 = vand.u32 %v8541_v53, %v11119_v58  ;;  %v1019_v63 = vand.u32 %v8545_v55, %v11119_v58  ;;  %v10273_v55 = vld [vmem:[#allocation2 + $0x4] sm:$0xf]  ;;  %v8630_v59 = vld [vmem:[#allocation2 + $0x68] sm:$0x10] }
  0xeb   : > { %v656_v7 = vsel %vm11088_vm12, %v616_v62, %v655_v38  ;;  %v779_v0 = vrot.slane %v757_v11, 4  ;;  %v10294_v4 = vld [vmem:[#allocation2 + $0x28] sm:$0xf]  ;;  %v8552_v6 = vld [vmem:[#allocation2 + $0x2c] sm:$0xf] }
  0xec   : > { %657 = vst [vmem:[#allocation2 + $0x30] sm:$0x66] %v656_v7  ;;  %1147 = vmatpush.bf16.msrb.mxu3 %v1016_v54  ;;  %1161 = vmatpush.bf16.msra.mxu0 %v1019_v63  ;;  %v8601_v54 = vor.u32 %v10273_v55, %v11174_v36  ;;  %v8605_v63 = vor.u32 %v10282_v52, %v8604_v50  ;;  %v8636_v35 = vld [vmem:[#allocation2 + $0x28] sm:$0xf] }
  0xed   : > { %v813_v39 = vsel %vm14144_vm13, %v778_v41, %v779_v0  ;;  %v661_v41 = vld [vmem:[#allocation2 + $0x40] sm:$0x66] }
  0xee   : > { %v814_v2 = vsel %vm783_vm14, %v755_v32, %v813_v39  ;;  %v588_v3 = vpop.permute.xlu0 %587  ;;  %v10284_v39 = vld [vmem:[#allocation2 + $0x5c] sm:$0x10] }
  0xef   : > { %v872_v60 = vsel %vm11065_vm15, %v814_v2, %v871_v1  ;;  %v599_v13 = vrot.slane %v588_v3, 4  ;;  %8581 = vmatmul.msk.bf16.vlgmr.msrb.gmra.mxu3 %vm986_vm10, %v11136_v18  ;;  %v8546_v14 = vld [vmem:[#allocation2 + $0x6c] sm:$0x10]  ;;  %v10303_v15 = vld [vmem:[#allocation2 + $0x70] sm:$0x10] }
  0xf0   : > { %873 = vst [vmem:[#allocation2 + $0x78] sm:$0x11] %v872_v60  ;;  %v8549_v8 = vor.u32 %v10294_v4, %v8546_v14  ;;  %v8553_v17 = vor.u32 %v10303_v15, %v8552_v6  ;;  %v8614_v1 = vld [vmem:[#allocation2 + $0x58] sm:$0x10]  ;;  %v8612_v2 = vld [vmem:[#allocation2 + $0x10] sm:$0xf]  ;;  %v1345_v14 = vand.u32 %v8605_v63, %v11119_v58 }
  0xf1   : > { %v617_v20 = vsel %vm14144_vm13, %v598_v49, %v599_v13  ;;  %v877_v49 = vld [vmem:[#allocation2 + $0x88] sm:$0x11]  ;;  %v8613_v4 = vor.u32 %v10283_v56, %v8612_v2  ;;  %v10275_v6 = vld [vmem:[#allocation2 + $0x14] sm:$0xf]  ;;  %v8620_v60 = vld [vmem:[#allocation2 + $0x18] sm:$0xf] }
  0xf2   : > { %v618_v21 = vsel %vm14145_vm11, %v586_v37, %v617_v20  ;;  %v759_v23 = vpop.permute.xlu1 %758  ;;  %v1022_v12 = vand.u32 %v8549_v8, %v11119_v58  ;;  %v1025_v9 = vand.u32 %v8553_v17, %v11119_v58  ;;  %v8617_v15 = vor.u32 %v10275_v6, %v8614_v1  ;;  %v8606_v17 = vld [vmem:[#allocation2 + $0x50] sm:$0x10]  ;;  %v10316_v1 = vld [vmem:[#allocation2 + $0x54] sm:$0x10] }
  0xf3   : > { %v659_v24 = vsel %vm11088_vm12, %v618_v21, %v658_v16  ;;  %v780_v25 = vrot.slane %v759_v23, 4  ;;  %v10295_v40 = vld [vmem:[#allocation2 + $0x30] sm:$0xf]  ;;  %v8560_v30 = vld [vmem:[#allocation2 + $0x34] sm:$0xf]  ;;  %v8621_v36 = vor.u32 %v10284_v39, %v8620_v60  ;;  %v1351_v8 = vand.u32 %v8613_v4, %v11119_v58 }
  0xf4   : > { %660 = vst [vmem:[#allocation2 + $0x38] sm:$0x66] %v659_v24  ;;  %1175 = vmatpush.bf16.msra.mxu1 %v1022_v12  ;;  %1189 = vmatpush.bf16.msra.mxu2 %v1025_v9  ;;  %v10274_v16 = vld [vmem:[#allocation2 + $0xc] sm:$0xf]  ;;  %v1354_v20 = vand.u32 %v8617_v15, %v11119_v58  ;;  %v8622_v24 = vld [vmem:[#allocation2 + $0x60] sm:$0x10] }
  0xf5   : > { %v815_v27 = vsel %vm14144_vm13, %v779_v0, %v780_v25  ;;  %v1357_v21 = vand.u32 %v8621_v36, %v11119_v58  ;;  %v8609_v9 = vor.u32 %v10274_v16, %v8606_v17  ;;  %v8644_v50 = vld [vmem:[#allocation2 + $0x30] sm:$0xf]  ;;  %v10279_v52 = vld [vmem:[#allocation2 + $0x34] sm:$0xf]  ;;  %v8692_v15 = vld [vmem:[#allocation2 + $0x58] sm:$0x10] }
  0xf6   : > { %v816_v28 = vsel %vm783_vm14, %v757_v11, %v815_v27  ;;  %v590_v29 = vpop.permute.xlu0 %589  ;;  %v10315_v39 = vld [vmem:[#allocation2 + $0x4c] sm:$0x10]  ;;  %v10308_v36 = vld [vmem:[#allocation2 + $0x14] sm:$0xf]  ;;  %v10317_v17 = vld [vmem:[#allocation2 + $0x5c] sm:$0x10] }
  0xf7   : > { %v875_v31 = vsel %vm11065_vm15, %v816_v28, %v874_v26  ;;  %v600_v32 = vrot.slane %v590_v29, 4  ;;  %8582 = vmatmul.msk.bf16.vlgmr.msra.gmra.mxu0 %vm986_vm10, %v11136_v18  ;;  %8583 = vmatmul.msk.bf16.vlgmr.msra.gmra.mxu1 %vm986_vm10, %v11136_v18  ;;  %v8554_v57 = vld [vmem:[#allocation2 + $0x74] sm:$0x10]  ;;  %v10304_v34 = vld [vmem:[#allocation2 + $0x78] sm:$0x10]  ;;  %v1348_v29 = vand.u32 %v8609_v9, %v11119_v58  ;;  %v8695_v16 = vor.u32 %v10308_v36, %v8692_v15 }
  0xf8   : > { %876 = vst [vmem:[#allocation2 + $0x80] sm:$0x11] %v875_v31  ;;  %8584 = vmatmul.msk.bf16.vlgmr.msra.gmra.mxu2 %vm986_vm10, %v11136_v18  ;;  %v8557_v42 = vor.u32 %v10295_v40, %v8554_v57  ;;  %v8561_v43 = vor.u32 %v10304_v34, %v8560_v30  ;;  %v10276_v26 = vld [vmem:[#allocation2 + $0x1c] sm:$0xf]  ;;  %v10285_v30 = vld [vmem:[#allocation2 + $0x64] sm:$0x10] }
  0xf9   : > { %v619_v44 = vsel %vm14144_vm13, %v599_v13, %v600_v32  ;;  %v1342_v13 = vand.u32 %v8601_v54, %v11119_v58  ;;  %v8625_v28 = vor.u32 %v10276_v26, %v8622_v24  ;;  %v10286_v31 = vld [vmem:[#allocation2 + $0x6c] sm:$0x10]  ;;  %v8628_v32 = vld [vmem:[#allocation2 + $0x20] sm:$0xf]  ;;  %v10277_v34 = vld [vmem:[#allocation2 + $0x24] sm:$0xf] }
  0xfa   : > { %v620_v45 = vsel %vm14145_vm11, %v588_v3, %v619_v44  ;;  %v761_v46 = vpop.permute.xlu1 %760  ;;  %v1028_v37 = vand.u32 %v8557_v42, %v11119_v58  ;;  %v1031_v10 = vand.u32 %v8561_v43, %v11119_v58  ;;  %v8629_v57 = vor.u32 %v10285_v30, %v8628_v32  ;;  %v10309_v9 = vld [vmem:[#allocation2 + $0x1c] sm:$0xf]  ;;  %v8706_v24 = vld [vmem:[#allocation2 + $0x20] sm:$0xf] }
  0xfb   : > { %v662_v47 = vsel %vm11088_vm12, %v620_v45, %v661_v41  ;;  %v781_v33 = vrot.slane %v761_v46, 4  ;;  %v10296_v53 = vld [vmem:[#allocation2 + $0x38] sm:$0xf]  ;;  %v8568_v62 = vld [vmem:[#allocation2 + $0x3c] sm:$0xf]  ;;  %v1360_v40 = vand.u32 %v8625_v28, %v11119_v58  ;;  %v8633_v42 = vor.u32 %v10277_v34, %v8630_v59 }
  0xfc   : > { %663 = vst [vmem:[#allocation2 + $0x40] sm:$0x66] %v662_v47  ;;  %1203 = vmatpush.bf16.msra.mxu3 %v1028_v37  ;;  %1217 = vmatpush.bf16.msrb.mxu0 %v1031_v10  ;;  %v11288_v41 = vld [vmem:[%s14096_s2] sm:$0xff]  ;;  %v8637_v43 = vor.u32 %v10286_v31, %v8636_v35  ;;  %v1363_v44 = vand.u32 %v8629_v57, %v11119_v58  ;;  %v8638_v46 = vld [vmem:[#allocation2 + $0x70] sm:$0x10]  ;;  %v2006_v57 = vld [vmem:[%s14097_s3 + $0x8] sm:$0xff] }
  0xfd   : > { %v817_v51 = vsel %vm14144_vm13, %v780_v25, %v781_v33  ;;  %v10278_v37 = vld [vmem:[#allocation2 + $0x2c] sm:$0xf]  ;;  %v10287_v33 = vld [vmem:[#allocation2 + $0x74] sm:$0x10]  ;;  %v10310_v31 = vld [vmem:[#allocation2 + $0x24] sm:$0xf] }
  0xfe   : > { %v818_v38 = vsel %vm783_vm14, %v759_v23, %v817_v51  ;;  %v1369_v45 = vand.u32 %v8637_v43, %v11119_v58  ;;  %v8641_v10 = vor.u32 %v10278_v37, %v8638_v46  ;;  %v8645_v51 = vor.u32 %v10287_v33, %v8644_v50  ;;  %v2005_v28 = vld [vmem:[%s14097_s3] sm:$0xff]  ;;  %v8708_v59 = vld [vmem:[#allocation2 + $0x68] sm:$0x10]  ;;  %v10319_v35 = vld [vmem:[#allocation2 + $0x6c] sm:$0x10] }
  0xff   : > { %v878_v22 = vsel %vm11065_vm15, %v818_v38, %v877_v49  ;;  %8585 = vmatmul.msk.bf16.vlgmr.msra.gmra.mxu3 %vm986_vm10, %v11136_v18  ;;  %v8562_v5 = vld [vmem:[#allocation2 + $0x7c] sm:$0x10]  ;;  %v10305_v11 = vld [vmem:[#allocation2 + $0x80] sm:$0x10]  ;;  %v8652_v38 = vld [vmem:[#allocation2 + $0x38] sm:$0xf]  ;;  %v8711_v32 = vor.u32 %v10310_v31, %v8708_v59 }
 0x100   : > { %1393 = vmatpush.bf16.msra.mxu0 %v1339_v48  ;;  %879 = vst [vmem:[#allocation2 + $0x88] sm:$0x11] %v878_v22  ;;  %v8565_v7 = vor.u32 %v10296_v53, %v8562_v5  ;;  %v8569_v0 = vor.u32 %v10305_v11, %v8568_v62  ;;  %v1372_v47 = vand.u32 %v8641_v10, %v11119_v58  ;;  %v8646_v48 = vld [vmem:[#allocation2 + $0x78] sm:$0x10]  ;;  %v10288_v49 = vld [vmem:[#allocation2 + $0x7c] sm:$0x10] }
 0x101   : > { %v8649_v53 = vor.u32 %v10279_v52, %v8646_v48  ;;  %v8653_v55 = vor.u32 %v10288_v49, %v8652_v38  ;;  %v1375_v56 = vand.u32 %v8645_v51, %v11119_v58  ;;  %v8654_v62 = vld [vmem:[#allocation2 + $0x80] sm:$0x10]  ;;  %v10280_v11 = vld [vmem:[#allocation2 + $0x3c] sm:$0xf]  ;;  %v1723_v34 = vand.u32 %v8711_v32, %v11119_v58  ;;  %v8716_v43 = vld [vmem:[#allocation2 + $0x70] sm:$0x10] }
 0x102   : > { %v1034_v3 = vand.u32 %v8565_v7, %v11119_v58  ;;  %v1037_v61 = vand.u32 %v8569_v0, %v11119_v58  ;;  %v8657_v54 = vor.u32 %v10280_v11, %v8654_v62  ;;  %v8682_v7 = vld [vmem:[#allocation2 + $0x8] sm:$0xf]  ;;  %v10307_v0 = vld [vmem:[#allocation2 + $0xc] sm:$0xf]  ;;  %v8722_v37 = vld [vmem:[#allocation2 + $0x30] sm:$0xf] }
 0x103   : > { %v10297_v23 = vld [vmem:[#allocation2 + $0x40] sm:$0xf]  ;;  %v1378_v22 = vand.u32 %v8649_v53, %v11119_v58  ;;  %v1381_v5 = vand.u32 %v8653_v55, %v11119_v58  ;;  %v8683_v2 = vor.u32 %v10315_v39, %v8682_v7  ;;  %v10311_v46 = vld [vmem:[#allocation2 + $0x2c] sm:$0xf]  ;;  %v8724_v52 = vld [vmem:[#allocation2 + $0x78] sm:$0x10] }
 0x104   : > { %1231 = vmatpush.bf16.msrb.mxu1 %v1034_v3  ;;  %1245 = vmatpush.bf16.msrb.mxu2 %v1037_v61  ;;  %v1384_v63 = vand.u32 %v8657_v54, %v11119_v58  ;;  %v8684_v3 = vld [vmem:[#allocation2 + $0x50] sm:$0x10]  ;;  %v8690_v61 = vld [vmem:[#allocation2 + $0x10] sm:$0xf]  ;;  %v11360_v10 = vld [vmem:[%s14096_s2 + $0x10] sm:$0xff]  ;;  %vm2163_vm14 = vcmask 7172  }
 0x105   : > { %v8687_v4 = vor.u32 %v10307_v0, %v8684_v3  ;;  %v8691_v6 = vor.u32 %v10316_v1, %v8690_v61  ;;  %v1702_v60 = vand.u32 %v8683_v2, %v11119_v58  ;;  %v10312_v38 = vld [vmem:[#allocation2 + $0x34] sm:$0xf]  ;;  %v8732_v62 = vld [vmem:[#allocation2 + $0x80] sm:$0x10]  ;;  %v10313_v1 = vld [vmem:[#allocation2 + $0x3c] sm:$0xf] }
 0x106   : > { %v8727_v55 = vor.u32 %v10312_v38, %v8724_v52  ;;  %v8738_v39 = vld [vmem:[#allocation2 + $0x40] sm:$0xf]  ;;  %v8735_v2 = vor.u32 %v10313_v1, %v8732_v62  ;;  %v10314_v15 = vld [vmem:[#allocation2 + $0x44] sm:$0xf]  ;;  %vm2164_vm15 = vmor %vm2163_vm14, %vm14144_vm13  ;;  %vm2281_vm12 = vcmask 1047556  }
 0x107   : > { %8586 = vmatmul.msk.bf16.vlgmr.msrb.gmra.mxu0 %vm986_vm10, %v11136_v18  ;;  %8587 = vmatmul.msk.bf16.vlgmr.msrb.gmra.mxu1 %vm986_vm10, %v11136_v18  ;;  %v8570_v12 = vld [vmem:[#allocation2 + $0x84] sm:$0x10]  ;;  %vm11783_vm14 = vmor %vm2281_vm12, %vm14124_vm1 }
 0x108   : > { %1407 = vmatpush.bf16.msra.mxu1 %v1342_v13  ;;  %1421 = vmatpush.bf16.msra.mxu2 %v1345_v14  ;;  %v8573_v25 = vor.u32 %v10297_v23, %v8570_v12  ;;  %v1705_v13 = vand.u32 %v8687_v4, %v11119_v58  ;;  %v1708_v14 = vand.u32 %v8691_v6, %v11119_v58  ;;  %v8698_v23 = vld [vmem:[#allocation2 + $0x18] sm:$0xf]  ;;  %v10322_v11 = vld [vmem:[#allocation2 + $0x84] sm:$0x10] }
 0x109   : > { %8588 = vmatmul.msk.bf16.vlgmr.msrb.gmra.mxu2 %vm986_vm10, %v11136_v18  ;;  %1449 = vmatpush.bf16.msrb.mxu0 %v1351_v8  ;;  %v1711_v8 = vand.u32 %v8695_v16, %v11119_v58  ;;  %v8699_v12 = vor.u32 %v10317_v17, %v8698_v23  ;;  %v8739_v3 = vor.u32 %v10322_v11, %v8738_v39 }
 0x10a   : > { %v1040_v27 = vand.u32 %v8573_v25, %v11119_v58 }
 0x10c   : > { %1463 = vmatpush.bf16.msrb.mxu1 %v1354_v20  ;;  %1477 = vmatpush.bf16.msrb.mxu2 %v1357_v21  ;;  %v8700_v20 = vld [vmem:[#allocation2 + $0x60] sm:$0x10]  ;;  %v10318_v21 = vld [vmem:[#allocation2 + $0x64] sm:$0x10] }
 0x10d   : > { %1259 = vmatpush.bf16.msrb.mxu3 %v1040_v27  ;;  %v8703_v25 = vor.u32 %v10309_v9, %v8700_v20  ;;  %v8707_v26 = vor.u32 %v10318_v21, %v8706_v24  ;;  %v14106_v27 = vmov 0  }
 0x10e   : > { %10708 = vset.pattern.permute.xlu0 %v14106_v27  ;;  %2304 = vst [vmem:[#allocation3 + $0x90] sm:$0xf] %v14106_v27  ;;  %10709 = vset.pattern.permute.xlu1 %v14106_v27 }
 0x10f   : > { %2305 = vst [vmem:[#allocation3 + $0xd8] sm:$0xf] %v14106_v27  ;;  %10710 = vset.pattern.permute.xlu2 %v14106_v27  ;;  %2009 = vperm.xlu0 %10708, %v2005_v28   ;;  %v1720_v30 = vand.u32 %v8707_v26, %v11119_v58 }
 0x110   : > { %8589 = vmatmul.msk.bf16.vlgmr.msrb.gmra.mxu3 %vm986_vm10, %v11136_v18  ;;  %v1366_v18 = vand.u32 %v8633_v42, %v11119_v58  ;;  %2322 = vst [vmem:[#allocation3 + $0xd4] sm:$0xf] %v14106_v27  ;;  %2014 = vperm.xlu1 %10709, %v2006_v57  }
 0x111   : > { %1435 = vmatpush.bf16.msra.mxu3 %v1348_v29  ;;  %v1714_v29 = vand.u32 %v8699_v12, %v11119_v58  ;;  %2323 = vst [vmem:[#allocation3 + $0x11c] sm:$0xf] %v14106_v27 }
 0x112   : > { %6542 = vst [vmem:[#allocation4 + $0x90] sm:$0xf] %v14106_v27 }
 0x113   : > { %6543 = vst [vmem:[#allocation4 + $0xd8] sm:$0xf] %v14106_v27 }
 0x114   : > { %6560 = vst [vmem:[#allocation4 + $0xd4] sm:$0xf] %v14106_v27 }
 0x115   : > { %1491 = vmatpush.bf16.msrb.mxu3 %v1360_v40  ;;  %v1717_v40 = vand.u32 %v8703_v25, %v11119_v58  ;;  %6561 = vst [vmem:[#allocation4 + $0x11c] sm:$0xf] %v14106_v27 }
 0x117   : > { %8658 = vmatmul.msk.bf16.vlgmr.msra.gmra.mxu0 %vm986_vm10, %v11288_v41  ;;  %8659 = vmatmul.msk.bf16.vlgmr.msra.gmra.mxu1 %vm986_vm10, %v11288_v41 }
 0x118   : > { %1505 = vmatpush.bf16.msra.mxu0 %v1363_v44  ;;  %1519 = vmatpush.bf16.msra.mxu1 %v1366_v18  ;;  %v10320_v44 = vld [vmem:[#allocation2 + $0x74] sm:$0x10]  ;;  %v8714_v18 = vld [vmem:[#allocation2 + $0x28] sm:$0xf] }
 0x119   : > { %8660 = vmatmul.msk.bf16.vlgmr.msra.gmra.mxu2 %vm986_vm10, %v11288_v41  ;;  %v8723_v33 = vor.u32 %v10320_v44, %v8722_v37 }
 0x11a   : > { %1533 = vmatpush.bf16.msra.mxu2 %v1369_v45  ;;  %v8715_v45 = vor.u32 %v10319_v35, %v8714_v18 }
 0x11b   : > { %v1732_v50 = vand.u32 %v8723_v33, %v11119_v58 }
 0x120   : > { %8661 = vmatmul.msk.bf16.vlgmr.msra.gmra.mxu3 %vm986_vm10, %v11288_v41 }
 0x121   : > { %1547 = vmatpush.bf16.msra.mxu3 %v1372_v47  ;;  %v8719_v47 = vor.u32 %v10311_v46, %v8716_v43 }
 0x123   : > { %v1729_v49 = vand.u32 %v8719_v47, %v11119_v58 }
 0x127   : > { %8662 = vmatmul.msk.bf16.vlgmr.msrb.gmra.mxu0 %vm986_vm10, %v11288_v41  ;;  %8663 = vmatmul.msk.bf16.vlgmr.msrb.gmra.mxu1 %vm986_vm10, %v11288_v41 }
 0x128   : > { %1561 = vmatpush.bf16.msrb.mxu0 %v1375_v56  ;;  %1575 = vmatpush.bf16.msrb.mxu1 %v1378_v22  ;;  %v1735_v22 = vand.u32 %v8727_v55, %v11119_v58 }
 0x129   : > { %8664 = vmatmul.msk.bf16.vlgmr.msrb.gmra.mxu2 %vm986_vm10, %v11288_v41 }
 0x12a   : > { %1589 = vmatpush.bf16.msrb.mxu2 %v1381_v5  ;;  %v10321_v5 = vld [vmem:[#allocation2 + $0x7c] sm:$0x10] }
 0x130   : > { %8665 = vmatmul.msk.bf16.vlgmr.msrb.gmra.mxu3 %vm986_vm10, %v11288_v41 }
 0x131   : > { %1603 = vmatpush.bf16.msrb.mxu3 %v1384_v63  ;;  %v8730_v63 = vld [vmem:[#allocation2 + $0x38] sm:$0xf] }
 0x132   : > { %v8731_v0 = vor.u32 %v10321_v5, %v8730_v63 }
 0x134   : > { %v1738_v6 = vand.u32 %v8731_v0, %v11119_v58 }
 0x137   : > { %8666 = vmatmul.msk.bf16.vlgmr.msra.gmra.mxu0 %vm986_vm10, %v11288_v41  ;;  %8667 = vmatmul.msk.bf16.vlgmr.msra.gmra.mxu1 %vm986_vm10, %v11288_v41 }
 0x138   : > { %1756 = vmatpush.bf16.msra.mxu0 %v1702_v60  ;;  %1770 = vmatpush.bf16.msra.mxu1 %v1705_v13  ;;  %v1741_v60 = vand.u32 %v8735_v2, %v11119_v58  ;;  %v1744_v13 = vand.u32 %v8739_v3, %v11119_v58 }
 0x139   : > { %8668 = vmatmul.msk.bf16.vlgmr.msra.gmra.mxu2 %vm986_vm10, %v11288_v41 }
 0x13a   : > { %1784 = vmatpush.bf16.msra.mxu2 %v1708_v14  ;;  %v8740_v14 = vld [vmem:[#allocation2 + $0x88] sm:$0x10] }
 0x13b   : > { %v8743_v16 = vor.u32 %v10314_v15, %v8740_v14 }
 0x13d   : > { %v1747_v21 = vand.u32 %v8743_v16, %v11119_v58 }
 0x140   : > { %8669 = vmatmul.msk.bf16.vlgmr.msra.gmra.mxu3 %vm986_vm10, %v11288_v41 }
 0x141   : > { %1798 = vmatpush.bf16.msra.mxu3 %v1711_v8 }
 0x147   : > { %8670 = vmatmul.msk.bf16.vlgmr.msrb.gmra.mxu0 %vm986_vm10, %v11288_v41  ;;  %8671 = vmatmul.msk.bf16.vlgmr.msrb.gmra.mxu1 %vm986_vm10, %v11288_v41 }
 0x148   : > { %1812 = vmatpush.bf16.msrb.mxu0 %v1714_v29  ;;  %1826 = vmatpush.bf16.msrb.mxu1 %v1717_v40 }
 0x149   : > { %8672 = vmatmul.msk.bf16.vlgmr.msrb.gmra.mxu2 %vm986_vm10, %v11288_v41 }
 0x14a   : > { %1840 = vmatpush.bf16.msrb.mxu2 %v1720_v30 }
 0x14b   : > { %v11355_v42 = vpop.f32.mrf.mxu1 }
 0x150   : > { %8673 = vmatmul.msk.bf16.vlgmr.msrb.gmra.mxu3 %vm986_vm10, %v11288_v41  ;;  %v1726_v41 = vand.u32 %v8715_v45, %v11119_v58 }
 0x151   : > { %1854 = vmatpush.bf16.msrb.mxu3 %v1723_v34  ;;  %v11371_v51 = vpop.f32.mrf.mxu2 }
 0x153   : > { %v11375_v53 = vpop.f32.mrf.mxu1 }
 0x154   : > { %v11362_v48 = vpop.f32.mrf.mxu0 }
 0x157   : > { %8744 = vmatmul.msk.bf16.vlgmr.msra.gmra.mxu0 %vm986_vm10, %v11360_v10  ;;  %8745 = vmatmul.msk.bf16.vlgmr.msra.gmra.mxu1 %vm986_vm10, %v11360_v10 }
 0x158   : > { %1868 = vmatpush.bf16.msra.mxu0 %v1726_v41  ;;  %1882 = vmatpush.bf16.msra.mxu1 %v1729_v49 }
 0x159   : > { %8746 = vmatmul.msk.bf16.vlgmr.msra.gmra.mxu2 %vm986_vm10, %v11360_v10  ;;  %v11382_v54 = vpop.f32.mrf.mxu2 }
 0x15a   : > { %1896 = vmatpush.bf16.msra.mxu2 %v1732_v50 }
 0x15c   : > { %v11377_v56 = vpop.f32.mrf.mxu0 }
 0x160   : > { %8747 = vmatmul.msk.bf16.vlgmr.msra.gmra.mxu3 %vm986_vm10, %v11360_v10 }
 0x161   : > { %1910 = vmatpush.bf16.msra.mxu3 %v1735_v22 }
 0x162   : > { %v11384_v7 = vpop.f32.mrf.mxu3 }
 0x164   : > { %v11386_v61 = vpop.f32.mrf.mxu0  ;;  %v11388_v4 = vpop.f32.mrf.mxu1 }
 0x167   : > { %8748 = vmatmul.msk.bf16.vlgmr.msrb.gmra.mxu0 %vm986_vm10, %v11360_v10  ;;  %8749 = vmatmul.msk.bf16.vlgmr.msrb.gmra.mxu1 %vm986_vm10, %v11360_v10 }
 0x168   : > { %1924 = vmatpush.bf16.msrb.mxu0 %v1738_v6  ;;  %1938 = vmatpush.bf16.msrb.mxu1 %v1741_v60 }
 0x169   : > { %8750 = vmatmul.msk.bf16.vlgmr.msrb.gmra.mxu2 %vm986_vm10, %v11360_v10 }
 0x16a   : > { %1952 = vmatpush.bf16.msrb.mxu2 %v1744_v13  ;;  %v11399_v36 = vpop.f32.mrf.mxu3 }
 0x16b   : > { %v11401_v8 = vpop.f32.mrf.mxu2 }
 0x16c   : > { %v11403_v17 = vpop.f32.mrf.mxu0  ;;  %v11405_v20 = vpop.f32.mrf.mxu1 }
 0x170   : > { %8751 = vmatmul.msk.bf16.vlgmr.msrb.gmra.mxu3 %vm986_vm10, %v11360_v10 }
 0x171   : > { %1966 = vmatpush.bf16.msrb.mxu3 %v1747_v21 }
 0x172   : > { %v11410_v23 = vpop.f32.mrf.mxu3 }
 0x173   : > { %v11412_v12 = vpop.f32.mrf.mxu2 }
 0x174   : > { %v11414_v9 = vpop.f32.mrf.mxu0  ;;  %v11416_v24 = vpop.f32.mrf.mxu1 }
 0x177   : > { %8752 = vmatmul.msk.bf16.vlgmr.msra.gmra.mxu0 %vm986_vm10, %v11360_v10  ;;  %8753 = vmatmul.msk.bf16.vlgmr.msra.gmra.mxu1 %vm986_vm10, %v11360_v10 }
 0x179   : > { %8754 = vmatmul.msk.bf16.vlgmr.msra.gmra.mxu2 %vm986_vm10, %v11360_v10 }
 0x17a   : > { %v11424_v58 = vpop.f32.mrf.mxu3 }
 0x17b   : > { %v11426_v25 = vpop.f32.mrf.mxu2 }
 0x17c   : > { %v11428_v26 = vpop.f32.mrf.mxu0  ;;  %v11430_v28 = vpop.f32.mrf.mxu1 }
 0x180   : > { %8755 = vmatmul.msk.bf16.vlgmr.msra.gmra.mxu3 %vm986_vm10, %v11360_v10 }
 0x182   : > { %v11434_v29 = vpop.f32.mrf.mxu3 }
 0x183   : > { %v11436_v40 = vpop.f32.mrf.mxu2 }
 0x184   : > { %v11438_v30 = vpop.f32.mrf.mxu0  ;;  %v11440_v59 = vpop.f32.mrf.mxu1 }
 0x185   : > { %14202 = vst [vmem:[#allocation10_spill] sm:$0xff] %v11440_v59 }
 0x187   : > { %8756 = vmatmul.msk.bf16.vlgmr.msrb.gmra.mxu0 %vm986_vm10, %v11360_v10  ;;  %8757 = vmatmul.msk.bf16.vlgmr.msrb.gmra.mxu1 %vm986_vm10, %v11360_v10 }
 0x189   : > { %8758 = vmatmul.msk.bf16.vlgmr.msrb.gmra.mxu2 %vm986_vm10, %v11360_v10 }
 0x18a   : > { %v11448_v31 = vpop.f32.mrf.mxu3 }
 0x18b   : > { %14203 = vst [vmem:[#allocation11_spill] sm:$0xff] %v11448_v31 }
 0x18c   : > { %v11450_v32 = vpop.f32.mrf.mxu2  ;;  %v11452_v57 = vpop.f32.mrf.mxu0 }
 0x18d   : > { %14204 = vst [vmem:[#allocation12_spill] sm:$0xff] %v11450_v32  ;;  %v11454_v34 = vpop.f32.mrf.mxu1 }
 0x18e   : > { %14205 = vst [vmem:[#allocation13_spill] sm:$0xff] %v11452_v57  ;;  %v11521_v57 = vld [vmem:[%s14095_s1] sm:$0xff] }
 0x18f   : > { %14206 = vst [vmem:[#allocation14_spill] sm:$0xff] %v11454_v34 }
 0x190   : > { %8759 = vmatmul.msk.bf16.vlgmr.msrb.gmra.mxu3 %vm986_vm10, %v11360_v10  ;;  %vm11774_vm10 = vmor %vm2281_vm12, %vm2423_vm4  ;;  %vm14125_vm12 = vcmask 3072   ;;  %vm4034_vm4 = vcmask 1042432  }
 0x193   : > { %v11458_v35 = vpop.f32.mrf.mxu3 }
 0x194   : > { %14207 = vst [vmem:[#allocation15_spill] sm:$0xff] %v11458_v35  ;;  %v11460_v43 = vpop.f32.mrf.mxu2  ;;  %v1395_v44 = vpop.f32.mrf.mxu0 }
 0x195   : > { %14208 = vst [vmem:[#allocation16_spill] sm:$0xff] %v11460_v43  ;;  %v1409_v18 = vpop.f32.mrf.mxu1  ;;  %v1396_v27 = vadd.f32 %v1395_v44, %v11362_v48  ;;  %v11516_v43 = vpop.permute.xlu0 %2009  ;;  %v11526_v48 = vperm.slane %v11521_v57, 0 }
 0x196   : > { %v1410_v19 = vadd.f32 %v1409_v18, %v11355_v42  ;;  %v11529_v42 = vperm.slane %v11521_v57, 1 }
 0x19b   : > { %v11462_v45 = vpop.f32.mrf.mxu3 }
 0x19c   : > { %14209 = vst [vmem:[#allocation17_spill] sm:$0xff] %v11462_v45  ;;  %v1423_v46 = vpop.f32.mrf.mxu2  ;;  %v1397_v37 = vpop.f32.mrf.mxu0 }
 0x19d   : > { %v1411_v47 = vpop.f32.mrf.mxu1 }
 0x1a3   : > { %v1437_v33 = vpop.f32.mrf.mxu3 }
 0x1a4   : > { %v11464_v41 = vpop.f32.mrf.mxu2  ;;  %v11466_v49 = vpop.f32.mrf.mxu0 }
 0x1a5   : > { %v11468_v50 = vpop.f32.mrf.mxu1 }
 0x1ab   : > { %v11470_v52 = vpop.f32.mrf.mxu3 }
 0x1ac   : > { %v11472_v10 = vpop.f32.mrf.mxu2  ;;  %v11474_v38 = vpop.f32.mrf.mxu0 }
 0x1ad   : > { %v11476_v55 = vpop.f32.mrf.mxu1 }
 0x1b3   : > { %v11478_v22 = vpop.f32.mrf.mxu3 }
 0x1b4   : > { %v11480_v5 = vpop.f32.mrf.mxu2  ;;  %v11482_v62 = vpop.f32.mrf.mxu0 }
 0x1b5   : > { %v11484_v11 = vpop.f32.mrf.mxu1 }
 0x1bb   : > { %v11486_v63 = vpop.f32.mrf.mxu3 }
 0x1bc   : > { %v11488_v0 = vpop.f32.mrf.mxu2  ;;  %v11490_v1 = vpop.f32.mrf.mxu0 }
 0x1bd   : > { %v11492_v39 = vpop.f32.mrf.mxu1 }
 0x1c3   : > { %v11494_v2 = vpop.f32.mrf.mxu3 }
 0x1c4   : > { %v11496_v3 = vpop.f32.mrf.mxu2  ;;  %v11498_v6 = vpop.f32.mrf.mxu0 }
 0x1c5   : > { %v11500_v60 = vpop.f32.mrf.mxu1 }
 0x1c6   : > { %14210 = vst [vmem:[#allocation18_spill] sm:$0xff] %v11500_v60 }
 0x1cb   : > { %v11502_v13 = vpop.f32.mrf.mxu3 }
 0x1cc   : > { %14211 = vst [vmem:[#allocation19_spill] sm:$0xff] %v11502_v13  ;;  %v11504_v14 = vpop.f32.mrf.mxu2  ;;  %v11506_v15 = vpop.f32.mrf.mxu0  ;;  %v1398_v13 = vadd.f32 %v1397_v37, %v11377_v56 }
 0x1cd   : > { %14212 = vst [vmem:[#allocation20_spill] sm:$0xff] %v11504_v14  ;;  %v11508_v16 = vpop.f32.mrf.mxu1 }
 0x1ce   : > { %14213 = vst [vmem:[#allocation21_spill] sm:$0xff] %v11506_v15 }
 0x1cf   : > { %14214 = vst [vmem:[#allocation22_spill] sm:$0xff] %v11508_v16 }
 0x1d3   : > { %v11510_v21 = vpop.f32.mrf.mxu3 }
 0x1d4   : > { %14215 = vst [vmem:[#allocation23_spill] sm:$0xff] %v11510_v21  ;;  %v11514_v45 = vpop.f32.mrf.mxu2  ;;  %v1758_v35 = vpop.f32.mrf.mxu0 }
 0x1d5   : > { %14216 = vst [vmem:[#allocation24_spill] sm:$0xff] %v11514_v45  ;;  %v1772_v34 = vpop.f32.mrf.mxu1  ;;  %v1973_v15 = vadd.f32 %v1758_v35, %v1396_v27  ;;  %v1424_v45 = vadd.f32 %v1423_v46, %v11371_v51  ;;  %v1438_v46 = vadd.f32 %v1437_v33, %v11384_v7  ;;  %v11555_v7 = vperm.slane %v11521_v57, 2 }
 0x1d6   : > { %v1974_v14 = vadd.f32 %v1772_v34, %v1410_v19  ;;  %v1412_v19 = vadd.f32 %v1411_v47, %v11375_v53  ;;  %v11536_v34 = vpop.permute.xlu1 %2014  ;;  %v1452_v47 = vadd.f32 %v11466_v49, %v11386_v61 }
 0x1d7   : > { %v2017_v16 = vadd.f32 %v11516_v43, %v1973_v15 }
 0x1d8   : > { %v2018_v21 = vadd.f32 %v11516_v43, %v1974_v14 }
 0x1d9   : > { %v2049_v44 = vmax.f32 %v2017_v16, 0.0 }
 0x1da   : > { %v2050_v18 = vmax.f32 %v2018_v21, 0.0 }
 0x1db   : > { %v11532_v32 = vpop.f32.mrf.mxu3  ;;  %v2115_v35 = vmul.f32 %v11526_v48, %v2049_v44 }
 0x1dc   : > { %v1786_v27 = vpop.f32.mrf.mxu2  ;;  %v2116_v14 = vmul.f32 %v11529_v42, %v2050_v18  ;;  %v1760_v31 = vpop.f32.mrf.mxu0 }
 0x1dd   : > { %v1975_v15 = vadd.f32 %v1786_v27, %v1424_v45  ;;  %v1774_v60 = vpop.f32.mrf.mxu1  ;;  %v1989_v16 = vadd.f32 %v1760_v31, %v1398_v13  ;;  %v1426_v31 = vadd.f32 %v11464_v41, %v11382_v54  ;;  %v11558_v54 = vperm.slane %v11521_v57, 3 }
 0x1de   : > { %v1990_v21 = vadd.f32 %v1774_v60, %v1412_v19  ;;  %v2147_v59 = vpack.c.bf16 %v2116_v14, %v2115_v35  ;;  %v11562_v14 = vperm.slane %v11521_v57, 4 }
 0x1df   : > { %v2033_v51 = vadd.f32 %v11536_v34, %v1989_v16  ;;  %v2019_v56 = vadd.f32 %v11516_v43, %v1975_v15 }
 0x1e0   : > { %2183 = vrot.lane.b32.xlu0 %v2147_v59, %s10853_s26  ;;  %2306 = vst [vmem:[#allocation3 + $0x94] sm:$0xff] %v2147_v59  ;;  %2327 = vrot.lane.b32.xlu2 %v2147_v59, %s10849_s16  ;;  %v2034_v53 = vadd.f32 %v11536_v34, %v1990_v21  ;;  %v1466_v59 = vadd.f32 %v11468_v50, %v11388_v4 }
 0x1e1   : > { %v2065_v45 = vmax.f32 %v2033_v51, 0.0  ;;  %v2051_v27 = vmax.f32 %v2019_v56, 0.0  ;;  %v11567_v51 = vperm.slane %v11521_v57, 5 }
 0x1e2   : > { %v2066_v37 = vmax.f32 %v2034_v53, 0.0  ;;  %v1440_v53 = vadd.f32 %v11470_v52, %v11399_v36 }
 0x1e3   : > { %v1800_v60 = vpop.f32.mrf.mxu3  ;;  %v2131_v18 = vmul.f32 %v11526_v48, %v2065_v45  ;;  %v2117_v56 = vmul.f32 %v11555_v7, %v2051_v27 }
 0x1e4   : > { %v1788_v13 = vpop.f32.mrf.mxu2  ;;  %v1976_v44 = vadd.f32 %v1800_v60, %v1438_v46  ;;  %v2132_v19 = vmul.f32 %v11529_v42, %v2066_v37  ;;  %v1814_v41 = vpop.f32.mrf.mxu0  ;;  %v1454_v60 = vadd.f32 %v11474_v38, %v11403_v17 }
 0x1e5   : > { %v1991_v33 = vadd.f32 %v1788_v13, %v1426_v31  ;;  %v1828_v61 = vpop.f32.mrf.mxu1  ;;  %v1977_v35 = vadd.f32 %v1814_v41, %v1452_v47  ;;  %v1480_v47 = vadd.f32 %v11472_v10, %v11401_v8 }
 0x1e6   : > { %v2020_v49 = vadd.f32 %v11516_v43, %v1976_v44  ;;  %v1978_v4 = vadd.f32 %v1828_v61, %v1466_v59  ;;  %v2155_v50 = vpack.c.bf16 %v2132_v19, %v2131_v18  ;;  %v1468_v59 = vadd.f32 %v11476_v55, %v11405_v20 }
 0x1e7   : > { %v2021_v16 = vadd.f32 %v11516_v43, %v1977_v35  ;;  %v2035_v46 = vadd.f32 %v11536_v34, %v1991_v33  ;;  %v1494_v35 = vadd.f32 %v11478_v22, %v11410_v23  ;;  %v1522_v23 = vadd.f32 %v11484_v11, %v11416_v24 }
 0x1e8   : > { %v2052_v15 = vmax.f32 %v2020_v49, 0.0  ;;  %v2022_v21 = vadd.f32 %v11516_v43, %v1978_v4  ;;  %2314 = vst [vmem:[#allocation3 + $0xdc] sm:$0xff] %v2155_v50  ;;  %2343 = vrot.lane.b32.xlu0 %v2155_v50, %s10849_s16  ;;  %2199 = vrot.lane.b32.xlu2 %v2155_v50, %s10853_s26  ;;  %v11615_v24 = vperm.slane %v11521_v57, 7 }
 0x1e9   : > { %v2053_v37 = vmax.f32 %v2021_v16, 0.0  ;;  %v2067_v61 = vmax.f32 %v2035_v46, 0.0 }
 0x1ea   : > { %v2118_v45 = vmul.f32 %v11558_v54, %v2052_v15  ;;  %v2054_v31 = vmax.f32 %v2022_v21, 0.0  ;;  %14218 = vst [vmem:[#allocation26_spill] sm:$0xff] %v11615_v24 }
 0x1eb   : > { %v1802_v13 = vpop.f32.mrf.mxu3  ;;  %v2119_v36 = vmul.f32 %v11562_v14, %v2053_v37  ;;  %v2133_v16 = vmul.f32 %v11555_v7, %v2067_v61  ;;  %v11607_v37 = vld [vmem:[%s14095_s1 + $0x8] sm:$0xff] }
 0x1ec   : > { %v2120_v52 = vmul.f32 %v11567_v51, %v2054_v31  ;;  %v1992_v44 = vadd.f32 %v1802_v13, %v1440_v53  ;;  %v1842_v18 = vpop.f32.mrf.mxu2  ;;  %v2148_v19 = vpack.c.bf16 %v2118_v45, %v2117_v56  ;;  %v1816_v33 = vpop.f32.mrf.mxu0  ;;  %v1482_v53 = vadd.f32 %v11480_v5, %v11412_v12 }
 0x1ed   : > { %v1979_v27 = vadd.f32 %v1842_v18, %v1480_v47  ;;  %v1830_v41 = vpop.f32.mrf.mxu1  ;;  %v1993_v10 = vadd.f32 %v1816_v33, %v1454_v60  ;;  %v1508_v56 = vadd.f32 %v11482_v62, %v11414_v9  ;;  %v11612_v5 = vperm.slane %v11521_v57, 6 }
 0x1ee   : > { %v2036_v8 = vadd.f32 %v11536_v34, %v1992_v44  ;;  %v1994_v49 = vadd.f32 %v1830_v41, %v1468_v59  ;;  %2329 = vrot.lane.b32.xlu1 %v2148_v19, %s10849_s16  ;;  %2307 = vst [vmem:[#allocation3 + $0x9c] sm:$0xff] %v2148_v19  ;;  %v11586_v17 = vpack.c.bf16 %v2120_v52, %v2119_v36  ;;  %v11621_v52 = vperm.slane %v11607_v37, 0 }
 0x1ef   : > { %v2037_v38 = vadd.f32 %v11536_v34, %v1993_v10  ;;  %v2023_v4 = vadd.f32 %v11516_v43, %v1979_v27  ;;  %14217 = vst [vmem:[#allocation25_spill] sm:$0xff] %v11612_v5  ;;  %v11628_v33 = vperm.slane %v11607_v37, 1  ;;  %v1496_v41 = vadd.f32 %v11486_v63, %v11424_v58 }
 0x1f0   : > { %v2068_v20 = vmax.f32 %v2036_v8, 0.0  ;;  %v2038_v55 = vadd.f32 %v11536_v34, %v1994_v49  ;;  %2308 = vst [vmem:[#allocation3 + $0xa4] sm:$0xff] %v11586_v17  ;;  %2331 = vrot.lane.b32.xlu2 %v11586_v17, %s10849_s16  ;;  %v1524_v58 = vadd.f32 %v11492_v39, %v11430_v28 }
 0x1f1   : > { %v2069_v50 = vmax.f32 %v2037_v38, 0.0  ;;  %v2055_v12 = vmax.f32 %v2023_v4, 0.0  ;;  %14219 = vst [vmem:[#allocation27_spill] sm:$0xff] %v11621_v52  ;;  %v1510_v38 = vadd.f32 %v11490_v1, %v11428_v26 }
 0x1f2   : > { %v2070_v15 = vmax.f32 %v2038_v55, 0.0  ;;  %v2134_v21 = vmul.f32 %v11558_v54, %v2068_v20  ;;  %14220 = vst [vmem:[#allocation28_spill] sm:$0xff] %v11628_v33  ;;  %v1536_v20 = vadd.f32 %v11488_v0, %v11426_v25 }
 0x1f3   : > { %v1856_v22 = vpop.f32.mrf.mxu3  ;;  %v2135_v47 = vmul.f32 %v11562_v14, %v2069_v50 }
 0x1f4   : > { %v1844_v46 = vpop.f32.mrf.mxu2  ;;  %v1980_v45 = vadd.f32 %v1856_v22, %v1494_v35  ;;  %v2156_v31 = vpack.c.bf16 %v2134_v21, %v2133_v16  ;;  %v2136_v60 = vmul.f32 %v11567_v51, %v2070_v15  ;;  %v1870_v62 = vpop.f32.mrf.mxu0  ;;  %v1550_v22 = vadd.f32 %v11494_v2, %v11434_v29  ;;  %v14221_v29 = vld [vmem:[#allocation10_spill] sm:$0xff] }
 0x1f5   : > { %v1995_v9 = vadd.f32 %v1844_v46, %v1482_v53  ;;  %v1884_v11 = vpop.f32.mrf.mxu1  ;;  %v1981_v13 = vadd.f32 %v1870_v62, %v1508_v56  ;;  %v14222_v2 = vld [vmem:[#allocation18_spill] sm:$0xff] }
 0x1f6   : > { %v2024_v59 = vadd.f32 %v11516_v43, %v1980_v45  ;;  %v1982_v36 = vadd.f32 %v1884_v11, %v1522_v23  ;;  %2201 = vrot.lane.b32.xlu0 %v2156_v31, %s10853_s26  ;;  %2315 = vst [vmem:[#allocation3 + $0xe4] sm:$0xff] %v2156_v31  ;;  %2185 = vrot.lane.b32.xlu1 %v2148_v19, %s10853_s26 }
 0x1f7   : > { %v11623_v44 = vpack.c.bf16 %v2136_v60, %v2135_v47  ;;  %v2025_v57 = vadd.f32 %v11516_v43, %v1981_v13  ;;  %v2039_v61 = vadd.f32 %v11536_v34, %v1995_v9  ;;  %v2121_v19 = vmul.f32 %v11612_v5, %v2055_v12 }
 0x1f8   : > { %v2056_v18 = vmax.f32 %v2024_v59, 0.0  ;;  %v2026_v27 = vadd.f32 %v11516_v43, %v1982_v36  ;;  %v1538_v12 = vadd.f32 %v11496_v3, %v11436_v40  ;;  %v1564_v9 = vadd.f32 %v11498_v6, %v11438_v30 }
 0x1f9   : > { %2316 = vst [vmem:[#allocation3 + $0xec] sm:$0xff] %v11623_v44  ;;  %2347 = vrot.lane.b32.xlu2 %v11623_v44, %s10849_s16  ;;  %v2057_v10 = vmax.f32 %v2025_v57, 0.0  ;;  %v2071_v16 = vmax.f32 %v2039_v61, 0.0  ;;  %v1578_v62 = vadd.f32 %v14222_v2, %v14221_v29  ;;  %v11673_v40 = vperm.slane %v11607_v37, 3 }
 0x1fa   : > { %v2122_v8 = vmul.f32 %v11615_v24, %v2056_v18  ;;  %v2058_v49 = vmax.f32 %v2026_v27, 0.0  ;;  %v11670_v27 = vperm.slane %v11607_v37, 2 }
 0x1fb   : > { %v1858_v63 = vpop.f32.mrf.mxu3  ;;  %v2123_v55 = vmul.f32 %v11621_v52, %v2057_v10  ;;  %14224 = vst [vmem:[#allocation18_spill] sm:$0xff] %v11673_v40 }
 0x1fc   : > { %v2124_v35 = vmul.f32 %v11628_v33, %v2058_v49  ;;  %v1996_v4 = vadd.f32 %v1858_v63, %v1496_v41  ;;  %v1898_v50 = vpop.f32.mrf.mxu2  ;;  %v2150_v15 = vpack.c.bf16 %v2122_v8, %v2121_v19  ;;  %v1872_v53 = vpop.f32.mrf.mxu0  ;;  %14223 = vst [vmem:[#allocation10_spill] sm:$0xff] %v11670_v27  ;;  %v11679_v8 = vperm.slane %v11607_v37, 4  ;;  %v14227_v63 = vld [vmem:[#allocation11_spill] sm:$0xff] }
 0x1fd   : > { %v1983_v21 = vadd.f32 %v1898_v50, %v1536_v20  ;;  %v1886_v56 = vpop.f32.mrf.mxu1  ;;  %v1997_v0 = vadd.f32 %v1872_v53, %v1510_v38  ;;  %v14229_v53 = vld [vmem:[#allocation12_spill] sm:$0xff] }
 0x1fe   : > { %v2040_v25 = vadd.f32 %v11536_v34, %v1996_v4  ;;  %v1998_v23 = vadd.f32 %v1886_v56, %v1524_v58  ;;  %2309 = vst [vmem:[#allocation3 + $0xac] sm:$0xff] %v2150_v15  ;;  %2189 = vrot.lane.b32.xlu0 %v2150_v15, %s10853_s26  ;;  %2345 = vrot.lane.b32.xlu1 %v2156_v31, %s10849_s16  ;;  %v11686_v58 = vperm.slane %v11607_v37, 5  ;;  %v14230_v56 = vld [vmem:[#allocation20_spill] sm:$0xff] }
 0x1ff   : > { %v11649_v26 = vpack.c.bf16 %v2124_v35, %v2123_v55  ;;  %v2041_v1 = vadd.f32 %v11536_v34, %v1997_v0  ;;  %v2027_v46 = vadd.f32 %v11516_v43, %v1983_v21  ;;  %v2137_v31 = vmul.f32 %v11612_v5, %v2071_v16  ;;  %14225 = vst [vmem:[#allocation29_spill] sm:$0xff] %v11679_v8  ;;  %v14228_v55 = vld [vmem:[#allocation19_spill] sm:$0xff]  ;;  %v14231_v0 = vld [vmem:[#allocation13_spill] sm:$0xff] }
 0x200   : > { %v2072_v28 = vmax.f32 %v2040_v25, 0.0  ;;  %v2042_v39 = vadd.f32 %v11536_v34, %v1998_v23  ;;  %14226 = vst [vmem:[#allocation30_spill] sm:$0xff] %v11686_v58  ;;  %v1552_v35 = vadd.f32 %v14228_v55, %v14227_v63  ;;  %v1592_v25 = vadd.f32 %v14230_v56, %v14229_v53  ;;  %v14232_v23 = vld [vmem:[#allocation21_spill] sm:$0xff]  ;;  %v14238_v63 = vld [vmem:[#allocation24_spill] sm:$0xff] }
 0x201   : > { %2187 = vrot.lane.b32.xlu2 %v11586_v17, %s10853_s26  ;;  %2310 = vst [vmem:[#allocation3 + $0xb4] sm:$0xff] %v11649_v26  ;;  %v2073_v45 = vmax.f32 %v2041_v1, 0.0  ;;  %v2059_v57 = vmax.f32 %v2027_v46, 0.0  ;;  %v14233_v1 = vld [vmem:[#allocation14_spill] sm:$0xff]  ;;  %v11728_v53 = vperm.slane %v11607_v37, 6  ;;  %v11731_v56 = vperm.slane %v11607_v37, 7 }
 0x202   : > { %v2074_v47 = vmax.f32 %v2042_v39, 0.0  ;;  %v2138_v60 = vmul.f32 %v11615_v24, %v2072_v28  ;;  %v1566_v28 = vadd.f32 %v14232_v23, %v14231_v0  ;;  %v14234_v39 = vld [vmem:[#allocation22_spill] sm:$0xff]  ;;  %v14242_v37 = vld [vmem:[#allocation17_spill] sm:$0xff] }
 0x203   : > { %v1912_v11 = vpop.f32.mrf.mxu3  ;;  %v2139_v36 = vmul.f32 %v11621_v52, %v2073_v45  ;;  %v2125_v50 = vmul.f32 %v11670_v27, %v2059_v57  ;;  %14239 = vst [vmem:[#allocation11_spill] sm:$0xff] %v11728_v53 }
 0x204   : > { %v1900_v59 = vpop.f32.mrf.mxu2  ;;  %v1984_v17 = vadd.f32 %v1912_v11, %v1550_v22  ;;  %v2158_v13 = vpack.c.bf16 %v2138_v60, %v2137_v31  ;;  %v2140_v18 = vmul.f32 %v11628_v33, %v2074_v47  ;;  %v1926_v30 = vpop.f32.mrf.mxu0  ;;  %v1580_v22 = vadd.f32 %v14234_v39, %v14233_v1  ;;  %14240 = vst [vmem:[#allocation19_spill] sm:$0xff] %v11731_v56 }
 0x205   : > { %v1999_v41 = vadd.f32 %v1900_v59, %v1538_v12  ;;  %v1940_v3 = vpop.f32.mrf.mxu1  ;;  %v1985_v61 = vadd.f32 %v1926_v30, %v1564_v9  ;;  %v14235_v30 = vld [vmem:[#allocation15_spill] sm:$0xff] }
 0x206   : > { %v2028_v6 = vadd.f32 %v11516_v43, %v1984_v17  ;;  %v1986_v19 = vadd.f32 %v1940_v3, %v1578_v62  ;;  %2317 = vst [vmem:[#allocation3 + $0xf4] sm:$0xff] %v2158_v13  ;;  %2349 = vrot.lane.b32.xlu0 %v2158_v13, %s10849_s16  ;;  %2333 = vrot.lane.b32.xlu1 %v2150_v15, %s10849_s16  ;;  %v14236_v3 = vld [vmem:[#allocation23_spill] sm:$0xff] }
 0x207   : > { %v11681_v10 = vpack.c.bf16 %v2140_v18, %v2139_v36  ;;  %v2029_v20 = vadd.f32 %v11516_v43, %v1985_v61  ;;  %v2043_v4 = vadd.f32 %v11536_v34, %v1999_v41 }
 0x208   : > { %v2060_v49 = vmax.f32 %v2028_v6, 0.0  ;;  %v2030_v38 = vadd.f32 %v11516_v43, %v1986_v19  ;;  %v1606_v6 = vadd.f32 %v14236_v3, %v14235_v30 }
 0x209   : > { %2335 = vrot.lane.b32.xlu2 %v11649_v26, %s10849_s16  ;;  %2318 = vst [vmem:[#allocation3 + $0xfc] sm:$0xff] %v11681_v10  ;;  %v2061_v16 = vmax.f32 %v2029_v20, 0.0  ;;  %v2075_v9 = vmax.f32 %v2043_v4, 0.0 }
 0x20a   : > { %v2126_v15 = vmul.f32 %v11673_v40, %v2060_v49  ;;  %v2062_v21 = vmax.f32 %v2030_v38, 0.0  ;;  %v14237_v38 = vld [vmem:[#allocation16_spill] sm:$0xff] }
 0x20b   : > { %v1914_v46 = vpop.f32.mrf.mxu3  ;;  %v2127_v45 = vmul.f32 %v11679_v8, %v2061_v16  ;;  %v1594_v55 = vadd.f32 %v14238_v63, %v14237_v38 }
 0x20c   : > { %v2128_v47 = vmul.f32 %v11686_v58, %v2062_v21  ;;  %v2000_v31 = vadd.f32 %v1914_v46, %v1552_v35  ;;  %v1954_v60 = vpop.f32.mrf.mxu2  ;;  %v11704_v12 = vpack.c.bf16 %v2126_v15, %v2125_v50  ;;  %v1928_v2 = vpop.f32.mrf.mxu0 }
 0x20d   : > { %v1987_v29 = vadd.f32 %v1954_v60, %v1592_v25  ;;  %v1942_v62 = vpop.f32.mrf.mxu1  ;;  %v2001_v59 = vadd.f32 %v1928_v2, %v1566_v28  ;;  %v14241_v28 = vmov 0  }
 0x20e   : > { %v2044_v11 = vadd.f32 %v11536_v34, %v2000_v31  ;;  %v2002_v17 = vadd.f32 %v1942_v62, %v1580_v22  ;;  %2311 = vst [vmem:[#allocation3 + $0xbc] sm:$0xff] %v11704_v12  ;;  %2337 = vrot.lane.b32.xlu0 %v11704_v12, %s10849_s16  ;;  %2203 = vrot.lane.b32.xlu1 %v11623_v44, %s10853_s26 }
 0x20f   : > { %v11712_v36 = vpack.c.bf16 %v2128_v47, %v2127_v45  ;;  %v2045_v57 = vadd.f32 %v11536_v34, %v2001_v59  ;;  %v2031_v61 = vadd.f32 %v11516_v43, %v1987_v29  ;;  %v2141_v44 = vmul.f32 %v11670_v27, %v2075_v9  ;;  %2325 = vst.msk [vmem:[#allocation3 + $0x120] sm:$0xf] %vm14126_vm6, %v14241_v28 }
 0x210   : > { %v2076_v18 = vmax.f32 %v2044_v11, 0.0  ;;  %v2046_v41 = vadd.f32 %v11536_v34, %v2002_v17  ;;  %2326 = vst.msk [vmem:[#allocation3 + $0x168] sm:$0xf] %vm14126_vm6, %v14241_v28  ;;  %v14246_v59 = vmov 0 }
 0x211   : > { %2205 = vrot.lane.b32.xlu2 %v2158_v13, %s10853_s26  ;;  %2312 = vst [vmem:[#allocation3 + $0xc4] sm:$0xff] %v11712_v36  ;;  %v2077_v19 = vmax.f32 %v2045_v57, 0.0  ;;  %v2063_v13 = vmax.f32 %v2031_v61, 0.0  ;;  %v14247_v59 = vsel %vm11783_vm14, 4294967295, %v14246_v59 }
 0x212   : > { %v2078_v49 = vmax.f32 %v2046_v41, 0.0  ;;  %v2142_v20 = vmul.f32 %v11673_v40, %v2076_v18  ;;  %6562 = vst.msk [vmem:[#allocation4 + $0x120] sm:$0xf] %vm14126_vm6, %v14241_v28 }
 0x213   : > { %v1968_v35 = vpop.f32.mrf.mxu3  ;;  %v2143_v16 = vmul.f32 %v11679_v8, %v2077_v19  ;;  %v2129_v39 = vmul.f32 %v11728_v53, %v2063_v13  ;;  %6563 = vst.msk [vmem:[#allocation4 + $0x168] sm:$0xf] %vm14126_vm6, %v14241_v28  ;;  %v10396_v13 = vld [vmem:[#allocation3 + $0xd8] sm:$0xf0] }
 0x214   : > { %v1956_v4 = vpop.f32.mrf.mxu2  ;;  %v1988_v50 = vadd.f32 %v1968_v35, %v1606_v6  ;;  %v2160_v15 = vpack.c.bf16 %v2142_v20, %v2141_v44  ;;  %v2144_v21 = vmul.f32 %v11686_v58, %v2078_v49  ;;  %2166 = vst.msk [vmem:[#allocation3 + $0x48] sm:$0xff] %vm2164_vm15, %v14241_v28 }
 0x215   : > { %v2003_v25 = vadd.f32 %v1956_v4, %v1594_v55  ;;  %2165 = vst.msk [vmem:[#allocation3] sm:$0xff] %vm2164_vm15, %v14241_v28 }
 0x216   : > { %v2032_v0 = vadd.f32 %v11516_v43, %v1988_v50  ;;  %2351 = vrot.lane.b32.xlu1 %v11681_v10, %s10849_s16  ;;  %2319 = vst [vmem:[#allocation3 + $0x104] sm:$0xff] %v2160_v15  ;;  %v2161_v23 = vpack.c.bf16 %v2144_v21, %v2143_v16  ;;  %v1608_v43 = vadd.f32 %v11532_v32, %v14242_v37 }
 0x217   : > { %v2047_v22 = vadd.f32 %v11536_v34, %v2003_v25  ;;  %6408 = vst.msk [vmem:[#allocation4] sm:$0xff] %vm2164_vm15, %v14241_v28 }
 0x218   : > { %v2064_v1 = vmax.f32 %v2032_v0, 0.0  ;;  %2320 = vst [vmem:[#allocation3 + $0x10c] sm:$0xff] %v2161_v23  ;;  %2355 = vrot.lane.b32.xlu0 %v2161_v23, %s10849_s16 }
 0x219   : > { %2353 = vrot.lane.b32.xlu2 %v2160_v15, %s10849_s16  ;;  %v2079_v60 = vmax.f32 %v2047_v22, 0.0  ;;  %6409 = vst.msk [vmem:[#allocation4 + $0x48] sm:$0xff] %vm2164_vm15, %v14241_v28  ;;  %vm14127_vm15 = vcmask 392192  }
 0x21a   : > { %v2130_v46 = vmul.f32 %v11731_v56, %v2064_v1  ;;  %14248 = vst [vmem:[#allocation20_spill] sm:$0xff] %v14247_v59 }
 0x21b   : > { %v1970_v45 = vpop.f32.mrf.mxu3 }
 0x21c   : > { %v2004_v47 = vadd.f32 %v1970_v45, %v1608_v43  ;;  %v2154_v31 = vpack.c.bf16 %v2130_v46, %v2129_v39  ;;  %v8827_v43 = vld [vmem:[#allocation3 + $0x94] sm:$0xf] }
 0x21d   : > { %v8828_v39 = vor.u32 %v10396_v13, %v8827_v43 }
 0x21e   : > { %v2048_v9 = vadd.f32 %v11536_v34, %v2004_v47  ;;  %2191 = vrot.lane.b32.xlu1 %v11649_v26, %s10853_s26  ;;  %2313 = vst [vmem:[#allocation3 + $0xcc] sm:$0xff] %v2154_v31  ;;  %v2145_v34 = vmul.f32 %v11728_v53, %v2079_v60 }
 0x220   : > { %v2080_v32 = vmax.f32 %v2048_v9, 0.0  ;;  %2207 = vrot.lane.b32.xlu0 %v11681_v10, %s10853_s26 }
 0x221   : > { %2193 = vrot.lane.b32.xlu2 %v11704_v12, %s10853_s26  ;;  %v14243_v12 = vmov 0 }
 0x222   : > { %v2146_v29 = vmul.f32 %v11731_v56, %v2080_v32  ;;  %v14244_v12 = vsel %vm11774_vm10, 4294967295, %v14243_v12 }
 0x223   : > { %14245 = vst [vmem:[#allocation12_spill] sm:$0xff] %v14244_v12 }
 0x224   : > { %v2162_v26 = vpack.c.bf16 %v2146_v29, %v2145_v34 }
 0x226   : > { %2339 = vrot.lane.b32.xlu1 %v11712_v36, %s10849_s16  ;;  %2321 = vst [vmem:[#allocation3 + $0x114] sm:$0xff] %v2162_v26 }
 0x228   : > { %2357 = vrot.lane.b32.xlu0 %v2162_v26, %s10849_s16 }
 0x229   : > { %2341 = vrot.lane.b32.xlu2 %v2154_v31, %s10849_s16 }
 0x22e   : > { %2209 = vrot.lane.b32.xlu1 %v2160_v15, %s10853_s26 }
 0x230   : > { %2211 = vrot.lane.b32.xlu0 %v2161_v23, %s10853_s26 }
 0x231   : > { %2197 = vrot.lane.b32.xlu2 %v2154_v31, %s10853_s26 }
 0x236   : > { %2195 = vrot.lane.b32.xlu1 %v11712_v36, %s10853_s26 }
 0x23a   : > { %v2328_v10 = vpop.permute.xlu2 %2327 }
 0x23b   : > { %v2359_v2 = vrot.slane %v2328_v10, 4 }
 0x23d   : > { %v2375_v62 = vsel %vm14145_vm11, %v2359_v2, %v2328_v10 }
 0x23e   : > { %2425 = vst.msk [vmem:[#allocation3 + $0x120] sm:$0xff] %vm11774_vm10, %v2375_v62  ;;  %2213 = vrot.lane.b32.xlu1 %v2162_v26, %s10853_s26 }
 0x242   : > { %v2200_v11 = vpop.permute.xlu2 %2199 }
 0x243   : > { %v2223_v17 = vrot.slane %v2200_v11, 4 }
 0x245   : > { %v2247_v36 = vsel %vm14135_vm0, %v2223_v17, %v2200_v11  ;;  %v8891_v15 = vld [vmem:[#allocation3 + $0x124] sm:$0xf] }
 0x246   : > { %2293 = vst.msk [vmem:[#allocation3 + $0x4c] sm:$0xff] %vm11783_vm14, %v2247_v36 }
 0x24a   : > { %v11790_v18 = vpop.permute.xlu2 %2331 }
 0x24b   : > { %v2361_v20 = vrot.slane %v11790_v18, 4 }
 0x24d   : > { %v10380_v34 = vld [vmem:[#allocation3 + $0x48] sm:$0xf0] }
 0x252   : > { %v2184_v57 = vpop.permute.xlu0 %2183 }
 0x253   : > { %v2215_v41 = vrot.slane %v2184_v57, 4  ;;  %v11792_v30 = vpop.permute.xlu2 %2347 }
 0x254   : > { %v2369_v62 = vrot.slane %v11792_v30, 4 }
 0x255   : > { %v2232_v3 = vsel %vm14135_vm0, %v2215_v41, %v2184_v57 }
 0x256   : > { %2283 = vst.msk [vmem:[#allocation3 + $0x4] sm:$0xff] %vm11783_vm14, %v2232_v3 }
 0x25a   : > { %v2344_v6 = vpop.permute.xlu0 %2343 }
 0x25b   : > { %v2367_v61 = vrot.slane %v2344_v6, 4  ;;  %v2188_v19 = vpop.permute.xlu2 %2187 }
 0x25c   : > { %v2217_v23 = vrot.slane %v2188_v19, 4 }
 0x25d   : > { %v2390_v49 = vsel %vm14145_vm11, %v2367_v61, %v2344_v6  ;;  %v8763_v31 = vld [vmem:[#allocation3 + $0x4] sm:$0xf] }
 0x25e   : > { %2434 = vst.msk [vmem:[#allocation3 + $0x168] sm:$0xff] %vm11774_vm10, %v2390_v49  ;;  %v8764_v29 = vor.u32 %v10380_v34, %v8763_v31  ;;  %v8837_v34 = vld [vmem:[#allocation3 + $0xe4] sm:$0xf0] }
 0x260   : > { %v2330_v44 = vpop.permute.xlu1 %2329 }
 0x261   : > { %v2360_v38 = vrot.slane %v2330_v44, 4 }
 0x263   : > { %v2376_v63 = vsel %vm14144_vm13, %v2359_v2, %v2360_v38  ;;  %v2378_v55 = vsel %vm14144_vm13, %v2360_v38, %v2361_v20  ;;  %v11803_v35 = vpop.permute.xlu2 %2335  ;;  %v11827_v2 = vld [vmem:[%s14098_s4 + $0x2] sm:$0x3] }
 0x264   : > { %v2377_v4 = vsel %vm14145_vm11, %v2376_v63, %v2330_v44  ;;  %v2379_v50 = vsel %vm14145_vm11, %v2378_v55, %v11790_v18  ;;  %v2363_v44 = vrot.slane %v11803_v35, 4 }
 0x265   : > { %2426 = vst [vmem:[#allocation3 + $0x128] sm:$0xff] %v2377_v4  ;;  %v10412_v16 = vld [vmem:[#allocation3 + $0x168] sm:$0xf0] }
 0x266   : > { %2427 = vst [vmem:[#allocation3 + $0x130] sm:$0xff] %v2379_v50  ;;  %v8892_v21 = vor.u32 %v10412_v16, %v8891_v15 }
 0x268   : > { %2793 = vmatpush.bf16.msra.mxu0 %v8892_v21  ;;  %v11808_v25 = vpop.permute.xlu0 %2201  ;;  %v2186_v0 = vpop.permute.xlu1 %2185 }
 0x269   : > { %v2224_v1 = vrot.slane %v11808_v25, 4  ;;  %v2216_v37 = vrot.slane %v2186_v0, 4 }
 0x26b   : > { %v2248_v22 = vsel %vm14144_vm13, %v2223_v17, %v2224_v1  ;;  %v2233_v46 = vsel %vm14144_vm13, %v2215_v41, %v2216_v37  ;;  %v2235_v45 = vsel %vm14144_vm13, %v2216_v37, %v2217_v23  ;;  %v11816_v47 = vpop.permute.xlu2 %2205 }
 0x26c   : > { %v2249_v60 = vsel %vm14135_vm0, %v2248_v22, %v11808_v25  ;;  %v2234_v9 = vsel %vm14135_vm0, %v2233_v46, %v2186_v0  ;;  %v2236_v32 = vsel %vm14135_vm0, %v2235_v45, %v2188_v19  ;;  %2794 = vmatpush.bf16.msra.mxu0 %v8828_v39  ;;  %v10404_v15 = vld [vmem:[#allocation3 + $0x128] sm:$0xf]  ;;  %v8899_v0 = vld [vmem:[#allocation3 + $0x12c] sm:$0xf] }
 0x26d   : > { %2294 = vst [vmem:[#allocation3 + $0x54] sm:$0xff] %v2249_v60  ;;  %v8907_v37 = vld [vmem:[#allocation3 + $0x134] sm:$0xf] }
 0x26e   : > { %2284 = vst [vmem:[#allocation3 + $0xc] sm:$0xff] %v2234_v9 }
 0x26f   : > { %2285 = vst [vmem:[#allocation3 + $0x14] sm:$0xff] %v2236_v32  ;;  %v10397_v32 = vld [vmem:[#allocation3 + $0xe0] sm:$0xf0] }
 0x270   : > { %2795 = vmatpush.bf16.msra.mxu0 %v8764_v29  ;;  %v11822_v26 = vpop.permute.xlu0 %2189  ;;  %v2346_v10 = vpop.permute.xlu1 %2345 }
 0x271   : > { %v2218_v11 = vrot.slane %v11822_v26, 4  ;;  %v2368_v17 = vrot.slane %v2346_v10, 4 }
 0x273   : > { %v2237_v36 = vsel %vm14144_vm13, %v2217_v23, %v2218_v11  ;;  %v2391_v18 = vsel %vm14144_vm13, %v2367_v61, %v2368_v17  ;;  %v2393_v57 = vsel %vm14144_vm13, %v2368_v17, %v2369_v62  ;;  %v11836_v41 = vpop.permute.xlu2 %2353  ;;  %8953 = vmatmul.msk.bf16.vlgmr.msra.gmra.mxu0 %vm14127_vm15, %v11827_v2  ;;  %v10405_v23 = vld [vmem:[#allocation3 + $0x130] sm:$0xf]  ;;  %v10398_v17 = vld [vmem:[#allocation3 + $0xe8] sm:$0xf0] }
 0x274   : > { %v2238_v3 = vsel %vm14135_vm0, %v2237_v36, %v11822_v26  ;;  %v2392_v6 = vsel %vm14145_vm11, %v2391_v18, %v2346_v10  ;;  %v2394_v19 = vsel %vm14145_vm11, %v2393_v57, %v11792_v30  ;;  %v10388_v10 = vld [vmem:[#allocation3 + $0x98] sm:$0xf]  ;;  %v2226_v36 = vrot.slane %v11816_v47, 4 }
 0x275   : > { %2286 = vst [vmem:[#allocation3 + $0x1c] sm:$0xff] %v2238_v3  ;;  %v10389_v3 = vld [vmem:[#allocation3 + $0xa0] sm:$0xf] }
 0x276   : > { %2435 = vst [vmem:[#allocation3 + $0x170] sm:$0xff] %v2392_v6 }
 0x277   : > { %2436 = vst [vmem:[#allocation3 + $0x178] sm:$0xff] %v2394_v19 }
 0x278   : > { %v11845_v49 = vpop.permute.xlu0 %2349  ;;  %v2334_v61 = vpop.permute.xlu1 %2333 }
 0x279   : > { %v2370_v38 = vrot.slane %v11845_v49, 4  ;;  %v2362_v63 = vrot.slane %v2334_v61, 4 }
 0x27b   : > { %v2395_v55 = vsel %vm14144_vm13, %v2369_v62, %v2370_v38  ;;  %v2380_v4 = vsel %vm14144_vm13, %v2361_v20, %v2362_v63  ;;  %v2382_v50 = vsel %vm14144_vm13, %v2362_v63, %v2363_v44  ;;  %v11854_v30 = vpop.permute.xlu2 %2193  ;;  %v8829_v20 = vld [vmem:[#allocation3 + $0xdc] sm:$0xf0]  ;;  %v8835_v62 = vld [vmem:[#allocation3 + $0x9c] sm:$0xf]  ;;  %v8843_v63 = vld [vmem:[#allocation3 + $0xa4] sm:$0xf] }
 0x27c   : > { %v2396_v16 = vsel %vm14145_vm11, %v2395_v55, %v11845_v49  ;;  %v2381_v21 = vsel %vm14145_vm11, %v2380_v4, %v2334_v61  ;;  %v2383_v13 = vsel %vm14145_vm11, %v2382_v50, %v11803_v35  ;;  %v8832_v6 = vor.u32 %v10388_v10, %v8829_v20  ;;  %v10372_v55 = vld [vmem:[#allocation3 + $0x8] sm:$0xf]  ;;  %v10381_v4 = vld [vmem:[#allocation3 + $0x50] sm:$0xf0] }
 0x27d   : > { %2437 = vst [vmem:[#allocation3 + $0x180] sm:$0xff] %v2396_v16  ;;  %v8893_v43 = vld [vmem:[#allocation3 + $0x16c] sm:$0xf0]  ;;  %v10413_v39 = vld [vmem:[#allocation3 + $0x170] sm:$0xf0]  ;;  %v8836_v19 = vor.u32 %v10397_v32, %v8835_v62  ;;  %v8840_v61 = vor.u32 %v10389_v3, %v8837_v34 }
 0x27e   : > { %2428 = vst [vmem:[#allocation3 + $0x138] sm:$0xff] %v2381_v21  ;;  %v8896_v22 = vor.u32 %v10404_v15, %v8893_v43  ;;  %v8900_v46 = vor.u32 %v10413_v39, %v8899_v0  ;;  %v8901_v45 = vld [vmem:[#allocation3 + $0x174] sm:$0xf0]  ;;  %v10414_v31 = vld [vmem:[#allocation3 + $0x178] sm:$0xf0] }
 0x27f   : > { %2429 = vst [vmem:[#allocation3 + $0x140] sm:$0xff] %v2383_v13  ;;  %v8904_v60 = vor.u32 %v10405_v23, %v8901_v45  ;;  %v8908_v9 = vor.u32 %v10414_v31, %v8907_v37  ;;  %v8844_v13 = vor.u32 %v10398_v17, %v8843_v63  ;;  %v8765_v0 = vld [vmem:[#allocation3 + $0x4c] sm:$0xf0]  ;;  %v8771_v23 = vld [vmem:[#allocation3 + $0xc] sm:$0xf]  ;;  %v2372_v17 = vrot.slane %v11836_v41, 4 }
 0x280   : > { %2806 = vmatpush.bf16.msra.mxu1 %v8896_v22  ;;  %2819 = vmatpush.bf16.msra.mxu2 %v8900_v46  ;;  %v11861_v35 = vpop.permute.xlu0 %2337  ;;  %v2204_v29 = vpop.permute.xlu1 %2203  ;;  %v10373_v37 = vld [vmem:[#allocation3 + $0x10] sm:$0xf]  ;;  %v8773_v43 = vld [vmem:[#allocation3 + $0x54] sm:$0xf0]  ;;  %v8768_v31 = vor.u32 %v10372_v55, %v8765_v0  ;;  %v10399_v62 = vld [vmem:[#allocation3 + $0xf0] sm:$0xf0] }
 0x281   : > { %2832 = vmatpush.bf16.msra.mxu3 %v8904_v60  ;;  %2845 = vmatpush.bf16.msrb.mxu0 %v8908_v9  ;;  %v2364_v18 = vrot.slane %v11861_v35, 4  ;;  %v2225_v57 = vrot.slane %v2204_v29, 4  ;;  %v8772_v60 = vor.u32 %v10381_v4, %v8771_v23  ;;  %v8776_v34 = vor.u32 %v10373_v37, %v8773_v43  ;;  %v10390_v3 = vld [vmem:[#allocation3 + $0xa8] sm:$0xf]  ;;  %v10374_v0 = vld [vmem:[#allocation3 + $0x18] sm:$0xf] }
 0x283   : > { %v2384_v50 = vsel %vm14144_vm13, %v2363_v44, %v2364_v18  ;;  %v2250_v15 = vsel %vm14144_vm13, %v2224_v1, %v2225_v57  ;;  %v2252_v16 = vsel %vm14144_vm13, %v2225_v57, %v2226_v36  ;;  %v11874_v21 = vpop.permute.xlu2 %2341 }
 0x284   : > { %v2385_v39 = vsel %vm14145_vm11, %v2384_v50, %v11861_v35  ;;  %v2251_v44 = vsel %vm14135_vm0, %v2250_v15, %v2204_v29  ;;  %v2253_v25 = vsel %vm14135_vm0, %v2252_v16, %v11816_v47  ;;  %v2366_v1 = vrot.slane %v11874_v21, 4  ;;  %2807 = vmatpush.bf16.msra.mxu1 %v8832_v6  ;;  %2820 = vmatpush.bf16.msra.mxu2 %v8836_v19  ;;  %v8909_v20 = vld [vmem:[#allocation3 + $0x17c] sm:$0xf0]  ;;  %v10415_v22 = vld [vmem:[#allocation3 + $0x180] sm:$0xf0] }
 0x285   : > { %2430 = vst [vmem:[#allocation3 + $0x148] sm:$0xff] %v2385_v39  ;;  %2833 = vmatpush.bf16.msra.mxu3 %v8840_v61  ;;  %2846 = vmatpush.bf16.msrb.mxu0 %v8844_v13  ;;  %v10406_v46 = vld [vmem:[#allocation3 + $0x138] sm:$0xf]  ;;  %v8915_v45 = vld [vmem:[#allocation3 + $0x13c] sm:$0xf] }
 0x286   : > { %2295 = vst [vmem:[#allocation3 + $0x5c] sm:$0xff] %v2251_v44  ;;  %v8912_v9 = vor.u32 %v10406_v46, %v8909_v20  ;;  %v8916_v32 = vor.u32 %v10415_v22, %v8915_v45  ;;  %v8845_v29 = vld [vmem:[#allocation3 + $0xec] sm:$0xf0]  ;;  %v8851_v61 = vld [vmem:[#allocation3 + $0xac] sm:$0xf]  ;;  %v2220_v45 = vrot.slane %v11854_v30, 4 }
 0x287   : > { %2296 = vst [vmem:[#allocation3 + $0x64] sm:$0xff] %v2253_v25  ;;  %v8848_v19 = vor.u32 %v10390_v3, %v8845_v29  ;;  %v8852_v15 = vor.u32 %v10399_v62, %v8851_v61  ;;  %v8779_v13 = vld [vmem:[#allocation3 + $0x14] sm:$0xf]  ;;  %v8787_v25 = vld [vmem:[#allocation3 + $0x1c] sm:$0xf] }
 0x288   : > { %2433 = vst.msk [vmem:[#allocation3 + $0x160] sm:$0xf] %vm14126_vm6, %v2366_v1  ;;  %2808 = vmatpush.bf16.msra.mxu1 %v8768_v31  ;;  %2821 = vmatpush.bf16.msra.mxu2 %v8772_v60  ;;  %v2352_v10 = vpop.permute.xlu1 %2351  ;;  %v10375_v35 = vld [vmem:[#allocation3 + $0x20] sm:$0xf] }
 0x289   : > { %2443 = vst.msk [vmem:[#allocation3 + $0x160] sm:$0xff] %vm11774_vm10, %v14241_v28  ;;  %2834 = vmatpush.bf16.msra.mxu3 %v8776_v34  ;;  %v2371_v57 = vrot.slane %v2352_v10, 4 }
 0x28a   : > { %v11889_v6 = vpop.permute.xlu0 %2355 }
 0x28b   : > { %v2397_v63 = vsel %vm14144_vm13, %v2370_v38, %v2371_v57  ;;  %v2399_v55 = vsel %vm14144_vm13, %v2371_v57, %v2372_v17  ;;  %v11895_v4 = vpop.permute.xlu2 %2197  ;;  %v2373_v50 = vrot.slane %v11889_v6, 4  ;;  %8954 = vmatmul.msk.bf16.vlgmr.msra.gmra.mxu1 %vm14127_vm15, %v11827_v2  ;;  %8955 = vmatmul.msk.bf16.vlgmr.msra.gmra.mxu2 %vm14127_vm15, %v11827_v2 }
 0x28c   : > { %2858 = vmatpush.bf16.msrb.mxu1 %v8912_v9  ;;  %2871 = vmatpush.bf16.msrb.mxu2 %v8916_v32  ;;  %v2398_v16 = vsel %vm14145_vm11, %v2397_v63, %v2352_v10  ;;  %v2400_v49 = vsel %vm14145_vm11, %v2399_v55, %v11836_v41  ;;  %v2222_v38 = vrot.slane %v11895_v4, 4  ;;  %v10407_v9 = vld [vmem:[#allocation3 + $0x140] sm:$0xf]  ;;  %v8923_v10 = vld [vmem:[#allocation3 + $0x144] sm:$0xf] }
 0x28d   : > { %8956 = vmatmul.msk.bf16.vlgmr.msra.gmra.mxu3 %vm14127_vm15, %v11827_v2  ;;  %2438 = vst [vmem:[#allocation3 + $0x188] sm:$0xff] %v2398_v16  ;;  %v2401_v23 = vsel %vm14144_vm13, %v2372_v17, %v2373_v50  ;;  %v10382_v37 = vld [vmem:[#allocation3 + $0x58] sm:$0xf0]  ;;  %v8781_v43 = vld [vmem:[#allocation3 + $0x5c] sm:$0xf0] }
 0x28e   : > { %2439 = vst [vmem:[#allocation3 + $0x190] sm:$0xff] %v2400_v49  ;;  %v2402_v41 = vsel %vm14145_vm11, %v2401_v23, %v11889_v6  ;;  %v8780_v39 = vor.u32 %v10382_v37, %v8779_v13  ;;  %v8784_v44 = vor.u32 %v10374_v0, %v8781_v43  ;;  %v10383_v20 = vld [vmem:[#allocation3 + $0x60] sm:$0xf0]  ;;  %v10408_v62 = vld [vmem:[#allocation3 + $0x148] sm:$0xf] }
 0x28f   : > { %2292 = vst.msk [vmem:[#allocation3 + $0x44] sm:$0xf] %vm14125_vm12, %v2222_v38  ;;  %v8788_v22 = vor.u32 %v10383_v20, %v8787_v25  ;;  %v8853_v0 = vld [vmem:[#allocation3 + $0xf4] sm:$0xf0]  ;;  %v10400_v23 = vld [vmem:[#allocation3 + $0xf8] sm:$0xf0] }
 0x290   : > { %2859 = vmatpush.bf16.msrb.mxu1 %v8848_v19  ;;  %2872 = vmatpush.bf16.msrb.mxu2 %v8852_v15  ;;  %2302 = vst.msk [vmem:[#allocation3 + $0x44] sm:$0xf] %vm14124_vm1, %v14241_v28  ;;  %v2192_v46 = vpop.permute.xlu1 %2191  ;;  %v8931_v19 = vld [vmem:[#allocation3 + $0x14c] sm:$0xf]  ;;  %v8861_v37 = vld [vmem:[#allocation3 + $0xfc] sm:$0xf0] }
 0x291   : > { %2847 = vmatpush.bf16.msrb.mxu0 %v8780_v39  ;;  %2440 = vst [vmem:[#allocation3 + $0x198] sm:$0xff] %v2402_v41  ;;  %v2219_v31 = vrot.slane %v2192_v46, 4  ;;  %v10401_v43 = vld [vmem:[#allocation3 + $0x100] sm:$0xf0]  ;;  %v10392_v25 = vld [vmem:[#allocation3 + $0xb8] sm:$0xf] }
 0x292   : > { %v11919_v60 = vpop.permute.xlu0 %2207 }
 0x293   : > { %v2239_v32 = vsel %vm14144_vm13, %v2218_v11, %v2219_v31  ;;  %v2241_v34 = vsel %vm14144_vm13, %v2219_v31, %v2220_v45  ;;  %v2227_v29 = vrot.slane %v11919_v60, 4  ;;  %v8867_v31 = vld [vmem:[#allocation3 + $0xbc] sm:$0xf] }
 0x294   : > { %2860 = vmatpush.bf16.msrb.mxu1 %v8784_v44  ;;  %2873 = vmatpush.bf16.msrb.mxu2 %v8788_v22  ;;  %v2240_v17 = vsel %vm14135_vm0, %v2239_v32, %v2192_v46  ;;  %v2242_v57 = vsel %vm14135_vm0, %v2241_v34, %v11854_v30  ;;  %v8917_v3 = vld [vmem:[#allocation3 + $0x184] sm:$0xf0]  ;;  %v10416_v26 = vld [vmem:[#allocation3 + $0x188] sm:$0xf0]  ;;  %v8859_v44 = vld [vmem:[#allocation3 + $0xb4] sm:$0xf]  ;;  %v8864_v46 = vor.u32 %v10392_v25, %v8861_v37 }
 0x295   : > { %8957 = vmatmul.msk.bf16.vlgmr.msrb.gmra.mxu0 %vm14127_vm15, %v11827_v2  ;;  %2287 = vst [vmem:[#allocation3 + $0x24] sm:$0xff] %v2240_v17  ;;  %v2254_v11 = vsel %vm14144_vm13, %v2226_v36, %v2227_v29  ;;  %v8920_v61 = vor.u32 %v10407_v9, %v8917_v3  ;;  %v8924_v63 = vor.u32 %v10416_v26, %v8923_v10  ;;  %v8925_v55 = vld [vmem:[#allocation3 + $0x18c] sm:$0xf0]  ;;  %v10417_v15 = vld [vmem:[#allocation3 + $0x190] sm:$0xf0] }
 0x296   : > { %2288 = vst [vmem:[#allocation3 + $0x2c] sm:$0xff] %v2242_v57  ;;  %v2255_v16 = vsel %vm14135_vm0, %v2254_v11, %v11919_v60  ;;  %v8928_v49 = vor.u32 %v10408_v62, %v8925_v55  ;;  %v8932_v13 = vor.u32 %v10417_v15, %v8931_v19  ;;  %v10391_v36 = vld [vmem:[#allocation3 + $0xb0] sm:$0xf]  ;;  %v8860_v22 = vor.u32 %v10400_v23, %v8859_v44  ;;  %v8789_v9 = vld [vmem:[#allocation3 + $0x64] sm:$0xf0] }
 0x297   : > { %2297 = vst [vmem:[#allocation3 + $0x6c] sm:$0xff] %v2255_v16  ;;  %2884 = vmatpush.bf16.msrb.mxu3 %v8920_v61  ;;  %2897 = vmatpush.bf16.msra.mxu0 %v8924_v63  ;;  %v8856_v39 = vor.u32 %v10391_v36, %v8853_v0  ;;  %v8868_v62 = vor.u32 %v10401_v43, %v8867_v31  ;;  %v10402_v25 = vld [vmem:[#allocation3 + $0x108] sm:$0xf0]  ;;  %v8877_v31 = vld [vmem:[#allocation3 + $0x10c] sm:$0xf0] }
 0x298   : > { %2910 = vmatpush.bf16.msra.mxu1 %v8928_v49  ;;  %2923 = vmatpush.bf16.msra.mxu2 %v8932_v13  ;;  %v2340_v47 = vpop.permute.xlu1 %2339  ;;  %v8933_v49 = vld [vmem:[#allocation3 + $0x194] sm:$0xf0]  ;;  %v10418_v37 = vld [vmem:[#allocation3 + $0x198] sm:$0xf0] }
 0x299   : > { %v2365_v41 = vrot.slane %v2340_v47, 4 }
 0x29a   : > { %v2358_v20 = vpop.permute.xlu0 %2357 }
 0x29b   : > { %v2386_v32 = vsel %vm14144_vm13, %v2364_v18, %v2365_v41  ;;  %v2388_v34 = vsel %vm14144_vm13, %v2365_v41, %v2366_v1  ;;  %v2374_v10 = vrot.slane %v2358_v20, 4  ;;  %8958 = vmatmul.msk.bf16.vlgmr.msrb.gmra.mxu1 %vm14127_vm15, %v11827_v2  ;;  %2885 = vmatpush.bf16.msrb.mxu3 %v8856_v39  ;;  %v8792_v1 = vor.u32 %v10375_v35, %v8789_v9  ;;  %v8869_v39 = vld [vmem:[#allocation3 + $0x104] sm:$0xf0] }
 0x29c   : > { %v2387_v17 = vsel %vm14145_vm11, %v2386_v32, %v2340_v47  ;;  %v2389_v57 = vsel %vm14145_vm11, %v2388_v34, %v11874_v21  ;;  %2898 = vmatpush.bf16.msra.mxu0 %v8860_v22  ;;  %2911 = vmatpush.bf16.msra.mxu1 %v8864_v46  ;;  %v8795_v3 = vld [vmem:[#allocation3 + $0x24] sm:$0xf]  ;;  %v10376_v26 = vld [vmem:[#allocation3 + $0x28] sm:$0xf]  ;;  %v10393_v22 = vld [vmem:[#allocation3 + $0xc0] sm:$0xf] }
 0x29d   : > { %2431 = vst [vmem:[#allocation3 + $0x150] sm:$0xff] %v2387_v17  ;;  %v2403_v18 = vsel %vm14144_vm13, %v2373_v50, %v2374_v10  ;;  %2924 = vmatpush.bf16.msra.mxu2 %v8868_v62  ;;  %v8875_v46 = vld [vmem:[#allocation3 + $0xc4] sm:$0xf]  ;;  %v8872_v32 = vor.u32 %v10393_v22, %v8869_v39  ;;  %v10411_v34 = vld [vmem:[#allocation3 + $0x160] sm:$0xf] }
 0x29e   : > { %2432 = vst [vmem:[#allocation3 + $0x158] sm:$0xff] %v2389_v57  ;;  %v2404_v19 = vsel %vm14145_vm11, %v2403_v18, %v2358_v20  ;;  %8959 = vmatmul.msk.bf16.vlgmr.msrb.gmra.mxu2 %vm14127_vm15, %v11827_v2  ;;  %v10384_v11 = vld [vmem:[#allocation3 + $0x68] sm:$0xf0]  ;;  %v8797_v21 = vld [vmem:[#allocation3 + $0x6c] sm:$0xf0]  ;;  %v8876_v62 = vor.u32 %v10402_v25, %v8875_v46 }
 0x29f   : > { %2441 = vst [vmem:[#allocation3 + $0x1a0] sm:$0xff] %v2404_v19  ;;  %2886 = vmatpush.bf16.msrb.mxu3 %v8792_v1  ;;  %v8796_v61 = vor.u32 %v10384_v11, %v8795_v3  ;;  %v8800_v63 = vor.u32 %v10376_v26, %v8797_v21  ;;  %v10394_v17 = vld [vmem:[#allocation3 + $0xc8] sm:$0xf]  ;;  %v8803_v1 = vld [vmem:[#allocation3 + $0x2c] sm:$0xf] }
 0x2a0   : > { %2442 = vst.msk [vmem:[#allocation3 + $0x1a8] sm:$0xf] %vm14126_vm6, %v2374_v10  ;;  %v2210_v6 = vpop.permute.xlu1 %2209  ;;  %v8880_v18 = vor.u32 %v10394_v17, %v8877_v31  ;;  %v10377_v11 = vld [vmem:[#allocation3 + $0x30] sm:$0xf]  ;;  %v10356_v39 = vld [vmem:[#allocation3 + $0x124] sm:$0xf] }
 0x2a1   : > { %2444 = vst.msk [vmem:[#allocation3 + $0x1a8] sm:$0xff] %vm11774_vm10, %v14241_v28  ;;  %v2228_v50 = vrot.slane %v2210_v6, 4  ;;  %2899 = vmatpush.bf16.msra.mxu0 %v8796_v61  ;;  %2912 = vmatpush.bf16.msra.mxu1 %v8800_v63  ;;  %v9035_v46 = vld [vmem:[#allocation3 + $0x90] sm:$0xf]  ;;  %v10332_v17 = vld [vmem:[#allocation3 + $0x44] sm:$0xf0] }
 0x2a2   : > { %v11961_v55 = vpop.permute.xlu0 %2211  ;;  %8960 = vmatmul.msk.bf16.vlgmr.msrb.gmra.mxu3 %vm14127_vm15, %v11827_v2 }
 0x2a3   : > { %v2256_v15 = vsel %vm14144_vm13, %v2227_v29, %v2228_v50  ;;  %v2229_v16 = vrot.slane %v11961_v55, 4 }
 0x2a4   : > { %v2257_v13 = vsel %vm14135_vm0, %v2256_v15, %v2210_v6  ;;  %v10409_v0 = vld [vmem:[#allocation3 + $0x150] sm:$0xf]  ;;  %v8939_v23 = vld [vmem:[#allocation3 + $0x154] sm:$0xf]  ;;  %v8885_v15 = vld [vmem:[#allocation3 + $0x114] sm:$0xf0] }
 0x2a5   : > { %8961 = vmatmul.msk.bf16.vlgmr.msra.gmra.mxu0 %vm14127_vm15, %v11827_v2  ;;  %2298 = vst [vmem:[#allocation3 + $0x74] sm:$0xff] %v2257_v13  ;;  %v2258_v47 = vsel %vm14144_vm13, %v2228_v50, %v2229_v16  ;;  %v8936_v36 = vor.u32 %v10409_v0, %v8933_v49  ;;  %v8940_v60 = vor.u32 %v10418_v37, %v8939_v23  ;;  %v10410_v43 = vld [vmem:[#allocation3 + $0x158] sm:$0xf]  ;;  %v8947_v63 = vld [vmem:[#allocation3 + $0x15c] sm:$0xf] }
 0x2a6   : > { %v2259_v29 = vsel %vm14135_vm0, %v2258_v47, %v11961_v55  ;;  %v8941_v41 = vld [vmem:[#allocation3 + $0x19c] sm:$0xf0]  ;;  %v10419_v3 = vld [vmem:[#allocation3 + $0x1a0] sm:$0xf0]  ;;  %v10403_v50 = vld [vmem:[#allocation3 + $0x110] sm:$0xf0] }
 0x2a7   : > { %2299 = vst [vmem:[#allocation3 + $0x7c] sm:$0xff] %v2259_v29  ;;  %2936 = vmatpush.bf16.msra.mxu3 %v8936_v36  ;;  %2949 = vmatpush.bf16.msrb.mxu0 %v8940_v60  ;;  %v8944_v44 = vor.u32 %v10410_v43, %v8941_v41  ;;  %v8948_v6 = vor.u32 %v10419_v3, %v8947_v63  ;;  %v8883_v13 = vld [vmem:[#allocation3 + $0xcc] sm:$0xf]  ;;  %v10395_v0 = vld [vmem:[#allocation3 + $0xd0] sm:$0xf] }
 0x2a8   : > { %v2196_v20 = vpop.permute.xlu1 %2195  ;;  %v8949_v10 = vld [vmem:[#allocation3 + $0x1a4] sm:$0xf0]  ;;  %v8884_v23 = vor.u32 %v10403_v50, %v8883_v13  ;;  %v8888_v37 = vor.u32 %v10395_v0, %v8885_v15  ;;  %v9101_v36 = vld [vmem:[#allocation3 + $0x168] sm:$0xf0]  ;;  %v9099_v41 = vld [vmem:[#allocation3 + $0x120] sm:$0xf] }
 0x2a9   : > { %v2221_v9 = vrot.slane %v2196_v20, 4  ;;  %2962 = vmatpush.bf16.msrb.mxu1 %v8944_v44  ;;  %v8952_v21 = vor.u32 %v10411_v34, %v8949_v10  ;;  %v10364_v47 = vld [vmem:[#allocation3 + $0x164] sm:$0xf0]  ;;  %v10340_v10 = vld [vmem:[#allocation3 + $0x94] sm:$0xf] }
 0x2aa   : > { %v9100_v31 = vor.u32 %v10364_v47, %v9099_v41  ;;  %v9109_v3 = vld [vmem:[#allocation3 + $0x170] sm:$0xf0]  ;;  %v9117_v63 = vld [vmem:[#allocation3 + $0x178] sm:$0xf0]  ;;  %v9107_v50 = vld [vmem:[#allocation3 + $0x128] sm:$0xf] }
 0x2ab   : > { %v2243_v57 = vsel %vm14144_vm13, %v2220_v45, %v2221_v9  ;;  %v2245_v35 = vsel %vm14144_vm13, %v2221_v9, %v2222_v38  ;;  %8962 = vmatmul.msk.bf16.vlgmr.msra.gmra.mxu1 %vm14127_vm15, %v11827_v2  ;;  %2937 = vmatpush.bf16.msra.mxu3 %v8872_v32  ;;  %v9104_v9 = vor.u32 %v10356_v39, %v9101_v36  ;;  %v9037_v32 = vld [vmem:[#allocation3 + $0xd8] sm:$0xf0]  ;;  %v10357_v15 = vld [vmem:[#allocation3 + $0x12c] sm:$0xf]  ;;  %v9115_v13 = vld [vmem:[#allocation3 + $0x130] sm:$0xf] }
 0x2ac   : > { %v2244_v26 = vsel %vm14135_vm0, %v2243_v57, %v2196_v20  ;;  %v2246_v19 = vsel %vm14135_vm0, %v2245_v35, %v11895_v4  ;;  %2950 = vmatpush.bf16.msrb.mxu0 %v8876_v62  ;;  %v10385_v30 = vld [vmem:[#allocation3 + $0x70] sm:$0xf0]  ;;  %v8805_v45 = vld [vmem:[#allocation3 + $0x74] sm:$0xf0]  ;;  %v8971_v62 = vld [vmem:[#allocation3] sm:$0xf]  ;;  %v9040_v57 = vor.u32 %v10340_v10, %v9037_v32 }
 0x2ad   : > { %2289 = vst [vmem:[#allocation3 + $0x34] sm:$0xff] %v2244_v26  ;;  %2963 = vmatpush.bf16.msrb.mxu1 %v8880_v18  ;;  %v8804_v38 = vor.u32 %v10385_v30, %v8803_v1  ;;  %v8808_v61 = vor.u32 %v10377_v11, %v8805_v45  ;;  %v10324_v35 = vld [vmem:[#allocation3 + $0x4] sm:$0xf]  ;;  %v10365_v1 = vld [vmem:[#allocation3 + $0x16c] sm:$0xf0]  ;;  %v8972_v11 = vor.u32 %v10332_v17, %v8971_v62 }
 0x2ae   : > { %2290 = vst [vmem:[#allocation3 + $0x3c] sm:$0xff] %v2246_v19  ;;  %v10386_v29 = vld [vmem:[#allocation3 + $0x78] sm:$0xf0]  ;;  %v8813_v43 = vld [vmem:[#allocation3 + $0x7c] sm:$0xf0] }
 0x2af   : > { %2925 = vmatpush.bf16.msra.mxu2 %v8804_v38  ;;  %2938 = vmatpush.bf16.msra.mxu3 %v8808_v61  ;;  %v8973_v38 = vld [vmem:[#allocation3 + $0x48] sm:$0xf0]  ;;  %v10366_v61 = vld [vmem:[#allocation3 + $0x174] sm:$0xf0]  ;;  %v10358_v0 = vld [vmem:[#allocation3 + $0x134] sm:$0xf] }
 0x2b0   : > { %v2214_v49 = vpop.permute.xlu1 %2213  ;;  %v10349_v47 = vld [vmem:[#allocation3 + $0xdc] sm:$0xf0]  ;;  %v9045_v36 = vld [vmem:[#allocation3 + $0xe0] sm:$0xf0]  ;;  %v10341_v41 = vld [vmem:[#allocation3 + $0x9c] sm:$0xf] }
 0x2b1   : > { %v2230_v4 = vrot.slane %v2214_v49, 4  ;;  %v8987_v32 = vld [vmem:[#allocation3 + $0x10] sm:$0xf]  ;;  %v8989_v10 = vld [vmem:[#allocation3 + $0x58] sm:$0xf0] }
 0x2b2   : > { %8963 = vmatmul.msk.bf16.vlgmr.msra.gmra.mxu2 %vm14127_vm15, %v11827_v2  ;;  %8964 = vmatmul.msk.bf16.vlgmr.msra.gmra.mxu3 %vm14127_vm15, %v11827_v2  ;;  %v9123_v62 = vld [vmem:[#allocation3 + $0x138] sm:$0xf]  ;;  %v10367_v17 = vld [vmem:[#allocation3 + $0x17c] sm:$0xf0] }
 0x2b3   : > { %2975 = vmatpush.bf16.msrb.mxu2 %v8948_v6  ;;  %2988 = vmatpush.bf16.msrb.mxu3 %v8952_v21  ;;  %v2260_v60 = vsel %vm14144_vm13, %v2229_v16, %v2230_v4  ;;  %2301 = vst.msk [vmem:[#allocation3 + $0x8c] sm:$0xf] %vm14125_vm12, %v2230_v4  ;;  %v10348_v16 = vld [vmem:[#allocation3 + $0xd4] sm:$0xf0]  ;;  %v8976_v6 = vor.u32 %v10324_v35, %v8973_v38  ;;  %v10351_v38 = vld [vmem:[#allocation3 + $0xec] sm:$0xf0] }
 0x2b4   : > { %v2261_v44 = vsel %vm14135_vm0, %v2260_v60, %v2214_v49  ;;  %2303 = vst.msk [vmem:[#allocation3 + $0x8c] sm:$0xf] %vm14124_vm1, %v14241_v28  ;;  %v8811_v25 = vld [vmem:[#allocation3 + $0x34] sm:$0xf]  ;;  %v10378_v20 = vld [vmem:[#allocation3 + $0x38] sm:$0xf]  ;;  %v9036_v34 = vor.u32 %v10348_v16, %v9035_v46  ;;  %v9108_v49 = vor.u32 %v10365_v1, %v9107_v50  ;;  %v9112_v4 = vor.u32 %v10357_v15, %v9109_v3 }
 0x2b5   : > { %2300 = vst [vmem:[#allocation3 + $0x84] sm:$0xff] %v2261_v44  ;;  %v8812_v22 = vor.u32 %v10386_v29, %v8811_v25  ;;  %v8816_v55 = vor.u32 %v10378_v20, %v8813_v43  ;;  %v8819_v18 = vld [vmem:[#allocation3 + $0x3c] sm:$0xf]  ;;  %v10379_v19 = vld [vmem:[#allocation3 + $0x40] sm:$0xf]  ;;  %v9048_v44 = vor.u32 %v10341_v41, %v9045_v36 }
 0x2b6   : > { %v10350_v60 = vld [vmem:[#allocation3 + $0xe4] sm:$0xf0]  ;;  %v9053_v29 = vld [vmem:[#allocation3 + $0xe8] sm:$0xf0]  ;;  %v9043_v43 = vld [vmem:[#allocation3 + $0x98] sm:$0xf] }
 0x2b7   : > { %2976 = vmatpush.bf16.msrb.mxu2 %v8884_v23  ;;  %2989 = vmatpush.bf16.msrb.mxu3 %v8888_v37  ;;  %v9116_v23 = vor.u32 %v10366_v61, %v9115_v13  ;;  %v9120_v37 = vor.u32 %v10358_v0, %v9117_v63  ;;  %v9044_v39 = vor.u32 %v10349_v47, %v9043_v43  ;;  %v9051_v25 = vld [vmem:[#allocation3 + $0xa0] sm:$0xf]  ;;  %v10342_v20 = vld [vmem:[#allocation3 + $0xa4] sm:$0xf]  ;;  %v10333_v16 = vld [vmem:[#allocation3 + $0x4c] sm:$0xf0] }
 0x2b8   : > { %2951 = vmatpush.bf16.msrb.mxu0 %v8812_v22  ;;  %2964 = vmatpush.bf16.msrb.mxu1 %v8816_v55  ;;  %v8979_v22 = vld [vmem:[#allocation3 + $0x8] sm:$0xf]  ;;  %v9052_v55 = vor.u32 %v10350_v60, %v9051_v25  ;;  %v9056_v46 = vor.u32 %v10342_v20, %v9053_v29  ;;  %v10326_v1 = vld [vmem:[#allocation3 + $0x14] sm:$0xf]  ;;  %v9131_v61 = vld [vmem:[#allocation3 + $0x140] sm:$0xf] }
 0x2b9   : > { %v8980_v35 = vor.u32 %v10333_v16, %v8979_v22  ;;  %v10360_v63 = vld [vmem:[#allocation3 + $0x144] sm:$0xf]  ;;  %v10352_v13 = vld [vmem:[#allocation3 + $0xf4] sm:$0xf0]  ;;  %v9069_v0 = vld [vmem:[#allocation3 + $0xf8] sm:$0xf0] }
 0x2ba   : > { %v9067_v47 = vld [vmem:[#allocation3 + $0xb0] sm:$0xf]  ;;  %v10344_v36 = vld [vmem:[#allocation3 + $0xb4] sm:$0xf]  ;;  %v10335_v60 = vld [vmem:[#allocation3 + $0x5c] sm:$0xf0] }
 0x2bb   : > { %8965 = vmatmul.msk.bf16.vlgmr.msrb.gmra.mxu0 %vm14127_vm15, %v11827_v2  ;;  %8966 = vmatmul.msk.bf16.vlgmr.msrb.gmra.mxu1 %vm14127_vm15, %v11827_v2  ;;  %v8997_v29 = vld [vmem:[#allocation3 + $0x60] sm:$0xf0]  ;;  %v9068_v43 = vor.u32 %v10352_v13, %v9067_v47  ;;  %v9072_v41 = vor.u32 %v10344_v36, %v9069_v0  ;;  %v10336_v25 = vld [vmem:[#allocation3 + $0x64] sm:$0xf0]  ;;  %v9005_v20 = vld [vmem:[#allocation3 + $0x68] sm:$0xf0] }
 0x2bc   : > { %3244 = vmatpush.bf16.msra.mxu0 %v9100_v31  ;;  %3257 = vmatpush.bf16.msra.mxu1 %v9104_v9  ;;  %v10387_v26 = vld [vmem:[#allocation3 + $0x80] sm:$0xf0]  ;;  %v8821_v30 = vld [vmem:[#allocation3 + $0x84] sm:$0xf0]  ;;  %v10325_v31 = vld [vmem:[#allocation3 + $0xc] sm:$0xf] }
 0x2bd   : > { %v8820_v45 = vor.u32 %v10387_v26, %v8819_v18  ;;  %v8824_v21 = vor.u32 %v10379_v19, %v8821_v30  ;;  %v8981_v9 = vld [vmem:[#allocation3 + $0x50] sm:$0xf0]  ;;  %v8992_v26 = vor.u32 %v10326_v1, %v8989_v10  ;;  %v10368_v19 = vld [vmem:[#allocation3 + $0x184] sm:$0xf0]  ;;  %v9133_v30 = vld [vmem:[#allocation3 + $0x188] sm:$0xf0] }
 0x2be   : > { %v8984_v18 = vor.u32 %v10325_v31, %v8981_v9  ;;  %v9132_v50 = vor.u32 %v10368_v19, %v9131_v61  ;;  %v9136_v15 = vor.u32 %v10360_v63, %v9133_v30  ;;  %v9141_v16 = vld [vmem:[#allocation3 + $0x190] sm:$0xf0]  ;;  %v9003_v31 = vld [vmem:[#allocation3 + $0x20] sm:$0xf]  ;;  %v10328_v9 = vld [vmem:[#allocation3 + $0x24] sm:$0xf] }
 0x2bf   : > { %2977 = vmatpush.bf16.msrb.mxu2 %v8820_v45  ;;  %2990 = vmatpush.bf16.msrb.mxu3 %v8824_v21  ;;  %v12010_v21 = vld [vmem:[%s14098_s4] sm:$0x3]  ;;  %v9139_v10 = vld [vmem:[#allocation3 + $0x148] sm:$0xf]  ;;  %v10345_v1 = vld [vmem:[#allocation3 + $0xbc] sm:$0xf] }
 0x2c0   : > { %3245 = vmatpush.bf16.msra.mxu0 %v9036_v34  ;;  %3258 = vmatpush.bf16.msra.mxu1 %v9040_v57  ;;  %v10334_v34 = vld [vmem:[#allocation3 + $0x54] sm:$0xf0]  ;;  %v9125_v57 = vld [vmem:[#allocation3 + $0x180] sm:$0xf0]  ;;  %v9147_v19 = vld [vmem:[#allocation3 + $0x150] sm:$0xf] }
 0x2c1   : > { %v8988_v3 = vor.u32 %v10334_v34, %v8987_v32  ;;  %v9004_v32 = vor.u32 %v10336_v25, %v9003_v31  ;;  %v9008_v34 = vor.u32 %v10328_v9, %v9005_v20  ;;  %v10362_v30 = vld [vmem:[#allocation3 + $0x154] sm:$0xf]  ;;  %v9149_v61 = vld [vmem:[#allocation3 + $0x198] sm:$0xf0]  ;;  %v9011_v63 = vld [vmem:[#allocation3 + $0x28] sm:$0xf] }
 0x2c2   : > { %8967 = vmatmul.msk.bf16.vlgmr.msrb.gmra.mxu2 %vm14127_vm15, %v11827_v2  ;;  %8968 = vmatmul.msk.bf16.vlgmr.msrb.gmra.mxu3 %vm14127_vm15, %v11827_v2  ;;  %v10359_v2 = vld [vmem:[#allocation3 + $0x13c] sm:$0xf]  ;;  %v10354_v13 = vld [vmem:[#allocation3 + $0x104] sm:$0xf0]  ;;  %v9085_v0 = vld [vmem:[#allocation3 + $0x108] sm:$0xf0] }
 0x2c3   : > { %3270 = vmatpush.bf16.msra.mxu2 %v9108_v49  ;;  %3283 = vmatpush.bf16.msra.mxu3 %v9112_v4  ;;  %v9128_v45 = vor.u32 %v10359_v2, %v9125_v57  ;;  %v9059_v49 = vld [vmem:[#allocation3 + $0xa8] sm:$0xf]  ;;  %v10343_v4 = vld [vmem:[#allocation3 + $0xac] sm:$0xf]  ;;  %v10353_v57 = vld [vmem:[#allocation3 + $0xfc] sm:$0xf0] }
 0x2c4   : > { %3246 = vmatpush.bf16.msra.mxu0 %v8972_v11  ;;  %3259 = vmatpush.bf16.msra.mxu1 %v8976_v6  ;;  %v9124_v11 = vor.u32 %v10367_v17, %v9123_v62  ;;  %v9061_v6 = vld [vmem:[#allocation3 + $0xf0] sm:$0xf0]  ;;  %v10361_v62 = vld [vmem:[#allocation3 + $0x14c] sm:$0xf]  ;;  %v10355_v31 = vld [vmem:[#allocation3 + $0x10c] sm:$0xf0] }
 0x2c5   : > { %v9144_v2 = vor.u32 %v10361_v62, %v9141_v16  ;;  %v9093_v9 = vld [vmem:[#allocation3 + $0x110] sm:$0xf0] }
 0x2c7   : > { %3271 = vmatpush.bf16.msra.mxu2 %v9044_v39  ;;  %3284 = vmatpush.bf16.msra.mxu3 %v9048_v44  ;;  %v8995_v39 = vld [vmem:[#allocation3 + $0x18] sm:$0xf]  ;;  %v10327_v44 = vld [vmem:[#allocation3 + $0x1c] sm:$0xf] }
 0x2c8   : > { %3296 = vmatpush.bf16.msrb.mxu0 %v9116_v23  ;;  %3309 = vmatpush.bf16.msrb.mxu1 %v9120_v37  ;;  %v9060_v23 = vor.u32 %v10351_v38, %v9059_v49  ;;  %v9064_v37 = vor.u32 %v10343_v4, %v9061_v6  ;;  %v8996_v22 = vor.u32 %v10335_v60, %v8995_v39  ;;  %v10370_v38 = vld [vmem:[#allocation3 + $0x194] sm:$0xf0]  ;;  %v10329_v6 = vld [vmem:[#allocation3 + $0x2c] sm:$0xf]  ;;  %v9019_v39 = vld [vmem:[#allocation3 + $0x30] sm:$0xf] }
 0x2c9   : > { %v10338_v60 = vld [vmem:[#allocation3 + $0x74] sm:$0xf0] }
 0x2ca   : > { %v9020_v25 = vor.u32 %v10338_v60, %v9019_v39 }
 0x2cb   : > { %3272 = vmatpush.bf16.msra.mxu2 %v8980_v35  ;;  %3285 = vmatpush.bf16.msra.mxu3 %v8984_v18  ;;  %v9077_v35 = vld [vmem:[#allocation3 + $0x100] sm:$0xf0]  ;;  %v9075_v18 = vld [vmem:[#allocation3 + $0xb8] sm:$0xf] }
 0x2cc   : > { %3297 = vmatpush.bf16.msrb.mxu0 %v9052_v55  ;;  %3310 = vmatpush.bf16.msrb.mxu1 %v9056_v46  ;;  %v9000_v55 = vor.u32 %v10327_v44, %v8997_v29  ;;  %v10369_v46 = vld [vmem:[#allocation3 + $0x18c] sm:$0xf0]  ;;  %v10330_v29 = vld [vmem:[#allocation3 + $0x34] sm:$0xf]  ;;  %v9021_v44 = vld [vmem:[#allocation3 + $0x78] sm:$0xf0] }
 0x2cd   : > { %9161 = vmatmul.msk.bf16.vlgmr.msra.gmra.mxu0 %vm14127_vm15, %v12010_v21  ;;  %9162 = vmatmul.msk.bf16.vlgmr.msra.gmra.mxu1 %vm14127_vm15, %v12010_v21  ;;  %v9140_v17 = vor.u32 %v10369_v46, %v9139_v10  ;;  %v9024_v20 = vor.u32 %v10330_v29, %v9021_v44  ;;  %v9316_v29 = vld [vmem:[#allocation3 + $0x130] sm:$0xf]  ;;  %v10445_v44 = vld [vmem:[#allocation3 + $0xe4] sm:$0xf0] }
 0x2cf   : > { %3322 = vmatpush.bf16.msrb.mxu2 %v9124_v11  ;;  %3335 = vmatpush.bf16.msrb.mxu3 %v9128_v45  ;;  %v10337_v11 = vld [vmem:[#allocation3 + $0x6c] sm:$0xf0]  ;;  %v9013_v45 = vld [vmem:[#allocation3 + $0x70] sm:$0xf0] }
 0x2d0   : > { %3298 = vmatpush.bf16.msrb.mxu0 %v8988_v3  ;;  %3311 = vmatpush.bf16.msrb.mxu1 %v8992_v26  ;;  %v9076_v3 = vor.u32 %v10353_v57, %v9075_v18  ;;  %v9080_v26 = vor.u32 %v10345_v1, %v9077_v35  ;;  %v9012_v49 = vor.u32 %v10337_v11, %v9011_v63  ;;  %v9027_v57 = vld [vmem:[#allocation3 + $0x38] sm:$0xf]  ;;  %v9029_v35 = vld [vmem:[#allocation3 + $0x80] sm:$0xf0]  ;;  %v9308_v18 = vld [vmem:[#allocation3 + $0x128] sm:$0xf] }
 0x2d1   : > { %v9016_v4 = vor.u32 %v10329_v6, %v9013_v45  ;;  %v10452_v1 = vld [vmem:[#allocation3 + $0x12c] sm:$0xf]  ;;  %v9244_v63 = vld [vmem:[#allocation3 + $0x98] sm:$0xf]  ;;  %v10436_v6 = vld [vmem:[#allocation3 + $0x9c] sm:$0xf] }
 0x2d2   : > { %9163 = vmatmul.msk.bf16.vlgmr.msra.gmra.mxu2 %vm14127_vm15, %v12010_v21  ;;  %9164 = vmatmul.msk.bf16.vlgmr.msra.gmra.mxu3 %vm14127_vm15, %v12010_v21 }
 0x2d3   : > { %3323 = vmatpush.bf16.msrb.mxu2 %v9060_v23  ;;  %3336 = vmatpush.bf16.msrb.mxu3 %v9064_v37  ;;  %v9083_v23 = vld [vmem:[#allocation3 + $0xc0] sm:$0xf]  ;;  %v10346_v37 = vld [vmem:[#allocation3 + $0xc4] sm:$0xf] }
 0x2d4   : > { %3348 = vmatpush.bf16.msra.mxu0 %v9132_v50  ;;  %3361 = vmatpush.bf16.msra.mxu1 %v9136_v15  ;;  %v9148_v50 = vor.u32 %v10370_v38, %v9147_v19  ;;  %v9152_v15 = vor.u32 %v10362_v30, %v9149_v61  ;;  %v9084_v47 = vor.u32 %v10354_v13, %v9083_v23  ;;  %v10444_v38 = vld [vmem:[#allocation3 + $0xdc] sm:$0xf0]  ;;  %v9246_v61 = vld [vmem:[#allocation3 + $0xe0] sm:$0xf0]  ;;  %v9182_v13 = vld [vmem:[#allocation3 + $0x50] sm:$0xf0] }
 0x2d5   : > { %v9088_v36 = vor.u32 %v10346_v37, %v9085_v0  ;;  %v10461_v23 = vld [vmem:[#allocation3 + $0x174] sm:$0xf0]  ;;  %v9318_v37 = vld [vmem:[#allocation3 + $0x178] sm:$0xf0] }
 0x2d7   : > { %3324 = vmatpush.bf16.msrb.mxu2 %v8996_v22  ;;  %3337 = vmatpush.bf16.msrb.mxu3 %v9000_v55  ;;  %v9155_v22 = vld [vmem:[#allocation3 + $0x158] sm:$0xf]  ;;  %v10363_v55 = vld [vmem:[#allocation3 + $0x15c] sm:$0xf] }
 0x2d8   : > { %3349 = vmatpush.bf16.msra.mxu0 %v9068_v43  ;;  %3362 = vmatpush.bf16.msra.mxu1 %v9072_v41  ;;  %v10371_v43 = vld [vmem:[#allocation3 + $0x19c] sm:$0xf0]  ;;  %v9157_v41 = vld [vmem:[#allocation3 + $0x1a0] sm:$0xf0] }
 0x2d9   : > { %v9156_v46 = vor.u32 %v10371_v43, %v9155_v22  ;;  %v9160_v16 = vor.u32 %v10363_v55, %v9157_v41  ;;  %v10453_v43 = vld [vmem:[#allocation3 + $0x134] sm:$0xf]  ;;  %v9317_v41 = vor.u32 %v10461_v23, %v9316_v29  ;;  %v10437_v22 = vld [vmem:[#allocation3 + $0xa4] sm:$0xf]  ;;  %v9324_v55 = vld [vmem:[#allocation3 + $0x138] sm:$0xf] }
 0x2da   : > { %v9321_v39 = vor.u32 %v10453_v43, %v9318_v37  ;;  %v10455_v23 = vld [vmem:[#allocation3 + $0x144] sm:$0xf]  ;;  %v9268_v29 = vld [vmem:[#allocation3 + $0xb0] sm:$0xf]  ;;  %v10439_v43 = vld [vmem:[#allocation3 + $0xb4] sm:$0xf] }
 0x2db   : > { %3374 = vmatpush.bf16.msra.mxu2 %v9140_v17  ;;  %3387 = vmatpush.bf16.msra.mxu3 %v9144_v2  ;;  %v10460_v17 = vld [vmem:[#allocation3 + $0x16c] sm:$0xf0]  ;;  %v9310_v2 = vld [vmem:[#allocation3 + $0x170] sm:$0xf0] }
 0x2dc   : > { %3350 = vmatpush.bf16.msra.mxu0 %v9004_v32  ;;  %3363 = vmatpush.bf16.msra.mxu1 %v9008_v34  ;;  %v9091_v32 = vld [vmem:[#allocation3 + $0xc8] sm:$0xf]  ;;  %v10347_v34 = vld [vmem:[#allocation3 + $0xcc] sm:$0xf]  ;;  %v9309_v19 = vor.u32 %v10460_v17, %v9308_v18  ;;  %v9313_v30 = vor.u32 %v10452_v1, %v9310_v2  ;;  %v9190_v17 = vld [vmem:[#allocation3 + $0x58] sm:$0xf0] }
 0x2dd   : > { %9165 = vmatmul.msk.bf16.vlgmr.msrb.gmra.mxu0 %vm14127_vm15, %v12010_v21  ;;  %9166 = vmatmul.msk.bf16.vlgmr.msrb.gmra.mxu1 %vm14127_vm15, %v12010_v21  ;;  %v9092_v10 = vor.u32 %v10355_v31, %v9091_v32  ;;  %v9096_v62 = vor.u32 %v10347_v34, %v9093_v9  ;;  %v10462_v31 = vld [vmem:[#allocation3 + $0x17c] sm:$0xf0]  ;;  %v10454_v9 = vld [vmem:[#allocation3 + $0x13c] sm:$0xf]  ;;  %v9326_v32 = vld [vmem:[#allocation3 + $0x180] sm:$0xf0] }
 0x2de   : > { %v10421_v2 = vld [vmem:[#allocation3 + $0x14] sm:$0xf] }
 0x2df   : > { %3375 = vmatpush.bf16.msra.mxu2 %v9076_v3  ;;  %3388 = vmatpush.bf16.msra.mxu3 %v9080_v26  ;;  %v10339_v3 = vld [vmem:[#allocation3 + $0x7c] sm:$0xf0]  ;;  %v10331_v26 = vld [vmem:[#allocation3 + $0x3c] sm:$0xf]  ;;  %v9193_v1 = vor.u32 %v10421_v2, %v9190_v17  ;;  %v9278_v2 = vld [vmem:[#allocation3 + $0x100] sm:$0xf0] }
 0x2e0   : > { %3400 = vmatpush.bf16.msrb.mxu0 %v9148_v50  ;;  %3413 = vmatpush.bf16.msrb.mxu1 %v9152_v15  ;;  %v9028_v11 = vor.u32 %v10339_v3, %v9027_v57  ;;  %v9032_v45 = vor.u32 %v10331_v26, %v9029_v35  ;;  %v9245_v50 = vor.u32 %v10444_v38, %v9244_v63  ;;  %v10446_v3 = vld [vmem:[#allocation3 + $0xec] sm:$0xf0]  ;;  %v9262_v26 = vld [vmem:[#allocation3 + $0xf0] sm:$0xf0]  ;;  %v10430_v38 = vld [vmem:[#allocation3 + $0x5c] sm:$0xf0] }
 0x2e1   : > { %v9249_v15 = vor.u32 %v10436_v6, %v9246_v61  ;;  %v9325_v57 = vor.u32 %v10462_v31, %v9324_v55  ;;  %v9329_v35 = vor.u32 %v10454_v9, %v9326_v32  ;;  %v9198_v61 = vld [vmem:[#allocation3 + $0x60] sm:$0xf0]  ;;  %v10463_v63 = vld [vmem:[#allocation3 + $0x184] sm:$0xf0]  ;;  %v9334_v6 = vld [vmem:[#allocation3 + $0x188] sm:$0xf0] }
 0x2e2   : > { %9167 = vmatmul.msk.bf16.vlgmr.msrb.gmra.mxu2 %vm14127_vm15, %v12010_v21  ;;  %9168 = vmatmul.msk.bf16.vlgmr.msrb.gmra.mxu3 %vm14127_vm15, %v12010_v21  ;;  %v9206_v55 = vld [vmem:[#allocation3 + $0x68] sm:$0xf0]  ;;  %v9204_v31 = vld [vmem:[#allocation3 + $0x20] sm:$0xf]  ;;  %v10423_v9 = vld [vmem:[#allocation3 + $0x24] sm:$0xf] }
 0x2e3   : > { %3376 = vmatpush.bf16.msra.mxu2 %v9012_v49  ;;  %3389 = vmatpush.bf16.msra.mxu3 %v9016_v4  ;;  %v9180_v49 = vld [vmem:[#allocation3 + $0x8] sm:$0xf]  ;;  %v10420_v4 = vld [vmem:[#allocation3 + $0xc] sm:$0xf]  ;;  %v10448_v17 = vld [vmem:[#allocation3 + $0xfc] sm:$0xf0] }
 0x2e4   : > { %3401 = vmatpush.bf16.msrb.mxu0 %v9084_v47  ;;  %3414 = vmatpush.bf16.msrb.mxu1 %v9088_v36  ;;  %v10428_v47 = vld [vmem:[#allocation3 + $0x4c] sm:$0xf0]  ;;  %v9185_v60 = vor.u32 %v10420_v4, %v9182_v13  ;;  %v9332_v13 = vld [vmem:[#allocation3 + $0x140] sm:$0xf] }
 0x2e5   : > { %v9181_v36 = vor.u32 %v10428_v47, %v9180_v49  ;;  %v9333_v37 = vor.u32 %v10463_v63, %v9332_v13  ;;  %v9337_v47 = vor.u32 %v10455_v23, %v9334_v6  ;;  %v10457_v63 = vld [vmem:[#allocation3 + $0x154] sm:$0xf]  ;;  %v9212_v6 = vld [vmem:[#allocation3 + $0x28] sm:$0xf]  ;;  %v9350_v13 = vld [vmem:[#allocation3 + $0x198] sm:$0xf0] }
 0x2e7   : > { %3426 = vmatpush.bf16.msrb.mxu2 %v9156_v46  ;;  %3439 = vmatpush.bf16.msrb.mxu3 %v9160_v16 }
 0x2e8   : > { %3402 = vmatpush.bf16.msrb.mxu0 %v9020_v25  ;;  %3415 = vmatpush.bf16.msrb.mxu1 %v9024_v20  ;;  %v9254_v25 = vld [vmem:[#allocation3 + $0xe8] sm:$0xf0]  ;;  %v9252_v20 = vld [vmem:[#allocation3 + $0xa0] sm:$0xf] }
 0x2e9   : > { %v9253_v46 = vor.u32 %v10445_v44, %v9252_v20  ;;  %v9257_v16 = vor.u32 %v10437_v22, %v9254_v25  ;;  %v10464_v25 = vld [vmem:[#allocation3 + $0x18c] sm:$0xf0]  ;;  %v9342_v20 = vld [vmem:[#allocation3 + $0x190] sm:$0xf0]  ;;  %v10431_v22 = vld [vmem:[#allocation3 + $0x64] sm:$0xf0] }
 0x2eb   : > { %3427 = vmatpush.bf16.msrb.mxu2 %v9092_v10  ;;  %3440 = vmatpush.bf16.msrb.mxu3 %v9096_v62  ;;  %v9188_v10 = vld [vmem:[#allocation3 + $0x10] sm:$0xf]  ;;  %v10429_v62 = vld [vmem:[#allocation3 + $0x54] sm:$0xf0] }
 0x2ec   : > { %v9189_v18 = vor.u32 %v10429_v62, %v9188_v10  ;;  %v9205_v10 = vor.u32 %v10431_v22, %v9204_v31  ;;  %v9209_v62 = vor.u32 %v10423_v9, %v9206_v55  ;;  %v10466_v22 = vld [vmem:[#allocation3 + $0x19c] sm:$0xf0]  ;;  %v9358_v55 = vld [vmem:[#allocation3 + $0x1a0] sm:$0xf0]  ;;  %v10425_v31 = vld [vmem:[#allocation3 + $0x34] sm:$0xf] }
 0x2ed   : > { %9169 = vmatmul.msk.bf16.vlgmr.msra.gmra.mxu0 %vm14127_vm15, %v12010_v21  ;;  %9170 = vmatmul.msk.bf16.vlgmr.msra.gmra.mxu1 %vm14127_vm15, %v12010_v21  ;;  %v9356_v9 = vld [vmem:[#allocation3 + $0x158] sm:$0xf] }
 0x2ee   : > { %3745 = vmatpush.bf16.msra.mxu0 %v9309_v19  ;;  %3758 = vmatpush.bf16.msra.mxu1 %v9313_v30  ;;  %v9260_v19 = vld [vmem:[#allocation3 + $0xa8] sm:$0xf]  ;;  %v10438_v30 = vld [vmem:[#allocation3 + $0xac] sm:$0xf] }
 0x2ef   : > { %3428 = vmatpush.bf16.msrb.mxu2 %v9028_v11  ;;  %3441 = vmatpush.bf16.msrb.mxu3 %v9032_v45  ;;  %v9261_v11 = vor.u32 %v10446_v3, %v9260_v19  ;;  %v9265_v45 = vor.u32 %v10438_v30, %v9262_v26 }
 0x2f0   : > { %v12032_v0 = vpop.f32.mrf.mxu0 }
 0x2f2   : > { %3746 = vmatpush.bf16.msra.mxu0 %v9245_v50  ;;  %3759 = vmatpush.bf16.msra.mxu1 %v9249_v15  ;;  %v9196_v50 = vld [vmem:[#allocation3 + $0x18] sm:$0xf]  ;;  %v10422_v15 = vld [vmem:[#allocation3 + $0x1c] sm:$0xf] }
 0x2f3   : > { %9171 = vmatmul.msk.bf16.vlgmr.msra.gmra.mxu2 %vm14127_vm15, %v12010_v21  ;;  %9172 = vmatmul.msk.bf16.vlgmr.msra.gmra.mxu3 %vm14127_vm15, %v12010_v21  ;;  %v9197_v49 = vor.u32 %v10430_v38, %v9196_v50  ;;  %v9201_v4 = vor.u32 %v10422_v15, %v9198_v61  ;;  %v9348_v61 = vld [vmem:[#allocation3 + $0x150] sm:$0xf]  ;;  %v10424_v50 = vld [vmem:[#allocation3 + $0x2c] sm:$0xf] }
 0x2f4   : > { %3771 = vmatpush.bf16.msra.mxu2 %v9317_v41  ;;  %3784 = vmatpush.bf16.msra.mxu3 %v9321_v39 }
 0x2f6   : > { %3747 = vmatpush.bf16.msra.mxu0 %v9181_v36  ;;  %3760 = vmatpush.bf16.msra.mxu1 %v9185_v60  ;;  %v10447_v36 = vld [vmem:[#allocation3 + $0xf4] sm:$0xf0]  ;;  %v9270_v60 = vld [vmem:[#allocation3 + $0xf8] sm:$0xf0] }
 0x2f7   : > { %v9269_v41 = vor.u32 %v10447_v36, %v9268_v29  ;;  %v9273_v39 = vor.u32 %v10439_v43, %v9270_v60  ;;  %v9286_v36 = vld [vmem:[#allocation3 + $0x108] sm:$0xf0]  ;;  %v9284_v29 = vld [vmem:[#allocation3 + $0xc0] sm:$0xf]  ;;  %v10441_v43 = vld [vmem:[#allocation3 + $0xc4] sm:$0xf] }
 0x2f8   : > { %v2799_v34 = vpop.f32.mrf.mxu0  ;;  %3772 = vmatpush.bf16.msra.mxu2 %v9253_v46  ;;  %3785 = vmatpush.bf16.msra.mxu3 %v9257_v16  ;;  %v9340_v46 = vld [vmem:[#allocation3 + $0x148] sm:$0xf]  ;;  %v10456_v16 = vld [vmem:[#allocation3 + $0x14c] sm:$0xf] }
 0x2f9   : > { %v9341_v32 = vor.u32 %v10464_v25, %v9340_v46  ;;  %v9345_v34 = vor.u32 %v10456_v16, %v9342_v20  ;;  %v9289_v25 = vor.u32 %v10441_v43, %v9286_v36  ;;  %v10433_v16 = vld [vmem:[#allocation3 + $0x74] sm:$0xf0]  ;;  %v10443_v43 = vld [vmem:[#allocation3 + $0xd4] sm:$0xf] }
 0x2fc   : > { %3773 = vmatpush.bf16.msra.mxu2 %v9189_v18  ;;  %3786 = vmatpush.bf16.msra.mxu3 %v9193_v1  ;;  %v3964_v1 = vld [vmem:[%s14099_s5] sm:$0x7] }
 0x2fd   : > { %9173 = vmatmul.msk.bf16.vlgmr.msrb.gmra.mxu0 %vm14127_vm15, %v12010_v21  ;;  %9174 = vmatmul.msk.bf16.vlgmr.msrb.gmra.mxu1 %vm14127_vm15, %v12010_v21 }
 0x2fe   : > { %3797 = vmatpush.bf16.msrb.mxu0 %v9325_v57  ;;  %3810 = vmatpush.bf16.msrb.mxu1 %v9329_v35  ;;  %v9276_v57 = vld [vmem:[#allocation3 + $0xb8] sm:$0xf]  ;;  %v10440_v35 = vld [vmem:[#allocation3 + $0xbc] sm:$0xf] }
 0x2ff   : > { %v9277_v3 = vor.u32 %v10448_v17, %v9276_v57  ;;  %v9281_v26 = vor.u32 %v10440_v35, %v9278_v2  ;;  %3967 = vperm.xlu2 %10710, %v3964_v1   ;;  %v10450_v35 = vld [vmem:[#allocation3 + $0x10c] sm:$0xf0]  ;;  %v9294_v1 = vld [vmem:[#allocation3 + $0x110] sm:$0xf0] }
 0x302   : > { %3798 = vmatpush.bf16.msrb.mxu0 %v9261_v11  ;;  %3811 = vmatpush.bf16.msrb.mxu1 %v9265_v45  ;;  %v10432_v11 = vld [vmem:[#allocation3 + $0x6c] sm:$0xf0]  ;;  %v9214_v45 = vld [vmem:[#allocation3 + $0x70] sm:$0xf0] }
 0x303   : > { %9175 = vmatmul.msk.bf16.vlgmr.msrb.gmra.mxu2 %vm14127_vm15, %v12010_v21  ;;  %9176 = vmatmul.msk.bf16.vlgmr.msrb.gmra.mxu3 %vm14127_vm15, %v12010_v21  ;;  %v12051_v21 = vld [vmem:[%s14098_s4 + $0x4] sm:$0x3]  ;;  %v9213_v15 = vor.u32 %v10432_v11, %v9212_v6  ;;  %v9366_v6 = vld [vmem:[#allocation3 + $0x1a8] sm:$0xf0] }
 0x304   : > { %3823 = vmatpush.bf16.msrb.mxu2 %v9333_v37  ;;  %3836 = vmatpush.bf16.msrb.mxu3 %v9337_v47  ;;  %v9353_v37 = vor.u32 %v10457_v63, %v9350_v13  ;;  %v10449_v47 = vld [vmem:[#allocation3 + $0x104] sm:$0xf0]  ;;  %v10459_v63 = vld [vmem:[#allocation3 + $0x164] sm:$0xf] }
 0x305   : > { %v9369_v36 = vor.u32 %v10459_v63, %v9366_v6 }
 0x306   : > { %3799 = vmatpush.bf16.msrb.mxu0 %v9197_v49  ;;  %3812 = vmatpush.bf16.msrb.mxu1 %v9201_v4  ;;  %v9217_v49 = vor.u32 %v10424_v50, %v9214_v45  ;;  %v10465_v4 = vld [vmem:[#allocation3 + $0x194] sm:$0xf0] }
 0x307   : > { %v9349_v23 = vor.u32 %v10465_v4, %v9348_v61  ;;  %v10467_v61 = vld [vmem:[#allocation3 + $0x1a4] sm:$0xf0] }
 0x308   : > { %v12046_v44 = vpop.f32.mrf.mxu1  ;;  %3824 = vmatpush.bf16.msrb.mxu2 %v9269_v41  ;;  %3837 = vmatpush.bf16.msrb.mxu3 %v9273_v39  ;;  %v9285_v39 = vor.u32 %v10449_v47, %v9284_v29 }
 0x30c   : > { %3825 = vmatpush.bf16.msrb.mxu2 %v9205_v10  ;;  %3838 = vmatpush.bf16.msrb.mxu3 %v9209_v62  ;;  %v9222_v10 = vld [vmem:[#allocation3 + $0x78] sm:$0xf0]  ;;  %v9357_v62 = vor.u32 %v10466_v22, %v9356_v9 }
 0x30d   : > { %9370 = vmatmul.msk.bf16.vlgmr.msra.gmra.mxu0 %vm14127_vm15, %v12051_v21  ;;  %9371 = vmatmul.msk.bf16.vlgmr.msra.gmra.mxu1 %vm14127_vm15, %v12051_v21  ;;  %v9225_v57 = vor.u32 %v10425_v31, %v9222_v10 }
 0x30e   : > { %3849 = vmatpush.bf16.msra.mxu0 %v9341_v32  ;;  %3862 = vmatpush.bf16.msra.mxu1 %v9345_v34  ;;  %v12057_v18 = vpop.f32.mrf.mxu2  ;;  %v10458_v32 = vld [vmem:[#allocation3 + $0x15c] sm:$0xf]  ;;  %v9220_v34 = vld [vmem:[#allocation3 + $0x30] sm:$0xf] }
 0x30f   : > { %v9361_v17 = vor.u32 %v10458_v32, %v9358_v55  ;;  %v9221_v2 = vor.u32 %v10433_v16, %v9220_v34  ;;  %v9300_v55 = vld [vmem:[#allocation3 + $0xd0] sm:$0xf]  ;;  %v9238_v16 = vld [vmem:[#allocation3 + $0x88] sm:$0xf0]  ;;  %v10435_v32 = vld [vmem:[#allocation3 + $0x84] sm:$0xf0] }
 0x310   : > { %v12062_v19 = vpop.f32.mrf.mxu3  ;;  %v2812_v30 = vpop.f32.mrf.mxu1 }
 0x311   : > { %v9364_v30 = vld [vmem:[#allocation3 + $0x160] sm:$0xf] }
 0x312   : > { %v12064_v38 = vpop.f32.mrf.mxu0  ;;  %3850 = vmatpush.bf16.msra.mxu0 %v9277_v3  ;;  %3863 = vmatpush.bf16.msra.mxu1 %v9281_v26  ;;  %v9292_v3 = vld [vmem:[#allocation3 + $0xc8] sm:$0xf]  ;;  %v10442_v26 = vld [vmem:[#allocation3 + $0xcc] sm:$0xf]  ;;  %v9365_v47 = vor.u32 %v10467_v61, %v9364_v30 }
 0x313   : > { %9372 = vmatmul.msk.bf16.vlgmr.msra.gmra.mxu2 %vm14127_vm15, %v12051_v21  ;;  %9373 = vmatmul.msk.bf16.vlgmr.msra.gmra.mxu3 %vm14127_vm15, %v12051_v21  ;;  %v9293_v11 = vor.u32 %v10450_v35, %v9292_v3  ;;  %v9297_v45 = vor.u32 %v10442_v26, %v9294_v1 }
 0x314   : > { %3875 = vmatpush.bf16.msra.mxu2 %v9349_v23  ;;  %3888 = vmatpush.bf16.msra.mxu3 %v9353_v37  ;;  %v10434_v23 = vld [vmem:[#allocation3 + $0x7c] sm:$0xf0]  ;;  %v10426_v37 = vld [vmem:[#allocation3 + $0x3c] sm:$0xf] }
 0x316   : > { %3851 = vmatpush.bf16.msra.mxu0 %v9213_v15  ;;  %3864 = vmatpush.bf16.msra.mxu1 %v9217_v49  ;;  %v2825_v60 = vpop.f32.mrf.mxu2  ;;  %v9228_v15 = vld [vmem:[#allocation3 + $0x38] sm:$0xf]  ;;  %v9230_v49 = vld [vmem:[#allocation3 + $0x80] sm:$0xf0] }
 0x317   : > { %v9229_v60 = vor.u32 %v10434_v23, %v9228_v15  ;;  %v9233_v29 = vor.u32 %v10426_v37, %v9230_v49 }
 0x318   : > { %v2838_v41 = vpop.f32.mrf.mxu3  ;;  %v12070_v20 = vpop.f32.mrf.mxu1  ;;  %3876 = vmatpush.bf16.msra.mxu2 %v9285_v39  ;;  %3889 = vmatpush.bf16.msra.mxu3 %v9289_v25  ;;  %v10451_v25 = vld [vmem:[#allocation3 + $0x114] sm:$0xf0] }
 0x319   : > { %v9302_v41 = vld [vmem:[#allocation3 + $0x118] sm:$0xf0]  ;;  %v9301_v31 = vor.u32 %v10451_v25, %v9300_v55 }
 0x31a   : > { %v2851_v46 = vpop.f32.mrf.mxu0  ;;  %v9305_v22 = vor.u32 %v10443_v43, %v9302_v41 }
 0x31b   : > { %v10427_v46 = vld [vmem:[#allocation3 + $0x44] sm:$0xf] }
 0x31c   : > { %3877 = vmatpush.bf16.msra.mxu2 %v9221_v2  ;;  %3890 = vmatpush.bf16.msra.mxu3 %v9225_v57 }
 0x31d   : > { %9374 = vmatmul.msk.bf16.vlgmr.msrb.gmra.mxu0 %vm14127_vm15, %v12051_v21  ;;  %9375 = vmatmul.msk.bf16.vlgmr.msrb.gmra.mxu1 %vm14127_vm15, %v12051_v21 }
 0x31e   : > { %3901 = vmatpush.bf16.msrb.mxu0 %v9357_v62  ;;  %3914 = vmatpush.bf16.msrb.mxu1 %v9361_v17  ;;  %v9241_v62 = vor.u32 %v10427_v46, %v9238_v16  ;;  %v9236_v17 = vld [vmem:[#allocation3 + $0x40] sm:$0xf] }
 0x31f   : > { %v9237_v2 = vor.u32 %v10435_v32, %v9236_v17 }
 0x320   : > { %v2864_v50 = vpop.f32.mrf.mxu1 }
 0x321   : > { %v12076_v4 = vpop.f32.mrf.mxu2 }
 0x322   : > { %3902 = vmatpush.bf16.msrb.mxu0 %v9293_v11  ;;  %3915 = vmatpush.bf16.msrb.mxu1 %v9297_v45  ;;  %v12078_v13 = vpop.f32.mrf.mxu0 }
 0x323   : > { %9376 = vmatmul.msk.bf16.vlgmr.msrb.gmra.mxu2 %vm14127_vm15, %v12051_v21  ;;  %9377 = vmatmul.msk.bf16.vlgmr.msrb.gmra.mxu3 %vm14127_vm15, %v12051_v21 }
 0x324   : > { %3927 = vmatpush.bf16.msrb.mxu2 %v9365_v47  ;;  %3940 = vmatpush.bf16.msrb.mxu3 %v9369_v36 }
 0x325   : > { %v12084_v39 = vpop.f32.mrf.mxu3 }
 0x326   : > { %3903 = vmatpush.bf16.msrb.mxu0 %v9229_v60  ;;  %3916 = vmatpush.bf16.msrb.mxu1 %v9233_v29 }
 0x328   : > { %v2914_v9 = vpop.f32.mrf.mxu1  ;;  %3928 = vmatpush.bf16.msrb.mxu2 %v9301_v31  ;;  %3941 = vmatpush.bf16.msrb.mxu3 %v9305_v22 }
 0x329   : > { %v2877_v34 = vpop.f32.mrf.mxu2 }
 0x32a   : > { %v2903_v10 = vpop.f32.mrf.mxu0 }
 0x32c   : > { %3929 = vmatpush.bf16.msrb.mxu2 %v9237_v2  ;;  %3942 = vmatpush.bf16.msrb.mxu3 %v9241_v62 }
 0x32d   : > { %9378 = vmatmul.msk.bf16.vlgmr.msra.gmra.mxu0 %vm14127_vm15, %v12051_v21  ;;  %9379 = vmatmul.msk.bf16.vlgmr.msra.gmra.mxu1 %vm14127_vm15, %v12051_v21  ;;  %v2890_v57 = vpop.f32.mrf.mxu3 }
 0x330   : > { %v2916_v35 = vpop.f32.mrf.mxu1 }
 0x333   : > { %9380 = vmatmul.msk.bf16.vlgmr.msra.gmra.mxu2 %vm14127_vm15, %v12051_v21  ;;  %9381 = vmatmul.msk.bf16.vlgmr.msra.gmra.mxu3 %vm14127_vm15, %v12051_v21 }
 0x335   : > { %v2927_v1 = vpop.f32.mrf.mxu2  ;;  %v2940_v3 = vpop.f32.mrf.mxu3 }
 0x338   : > { %v2953_v26 = vpop.f32.mrf.mxu0  ;;  %v2966_v30 = vpop.f32.mrf.mxu1 }
 0x33d   : > { %9382 = vmatmul.msk.bf16.vlgmr.msrb.gmra.mxu0 %vm14127_vm15, %v12051_v21  ;;  %9383 = vmatmul.msk.bf16.vlgmr.msrb.gmra.mxu1 %vm14127_vm15, %v12051_v21  ;;  %v2929_v11 = vpop.f32.mrf.mxu2  ;;  %v2942_v45 = vpop.f32.mrf.mxu3 }
 0x340   : > { %v2955_v61 = vpop.f32.mrf.mxu0  ;;  %v2968_v63 = vpop.f32.mrf.mxu1 }
 0x343   : > { %9384 = vmatmul.msk.bf16.vlgmr.msrb.gmra.mxu2 %vm14127_vm15, %v12051_v21  ;;  %9385 = vmatmul.msk.bf16.vlgmr.msrb.gmra.mxu3 %vm14127_vm15, %v12051_v21 }
 0x345   : > { %v2979_v6 = vpop.f32.mrf.mxu2  ;;  %v2992_v50 = vpop.f32.mrf.mxu3 }
 0x34a   : > { %v3248_v15 = vpop.f32.mrf.mxu0  ;;  %v3261_v49 = vpop.f32.mrf.mxu1 }
 0x34b   : > { %v3262_v23 = vadd.f32 %v3261_v49, %v12046_v44 }
 0x34d   : > { %v2981_v37 = vpop.f32.mrf.mxu2  ;;  %v2994_v47 = vpop.f32.mrf.mxu3 }
 0x352   : > { %v3250_v36 = vpop.f32.mrf.mxu0  ;;  %v3263_v60 = vpop.f32.mrf.mxu1 }
 0x355   : > { %v3274_v29 = vpop.f32.mrf.mxu2  ;;  %v3287_v43 = vpop.f32.mrf.mxu3 }
 0x35a   : > { %v3300_v41 = vpop.f32.mrf.mxu0  ;;  %v3313_v25 = vpop.f32.mrf.mxu1 }
 0x35d   : > { %v3276_v22 = vpop.f32.mrf.mxu2  ;;  %v3289_v55 = vpop.f32.mrf.mxu3 }
 0x362   : > { %v3302_v46 = vpop.f32.mrf.mxu0  ;;  %v3315_v16 = vpop.f32.mrf.mxu1 }
 0x363   : > { %v3249_v46 = vadd.f32 %v3248_v15, %v12032_v0  ;;  %v3314_v15 = vadd.f32 %v3313_v25, %v12070_v20 }
 0x365   : > { %v3326_v31 = vpop.f32.mrf.mxu2  ;;  %v12103_v21 = vpop.f32.mrf.mxu3 }
 0x366   : > { %v12106_v32 = vadd.f32 %v3326_v31, %v12076_v4 }
 0x36a   : > { %v12108_v34 = vpop.f32.mrf.mxu0  ;;  %v3365_v44 = vpop.f32.mrf.mxu1 }
 0x36b   : > { %v12110_v10 = vadd.f32 %v3365_v44, %v2914_v9 }
 0x36d   : > { %v3328_v62 = vpop.f32.mrf.mxu2  ;;  %v3341_v17 = vpop.f32.mrf.mxu3 }
 0x372   : > { %v3354_v2 = vpop.f32.mrf.mxu0  ;;  %v3367_v57 = vpop.f32.mrf.mxu1 }
 0x373   : > { %v3275_v57 = vadd.f32 %v3274_v29, %v12057_v18 }
 0x376   : > { %v3378_v35 = vpop.f32.mrf.mxu2  ;;  %v3391_v11 = vpop.f32.mrf.mxu3 }
 0x377   : > { %v12112_v45 = vadd.f32 %v3378_v35, %v2927_v1  ;;  %v12114_v61 = vadd.f32 %v3391_v11, %v2940_v3  ;;  %v3288_v35 = vadd.f32 %v3287_v43, %v12062_v19  ;;  %v12133_v11 = vpop.permute.xlu2 %3967 }
 0x37a   : > { %v3404_v63 = vpop.f32.mrf.mxu0  ;;  %v3417_v49 = vpop.f32.mrf.mxu1 }
 0x37b   : > { %v12116_v37 = vadd.f32 %v3404_v63, %v2953_v26  ;;  %v12118_v4 = vadd.f32 %v3417_v49, %v2966_v30 }
 0x37e   : > { %v3380_v47 = vpop.f32.mrf.mxu2  ;;  %v3393_v36 = vpop.f32.mrf.mxu3 }
 0x382   : > { %v3406_v9 = vpop.f32.mrf.mxu0  ;;  %v3419_v60 = vpop.f32.mrf.mxu1 }
 0x386   : > { %v3430_v22 = vpop.f32.mrf.mxu2  ;;  %v3443_v55 = vpop.f32.mrf.mxu3 }
 0x387   : > { %v12121_v16 = vadd.f32 %v3430_v22, %v2979_v6  ;;  %v12123_v1 = vadd.f32 %v3443_v55, %v2992_v50  ;;  %v3301_v50 = vadd.f32 %v3300_v41, %v12064_v38 }
 0x38a   : > { %v3749_v3 = vpop.f32.mrf.mxu0  ;;  %v3762_v31 = vpop.f32.mrf.mxu1 }
 0x38b   : > { %v12125_v44 = vadd.f32 %v3749_v3, %v3249_v46  ;;  %v12127_v26 = vadd.f32 %v3762_v31, %v3262_v23 }
 0x38e   : > { %v3432_v30 = vpop.f32.mrf.mxu2  ;;  %v3445_v62 = vpop.f32.mrf.mxu3 }
 0x392   : > { %v3751_v17 = vpop.f32.mrf.mxu0  ;;  %v3764_v2 = vpop.f32.mrf.mxu1 }
 0x396   : > { %v3775_v0 = vpop.f32.mrf.mxu2  ;;  %v3788_v6 = vpop.f32.mrf.mxu3 }
 0x397   : > { %v3950_v63 = vadd.f32 %v3775_v0, %v3275_v57  ;;  %v3951_v23 = vadd.f32 %v3788_v6, %v3288_v35 }
 0x399   : > { %v3972_v36 = vadd.f32 %v12133_v11, %v3950_v63  ;;  %v3973_v9 = vadd.f32 %v12133_v11, %v3951_v23 }
 0x39a   : > { %v3801_v49 = vpop.f32.mrf.mxu0  ;;  %v3814_v47 = vpop.f32.mrf.mxu1 }
 0x39b   : > { %v3952_v18 = vadd.f32 %v3801_v49, %v3301_v50  ;;  %v3953_v29 = vadd.f32 %v3814_v47, %v3314_v15  ;;  %v4049_v19 = vsel %vm4034_vm4, %v3972_v36, -inf  ;;  %v4003_v43 = vrot.slane %v3973_v9, 4 }
 0x39c   : > { %v4056_v38 = vsel %vm4034_vm4, %v3973_v9, -inf  ;;  %v4050_v41 = vrot.slane %v4049_v19, 4 }
 0x39d   : > { %v3974_v20 = vadd.f32 %v12133_v11, %v3952_v18  ;;  %v4057_v25 = vrot.slane %v4056_v38, 4  ;;  %v12142_v60 = vadd.f32 %v12133_v11, %v3953_v29  ;;  %v4011_v22 = vsel %vm14144_vm13, %v3972_v36, %v4003_v43 }
 0x39e   : > { %v4051_v46 = vmax.f32 %v4049_v19, %v4050_v41  ;;  %4027 = vst [vmem:[%s12147_s18 + $0x8] sm:$0x77] %v4011_v22  ;;  %v3777_v62 = vpop.f32.mrf.mxu2  ;;  %v3790_v17 = vpop.f32.mrf.mxu3 }
 0x39f   : > { %v4063_v55 = vsel %vm4034_vm4, %v3974_v20, -inf  ;;  %v4058_v3 = vmax.f32 %v4056_v38, %v4057_v25  ;;  %v4004_v30 = vrot.slane %v12142_v60, 4  ;;  %v4070_v2 = vsel %vm4034_vm4, %v12142_v60, -inf }
 0x3a0   : > { %v4064_v31 = vrot.slane %v4063_v55, 4  ;;  %v4052_v57 = vrot.slane %v4051_v46, 2  ;;  %v4071_v63 = vrot.slane %v4070_v2, 4  ;;  %v3340_v38 = vadd.f32 %v12103_v21, %v12084_v39 }
 0x3a1   : > { %v4059_v35 = vrot.slane %v4058_v3, 2  ;;  %v4012_v6 = vsel %vm14144_vm13, %v3974_v20, %v4004_v30  ;;  %v3353_v62 = vadd.f32 %v12108_v34, %v12078_v13  ;;  %v12164_v39 = vadd.f32 %v12133_v11, %v12125_v44 }
 0x3a2   : > { %v4065_v0 = vmax.f32 %v4063_v55, %v4064_v31  ;;  %v3803_v50 = vpop.f32.mrf.mxu0  ;;  %v3816_v15 = vpop.f32.mrf.mxu1  ;;  %4028 = vst [vmem:[%s12147_s18 + $0x10] sm:$0x77] %v4012_v6  ;;  %v4053_v23 = vmax.f32 %v4051_v46, %v4052_v57  ;;  %v4072_v18 = vmax.f32 %v4070_v2, %v4071_v63 }
 0x3a3   : > { %v4060_v49 = vmax.f32 %v4058_v3, %v4059_v35 }
 0x3a4   : > { %v4066_v47 = vrot.slane %v4065_v0, 2  ;;  %v4054_v29 = vrot.slane %v4053_v23, 1  ;;  %v4073_v41 = vrot.slane %v4072_v18, 2 }
 0x3a5   : > { %v4061_v19 = vrot.slane %v4060_v49, 1 }
 0x3a6   : > { %v4067_v43 = vmax.f32 %v4065_v0, %v4066_v47  ;;  %v4055_v25 = vmax.f32 %v4053_v23, %v4054_v29  ;;  %v3827_v31 = vpop.f32.mrf.mxu2  ;;  %v3840_v30 = vpop.f32.mrf.mxu3  ;;  %v4074_v17 = vmax.f32 %v4072_v18, %v4073_v41 }
 0x3a7   : > { %v4062_v22 = vmax.f32 %v4060_v49, %v4061_v19  ;;  %v3954_v46 = vadd.f32 %v3827_v31, %v12106_v32  ;;  %v3955_v3 = vadd.f32 %v3840_v30, %v3340_v38  ;;  %v4035_v30 = vsel %vm4034_vm4, %v12164_v39, -inf }
 0x3a8   : > { %v4068_v55 = vrot.slane %v4067_v43, 1  ;;  %v4149_v2 = vsub.f32 %v3972_v36, %v4055_v25  ;;  %v4075_v21 = vrot.slane %v4074_v17, 1 }
 0x3a9   : > { %v4150_v57 = vsub.f32 %v3973_v9, %v4062_v22  ;;  %v12167_v50 = vadd.f32 %v12133_v11, %v3954_v46  ;;  %v12170_v15 = vadd.f32 %v12133_v11, %v3955_v3 }
 0x3aa   : > { %v4069_v35 = vmax.f32 %v4067_v43, %v4068_v55  ;;  %v3853_v0 = vpop.f32.mrf.mxu0  ;;  %v3866_v6 = vpop.f32.mrf.mxu1  ;;  %v4167_v34 = vmul.f32 1.442695, %v4149_v2  ;;  %v4076_v9 = vmax.f32 %v4074_v17, %v4075_v21 }
 0x3ab   : > { %v3956_v13 = vadd.f32 %v3853_v0, %v3353_v62  ;;  %v4169_v32 = vmul.f32 1.442695, %v4150_v57  ;;  %v3957_v36 = vadd.f32 %v3866_v6, %v12110_v10  ;;  %v4077_v23 = vsel %vm4034_vm4, %v12167_v50, -inf }
 0x3ac   : > { %v4151_v63 = vsub.f32 %v3974_v20, %v4069_v35  ;;  %v4005_v44 = vrot.slane %v12170_v15, 4  ;;  %v4084_v49 = vsel %vm4034_vm4, %v12170_v15, -inf  ;;  %10721 = vpow2.f32 %v4167_v34 }
 0x3ad   : > { %v4078_v18 = vrot.slane %v4077_v23, 4  ;;  %v4085_v29 = vrot.slane %v4084_v49, 4  ;;  %10723 = vpow2.f32 %v4169_v32  ;;  %v4152_v19 = vsub.f32 %v12142_v60, %v4076_v9 }
 0x3ae   : > { %v4171_v47 = vmul.f32 1.442695, %v4151_v63  ;;  %v4013_v20 = vsel %vm14144_vm13, %v12167_v50, %v4005_v44  ;;  %v12182_v10 = vadd.f32 %v12133_v11, %v3956_v13  ;;  %v12186_v41 = vadd.f32 %v12133_v11, %v3957_v36  ;;  %v3829_v25 = vpop.f32.mrf.mxu2  ;;  %v3842_v22 = vpop.f32.mrf.mxu3 }
 0x3af   : > { %v4079_v43 = vmax.f32 %v4077_v23, %v4078_v18  ;;  %4029 = vst [vmem:[%s12147_s18 + $0x18] sm:$0x77] %v4013_v20  ;;  %v4086_v38 = vmax.f32 %v4084_v49, %v4085_v29  ;;  %v4173_v55 = vmul.f32 1.442695, %v4152_v19  ;;  %v12192_v60 = vadd.f32 %v12133_v11, %v12127_v26 }
 0x3b0   : > { %10725 = vpow2.f32 %v4171_v47  ;;  %v4091_v31 = vsel %vm4034_vm4, %v12182_v10, -inf  ;;  %v4006_v3 = vrot.slane %v12186_v41, 4  ;;  %v4098_v35 = vsel %vm4034_vm4, %v12186_v41, -inf }
 0x3b1   : > { %v4080_v62 = vrot.slane %v4079_v43, 2  ;;  %v4087_v17 = vrot.slane %v4086_v38, 2  ;;  %v4092_v46 = vrot.slane %v4091_v31, 4  ;;  %10727 = vpow2.f32 %v4173_v55 }
 0x3b2   : > { %v3855_v2 = vpop.f32.mrf.mxu0  ;;  %v3868_v57 = vpop.f32.mrf.mxu1  ;;  %v4014_v13 = vsel %vm14144_vm13, %v12182_v10, %v4006_v3  ;;  %v4099_v63 = vrot.slane %v4098_v35, 4  ;;  %v4036_v36 = vrot.slane %v4035_v30, 4  ;;  %v4042_v9 = vsel %vm4034_vm4, %v12192_v60, -inf }
 0x3b3   : > { %v12199_v0 = vpop.eup %10721  ;;  %v4081_v6 = vmax.f32 %v4079_v43, %v4080_v62  ;;  %v4088_v26 = vmax.f32 %v4086_v38, %v4087_v17  ;;  %v4093_v21 = vmax.f32 %v4091_v31, %v4092_v46  ;;  %4030 = vst [vmem:[%s12147_s18 + $0x20] sm:$0x77] %v4014_v13  ;;  %v4043_v57 = vrot.slane %v4042_v9, 4 }
 0x3b4   : > { %v12203_v34 = vpop.eup %10723  ;;  %v4209_v32 = vsel %vm4034_vm4, %v12199_v0, 0.0  ;;  %v4100_v43 = vmax.f32 %v4098_v35, %v4099_v63 }
 0x3b5   : > { %v4210_v44 = vrot.slane %v4209_v32, 4  ;;  %v4216_v49 = vsel %vm4034_vm4, %v12203_v34, 0.0  ;;  %v4082_v47 = vrot.slane %v4081_v6, 1  ;;  %v4089_v18 = vrot.slane %v4088_v26, 1 }
 0x3b6   : > { %v12210_v23 = vpop.eup %10725  ;;  %v4217_v29 = vrot.slane %v4216_v49, 4  ;;  %v4094_v20 = vrot.slane %v4093_v21, 2  ;;  %v3879_v31 = vpop.f32.mrf.mxu2  ;;  %v4101_v2 = vrot.slane %v4100_v43, 2 }
 0x3b7   : > { %v4223_v19 = vsel %vm4034_vm4, %v12210_v23, 0.0  ;;  %v4211_v38 = vadd.f32 %v4210_v44, %v4209_v32  ;;  %v4083_v22 = vmax.f32 %v4081_v6, %v4082_v47  ;;  %v4090_v55 = vmax.f32 %v4088_v26, %v4089_v18  ;;  %v12216_v62 = vpop.f32.mrf.mxu3  ;;  %v12218_v17 = vpop.eup %10727 }
 0x3b8   : > { %v4224_v25 = vrot.slane %v4223_v19, 4  ;;  %v4218_v46 = vadd.f32 %v4217_v29, %v4216_v49  ;;  %v4095_v3 = vmax.f32 %v4093_v21, %v4094_v20  ;;  %v4230_v59 = vsel %vm4034_vm4, %v12218_v17, 0.0 }
 0x3b9   : > { %v4212_v13 = vrot.slane %v4211_v38, 2  ;;  %v4153_v35 = vsub.f32 %v12167_v50, %v4083_v22  ;;  %v4231_v63 = vrot.slane %v4230_v59, 4  ;;  %v4037_v26 = vmax.f32 %v4035_v30, %v4036_v36 }
 0x3ba   : > { %v4225_v12 = vadd.f32 %v4224_v25, %v4223_v19  ;;  %v4219_v32 = vrot.slane %v4218_v46, 2  ;;  %v4096_v6 = vrot.slane %v4095_v3, 1  ;;  %v4154_v18 = vsub.f32 %v12170_v15, %v4090_v55  ;;  %v12232_v55 = vpop.f32.mrf.mxu1 }
 0x3bb   : > { %v4213_v44 = vadd.f32 %v4212_v13, %v4211_v38  ;;  %v4102_v28 = vmax.f32 %v4100_v43, %v4101_v2  ;;  %v4044_v29 = vmax.f32 %v4042_v9, %v4043_v57  ;;  %v4175_v56 = vmul.f32 1.442695, %v4153_v35  ;;  %v12229_v43 = vpop.f32.mrf.mxu0 }
 0x3bc   : > { %v4226_v47 = vrot.slane %v4225_v12, 2  ;;  %v4220_v49 = vadd.f32 %v4219_v32, %v4218_v46  ;;  %v4097_v21 = vmax.f32 %v4095_v3, %v4096_v6  ;;  %v4232_v53 = vadd.f32 %v4231_v63, %v4230_v59 }
 0x3bd   : > { %v4214_v20 = vrot.slane %v4213_v44, 1  ;;  %v4177_v50 = vmul.f32 1.442695, %v4154_v18  ;;  %v4103_v22 = vrot.slane %v4102_v28, 1  ;;  %v4038_v30 = vrot.slane %v4037_v26, 2 }
 0x3be   : > { %v4221_v19 = vrot.slane %v4220_v49, 1  ;;  %v4227_v25 = vadd.f32 %v4226_v47, %v4225_v12  ;;  %v3881_v8 = vpop.f32.mrf.mxu2  ;;  %v4155_v15 = vsub.f32 %v12182_v10, %v4097_v21  ;;  %v4045_v38 = vrot.slane %v4044_v29, 2 }
 0x3bf   : > { %v12224_v58 = vadd.f32 %v4214_v20, %v4213_v44  ;;  %v3894_v40 = vpop.f32.mrf.mxu3  ;;  %10729 = vpow2.f32 %v4175_v56  ;;  %v4233_v12 = vrot.slane %v4232_v53, 2  ;;  %v4104_v59 = vmax.f32 %v4102_v28, %v4103_v22 }
 0x3c0   : > { %v12226_v36 = vadd.f32 %v4221_v19, %v4220_v49  ;;  %v4228_v9 = vrot.slane %v4227_v25, 1  ;;  %v4039_v46 = vmax.f32 %v4037_v26, %v4038_v30  ;;  %v4179_v40 = vmul.f32 1.442695, %v4155_v15 }
 0x3c1   : > { %10731 = vrcp.f32 %v12224_v58  ;;  %v4046_v8 = vmax.f32 %v4044_v29, %v4045_v38  ;;  %v4234_v10 = vadd.f32 %v4233_v12, %v4232_v53  ;;  %v4156_v56 = vsub.f32 %v12186_v41, %v4104_v59 }
 0x3c2   : > { %10733 = vpow2.f32 %v4177_v50  ;;  %v12235_v3 = vadd.f32 %v4228_v9, %v4227_v25  ;;  %v4040_v57 = vrot.slane %v4039_v46, 1  ;;  %v3958_v63 = vadd.f32 %v3879_v31, %v12112_v45  ;;  %v3920_v47 = vpop.f32.mrf.mxu1 }
 0x3c3   : > { %10735 = vrcp.f32 %v12226_v36  ;;  %v3907_v35 = vpop.f32.mrf.mxu0  ;;  %v4047_v28 = vrot.slane %v4046_v8, 1  ;;  %v4235_v26 = vrot.slane %v4234_v10, 1  ;;  %v4181_v44 = vmul.f32 1.442695, %v4156_v56 }
 0x3c4   : > { %10737 = vpow2.f32 %v4179_v40  ;;  %v4041_v18 = vmax.f32 %v4039_v46, %v4040_v57  ;;  %v12259_v29 = vadd.f32 %v12133_v11, %v3958_v63  ;;  %v4346_v40 = vand.u32 2147483647, %v12224_v58 }
 0x3c5   : > { %v12237_v2 = vpop.eup %10729  ;;  %10739 = vrcp.f32 %v12235_v3  ;;  %v12252_v49 = vmax.f32 %v4046_v8, %v4047_v28  ;;  %v12263_v19 = vadd.f32 %v4235_v26, %v4234_v10  ;;  %v4348_v8 = vand.u32 2147483648, %v12224_v58 }
 0x3c6   : > { %v4237_v53 = vsel %vm4034_vm4, %v12237_v2, 0.0  ;;  %10741 = vpow2.f32 %v4181_v44  ;;  %v4147_v50 = vsub.f32 %v12164_v39, %v4041_v18  ;;  %v4105_v46 = vsel %vm4034_vm4, %v12259_v29, -inf }
 0x3c7   : > { %v12240_v13 = vpop.eup %10731  ;;  %v4238_v45 = vrot.slane %v4237_v53, 4  ;;  %v4363_v10 = vand.u32 2147483648, %v12226_v36  ;;  %10743 = vrcp.f32 %v12263_v19  ;;  %v4361_v57 = vand.u32 2147483647, %v12226_v36 }
 0x3c8   : > { %v12242_v32 = vpop.eup %10733  ;;  %v4338_v41 = vmul.f32 %v12240_v13, %v12224_v58  ;;  %v12283_v28 = vmul.f32 1.442695, %v4147_v50  ;;  %vm4342_vm1 = vweird.f32 %v12224_v58  ;;  %vm4357_vm12 = vweird.f32 %v12226_v36 }
 0x3c9   : > { %v12245_v6 = vpop.eup %10735  ;;  %v4244_v31 = vsel %vm4034_vm4, %v12242_v32, 0.0  ;;  %v4239_v12 = vadd.f32 %v4238_v45, %v4237_v53  ;;  %v4106_v53 = vrot.slane %v4105_v46, 4  ;;  %v12294_v45 = vpop.f32.mrf.mxu3  ;;  %vm12296_vm6 = vcmp.eq.f32.partialorder %v4346_v40, 8.507059e+37 }
 0x3ca   : > { %v4353_v21 = vmul.f32 %v12245_v6, %v12226_v36  ;;  %v12261_v20 = vpop.eup %10737  ;;  %v4339_v25 = vsub.f32 1.0, %v4338_v41  ;;  %v4245_v30 = vrot.slane %v4244_v31, 4  ;;  %v3959_v41 = vadd.f32 %v12216_v62, %v12114_v61 }
 0x3cb   : > { %v12266_v22 = vpop.eup %10739  ;;  %v4251_v59 = vsel %vm4034_vm4, %v12261_v20, 0.0  ;;  %v4240_v18 = vrot.slane %v4239_v12, 2  ;;  %v4364_v50 = vor.u32 1.1754944e-38, %v4363_v10  ;;  %v4378_v61 = vand.u32 2147483648, %v12235_v3 }
 0x3cc   : > { %v4354_v9 = vsub.f32 1.0, %v4353_v21  ;;  %v4340_v56 = vmul.f32 %v12240_v13, %v4339_v25  ;;  %v4368_v35 = vmul.f32 %v12266_v22, %v12235_v3  ;;  %v4246_v63 = vadd.f32 %v4245_v30, %v4244_v31  ;;  %v12287_v44 = vpop.eup %10741  ;;  %v12292_v21 = vpop.f32.mrf.mxu2 }
 0x3cd   : > { %v4252_v26 = vrot.slane %v4251_v59, 4  ;;  %v4349_v25 = vor.u32 1.1754944e-38, %v4348_v8  ;;  %vm4343_vm15 = vweird.f32 %v12240_v13  ;;  %vm12303_vm7 = vcmp.eq.f32.partialorder %v4361_v57, 8.507059e+37  ;;  %v12308_v38 = vpop.eup %10743 }
 0x3ce   : > { %v4355_v47 = vmul.f32 %v12245_v6, %v4354_v9  ;;  %v4341_v62 = vadd.f32 %v12240_v13, %v4340_v56  ;;  %v4369_v9 = vsub.f32 1.0, %v4368_v35  ;;  %v4376_v15 = vand.u32 2147483647, %v12235_v3  ;;  %vm12317_vm0 = vmor %vm4342_vm1, %vm4343_vm15 }
 0x3cf   : > { %v4247_v40 = vrot.slane %v4246_v63, 2  ;;  %v4253_v27 = vadd.f32 %v4252_v26, %v4251_v59  ;;  %v4258_v8 = vsel %vm4034_vm4, %v12287_v44, 0.0  ;;  %v4107_v10 = vmax.f32 %v4105_v46, %v4106_v53 }
 0x3d0   : > { %v4356_v33 = vadd.f32 %v12245_v6, %v4355_v47  ;;  %vm4358_vm3 = vweird.f32 %v12245_v6  ;;  %vm4372_vm9 = vweird.f32 %v12235_v3  ;;  %v4241_v56 = vadd.f32 %v4240_v18, %v4239_v12 }
 0x3d1   : > { %v4259_v57 = vrot.slane %v4258_v8, 4  ;;  %v4379_v52 = vor.u32 1.1754944e-38, %v4378_v61  ;;  %v4393_v59 = vand.u32 2147483648, %v12263_v19  ;;  %v4108_v26 = vrot.slane %v4107_v10, 2  ;;  %vm12333_vm1 = vmor %vm4357_vm12, %vm4358_vm3 }
 0x3d2   : > { %v12323_v46 = vadd.f32 %v12133_v11, %v3959_v41  ;;  %v4345_v53 = vsel %vm12317_vm0, %v12240_v13, %v4341_v62  ;;  %v4370_v12 = vmul.f32 %v12266_v22, %v4369_v9  ;;  %v4383_v58 = vmul.f32 %v12308_v38, %v12263_v19 }
 0x3d3   : > { %v4260_v47 = vadd.f32 %v4259_v57, %v4258_v8  ;;  %v4248_v61 = vadd.f32 %v4247_v40, %v4246_v63  ;;  %v4254_v24 = vrot.slane %v4253_v27, 2  ;;  %v4109_v41 = vmax.f32 %v4107_v10, %v4108_v26  ;;  %v3946_v8 = vpop.f32.mrf.mxu3 }
 0x3d4   : > { %v4007_v5 = vrot.slane %v12323_v46, 4  ;;  %v4360_v13 = vsel %vm12333_vm1, %v12245_v6, %v4356_v33  ;;  %vm12341_vm0 = vcmp.eq.f32.partialorder %v4376_v15, 8.507059e+37  ;;  %v4242_v9 = vrot.slane %v4241_v56, 1  ;;  %v3933_v40 = vpop.f32.mrf.mxu2 }
 0x3d5   : > { %v3960_v36 = vadd.f32 %v12229_v43, %v12116_v37  ;;  %v3961_v63 = vadd.f32 %v12232_v55, %v12118_v4  ;;  %v4350_v10 = vsel %vm12296_vm6, %v4349_v25, %v4345_v53  ;;  %vm4373_vm3 = vweird.f32 %v12266_v22 }
 0x3d6   : > { %v4261_v33 = vrot.slane %v4260_v47, 2  ;;  %v4110_v6 = vrot.slane %v4109_v41, 1  ;;  %v4371_v15 = vadd.f32 %v12266_v22, %v4370_v12  ;;  %v4384_v57 = vsub.f32 1.0, %v4383_v58  ;;  %vm12372_vm6 = vmor %vm4372_vm9, %vm4373_vm3 }
 0x3d7   : > { %v4015_v35 = vsel %vm14144_vm13, %v12259_v29, %v4007_v5  ;;  %v4112_v37 = vsel %vm4034_vm4, %v12323_v46, -inf  ;;  %v4365_v4 = vsel %vm12303_vm7, %v4364_v50, %v4360_v13  ;;  %v4249_v43 = vrot.slane %v4248_v61, 1 }
 0x3d8   : > { %v4255_v55 = vadd.f32 %v4254_v24, %v4253_v27  ;;  %v4111_v31 = vmax.f32 %v4109_v41, %v4110_v6  ;;  %4031 = vst [vmem:[%s12147_s18 + $0x28] sm:$0x77] %v4015_v35  ;;  %v12360_v25 = vadd.f32 %v4242_v9, %v4241_v56  ;;  %v4113_v26 = vrot.slane %v4112_v37, 4 }
 0x3d9   : > { %v12363_v53 = vadd.f32 %v12133_v11, %v3960_v36  ;;  %v12366_v12 = vadd.f32 %v12133_v11, %v3961_v63  ;;  %v4391_v24 = vand.u32 2147483647, %v12263_v19  ;;  %v12377_v27 = vor.u32 1.1754944e-38, %v4393_v59 }
 0x3da   : > { %v4262_v50 = vadd.f32 %v4261_v33, %v4260_v47  ;;  %v4157_v30 = vsub.f32 %v12259_v29, %v4111_v31  ;;  %v4375_v56 = vsel %vm12372_vm6, %v12266_v22, %v4371_v15  ;;  %v4385_v58 = vmul.f32 %v12308_v38, %v4384_v57 }
 0x3db   : > { %v4114_v18 = vmax.f32 %v4112_v37, %v4113_v26  ;;  %v4119_v3 = vsel %vm4034_vm4, %v12363_v53, -inf  ;;  %v12387_v41 = vmul.f32 %v12199_v0, %v4350_v10  ;;  %v12390_v13 = vmul.f32 %v12203_v34, %v4365_v4 }
 0x3dc   : > { %vm4387_vm7 = vweird.f32 %v12263_v19  ;;  %vm4388_vm9 = vweird.f32 %v12308_v38  ;;  %v4256_v29 = vrot.slane %v4255_v55, 1  ;;  %10745 = vrcp.f32 %v12360_v25 }
 0x3dd   : > { %14261 = vst [vmem:[#allocation13_spill] sm:$0xff] %v12387_v41  ;;  %v12395_v22 = vadd.f32 %v4249_v43, %v4248_v61  ;;  %v4183_v59 = vmul.f32 1.442695, %v4157_v30  ;;  %v4008_v47 = vrot.slane %v12366_v12, 4  ;;  %v4380_v9 = vsel %vm12341_vm0, %v4379_v52, %v4375_v56  ;;  %vm12438_vm12 = vmor %vm4387_vm7, %vm4388_vm9 }
 0x3de   : > { %14262 = vst [vmem:[#allocation21_spill] sm:$0xff] %v12390_v13  ;;  %v4263_v0 = vrot.slane %v4262_v50, 1  ;;  %v4115_v36 = vrot.slane %v4114_v18, 2  ;;  %v4120_v63 = vrot.slane %v4119_v3, 4  ;;  %v4386_v34 = vadd.f32 %v12308_v38, %v4385_v58 }
 0x3df   : > { %v4406_v40 = vand.u32 2147483647, %v12360_v25  ;;  %v4408_v8 = vand.u32 2147483648, %v12360_v25  ;;  %v3962_v61 = vadd.f32 %v12292_v21, %v12121_v16  ;;  %v12405_v10 = vadd.f32 %v4256_v29, %v4255_v55 }
 0x3e0   : > { %10747 = vpow2.f32 %v4183_v59  ;;  %v4116_v33 = vmax.f32 %v4114_v18, %v4115_v36  ;;  %v4121_v6 = vmax.f32 %v4119_v3, %v4120_v63  ;;  %v12408_v52 = vmul.f32 %v12210_v23, %v4380_v9 }
 0x3e1   : > { %vm12410_vm15 = vcmp.eq.f32.partialorder %v4391_v24, 8.507059e+37  ;;  %10749 = vrcp.f32 %v12395_v22  ;;  %v4016_v15 = vsel %vm14144_vm13, %v12363_v53, %v4008_v47  ;;  %v4126_v16 = vsel %vm4034_vm4, %v12366_v12, -inf }
 0x3e2   : > { %14263 = vst [vmem:[#allocation14_spill] sm:$0xff] %v12408_v52  ;;  %v12419_v21 = vadd.f32 %v4263_v0, %v4262_v50  ;;  %v4117_v57 = vrot.slane %v4116_v33, 1  ;;  %v4122_v35 = vrot.slane %v4121_v6, 2  ;;  %v4127_v37 = vrot.slane %v4126_v16, 4  ;;  %v12422_v23 = vpop.eup %10745 }
 0x3e3   : > { %4032 = vst [vmem:[%s12147_s18 + $0x30] sm:$0x77] %v4016_v15  ;;  %v12425_v4 = vadd.f32 %v12133_v11, %v3962_v61  ;;  %v3963_v43 = vadd.f32 %v12294_v45, %v12123_v1  ;;  %10751 = vpow2.f32 %v12283_v28  ;;  %v14266_v55 = vsub.f32 %v12192_v60, %v12252_v49 }
 0x3e4   : > { %10753 = vrcp.f32 %v12405_v10  ;;  %v4118_v26 = vmax.f32 %v4116_v33, %v4117_v57  ;;  %v4123_v5 = vmax.f32 %v4121_v6, %v4122_v35  ;;  %v4128_v24 = vmax.f32 %v4126_v16, %v4127_v37 }
 0x3e5   : > { %v4165_v31 = vmul.f32 1.442695, %v14266_v55  ;;  %v4421_v1 = vand.u32 2147483647, %v12395_v22  ;;  %v4133_v28 = vsel %vm4034_vm4, %v12425_v4, -inf  ;;  %v12446_v49 = vadd.f32 %v12133_v11, %v3963_v43 }
 0x3e6   : > { %v12448_v45 = vpop.eup %10747  ;;  %v4390_v30 = vsel %vm12438_vm12, %v12308_v38, %v4386_v34  ;;  %v12453_v19 = vor.u32 1.1754944e-38, %v4408_v8  ;;  %v4158_v56 = vsub.f32 %v12323_v46, %v4118_v26  ;;  %v4124_v11 = vrot.slane %v4123_v5, 1 }
 0x3e7   : > { %10755 = vpow2.f32 %v4165_v31  ;;  %v12457_v58 = vpop.eup %10749  ;;  %v4265_v18 = vsel %vm4034_vm4, %v12448_v45, 0.0  ;;  %v4129_v3 = vrot.slane %v4128_v24, 2  ;;  %v4134_v29 = vrot.slane %v4133_v28, 4 }
 0x3e8   : > { %10757 = vrcp.f32 %v12419_v21  ;;  %v4423_v59 = vand.u32 2147483648, %v12395_v22  ;;  %v4266_v47 = vrot.slane %v4265_v18, 4  ;;  %v4185_v9 = vmul.f32 1.442695, %v4158_v56 }
 0x3e9   : > { %v4009_v38 = vrot.slane %v12446_v49, 4  ;;  %v12463_v0 = vpop.eup %10751  ;;  %v4125_v36 = vmax.f32 %v4123_v5, %v4124_v11  ;;  %v4130_v63 = vmax.f32 %v4128_v24, %v4129_v3  ;;  %v4135_v46 = vmax.f32 %v4133_v28, %v4134_v29 }
 0x3ea   : > { %v4140_v34 = vsel %vm4034_vm4, %v12446_v49, -inf  ;;  %v12467_v8 = vpop.eup %10753  ;;  %v12472_v61 = vsel %vm12410_vm15, %v12377_v27, %v4390_v30  ;;  %v4267_v33 = vadd.f32 %v4266_v47, %v4265_v18  ;;  %10759 = vpow2.f32 %v4185_v9 }
 0x3eb   : > { %v4017_v6 = vsel %vm14144_vm13, %v12425_v4, %v4009_v38  ;;  %v4159_v16 = vsub.f32 %v12363_v53, %v4125_v36  ;;  %v4131_v57 = vrot.slane %v4130_v63, 1  ;;  %v4136_v35 = vrot.slane %v4135_v46, 2 }
 0x3ec   : > { %4033 = vst [vmem:[%s12147_s18 + $0x38] sm:$0x77] %v4017_v6  ;;  %v4141_v37 = vrot.slane %v4140_v34, 4  ;;  %v4398_v62 = vmul.f32 %v12422_v23, %v12360_v25  ;;  %v4268_v27 = vrot.slane %v4267_v33, 2  ;;  %v4195_v55 = vsel %vm4034_vm4, %v12463_v0, 0.0 }
 0x3ed   : > { %v12476_v15 = vpop.eup %10755  ;;  %v4187_v26 = vmul.f32 1.442695, %v4159_v16  ;;  %v4132_v5 = vmax.f32 %v4130_v63, %v4131_v57  ;;  %v4137_v24 = vmax.f32 %v4135_v46, %v4136_v35  ;;  %v4413_v50 = vmul.f32 %v12457_v58, %v12395_v22 }
 0x3ee   : > { %v12480_v43 = vpop.eup %10757  ;;  %v4202_v31 = vsel %vm4034_vm4, %v12476_v15, 0.0  ;;  %v4142_v53 = vmax.f32 %v4140_v34, %v4141_v37  ;;  %v4269_v28 = vadd.f32 %v4268_v27, %v4267_v33  ;;  %v4196_v30 = vrot.slane %v4195_v55, 4 }
 0x3ef   : > { %v4203_v56 = vrot.slane %v4202_v31, 4  ;;  %v4428_v18 = vmul.f32 %v12467_v8, %v12405_v10  ;;  %10761 = vpow2.f32 %v4187_v26  ;;  %v4160_v11 = vsub.f32 %v12366_v12, %v4132_v5 }
 0x3f0   : > { %v4138_v3 = vrot.slane %v4137_v24, 1  ;;  %v12493_v29 = vpop.eup %10759  ;;  %v4443_v47 = vmul.f32 %v12480_v43, %v12419_v21  ;;  %v4270_v9 = vrot.slane %v4269_v28, 1  ;;  %v4143_v38 = vrot.slane %v4142_v53, 2 }
 0x3f1   : > { %v4197_v36 = vadd.f32 %v4196_v30, %v4195_v55  ;;  %v4272_v63 = vsel %vm4034_vm4, %v12493_v29, 0.0  ;;  %v4189_v46 = vmul.f32 1.442695, %v4160_v11  ;;  %v4204_v33 = vadd.f32 %v4203_v56, %v4202_v31 }
 0x3f2   : > { %v4139_v34 = vmax.f32 %v4137_v24, %v4138_v3  ;;  %v12499_v6 = vadd.f32 %v4270_v9, %v4269_v28  ;;  %v4273_v16 = vrot.slane %v4272_v63, 4  ;;  %v4144_v12 = vmax.f32 %v4142_v53, %v4143_v38 }
 0x3f3   : > { %v4198_v57 = vrot.slane %v4197_v36, 2  ;;  %v12501_v35 = vor.u32 1.1754944e-38, %v4423_v59  ;;  %10763 = vpow2.f32 %v4189_v46  ;;  %v14269_v27 = vrot.slane %v12192_v60, 4 }
 0x3f4   : > { %v4161_v37 = vsub.f32 %v12425_v4, %v4139_v34  ;;  %v4399_v26 = vsub.f32 1.0, %v4398_v62  ;;  %vm4403_vm1 = vweird.f32 %v12422_v23  ;;  %v4414_v5 = vsub.f32 1.0, %v4413_v50 }
 0x3f5   : > { %v4010_v55 = vsel %vm14144_vm13, %v12164_v39, %v14269_v27  ;;  %10765 = vrcp.f32 %v12499_v6  ;;  %v4205_v31 = vrot.slane %v4204_v33, 2  ;;  %v12511_v24 = vpop.eup %10761  ;;  %v4274_v59 = vadd.f32 %v4273_v16, %v4272_v63 }
 0x3f6   : > { %4026 = vst [vmem:[%s12147_s18] sm:$0x77] %v4010_v55  ;;  %v4191_v53 = vmul.f32 1.442695, %v4161_v37  ;;  %v4145_v28 = vrot.slane %v4144_v12, 1  ;;  %v4199_v30 = vadd.f32 %v4198_v57, %v4197_v36  ;;  %vm4402_vm0 = vweird.f32 %v12360_v25  ;;  %s10269_s18 = sshll.u32 %s10938_s9, 4 }
 0x3f7   : > { %vm4418_vm3 = vweird.f32 %v12457_v58  ;;  %v4429_v60 = vsub.f32 1.0, %v4428_v18  ;;  %v4444_v39 = vsub.f32 1.0, %v4443_v47  ;;  %v4279_v4 = vsel %vm4034_vm4, %v12511_v24, 0.0  ;;  %vm12564_vm5 = vmor %vm4402_vm0, %vm4403_vm1 }
 0x3f8   : > { %vm4417_vm6 = vweird.f32 %v12395_v22  ;;  %v4275_v62 = vrot.slane %v4274_v59, 2  ;;  %v4280_v50 = vrot.slane %v4279_v4, 4  ;;  %10767 = vpow2.f32 %v4191_v53 }
 0x3f9   : > { %v4146_v56 = vmax.f32 %v4144_v12, %v4145_v28  ;;  %v4400_v11 = vmul.f32 %v12422_v23, %v4399_v26  ;;  %v4415_v3 = vmul.f32 %v12457_v58, %v4414_v5  ;;  %v4436_v9 = vand.u32 2147483647, %v12405_v10  ;;  %v12521_v36 = vpop.eup %10763  ;;  %vm12576_vm11 = vmor %vm4417_vm6, %vm4418_vm3 }
 0x3fa   : > { %v4200_v38 = vrot.slane %v4199_v30, 1  ;;  %v4276_v18 = vadd.f32 %v4275_v62, %v4274_v59  ;;  %v4281_v47 = vadd.f32 %v4280_v50, %v4279_v4  ;;  %v4206_v46 = vadd.f32 %v4205_v31, %v4204_v33 }
 0x3fb   : > { %v4162_v63 = vsub.f32 %v12446_v49, %v4146_v56  ;;  %v12524_v34 = vpop.eup %10765  ;;  %vm4432_vm7 = vweird.f32 %v12405_v10  ;;  %v4438_v16 = vand.u32 2147483648, %v12405_v10  ;;  %v4286_v12 = vsel %vm4034_vm4, %v12521_v36, 0.0 }
 0x3fc   : > { %v12530_v57 = vadd.f32 %v4200_v38, %v4199_v30  ;;  %vm12534_vm9 = vcmp.eq.f32.partialorder %v4406_v40, 8.507059e+37  ;;  %v4430_v49 = vmul.f32 %v12467_v8, %v4429_v60  ;;  %v4445_v33 = vmul.f32 %v12480_v43, %v4444_v39 }
 0x3fd   : > { %v4277_v27 = vrot.slane %v4276_v18, 1  ;;  %v4282_v55 = vrot.slane %v4281_v47, 2  ;;  %v4401_v26 = vadd.f32 %v12422_v23, %v4400_v11  ;;  %vm12543_vm15 = vcmp.eq.f32.partialorder %v4421_v1, 8.507059e+37 }
 0x3fe   : > { %v4287_v31 = vrot.slane %v4286_v12, 4  ;;  %v4193_v59 = vmul.f32 1.442695, %v4162_v63  ;;  %10769 = vrcp.f32 %v12530_v57  ;;  %v12548_v40 = vpop.eup %10767  ;;  %v4416_v53 = vadd.f32 %v12457_v58, %v4415_v3 }
 0x3ff   : > { %vm12551_vm12 = vcmp.eq.f32.partialorder %v4436_v9, 8.507059e+37  ;;  %v12555_v30 = vadd.f32 %v4277_v27, %v4276_v18  ;;  %v4283_v60 = vadd.f32 %v4282_v55, %v4281_v47  ;;  %v4207_v39 = vrot.slane %v4206_v46, 1 }
 0x400   : > { %vm4433_vm2 = vweird.f32 %v12467_v8  ;;  %v4458_v1 = vmul.f32 %v12524_v34, %v12499_v6  ;;  %v4288_v4 = vadd.f32 %v4287_v31, %v4286_v12  ;;  %10771 = vpow2.f32 %v4193_v59 }
 0x401   : > { %v4431_v50 = vadd.f32 %v12467_v8, %v4430_v49  ;;  %v4446_v56 = vadd.f32 %v12480_v43, %v4445_v33  ;;  %vm4448_vm13 = vweird.f32 %v12480_v43  ;;  %10773 = vrcp.f32 %v12555_v30  ;;  %vm12590_vm1 = vmor %vm4432_vm7, %vm4433_vm2 }
 0x402   : > { %v4453_v25 = vand.u32 2147483648, %v12419_v21  ;;  %v4284_v3 = vrot.slane %v4283_v60, 1  ;;  %v4289_v9 = vrot.slane %v4288_v4, 2  ;;  %v4293_v38 = vsel %vm4034_vm4, %v12548_v40, 0.0 }
 0x403   : > { %v4405_v18 = vsel %vm12564_vm5, %v12422_v23, %v4401_v26  ;;  %vm4447_vm0 = vweird.f32 %v12419_v21  ;;  %v4451_v47 = vand.u32 2147483647, %v12419_v21  ;;  %v12596_v63 = vadd.f32 %v4207_v39, %v4206_v46 }
 0x404   : > { %v12598_v12 = vpop.eup %10769  ;;  %v4420_v23 = vsel %vm12576_vm11, %v12457_v58, %v4416_v53  ;;  %vm12603_vm5 = vmor %vm4447_vm0, %vm4448_vm13  ;;  %v4459_v10 = vsub.f32 1.0, %v4458_v1  ;;  %v12607_v33 = vadd.f32 %v4284_v3, %v4283_v60  ;;  %v4290_v27 = vadd.f32 %v4289_v9, %v4288_v4 }
 0x405   : > { %v4435_v21 = vsel %vm12590_vm1, %v12467_v8, %v4431_v50  ;;  %v4439_v46 = vor.u32 1.1754944e-38, %v4438_v16  ;;  %v4450_v55 = vsel %vm12603_vm5, %v12480_v43, %v4446_v56  ;;  %v4294_v26 = vrot.slane %v4293_v38, 4 }
 0x406   : > { %v12615_v31 = vpop.eup %10771  ;;  %v4410_v58 = vsel %vm12534_vm9, %v12453_v19, %v4405_v18  ;;  %v4454_v59 = vor.u32 1.1754944e-38, %v4453_v25  ;;  %10775 = vrcp.f32 %v12607_v33  ;;  %v4308_v53 = vmul.f32 %v12598_v12, %v12530_v57 }
 0x407   : > { %v12623_v60 = vpop.eup %10773  ;;  %v4425_v8 = vsel %vm12543_vm15, %v12501_v35, %v4420_v23  ;;  %vm4452_vm2 = vcmp.eq.f32.partialorder %v4451_v47, 8.507059e+37  ;;  %v4291_v43 = vrot.slane %v4290_v27, 1  ;;  %10777 = vrcp.f32 %v12596_v63 }
 0x408   : > { %v4440_v16 = vsel %vm12551_vm12, %v4439_v46, %v4435_v21  ;;  %v4455_v19 = vsel %vm4452_vm2, %v4454_v59, %v4450_v55  ;;  %v4460_v37 = vmul.f32 %v12524_v34, %v4459_v10  ;;  %v4300_v39 = vsel %vm4034_vm4, %v12615_v31, 0.0 }
 0x409   : > { %v4473_v1 = vmul.f32 %v12623_v60, %v12555_v30  ;;  %v12636_v4 = vadd.f32 %v4291_v43, %v4290_v27  ;;  %v4295_v5 = vadd.f32 %v4294_v26, %v4293_v38  ;;  %v4301_v35 = vrot.slane %v4300_v39, 4 }
 0x40a   : > { %v12640_v62 = vmul.f32 %v12218_v17, %v12472_v61  ;;  %v12643_v28 = vmul.f32 %v12237_v2, %v4410_v58  ;;  %v12646_v50 = vmul.f32 %v12242_v32, %v4425_v8  ;;  %v4309_v56 = vsub.f32 1.0, %v4308_v53 }
 0x40b   : > { %v12649_v11 = vmul.f32 %v12261_v20, %v4440_v16  ;;  %v12652_v25 = vmul.f32 %v12287_v44, %v4455_v19  ;;  %v4466_v3 = vand.u32 2147483647, %v12499_v6  ;;  %v4468_v9 = vand.u32 2147483648, %v12499_v6 }
 0x40c   : > { %14284 = vst [vmem:[#allocation22_spill] sm:$0xff] %v12640_v62  ;;  %v12656_v38 = vpop.eup %10775  ;;  %v4461_v17 = vadd.f32 %v12524_v34, %v4460_v37  ;;  %vm4463_vm13 = vweird.f32 %v12524_v34  ;;  %v4302_v2 = vadd.f32 %v4301_v35, %v4300_v39  ;;  %v4310_v32 = vmul.f32 %v12598_v12, %v4309_v56 }
 0x40d   : > { %14285 = vst [vmem:[#allocation15_spill] sm:$0xff] %v12643_v28  ;;  %v12661_v61 = vpop.eup %10777  ;;  %v4474_v20 = vsub.f32 1.0, %v4473_v1  ;;  %v4488_v44 = vmul.f32 %v12656_v38, %v12607_v33  ;;  %10779 = vrcp.f32 %v12636_v4  ;;  %v4296_v18 = vrot.slane %v4295_v5, 2 }
 0x40e   : > { %14286 = vst [vmem:[#allocation23_spill] sm:$0xff] %v12646_v50  ;;  %vm4462_vm11 = vweird.f32 %v12499_v6  ;;  %v4303_v22 = vrot.slane %v4302_v2, 2  ;;  %v4316_v47 = vand.u32 2147483647, %v12530_v57  ;;  %v4318_v23 = vand.u32 2147483648, %v12530_v57 }
 0x40f   : > { %14287 = vst [vmem:[#allocation16_spill] sm:$0xff] %v12649_v11  ;;  %vm12669_vm4 = vmor %vm4462_vm11, %vm4463_vm13  ;;  %vm12673_vm3 = vcmp.eq.f32.partialorder %v4466_v3, 8.507059e+37  ;;  %v4483_v27 = vand.u32 2147483648, %v12555_v30  ;;  %v4311_v21 = vadd.f32 %v12598_v12, %v4310_v32  ;;  %vm4313_vm6 = vweird.f32 %v12598_v12 }
 0x410   : > { %14288 = vst [vmem:[#allocation24_spill] sm:$0xff] %v12652_v25  ;;  %v4465_v6 = vsel %vm12669_vm4, %v12524_v34, %v4461_v17  ;;  %v4469_v46 = vor.u32 1.1754944e-38, %v4468_v9  ;;  %vm4312_vm7 = vweird.f32 %v12530_v57  ;;  %v4323_v55 = vmul.f32 %v12661_v61, %v12596_v63 }
 0x411   : > { %v4475_v26 = vmul.f32 %v12623_v60, %v4474_v20  ;;  %vm4477_vm9 = vweird.f32 %v12555_v30  ;;  %v4489_v58 = vsub.f32 1.0, %v4488_v44  ;;  %v4297_v59 = vadd.f32 %v4296_v18, %v4295_v5  ;;  %vm12689_vm15 = vmor %vm4312_vm7, %vm4313_vm6 }
 0x412   : > { %v4481_v53 = vand.u32 2147483647, %v12555_v30  ;;  %v4304_v8 = vadd.f32 %v4303_v22, %v4302_v2  ;;  %vm4317_vm12 = vcmp.eq.f32.partialorder %v4316_v47, 8.507059e+37  ;;  %v4319_v34 = vor.u32 1.1754944e-38, %v4318_v23  ;;  %v14314_v47 = vld [vmem:[#allocation25_spill] sm:$0xff] }
 0x413   : > { %v12693_v16 = vpop.eup %10779  ;;  %v4470_v57 = vsel %vm12673_vm3, %v4469_v46, %v4465_v6  ;;  %v4484_v19 = vor.u32 1.1754944e-38, %v4483_v27  ;;  %v4498_v37 = vand.u32 2147483648, %v12607_v33  ;;  %v4315_v39 = vsel %vm12689_vm15, %v12598_v12, %v4311_v21 }
 0x414   : > { %vm4478_vm1 = vweird.f32 %v12623_v60  ;;  %v4496_v1 = vand.u32 2147483647, %v12607_v33  ;;  %v4324_v5 = vsub.f32 1.0, %v4323_v55  ;;  %v4331_v35 = vand.u32 2147483647, %v12596_v63 }
 0x415   : > { %v4476_v56 = vadd.f32 %v12623_v60, %v4475_v26  ;;  %v4490_v3 = vmul.f32 %v12656_v38, %v4489_v58  ;;  %v4298_v9 = vrot.slane %v4297_v59, 1  ;;  %v4320_v17 = vsel %vm4317_vm12, %v4319_v34, %v4315_v39  ;;  %vm12723_vm13 = vmor %vm4477_vm9, %vm4478_vm1  ;;  %v4758_v39 = vld [vmem:[#allocation2 + $0x54] sm:$0xcc] }
 0x416   : > { %vm12706_vm0 = vcmp.eq.f32.partialorder %v4481_v53, 8.507059e+37  ;;  %v4503_v12 = vmul.f32 %v12693_v16, %v12636_v4  ;;  %v4305_v32 = vrot.slane %v4304_v8, 1  ;;  %v4325_v20 = vmul.f32 %v12661_v61, %v4324_v5 }
 0x417   : > { %v4333_v44 = vand.u32 2147483648, %v12596_v63  ;;  %v12715_v18 = vmul.f32 %v12448_v45, %v4470_v57  ;;  %vm4492_vm5 = vweird.f32 %v12607_v33  ;;  %v4499_v22 = vor.u32 1.1754944e-38, %v4498_v37 }
 0x418   : > { %vm4328_vm2 = vweird.f32 %v12661_v61  ;;  %vm4493_vm11 = vweird.f32 %v12656_v38  ;;  %vm12728_vm4 = vcmp.eq.f32.partialorder %v4496_v1, 8.507059e+37  ;;  %v4511_v45 = vand.u32 2147483647, %v12636_v4 }
 0x419   : > { %14297 = vst [vmem:[#allocation17_spill] sm:$0xff] %v12715_v18  ;;  %v12734_v49 = vmul.f32 %v12463_v0, %v4320_v17  ;;  %vm4327_vm3 = vweird.f32 %v12596_v63  ;;  %v4480_v30 = vsel %vm12723_vm13, %v12623_v60, %v4476_v56  ;;  %v12740_v10 = vadd.f32 %v4298_v9, %v4297_v59  ;;  %vm12757_vm1 = vmor %vm4492_vm5, %vm4493_vm11 }
 0x41a   : > { %v4326_v27 = vadd.f32 %v12661_v61, %v4325_v20  ;;  %vm4332_vm6 = vcmp.eq.f32.partialorder %v4331_v35, 8.507059e+37  ;;  %v4491_v21 = vadd.f32 %v12656_v38, %v4490_v3  ;;  %v4504_v6 = vsub.f32 1.0, %v4503_v12  ;;  %vm4329_vm7 = vmor %vm4327_vm3, %vm4328_vm2 }
 0x41b   : > { %14302 = vst [vmem:[#allocation31_spill] sm:$0xff] %v12734_v49  ;;  %v12744_v46 = vadd.f32 %v4305_v32, %v4304_v8  ;;  %v4334_v55 = vor.u32 1.1754944e-38, %v4333_v44  ;;  %vm4721_vm9 = vcmask 1043458   ;;  %vm4751_vm15 = vcmask 1047558   ;;  %v4755_v32 = vld [vmem:[#allocation2 + $0x4c] sm:$0xcc] }
 0x41c   : > { %v4330_v0 = vsel %vm4329_vm7, %v12661_v61, %v4326_v27  ;;  %vm4752_vm12 = vsmask.f32 7424  ;;  %v4547_v60 = vmul.f32 %v12734_v49, %v11526_v48  ;;  %v4549_v26 = vmul.f32 %v12387_v41, %v11555_v7 }
 0x41d   : > { %v4335_v63 = vsel %vm4332_vm6, %v4334_v55, %v4330_v0  ;;  %v4550_v58 = vmul.f32 %v12390_v13, %v11558_v54  ;;  %vm4722_vm2 = vsmask.f32 3328  ;;  %v4551_v53 = vmul.f32 %v12408_v52, %v11562_v14  ;;  %vm12773_vm5 = vmand %vm4751_vm15, %vm4752_vm12 }
 0x41e   : > { %v12762_v61 = vmul.f32 %v12476_v15, %v4335_v63  ;;  %v4552_v8 = vmul.f32 %v12640_v62, %v11567_v51  ;;  %v4495_v43 = vsel %vm12757_vm1, %v12656_v38, %v4491_v21  ;;  %v4505_v33 = vmul.f32 %v12693_v16, %v4504_v6  ;;  %vm12787_vm11 = vmand %vm4721_vm9, %vm4722_vm2 }
 0x41f   : > { %10781 = vrcp.f32 %v12740_v10  ;;  %v12777_v15 = vpack.c.bf16 %v4550_v58, %v4549_v26  ;;  %v4485_v57 = vsel %vm12706_vm0, %v4484_v19, %v4480_v30  ;;  %vm4507_vm13 = vweird.f32 %v12636_v4  ;;  %vm12808_vm6 = vmor %vm12773_vm5, %vm12787_vm11 }
 0x420   : > { %14305 = vst [vmem:[#allocation32_spill] sm:$0xff] %v12762_v61  ;;  %v4513_v37 = vand.u32 2147483648, %v12636_v4  ;;  %v4548_v38 = vmul.f32 %v12762_v61, %v11529_v42  ;;  %10783 = vrcp.f32 %v12744_v46  ;;  %v12793_v19 = vpack.c.bf16 %v4552_v8, %v4551_v53 }
 0x421   : > { %v4591_v5 = vshll.u32 %v12777_v15, 16  ;;  %v4736_v35 = vrot.slane %v12777_v15, 6  ;;  %v4500_v56 = vsel %vm12728_vm4, %v4499_v22, %v4495_v43  ;;  %vm4508_vm0 = vweird.f32 %v12693_v16  ;;  %v4761_v22 = vld [vmem:[#allocation2 + $0x5c] sm:$0xcc] }
 0x422   : > { %vm12798_vm3 = vcmp.eq.f32.partialorder %v4511_v45, 8.507059e+37  ;;  %v12802_v9 = vpack.c.bf16 %v4548_v38, %v4547_v60  ;;  %v4588_v2 = vshrl.u32 %v12777_v15, 16  ;;  %v4506_v12 = vadd.f32 %v12693_v16, %v4505_v33  ;;  %v14315_v60 = vld [vmem:[#allocation26_spill] sm:$0xff]  ;;  %vm12846_vm4 = vmor %vm4507_vm13, %vm4508_vm0 }
 0x423   : > { %v4759_v20 = vsel %vm12808_vm6, %v4736_v35, %v4758_v39  ;;  %v4791_v44 = vrot.slane %v4591_v5, 5  ;;  %v4553_v23 = vmul.f32 %v12643_v28, %v14314_v47  ;;  %v14147_v55 = vshrl.u32 %v12793_v19, 16  ;;  %v14326_v15 = vld [vmem:[#allocation30_spill] sm:$0xff] }
 0x424   : > { %v4581_v45 = vshrl.u32 %v12802_v9, 16  ;;  %v4584_v30 = vshll.u32 %v12802_v9, 16  ;;  %v4735_v27 = vrot.slane %v12802_v9, 6  ;;  %4760 = vst [vmem:[#allocation2 + $0x54] sm:$0xcc] %v4759_v20  ;;  %v4801_v21 = vrot.slane %v4588_v2, 4 }
 0x425   : > { %v12823_v6 = vpop.eup %10781  ;;  %v14146_v0 = vshll.u32 %v12793_v19, 16  ;;  %v4737_v63 = vrot.slane %v12793_v19, 6  ;;  %v4554_v26 = vmul.f32 %v12646_v50, %v14315_v60  ;;  %v4514_v58 = vor.u32 1.1754944e-38, %v4513_v37 }
 0x426   : > { %v4756_v59 = vsel %vm12808_vm6, %v4735_v27, %v4755_v32  ;;  %v4790_v53 = vrot.slane %v4584_v30, 5  ;;  %v4798_v8 = vrot.slane %v4581_v45, 4  ;;  %v12834_v43 = vpop.eup %10783  ;;  %v12837_v33 = vmul.f32 %v12493_v29, %v4485_v57  ;;  %v14320_v27 = vld [vmem:[#allocation27_spill] sm:$0xff] }
 0x427   : > { %v12840_v34 = vmul.f32 %v12511_v24, %v4500_v56  ;;  %4757 = vst [vmem:[#allocation2 + $0x4c] sm:$0xcc] %v4756_v59  ;;  %v4802_v38 = vor.u32 %v4801_v21, %v4791_v44  ;;  %v4762_v39 = vsel %vm12808_vm6, %v4737_v63, %v4761_v22  ;;  %v4510_v29 = vsel %vm12846_vm4, %v12693_v16, %v4506_v12  ;;  %v4764_v12 = vld [vmem:[#allocation2 + $0x64] sm:$0xcc]  ;;  %v14321_v21 = vld [vmem:[#allocation28_spill] sm:$0xff] }
 0x428   : > { %14316 = vst [vmem:[#allocation25_spill] sm:$0xff] %v12837_v33  ;;  %v4518_v24 = vmul.f32 %v12823_v6, %v12740_v10  ;;  %v4799_v57 = vor.u32 %v4798_v8, %v4790_v53  ;;  %v10711_v35 = vpack.i.bf16 %v4791_v44, %v4790_v53  ;;  %v12859_v56 = vrot.slane %v14146_v0, 5 }
 0x429   : > { %14317 = vst [vmem:[#allocation26_spill] sm:$0xff] %v12840_v34  ;;  %v4803_v4 = vrot.slane %v4802_v38, 4  ;;  %v4804_v32 = vrot.slane %v14147_v55, 4  ;;  %v12863_v20 = vpack.c.bf16 %v4554_v26, %v4553_v23  ;;  %v4533_v22 = vmul.f32 %v12834_v43, %v12744_v46  ;;  %v14322_v38 = vld [vmem:[#allocation10_spill] sm:$0xff] }
 0x42a   : > { %4763 = vst [vmem:[#allocation2 + $0x5c] sm:$0xcc] %v4762_v39  ;;  %v4800_v16 = vrot.slane %v4799_v57, 4  ;;  %10712 = vrot.lane.b32.xlu2 %v10711_v35, %s10849_s16  ;;  %v4555_v44 = vmul.f32 %v12649_v11, %v14320_v27  ;;  %v4556_v63 = vmul.f32 %v12652_v25, %v14321_v21  ;;  %v4515_v59 = vsel %vm12798_vm3, %v4514_v58, %v4510_v29  ;;  %v14323_v57 = vld [vmem:[#allocation18_spill] sm:$0xff] }
 0x42b   : > { %4840 = vrot.lane.b32.xlu1 %v4803_v4, %s10849_s16  ;;  %v14148_v23 = vshll.u32 %v12863_v20, 16  ;;  %v4738_v26 = vrot.slane %v12863_v20, 6  ;;  %v4602_v53 = vshrl.u32 %v12863_v20, 16  ;;  %v4590_v8 = vrot.slane %v4588_v2, 7  ;;  %v4767_v4 = vld [vmem:[#allocation2 + $0x6c] sm:$0xcc] }
 0x42c   : > { %4838 = vrot.lane.b32.xlu0 %v4800_v16, %s10849_s16  ;;  %v12879_v37 = vpack.c.bf16 %v4556_v63, %v4555_v44  ;;  %v4557_v39 = vmul.f32 %v12715_v18, %v14322_v38  ;;  %v4558_v3 = vmul.f32 %v12837_v33, %v14323_v57  ;;  %v4519_v58 = vsub.f32 1.0, %v4518_v24 }
 0x42d   : > { %v4805_v29 = vor.u32 %v4804_v32, %v12859_v56  ;;  %v4765_v35 = vsel %vm12808_vm6, %v4738_v26, %v4764_v12  ;;  %v12889_v0 = vmul.f32 %v12521_v36, %v4515_v59  ;;  %v4534_v16 = vsub.f32 1.0, %v4533_v22  ;;  %v4724_v32 = vld [vmem:[#allocation2 + $0x48] sm:$0xc]  ;;  %v4770_v22 = vld [vmem:[#allocation2 + $0x74] sm:$0xcc] }
 0x42e   : > { %v4583_v2 = vrot.slane %v4581_v45, 7  ;;  %4766 = vst [vmem:[#allocation2 + $0x64] sm:$0xcc] %v4765_v35  ;;  %v4739_v44 = vrot.slane %v12879_v37, 6  ;;  %v4793_v63 = vrot.slane %v14148_v23, 5  ;;  %v4807_v24 = vrot.slane %v4602_v53, 4 }
 0x42f   : > { %14324 = vst [vmem:[#allocation27_spill] sm:$0xff] %v12889_v0  ;;  %v12896_v55 = vpack.c.bf16 %v4558_v3, %v4557_v39  ;;  %v4593_v12 = vor.u32 %v4591_v5, %v4590_v8  ;;  %v14325_v45 = vld [vmem:[#allocation29_spill] sm:$0xff]  ;;  %v4520_v26 = vmul.f32 %v12823_v6, %v4519_v58  ;;  %v4806_v35 = vrot.slane %v4805_v29, 4 }
 0x430   : > { %v4768_v36 = vsel %vm12808_vm6, %v4739_v44, %v4767_v4  ;;  %v4559_v59 = vmul.f32 %v12840_v34, %v14325_v45  ;;  %v4535_v39 = vmul.f32 %v12834_v43, %v4534_v16  ;;  %v4586_v3 = vor.u32 %v4584_v30, %v4583_v2  ;;  %v4773_v44 = vld [vmem:[#allocation2 + $0x7c] sm:$0xcc] }
 0x431   : > { %4769 = vst [vmem:[#allocation2 + $0x6c] sm:$0xcc] %v4768_v36  ;;  %v4740_v23 = vrot.slane %v12896_v55, 6  ;;  %v4560_v5 = vmul.f32 %v12889_v0, %v14326_v15  ;;  %v4725_v8 = vsel %vm12787_vm11, 0, %v4724_v32  ;;  %vm4522_vm7 = vweird.f32 %v12740_v10 }
 0x432   : > { %4638 = vrot.lane.b32.xlu2 %v4593_v12, %s10853_s26  ;;  %v4808_v58 = vor.u32 %v4807_v24, %v4793_v63  ;;  %4726 = vst [vmem:[#allocation2 + $0x48] sm:$0xc] %v4725_v8  ;;  %vm4523_vm9 = vweird.f32 %v12823_v6  ;;  %v4526_v9 = vand.u32 2147483647, %v12740_v10  ;;  %v14327_v30 = vshrl.u32 %v12793_v19, 16 }
 0x433   : > { %4842 = vrot.lane.b32.xlu1 %v4806_v35, %s10849_s16  ;;  %v4771_v29 = vsel %vm12808_vm6, %v4740_v23, %v4770_v22  ;;  %v12923_v16 = vpack.c.bf16 %v4560_v5, %v4559_v59  ;;  %v4521_v2 = vadd.f32 %v12823_v6, %v4520_v26  ;;  %vm4538_vm15 = vweird.f32 %v12834_v43  ;;  %vm12935_vm2 = vmor %vm4522_vm7, %vm4523_vm9  ;;  %v4698_v8 = vld [vmem:[#allocation2 + $0x64] sm:$0x33] }
 0x434   : > { %4636 = vrot.lane.b32.xlu0 %v4586_v3, %s10853_s26  ;;  %v4597_v4 = vrot.slane %v14327_v30, 7  ;;  %4772 = vst [vmem:[#allocation2 + $0x74] sm:$0xcc] %v4771_v29  ;;  %vm4782_vm12 = vcmask 1035267   ;;  %vm4783_vm1 = vsmask.f32 7950  ;;  %v4536_v23 = vadd.f32 %v12834_v43, %v4535_v39 }
 0x435   : > { %v4609_v24 = vshrl.u32 %v12879_v37, 16  ;;  %v4612_v32 = vshll.u32 %v12879_v37, 16  ;;  %v4741_v12 = vrot.slane %v12923_v16, 6  ;;  %v4528_v22 = vand.u32 2147483648, %v12740_v10  ;;  %vm12950_vm13 = vmand %vm4782_vm12, %vm4783_vm1 }
 0x436   : > { %vm4537_vm5 = vweird.f32 %v12744_v46  ;;  %v4543_v59 = vand.u32 2147483648, %v12744_v46  ;;  %v4809_v26 = vrot.slane %v4808_v58, 4  ;;  %v4541_v35 = vand.u32 2147483647, %v12744_v46 }
 0x437   : > { %v10716_v37 = vpack.i.bf16 %v4793_v63, %v12859_v56  ;;  %v14330_v39 = vshll.u32 %v12793_v19, 16  ;;  %v4774_v5 = vsel %vm12808_vm6, %v4741_v12, %v4773_v44  ;;  %vm12956_vm0 = vmor %vm4537_vm5, %vm4538_vm15  ;;  %v4525_v46 = vsel %vm12935_vm2, %v12823_v6, %v4521_v2 }
 0x438   : > { %4775 = vst [vmem:[#allocation2 + $0x7c] sm:$0xcc] %v4774_v5  ;;  %v4540_v19 = vsel %vm12956_vm0, %v12834_v43, %v4536_v23  ;;  %v4794_v56 = vrot.slane %v4612_v32, 5  ;;  %v4810_v63 = vrot.slane %v4609_v24, 4  ;;  %v4529_v29 = vor.u32 1.1754944e-38, %v4528_v22 }
 0x439   : > { %v4600_v3 = vor.u32 %v14330_v39, %v4597_v4  ;;  %v4785_v58 = vld [vmem:[#allocation2 + $0x48] sm:$0x8]  ;;  %v4544_v30 = vor.u32 1.1754944e-38, %v4543_v59  ;;  %vm4527_vm3 = vcmp.eq.f32.partialorder %v4526_v9, 8.507059e+37  ;;  %vm4542_vm4 = vcmp.eq.f32.partialorder %v4541_v35, 8.507059e+37 }
 0x43a   : > { %v4786_v4 = vsel %vm12950_vm13, 0, %v4785_v58  ;;  %v4619_v6 = vshll.u32 %v12896_v55, 16  ;;  %v4616_v43 = vshrl.u32 %v12896_v55, 16  ;;  %v4530_v2 = vsel %vm4527_vm3, %v4529_v29, %v4525_v46  ;;  %v14339_v39 = vld [vmem:[#allocation19_spill] sm:$0xff] }
 0x43b   : > { %4640 = vrot.lane.b32.xlu2 %v4600_v3, %s10853_s26  ;;  %4844 = vrot.lane.b32.xlu1 %v4809_v26, %s10849_s16  ;;  %4787 = vst [vmem:[#allocation2 + $0x48] sm:$0x8] %v4786_v4  ;;  %v4545_v44 = vsel %vm4542_vm4, %v4544_v30, %v4540_v19  ;;  %v4604_v23 = vrot.slane %v4602_v53, 7  ;;  %v4811_v12 = vor.u32 %v4810_v63, %v4794_v56  ;;  %v14337_v26 = vshll.u32 %v12863_v20, 16  ;;  %v14338_v53 = vld [vmem:[#allocation11_spill] sm:$0xff] }
 0x43c   : > { %10717 = vrot.lane.b32.xlu0 %v10716_v37, %s10849_s16  ;;  %v12976_v36 = vmul.f32 %v12548_v40, %v4530_v2  ;;  %v12979_v22 = vmul.f32 %v12615_v31, %v4545_v44  ;;  %v4795_v9 = vrot.slane %v4619_v6, 5  ;;  %v4813_v59 = vrot.slane %v4616_v43, 4 }
 0x43d   : > { %v4607_v35 = vor.u32 %v14337_v26, %v4604_v23  ;;  %v4812_v37 = vrot.slane %v4811_v12, 4  ;;  %v4611_v3 = vrot.slane %v4609_v24, 7  ;;  %v4626_v5 = vshll.u32 %v12923_v16, 16 }
 0x43e   : > { %14335 = vst [vmem:[#allocation28_spill] sm:$0xff] %v12976_v36  ;;  %v4814_v55 = vor.u32 %v4813_v59, %v4795_v9  ;;  %v4561_v40 = vmul.f32 %v12976_v36, %v14338_v53  ;;  %v4562_v31 = vmul.f32 %v12979_v22, %v14339_v39  ;;  %v4623_v20 = vshrl.u32 %v12923_v16, 16  ;;  %v4776_v59 = vld [vmem:[#allocation2 + $0x84] sm:$0xcc] }
 0x43f   : > { %14336 = vst [vmem:[#allocation33_spill] sm:$0xff] %v12979_v22  ;;  %v4614_v19 = vor.u32 %v4612_v32, %v4611_v3  ;;  %v4618_v30 = vrot.slane %v4616_v43, 7  ;;  %v14340_v17 = vmov 0   ;;  %vm4918_vm7 = vcmask 1044475  }
 0x440   : > { %v4815_v10 = vrot.slane %v4814_v55, 4  ;;  %v4570_v46 = vpack.c.bf16 %v4562_v31, %v4561_v40  ;;  %v4816_v63 = vrot.slane %v4623_v20, 4  ;;  %v4625_v12 = vrot.slane %v4623_v20, 7  ;;  %vm13013_vm2 = vmand %vm4918_vm7, %vm4783_vm1  ;;  %v10487_v40 = vld [vmem:[#allocation2 + $0x18] sm:$0xf] }
 0x441   : > { %v4621_v44 = vor.u32 %v4619_v6, %v4618_v30  ;;  %vm4920_vm9 = vcmask 1047559   ;;  %vm4921_vm15 = vsmask.f32 7966  ;;  %vm4927_vm12 = vcmask 1043459  }
 0x442   : > { %v4633_v58 = vshll.u32 %v4570_v46, 16  ;;  %v4630_v29 = vshrl.u32 %v4570_v46, 16  ;;  %v4742_v23 = vrot.slane %v4570_v46, 6  ;;  %v4628_v26 = vor.u32 %v4626_v5, %v4625_v12  ;;  %vm13017_vm5 = vmand %vm4920_vm9, %vm4921_vm15 }
 0x443   : > { %4830 = vrot.lane.b32.xlu2 %v4794_v56, %s10849_s16  ;;  %4642 = vrot.lane.b32.xlu1 %v4607_v35, %s10853_s26  ;;  %v4796_v56 = vrot.slane %v4626_v5, 5  ;;  %v6285_v35 = vld [vmem:[%s14101_s7 + $0x8] sm:$0xff]  ;;  %vm4928_vm0 = vmand %vm4927_vm12, %vm4783_vm1  ;;  %vm14347_vm7 = vcmask 1039360   ;;  %vm14348_vm1 = vcmask 1043456   ;;  %vm14350_vm15 = vsmask.f32 7954 }
 0x444   : > { %4846 = vrot.lane.b32.xlu0 %v4812_v37, %s10849_s16  ;;  %v4797_v24 = vrot.slane %v4633_v58, 5  ;;  %v4819_v2 = vrot.slane %v4630_v29, 4  ;;  %v4777_v43 = vsel %vm12808_vm6, %v4742_v23, %v4776_v59  ;;  %v4632_v6 = vrot.slane %v4630_v29, 7  ;;  %v6284_v37 = vld [vmem:[%s14101_s7] sm:$0xff]  ;;  %vm14150_vm3 = vmor %vm13017_vm5, %vm13013_vm2  ;;  %v4930_v29 = vld [vmem:[#allocation2 + $0x50] sm:$0x88] }
 0x445   : > { %v4817_v4 = vor.u32 %v4816_v63, %v4796_v56  ;;  %4778 = vst [vmem:[#allocation2 + $0x84] sm:$0xcc] %v4777_v43  ;;  %vm14149_vm6 = vcmask 1032192   ;;  %vm13030_vm4 = vmor %vm13017_vm5, %vm4928_vm0  ;;  %vm14351_vm12 = vcmask 1045508  }
 0x446   : > { %v4820_v32 = vor.u32 %v4819_v2, %v4797_v24  ;;  %v4635_v55 = vor.u32 %v4633_v58, %v4632_v6  ;;  %4789 = vst.msk [vmem:[#allocation2 + $0x90] sm:$0x1] %vm14149_vm6, %v14340_v17  ;;  %vm14349_vm9 = vmmov %vm14347_vm7  ;;  %vm14362_vm6 = vcmask 1043456  }
 0x447   : > { %v4818_v16 = vrot.slane %v4817_v4, 4  ;;  %vm13047_vm0 = vmand %vm14351_vm12, %vm14350_vm15  ;;  %vm4954_vm15 = vcmask 1041400  }
 0x44b   : > { %4832 = vrot.lane.b32.xlu2 %v4795_v9, %s10849_s16  ;;  %4644 = vrot.lane.b32.xlu1 %v4614_v19, %s10853_s26  ;;  %v4821_v9 = vrot.slane %v4820_v32, 4 }
 0x44c   : > { %4848 = vrot.lane.b32.xlu0 %v4815_v10, %s10849_s16 }
 0x453   : > { %4834 = vrot.lane.b32.xlu2 %v4796_v56, %s10849_s16  ;;  %4646 = vrot.lane.b32.xlu1 %v4621_v44, %s10853_s26  ;;  %v4924_v56 = vld [vmem:[#allocation2 + $0x48] sm:$0x88] }
 0x454   : > { %4850 = vrot.lane.b32.xlu0 %v4818_v16, %s10849_s16 }
 0x45b   : > { %4836 = vrot.lane.b32.xlu2 %v4797_v24, %s10849_s16  ;;  %4648 = vrot.lane.b32.xlu1 %v4628_v26, %s10853_s26  ;;  %v4695_v26 = vld [vmem:[#allocation2 + $0x5c] sm:$0x33] }
 0x45c   : > { %4852 = vrot.lane.b32.xlu0 %v4821_v9, %s10849_s16 }
 0x463   : > { %6293 = vperm.xlu2 %10710, %v6285_v35   ;;  %6288 = vperm.xlu1 %10709, %v6284_v37   ;;  %v4779_v35 = vld [vmem:[#allocation2 + $0x8c] sm:$0xc] }
 0x464   : > { %4650 = vrot.lane.b32.xlu0 %v4635_v55, %s10853_s26  ;;  %v4780_v55 = vsel %vm12787_vm11, 0, %v4779_v35  ;;  %vm14364_vm11 = vsmask.f32 7938  ;;  %v4942_v35 = vld [vmem:[#allocation2 + $0x70] sm:$0x88] }
 0x465   : > { %4781 = vst [vmem:[#allocation2 + $0x8c] sm:$0xc] %v4780_v55 }
 0x484   : > { %v10713_v3 = vpop.permute.xlu2 %10712 }
 0x485   : > { %v10715_v5 = vunpack.i.h.bf16 %v10713_v3  ;;  %v10714_v20 = vunpack.i.l.bf16 %v10713_v3 }
 0x487   : > { %v13026_v10 = vrot.slane %v10715_v5, 4  ;;  %v4854_v46 = vrot.slane %v10714_v20, 4 }
 0x489   : > { %v4870_v63 = vsel %vm14347_vm7, %v4854_v46, %v10714_v20  ;;  %v4871_v58 = vsel %vm14348_vm1, %v4854_v46, %v13026_v10  ;;  %vm13058_vm7 = vmor %vm13047_vm0, %vm11140_vm8  ;;  %vm14358_vm8 = vcmask 1044484  }
 0x48a   : > { %v4872_v30 = vsel %vm14349_vm9, %v4871_v58, %v10715_v5  ;;  %v4925_v4 = vsel %vm14150_vm3, %v4870_v63, %v4924_v56  ;;  %vm14357_vm9 = vcmask 7168   ;;  %vm13074_vm12 = vmor %vm14358_vm8, %vm4954_vm15 }
 0x48b   : > { %4926 = vst [vmem:[#allocation2 + $0x48] sm:$0x88] %v4925_v4  ;;  %v4931_v24 = vsel %vm13030_vm4, %v4872_v30, %v4930_v29 }
 0x48c   : > { %4932 = vst [vmem:[#allocation2 + $0x50] sm:$0x88] %v4931_v24  ;;  %v4639_v2 = vpop.permute.xlu2 %4638 }
 0x48d   : > { %v4653_v32 = vrot.slane %v4639_v2, 4 }
 0x495   : > { %v13051_v16 = vpop.permute.xlu2 %4640 }
 0x496   : > { %v14153_v23 = vrot.slane %v13051_v16, 4 }
 0x498   : > { %v4663_v59 = vsel %vm14348_vm1, %v4653_v32, %v14153_v23  ;;  %vm14361_vm1 = vcmask 1039360  }
 0x499   : > { %v4664_v43 = vsel %vm14357_vm9, %v4663_v59, %v13051_v16  ;;  %vm4684_vm9 = vcmask 1041416   ;;  %vm14363_vm3 = vmmov %vm14361_vm1 }
 0x49a   : > { %v4696_v6 = vsel %vm13058_vm7, %v4664_v43, %v4695_v26  ;;  %vm13084_vm10 = vmand %vm4684_vm9, %vm14364_vm11 }
 0x49b   : > { %4697 = vst [vmem:[#allocation2 + $0x5c] sm:$0x33] %v4696_v6  ;;  %vm14368_vm15 = vmmov %vm14361_vm1 }
 0x49d   : > { %v13069_v37 = vpop.permute.xlu2 %4830  ;;  %v4841_v3 = vpop.permute.xlu1 %4840 }
 0x49e   : > { %v4839_v5 = vpop.permute.xlu0 %4838  ;;  %v4863_v20 = vrot.slane %v4841_v3, 4  ;;  %v4858_v4 = vrot.slane %v13069_v37, 4 }
 0x49f   : > { %v4862_v56 = vrot.slane %v4839_v5, 4 }
 0x4a1   : > { %v4885_v63 = vsel %vm14361_vm1, %v4862_v56, %v4839_v5  ;;  %v4886_v58 = vsel %vm14362_vm6, %v4862_v56, %v4863_v20  ;;  %vm4687_vm6 = vmor %vm13047_vm0, %vm13084_vm10  ;;  %v4688_v5 = vld [vmem:[#allocation2 + $0x4c] sm:$0x33]  ;;  %vm14370_vm1 = vcmask 7168  }
 0x4a2   : > { %4957 = vst.msk [vmem:[#allocation2 + $0x90] sm:$0x11] %vm13074_vm12, %v4885_v63  ;;  %v4887_v1 = vsel %vm14363_vm3, %v4886_v58, %v4841_v3  ;;  %vm14367_vm3 = vcmask 1043456   ;;  %vm14372_vm11 = vmmov %vm14370_vm1 }
 0x4a3   : > { %4958 = vst [vmem:[#allocation2 + $0x98] sm:$0x11] %v4887_v1  ;;  %vm14369_vm8 = vmmov %vm14367_vm3  ;;  %v4692_v1 = vld [vmem:[#allocation2 + $0x54] sm:$0x33] }
 0x4a4   : > { %vm14371_vm9 = vmmov %vm14367_vm3 }
 0x4a5   : > { %v4833_v30 = vpop.permute.xlu2 %4832  ;;  %v4843_v12 = vpop.permute.xlu1 %4842  ;;  %vm14373_vm0 = vmmov %vm14368_vm15 }
 0x4a6   : > { %v4859_v24 = vrot.slane %v4833_v30, 4  ;;  %v4637_v59 = vpop.permute.xlu0 %4636  ;;  %v4864_v26 = vrot.slane %v4843_v12, 4 }
 0x4a7   : > { %v4652_v43 = vrot.slane %v4637_v59, 4 }
 0x4a8   : > { %v4879_v6 = vsel %vm14367_vm3, %v4858_v4, %v4859_v24  ;;  %v4888_v3 = vsel %vm14369_vm8, %v4863_v20, %v4864_v26 }
 0x4a9   : > { %v4880_v55 = vsel %vm14368_vm15, %v4879_v6, %v4833_v30  ;;  %v4660_v56 = vsel %vm14370_vm1, %v4652_v43, %v4637_v59  ;;  %v4661_v63 = vsel %vm14371_vm9, %v4652_v43, %v4653_v32  ;;  %v4889_v22 = vsel %vm14373_vm0, %v4888_v3, %v4843_v12  ;;  %vm14376_vm15 = vmmov %vm14373_vm0 }
 0x4aa   : > { %v4943_v58 = vsel %vm13030_vm4, %v4880_v55, %v4942_v35  ;;  %v4662_v44 = vsel %vm14372_vm11, %v4661_v63, %v4639_v2  ;;  %v4689_v23 = vsel %vm4687_vm6, %v4660_v56, %v4688_v5  ;;  %v5012_v36 = vld [vmem:[#allocation2 + $0x94] sm:$0x11]  ;;  %4959 = vst [vmem:[#allocation2 + $0xa0] sm:$0x11] %v4889_v22  ;;  %vm14374_vm6 = vmmov %vm14367_vm3  ;;  %vm14375_vm3 = vcmask 1040384  }
 0x4ab   : > { %4944 = vst [vmem:[#allocation2 + $0x70] sm:$0x88] %v4943_v58  ;;  %v4693_v30 = vsel %vm13058_vm7, %v4662_v44, %v4692_v1  ;;  %v5084_v20 = vunpack.c.l.b16 %v5012_v36  ;;  %v5085_v6 = vunpack.c.h.b16 %v5012_v36  ;;  %vm14377_vm8 = vmmov %vm14374_vm6  ;;  %vm5148_vm9 = vcmask 146432  }
 0x4ac   : > { %4690 = vst [vmem:[#allocation2 + $0x4c] sm:$0x33] %v4689_v23  ;;  %v4945_v23 = vld [vmem:[#allocation2 + $0x78] sm:$0x88]  ;;  %vm14378_vm1 = vmmov %vm14375_vm3 }
 0x4ad   : > { %4694 = vst [vmem:[#allocation2 + $0x54] sm:$0x33] %v4693_v30  ;;  %v4835_v59 = vpop.permute.xlu2 %4834  ;;  %v13104_v43 = vpop.permute.xlu1 %4844  ;;  %v5116_v35 = vpack.c.b16 %v5084_v20, %v5084_v20  ;;  %v5117_v55 = vpack.c.b16 %v5085_v6, %v5085_v6  ;;  %vm14379_vm11 = vmmov %vm14373_vm0  ;;  %v10485_v6 = vld [vmem:[#allocation2 + $0x8] sm:$0xf] }
 0x4ae   : > { %v4860_v32 = vrot.slane %v4835_v59, 4  ;;  %v10718_v2 = vpop.permute.xlu0 %10717  ;;  %v4865_v5 = vrot.slane %v13104_v43, 4  ;;  %vm14380_vm0 = vmmov %vm14374_vm6 }
 0x4af   : > { %v10720_v56 = vunpack.i.h.bf16 %v10718_v2  ;;  %v10719_v12 = vunpack.i.l.bf16 %v10718_v2  ;;  %v5154_v63 = vsel %vm14375_vm3, %v5116_v35, 0  ;;  %v5157_v22 = vsel %vm14378_vm1, %v5117_v55, 0  ;;  %v4936_v2 = vld [vmem:[#allocation2 + $0x60] sm:$0x88]  ;;  %vm14382_vm3 = vmmov %vm14380_vm0 }
 0x4b0   : > { %v4881_v3 = vsel %vm14374_vm6, %v4859_v24, %v4860_v32  ;;  %v4890_v58 = vsel %vm14377_vm8, %v4864_v26, %v4865_v5  ;;  %5207 = vmatpush.bf16.msra.mxu0 %v5154_v63  ;;  %5221 = vmatpush.bf16.msra.mxu1 %v5157_v22  ;;  %v9394_v24 = vld [vmem:[#allocation2 + $0x4] sm:$0xf]  ;;  %vm14381_vm6 = vmmov %vm14380_vm0  ;;  %v4933_v63 = vld [vmem:[#allocation2 + $0x58] sm:$0x88] }
 0x4b1   : > { %v4882_v36 = vsel %vm14376_vm15, %v4881_v3, %v4835_v59  ;;  %v4857_v1 = vrot.slane %v10720_v56, 4  ;;  %v4856_v44 = vrot.slane %v10719_v12, 4  ;;  %v4891_v20 = vsel %vm14379_vm11, %v4890_v58, %v13104_v43  ;;  %vm14383_vm15 = vmmov %vm14379_vm11 }
 0x4b2   : > { %v4946_v30 = vsel %vm13030_vm4, %v4882_v36, %v4945_v23  ;;  %4960 = vst [vmem:[#allocation2 + $0xa8] sm:$0x11] %v4891_v20  ;;  %v4939_v36 = vld [vmem:[#allocation2 + $0x68] sm:$0x88]  ;;  %vm14384_vm8 = vmmov %vm14379_vm11 }
 0x4b3   : > { %4947 = vst [vmem:[#allocation2 + $0x78] sm:$0x88] %v4946_v30  ;;  %v10493_v35 = vld [vmem:[#allocation2 + $0x48] sm:$0xf0]  ;;  %v9396_v59 = vld [vmem:[#allocation2 + $0x4c] sm:$0xf0]  ;;  %v4873_v26 = vsel %vm14380_vm0, %v13026_v10, %v4856_v44  ;;  %v4875_v55 = vsel %vm14381_vm6, %v4856_v44, %v4857_v1  ;;  %v4877_v3 = vsel %vm14382_vm3, %v4857_v1, %v4858_v4  ;;  %vm14385_vm1 = vmmov %vm14384_vm8 }
 0x4b4   : > { %v9395_v23 = vor.u32 %v10493_v35, %v9394_v24  ;;  %v4874_v43 = vsel %vm14383_vm15, %v4873_v26, %v10719_v12  ;;  %v4876_v58 = vsel %vm14384_vm8, %v4875_v55, %v10720_v56  ;;  %v4878_v22 = vsel %vm14385_vm1, %v4877_v3, %v13069_v37  ;;  %v13127_v10 = vld [vmem:[%s14100_s6 + $0x8] sm:$0xff]  ;;  %v4951_v24 = vld [vmem:[#allocation2 + $0x88] sm:$0x8]  ;;  %vm14386_vm11 = vmmov %vm14380_vm0 }
 0x4b5   : > { %v9399_v30 = vor.u32 %v10485_v6, %v9396_v59  ;;  %v4837_v0 = vpop.permute.xlu2 %4836  ;;  %v5013_v44 = vld [vmem:[#allocation2 + $0x9c] sm:$0x11]  ;;  %v4934_v4 = vsel %vm13030_vm4, %v4874_v43, %v4933_v63  ;;  %v4937_v1 = vsel %vm13030_vm4, %v4876_v58, %v4936_v2  ;;  %v4940_v56 = vsel %vm13030_vm4, %v4878_v22, %v4939_v36  ;;  %v4643_v37 = vpop.permute.xlu1 %4642  ;;  %v4948_v3 = vld [vmem:[#allocation2 + $0x80] sm:$0x88]  ;;  %vm14387_vm0 = vmmov %vm14385_vm1 }
 0x4b6   : > { %5208 = vmatpush.bf16.msra.mxu0 %v9395_v23  ;;  %v4861_v12 = vrot.slane %v4837_v0, 4  ;;  %4935 = vst [vmem:[#allocation2 + $0x58] sm:$0x88] %v4934_v4  ;;  %v4847_v20 = vpop.permute.xlu0 %4846  ;;  %v4655_v6 = vrot.slane %v4643_v37, 4  ;;  %v5086_v35 = vunpack.c.l.b16 %v5013_v44  ;;  %v5087_v59 = vunpack.c.h.b16 %v5013_v44  ;;  %vm14389_vm6 = vmmov %vm14382_vm3 }
 0x4b7   : > { %5222 = vmatpush.bf16.msra.mxu1 %v9399_v30  ;;  %4938 = vst [vmem:[#allocation2 + $0x60] sm:$0x88] %v4937_v1  ;;  %v4866_v26 = vrot.slane %v4847_v20, 4  ;;  %v14388_v23 = vrot.slane %v13051_v16, 4  ;;  %vm14391_vm15 = vmmov %vm14387_vm0  ;;  %vm14392_vm8 = vcmask 1040384  }
 0x4b8   : > { %v4883_v55 = vsel %vm14386_vm11, %v4860_v32, %v4861_v12  ;;  %v4952_v2 = vsel %vm12950_vm13, %v4861_v12, %v4951_v24  ;;  %4941 = vst [vmem:[#allocation2 + $0x68] sm:$0x88] %v4940_v56  ;;  %v5118_v43 = vpack.c.b16 %v5086_v35, %v5086_v35  ;;  %vm14390_vm13 = vcmask 7168   ;;  %v9402_v12 = vld [vmem:[#allocation2 + $0xc] sm:$0xf] }
 0x4b9   : > { %v4884_v63 = vsel %vm14387_vm0, %v4883_v55, %v4837_v0  ;;  %v4665_v36 = vsel %vm14389_vm6, %v14388_v23, %v4655_v6  ;;  %9456 = vmatmul.msk.bf16.vlgmr.msra.gmra.mxu0 %vm5148_vm9, %v13127_v10  ;;  %v4892_v58 = vsel %vm14382_vm3, %v4865_v5, %v4866_v26  ;;  %4953 = vst [vmem:[#allocation2 + $0x88] sm:$0x8] %v4952_v2  ;;  %v10494_v0 = vld [vmem:[#allocation2 + $0x50] sm:$0xf0]  ;;  %v5014_v4 = vld [vmem:[#allocation2 + $0xa4] sm:$0x11]  ;;  %vm14396_vm0 = vmmov %vm14382_vm3 }
 0x4ba   : > { %v4949_v32 = vsel %vm13030_vm4, %v4884_v63, %v4948_v3  ;;  %v4666_v22 = vsel %vm14390_vm13, %v4665_v36, %v4643_v37  ;;  %9457 = vmatmul.msk.bf16.vlgmr.msra.gmra.mxu1 %vm5148_vm9, %v13127_v10  ;;  %v4893_v16 = vsel %vm14391_vm15, %v4892_v58, %v4847_v20  ;;  %v5160_v44 = vsel %vm14392_vm8, %v5118_v43, 0  ;;  %vm14393_vm4 = vmmov %vm14392_vm8  ;;  %v10486_v20 = vld [vmem:[#allocation2 + $0x10] sm:$0xf] }
 0x4bb   : > { %4950 = vst [vmem:[#allocation2 + $0x80] sm:$0x88] %v4949_v32  ;;  %v4699_v30 = vsel %vm13058_vm7, %v4666_v22, %v4698_v8  ;;  %v5119_v5 = vpack.c.b16 %v5087_v59, %v5087_v59  ;;  %5235 = vmatpush.bf16.msra.mxu2 %v5160_v44  ;;  %v5088_v19 = vunpack.c.l.b16 %v5014_v4  ;;  %v5089_v1 = vunpack.c.h.b16 %v5014_v4  ;;  %vm14394_vm1 = vmmov %vm14393_vm4 }
 0x4bc   : > { %4961 = vst [vmem:[#allocation2 + $0xb0] sm:$0x11] %v4893_v16  ;;  %v9403_v37 = vor.u32 %v10494_v0, %v9402_v12  ;;  %vm14395_vm11 = vmmov %vm14394_vm1 }
 0x4bd   : > { %4700 = vst [vmem:[#allocation2 + $0x64] sm:$0x33] %v4699_v30  ;;  %v5163_v56 = vsel %vm14393_vm4, %v5119_v5, 0  ;;  %v4645_v24 = vpop.permute.xlu1 %4644  ;;  %v9404_v35 = vld [vmem:[#allocation2 + $0x54] sm:$0xf0]  ;;  %v5120_v55 = vpack.c.b16 %v5088_v19, %v5088_v19  ;;  %v5121_v2 = vpack.c.b16 %v5089_v1, %v5089_v1  ;;  %vm14397_vm6 = vmor %vm13017_vm5, %vm13013_vm2 }
 0x4be   : > { %5249 = vmatpush.bf16.msra.mxu3 %v5163_v56  ;;  %v4849_v3 = vpop.permute.xlu0 %4848  ;;  %v4656_v63 = vrot.slane %v4645_v24, 4  ;;  %v9407_v23 = vor.u32 %v10486_v20, %v9404_v35  ;;  %v10495_v58 = vld [vmem:[#allocation2 + $0x58] sm:$0xf0]  ;;  %v9412_v22 = vld [vmem:[#allocation2 + $0x5c] sm:$0xf0]  ;;  %vm14398_vm3 = vmmov %vm14396_vm0 }
 0x4bf   : > { %5236 = vmatpush.bf16.msra.mxu2 %v9403_v37  ;;  %v4867_v59 = vrot.slane %v4849_v3, 4  ;;  %v5166_v36 = vsel %vm14394_vm1, %v5120_v55, 0  ;;  %v5169_v43 = vsel %vm14395_vm11, %v5121_v2, 0  ;;  %v4701_v30 = vld [vmem:[#allocation2 + $0x6c] sm:$0x33]  ;;  %v9415_v1 = vor.u32 %v10487_v40, %v9412_v22  ;;  %vm14399_vm2 = vmmov %vm14394_vm1 }
 0x4c0   : > { %v4966_v32 = vld [vmem:[#allocation2 + $0x88] sm:$0x88]  ;;  %v4667_v8 = vsel %vm14396_vm0, %v4655_v6, %v4656_v63  ;;  %5263 = vmatpush.bf16.msrb.mxu0 %v5166_v36  ;;  %5277 = vmatpush.bf16.msrb.mxu1 %v5169_v43  ;;  %v9410_v5 = vld [vmem:[#allocation2 + $0x14] sm:$0xf]  ;;  %vm14400_vm5 = vmmov %vm14394_vm1 }
 0x4c1   : > { %v4967_v0 = vsel %vm14397_vm6, 0, %v4966_v32  ;;  %v4894_v16 = vsel %vm14398_vm3, %v4866_v26, %v4867_v59  ;;  %v4668_v44 = vsel %vm14390_vm13, %v4667_v8, %v4645_v24  ;;  %v9411_v31 = vor.u32 %v10495_v58, %v9410_v5  ;;  %vm14401_vm8 = vmmov %vm14396_vm0  ;;  %v4704_v32 = vld [vmem:[#allocation2 + $0x74] sm:$0x33]  ;;  %v9418_v22 = vld [vmem:[#allocation2 + $0x1c] sm:$0xf] }
 0x4c2   : > { %5250 = vmatpush.bf16.msra.mxu3 %v9407_v23  ;;  %4968 = vst [vmem:[#allocation2 + $0x88] sm:$0x88] %v4967_v0  ;;  %v4895_v4 = vsel %vm14391_vm15, %v4894_v16, %v4849_v3  ;;  %v4702_v6 = vsel %vm13058_vm7, %v4668_v44, %v4701_v30  ;;  %9458 = vmatmul.msk.bf16.vlgmr.msra.gmra.mxu2 %vm5148_vm9, %v13127_v10  ;;  %vm14402_vm4 = vmmov %vm14396_vm0  ;;  %v10488_v0 = vld [vmem:[#allocation2 + $0x20] sm:$0xf] }
 0x4c3   : > { %v5015_v19 = vld [vmem:[#allocation2 + $0xac] sm:$0x11]  ;;  %4962 = vst [vmem:[#allocation2 + $0xb8] sm:$0x11] %v4895_v4  ;;  %vm14403_vm1 = vmmov %vm14390_vm13 }
 0x4c4   : > { %v5090_v26 = vunpack.c.l.b16 %v5015_v19  ;;  %v5091_v56 = vunpack.c.h.b16 %v5015_v19  ;;  %4703 = vst [vmem:[#allocation2 + $0x6c] sm:$0x33] %v4702_v6  ;;  %5264 = vmatpush.bf16.msrb.mxu0 %v9411_v31  ;;  %5278 = vmatpush.bf16.msrb.mxu1 %v9415_v1  ;;  %v10496_v55 = vld [vmem:[#allocation2 + $0x60] sm:$0xf0]  ;;  %v9420_v36 = vld [vmem:[#allocation2 + $0x64] sm:$0xf0]  ;;  %vm14404_vm11 = vmmov %vm14391_vm15 }
 0x4c5   : > { %9459 = vmatmul.msk.bf16.vlgmr.msra.gmra.mxu3 %vm5148_vm9, %v13127_v10  ;;  %v4647_v12 = vpop.permute.xlu1 %4646  ;;  %v9419_v30 = vor.u32 %v10496_v55, %v9418_v22  ;;  %v9423_v44 = vor.u32 %v10488_v0, %v9420_v36  ;;  %vm14405_vm0 = vmmov %vm14399_vm2  ;;  %vm14408_vm15 = vcmask 1032192   ;;  %v9426_v36 = vld [vmem:[#allocation2 + $0x24] sm:$0xf] }
 0x4c6   : > { %v5122_v37 = vpack.c.b16 %v5090_v26, %v5090_v26  ;;  %v5123_v24 = vpack.c.b16 %v5091_v56, %v5091_v56  ;;  %v4851_v20 = vpop.permute.xlu0 %4850  ;;  %v4657_v35 = vrot.slane %v4647_v12, 4  ;;  %vm14406_vm6 = vmmov %vm14405_vm0 }
 0x4c7   : > { %v4868_v2 = vrot.slane %v4851_v20, 4  ;;  %vm14407_vm13 = vmmov %vm14398_vm3 }
 0x4c8   : > { %v5172_v3 = vsel %vm14399_vm2, %v5122_v37, 0  ;;  %v5175_v23 = vsel %vm14400_vm5, %v5123_v24, 0  ;;  %v4669_v43 = vsel %vm14401_vm8, %v4656_v63, %v4657_v35  ;;  %vm14409_vm2 = vmmov %vm14403_vm1  ;;  %vm4713_vm8 = vcmask 1024  }
 0x4c9   : > { %5291 = vmatpush.bf16.msrb.mxu2 %v5172_v3  ;;  %5305 = vmatpush.bf16.msrb.mxu3 %v5175_v23  ;;  %v4896_v58 = vsel %vm14402_vm4, %v4867_v59, %v4868_v2  ;;  %v4670_v8 = vsel %vm14403_vm1, %v4669_v43, %v4647_v12  ;;  %v4707_v3 = vld [vmem:[#allocation2 + $0x7c] sm:$0x33]  ;;  %vm14410_vm5 = vmmov %vm14404_vm11 }
 0x4ca   : > { %9460 = vmatmul.msk.bf16.vlgmr.msrb.gmra.mxu0 %vm5148_vm9, %v13127_v10  ;;  %9461 = vmatmul.msk.bf16.vlgmr.msrb.gmra.mxu1 %vm5148_vm9, %v13127_v10  ;;  %v4897_v16 = vsel %vm14404_vm11, %v4896_v58, %v4851_v20  ;;  %v4705_v63 = vsel %vm13058_vm7, %v4670_v8, %v4704_v32  ;;  %v5016_v5 = vld [vmem:[#allocation2 + $0xb4] sm:$0x11]  ;;  %vm14412_vm1 = vmmov %vm14405_vm0 }
 0x4cb   : > { %4963 = vst [vmem:[#allocation2 + $0xc0] sm:$0x11] %v4897_v16  ;;  %v5092_v59 = vunpack.c.l.b16 %v5016_v5  ;;  %v5093_v4 = vunpack.c.h.b16 %v5016_v5  ;;  %v10497_v37 = vld [vmem:[#allocation2 + $0x68] sm:$0xf0]  ;;  %v9428_v20 = vld [vmem:[#allocation2 + $0x6c] sm:$0xf0]  ;;  %vm14413_vm11 = vmmov %vm14405_vm0 }
 0x4cc   : > { %4706 = vst [vmem:[#allocation2 + $0x74] sm:$0x33] %v4705_v63  ;;  %v9427_v58 = vor.u32 %v10497_v37, %v9426_v36  ;;  %v4987_v37 = vld [vmem:[#allocation2 + $0x98] sm:$0x11] }
 0x4cd   : > { %5292 = vmatpush.bf16.msrb.mxu2 %v9419_v30  ;;  %5306 = vmatpush.bf16.msrb.mxu3 %v9423_v44  ;;  %v4649_v6 = vpop.permute.xlu1 %4648  ;;  %v5124_v31 = vpack.c.b16 %v5092_v59, %v5092_v59  ;;  %v5125_v40 = vpack.c.b16 %v5093_v4, %v5093_v4 }
 0x4ce   : > { %v4853_v19 = vpop.permute.xlu0 %4852  ;;  %v4658_v1 = vrot.slane %v4649_v6, 4 }
 0x4cf   : > { %v4869_v26 = vrot.slane %v4853_v19, 4  ;;  %v5178_v56 = vsel %vm14405_vm0, %v5124_v31, 0  ;;  %v5181_v12 = vsel %vm14406_vm6, %v5125_v40, 0  ;;  %v9434_v31 = vld [vmem:[#allocation2 + $0x2c] sm:$0xf]  ;;  %vm14414_vm0 = vmmov %vm14398_vm3 }
 0x4d0   : > { %v4671_v24 = vsel %vm14398_vm3, %v4657_v35, %v4658_v1  ;;  %5319 = vmatpush.bf16.msra.mxu0 %v5178_v56  ;;  %5333 = vmatpush.bf16.msra.mxu1 %v5181_v12  ;;  %v10490_v40 = vld [vmem:[#allocation2 + $0x30] sm:$0xf]  ;;  %vm14415_vm6 = vmmov %vm14409_vm2 }
 0x4d1   : > { %v4898_v55 = vsel %vm14407_vm13, %v4868_v2, %v4869_v26  ;;  %4965 = vst.msk [vmem:[#allocation2 + $0xd0] sm:$0x1] %vm14408_vm15, %v4869_v26  ;;  %v4672_v23 = vsel %vm14409_vm2, %v4671_v24, %v4649_v6  ;;  %v10489_v2 = vld [vmem:[#allocation2 + $0x28] sm:$0xf]  ;;  %v4715_v6 = vld [vmem:[#allocation2 + $0x8c] sm:$0x3]  ;;  %vm14416_vm3 = vmmov %vm14412_vm1 }
 0x4d2   : > { %v4899_v43 = vsel %vm14410_vm5, %v4898_v55, %v4853_v19  ;;  %4969 = vst.msk [vmem:[#allocation2 + $0xd0] sm:$0x11] %vm13074_vm12, %v14340_v17  ;;  %v4708_v35 = vsel %vm13058_vm7, %v4672_v23, %v4707_v3  ;;  %9462 = vmatmul.msk.bf16.vlgmr.msrb.gmra.mxu2 %vm5148_vm9, %v13127_v10  ;;  %v5017_v32 = vld [vmem:[#allocation2 + $0xbc] sm:$0x11]  ;;  %v9431_v8 = vor.u32 %v10489_v2, %v9428_v20  ;;  %vm14411_vm12 = vsmask.f32 7938  ;;  %vm14417_vm13 = vmmov %vm14412_vm1 }
 0x4d3   : > { %4964 = vst [vmem:[#allocation2 + $0xc8] sm:$0x11] %v4899_v43  ;;  %v5094_v22 = vunpack.c.l.b16 %v5017_v32  ;;  %v5095_v0 = vunpack.c.h.b16 %v5017_v32  ;;  %vm4714_vm4 = vmand %vm4713_vm8, %vm14411_vm12  ;;  %v10498_v30 = vld [vmem:[#allocation2 + $0x70] sm:$0xf0]  ;;  %v9436_v4 = vld [vmem:[#allocation2 + $0x74] sm:$0xf0] }
 0x4d4   : > { %4709 = vst [vmem:[#allocation2 + $0x7c] sm:$0x33] %v4708_v35  ;;  %5320 = vmatpush.bf16.msra.mxu0 %v9427_v58  ;;  %5334 = vmatpush.bf16.msra.mxu1 %v9431_v8  ;;  %v4710_v19 = vld [vmem:[#allocation2 + $0x84] sm:$0x33]  ;;  %v4986_v12 = vld [vmem:[#allocation2 + $0x90] sm:$0x11]  ;;  %v9435_v20 = vor.u32 %v10498_v30, %v9434_v31  ;;  %v9439_v55 = vor.u32 %v10490_v40, %v9436_v4  ;;  %vm14419_vm15 = vmmov %vm14412_vm1 }
 0x4d5   : > { %9463 = vmatmul.msk.bf16.vlgmr.msrb.gmra.mxu3 %vm5148_vm9, %v13127_v10  ;;  %v5126_v46 = vpack.c.b16 %v5094_v22, %v5094_v22  ;;  %v5127_v16 = vpack.c.b16 %v5095_v0, %v5095_v0  ;;  %v5486_v2 = vunpack.c.l.b16 %v4986_v12  ;;  %v5487_v32 = vunpack.c.h.b16 %v4986_v12  ;;  %vm14420_vm2 = vmmov %vm14412_vm1 }
 0x4d6   : > { %v4651_v63 = vpop.permute.xlu0 %4650  ;;  %vm14422_vm5 = vmmov %vm14412_vm1 }
 0x4d7   : > { %v4659_v44 = vrot.slane %v4651_v63, 4  ;;  %v5184_v5 = vsel %vm14412_vm1, %v5126_v46, 0  ;;  %v5187_v59 = vsel %vm14413_vm11, %v5127_v16, 0  ;;  %v5488_v46 = vunpack.c.l.b16 %v4987_v37  ;;  %vm14423_vm8 = vmmov %vm14412_vm1 }
 0x4d8   : > { %5347 = vmatpush.bf16.msra.mxu2 %v5184_v5  ;;  %5361 = vmatpush.bf16.msra.mxu3 %v5187_v59  ;;  %v5489_v59 = vunpack.c.h.b16 %v4987_v37  ;;  %v5518_v31 = vpack.c.b16 %v5486_v2, %v5486_v2  ;;  %vm14424_vm12 = vmmov %vm14412_vm1 }
 0x4d9   : > { %v4673_v26 = vsel %vm14414_vm0, %v4658_v1, %v4659_v44  ;;  %v4716_v56 = vsel %vm4714_vm4, %v4659_v44, %v4715_v6  ;;  %v5520_v12 = vpack.c.b16 %v5488_v46, %v5488_v46  ;;  %vm14425_vm4 = vmmov %vm14412_vm1 }
 0x4da   : > { %9464 = vmatmul.msk.bf16.vlgmr.msra.gmra.mxu0 %vm5148_vm9, %v13127_v10  ;;  %9465 = vmatmul.msk.bf16.vlgmr.msra.gmra.mxu1 %vm5148_vm9, %v13127_v10  ;;  %v4674_v24 = vsel %vm14415_vm6, %v4673_v26, %v4651_v63  ;;  %4717 = vst [vmem:[#allocation2 + $0x8c] sm:$0x3] %v4716_v56  ;;  %v5018_v3 = vld [vmem:[#allocation2 + $0xc4] sm:$0x11]  ;;  %v5019_v23 = vld [vmem:[#allocation2 + $0xcc] sm:$0x11]  ;;  %v5519_v56 = vpack.c.b16 %v5487_v32, %v5487_v32  ;;  %vm14426_vm11 = vmmov %vm14412_vm1 }
 0x4db   : > { %v4711_v36 = vsel %vm13058_vm7, %v4674_v24, %v4710_v19  ;;  %v5096_v1 = vunpack.c.l.b16 %v5018_v3  ;;  %v5097_v43 = vunpack.c.h.b16 %v5018_v3  ;;  %v5098_v35 = vunpack.c.l.b16 %v5019_v23  ;;  %v4988_v63 = vld [vmem:[#allocation2 + $0xa0] sm:$0x11]  ;;  %vm14418_vm7 = vmmov %vm14412_vm1  ;;  %v10499_v5 = vld [vmem:[#allocation2 + $0x78] sm:$0xf0] }
 0x4dc   : > { %4712 = vst [vmem:[#allocation2 + $0x84] sm:$0x33] %v4711_v36  ;;  %5348 = vmatpush.bf16.msra.mxu2 %v9435_v20  ;;  %5362 = vmatpush.bf16.msra.mxu3 %v9439_v55  ;;  %v5099_v58 = vunpack.c.h.b16 %v5019_v23  ;;  %v9444_v6 = vld [vmem:[#allocation2 + $0x7c] sm:$0xf0]  ;;  %v9442_v19 = vld [vmem:[#allocation2 + $0x34] sm:$0xf]  ;;  %v5490_v3 = vunpack.c.l.b16 %v4988_v63  ;;  %v5491_v23 = vunpack.c.h.b16 %v4988_v63  ;;  %vm14427_vm0 = vmmov %vm14412_vm1 }
 0x4dd   : > { %v5128_v8 = vpack.c.b16 %v5096_v1, %v5096_v1  ;;  %v5129_v22 = vpack.c.b16 %v5097_v43, %v5097_v43  ;;  %v5130_v0 = vpack.c.b16 %v5098_v35, %v5098_v35  ;;  %v10491_v26 = vld [vmem:[#allocation2 + $0x38] sm:$0xf]  ;;  %v9443_v37 = vor.u32 %v10499_v5, %v9442_v19  ;;  %v9450_v20 = vld [vmem:[#allocation2 + $0x3c] sm:$0xf]  ;;  %v10492_v55 = vld [vmem:[#allocation2 + $0x40] sm:$0xf] }
 0x4de   : > { %v5131_v16 = vpack.c.b16 %v5099_v58, %v5099_v58  ;;  %v9447_v36 = vor.u32 %v10491_v26, %v9444_v6  ;;  %v5521_v35 = vpack.c.b16 %v5489_v59, %v5489_v59  ;;  %v5554_v29 = vsel %vm14420_vm2, %v5518_v31, 0  ;;  %v9488_v5 = vld [vmem:[#allocation2 + $0x50] sm:$0xf0]  ;;  %v4989_v59 = vld [vmem:[#allocation2 + $0xa8] sm:$0x11]  ;;  %vm14428_vm6 = vmmov %vm14427_vm0 }
 0x4df   : > { %v5190_v30 = vsel %vm14416_vm3, %v5128_v8, 0  ;;  %v5193_v9 = vsel %vm14417_vm13, %v5129_v22, 0  ;;  %v5196_v44 = vsel %vm14418_vm7, %v5130_v0, 0  ;;  %v9478_v8 = vld [vmem:[#allocation2] sm:$0xf]  ;;  %v5560_v46 = vsel %vm14422_vm5, %v5520_v12, 0  ;;  %vm14429_vm3 = vmmov %vm14427_vm0 }
 0x4e0   : > { %5375 = vmatpush.bf16.msrb.mxu0 %v5190_v30  ;;  %5389 = vmatpush.bf16.msrb.mxu1 %v5193_v9  ;;  %v5199_v4 = vsel %vm14419_vm15, %v5131_v16, 0  ;;  %v10476_v22 = vld [vmem:[#allocation2 + $0x44] sm:$0xf0]  ;;  %v9480_v0 = vld [vmem:[#allocation2 + $0x48] sm:$0xf0]  ;;  %v5522_v63 = vpack.c.b16 %v5490_v3, %v5490_v3  ;;  %v5523_v30 = vpack.c.b16 %v5491_v23, %v5491_v23  ;;  %v5493_v23 = vunpack.c.h.b16 %v4989_v59  ;;  %vm14430_vm13 = vmmov %vm14427_vm0 }
 0x4e1   : > { %v4718_v40 = vld [vmem:[#allocation2 + $0x8c] sm:$0x3]  ;;  %5403 = vmatpush.bf16.msrb.mxu2 %v5196_v44  ;;  %5417 = vmatpush.bf16.msrb.mxu3 %v5199_v4  ;;  %v10468_v16 = vld [vmem:[#allocation2 + $0x4] sm:$0xf]  ;;  %v10477_v9 = vld [vmem:[#allocation2 + $0x4c] sm:$0xf0]  ;;  %v9479_v4 = vor.u32 %v10476_v22, %v9478_v8 }
 0x4e2   : > { %v4719_v24 = vsel %vm13084_vm10, 0, %v4718_v40  ;;  %9466 = vmatmul.msk.bf16.vlgmr.msra.gmra.mxu2 %vm5148_vm9, %v13127_v10  ;;  %vm14421_vm10 = vmmov %vm14412_vm1  ;;  %v5563_v44 = vsel %vm14423_vm8, %v5521_v35, 0  ;;  %v9483_v6 = vor.u32 %v10468_v16, %v9480_v0  ;;  %v9486_v31 = vld [vmem:[#allocation2 + $0x8] sm:$0xf]  ;;  %v10469_v19 = vld [vmem:[#allocation2 + $0xc] sm:$0xf] }
 0x4e3   : > { %4720 = vst [vmem:[#allocation2 + $0x8c] sm:$0x3] %v4719_v24  ;;  %v10500_v1 = vld [vmem:[#allocation2 + $0x80] sm:$0xf0]  ;;  %v9452_v43 = vld [vmem:[#allocation2 + $0x84] sm:$0xf0]  ;;  %v9487_v40 = vor.u32 %v10477_v9, %v9486_v31  ;;  %v9491_v12 = vor.u32 %v10469_v19, %v9488_v5  ;;  %vm14431_vm7 = vmmov %vm14427_vm0 }
 0x4e4   : > { %5376 = vmatpush.bf16.msrb.mxu0 %v9443_v37  ;;  %v9451_v58 = vor.u32 %v10500_v1, %v9450_v20  ;;  %v9455_v2 = vor.u32 %v10492_v55, %v9452_v43  ;;  %5390 = vmatpush.bf16.msrb.mxu1 %v9447_v36  ;;  %v5557_v32 = vsel %vm14421_vm10, %v5519_v56, 0  ;;  %v5566_v26 = vsel %vm14424_vm12, %v5522_v63, 0  ;;  %v10478_v24 = vld [vmem:[#allocation2 + $0x54] sm:$0xf0]  ;;  %v9496_v37 = vld [vmem:[#allocation2 + $0x58] sm:$0xf0]  ;;  %vm14432_vm15 = vmmov %vm14427_vm0 }
 0x4e5   : > { %9467 = vmatmul.msk.bf16.vlgmr.msra.gmra.mxu3 %vm5148_vm9, %v13127_v10  ;;  %v5569_v56 = vsel %vm14425_vm4, %v5523_v30, 0  ;;  %v5492_v20 = vunpack.c.l.b16 %v4989_v59  ;;  %v9494_v55 = vld [vmem:[#allocation2 + $0x10] sm:$0xf]  ;;  %v10470_v3 = vld [vmem:[#allocation2 + $0x14] sm:$0xf]  ;;  %v13240_v63 = vld [vmem:[%s14100_s6] sm:$0xff] }
 0x4e6   : > { %5404 = vmatpush.bf16.msrb.mxu2 %v9451_v58  ;;  %5418 = vmatpush.bf16.msrb.mxu3 %v9455_v2  ;;  %v9495_v36 = vor.u32 %v10478_v24, %v9494_v55  ;;  %v9499_v1 = vor.u32 %v10470_v3, %v9496_v37  ;;  %v4990_v35 = vld [vmem:[#allocation2 + $0xb0] sm:$0x11]  ;;  %v9502_v0 = vld [vmem:[#allocation2 + $0x18] sm:$0xf]  ;;  %v10471_v9 = vld [vmem:[#allocation2 + $0x1c] sm:$0xf] }
 0x4e7   : > { %v5524_v43 = vpack.c.b16 %v5492_v20, %v5492_v20  ;;  %v5494_v58 = vunpack.c.l.b16 %v4990_v35  ;;  %v5495_v8 = vunpack.c.h.b16 %v4990_v35  ;;  %v4991_v59 = vld [vmem:[#allocation2 + $0xb8] sm:$0x11]  ;;  %v9512_v31 = vld [vmem:[#allocation2 + $0x68] sm:$0xf0]  ;;  %v9510_v19 = vld [vmem:[#allocation2 + $0x20] sm:$0xf] }
 0x4e8   : > { %5607 = vmatpush.bf16.msra.mxu0 %v5554_v29  ;;  %5621 = vmatpush.bf16.msra.mxu1 %v5557_v32  ;;  %v5525_v29 = vpack.c.b16 %v5493_v23, %v5493_v23  ;;  %v10479_v32 = vld [vmem:[#allocation2 + $0x5c] sm:$0xf0]  ;;  %v9518_v35 = vld [vmem:[#allocation2 + $0x28] sm:$0xf]  ;;  %vm14433_vm2 = vmmov %vm14427_vm0 }
 0x4e9   : > { %v5572_v2 = vsel %vm14412_vm1, %v5524_v43, 0  ;;  %v9503_v16 = vor.u32 %v10479_v32, %v9502_v0  ;;  %v5526_v30 = vpack.c.b16 %v5494_v58, %v5494_v58  ;;  %v4992_v20 = vld [vmem:[#allocation2 + $0xc0] sm:$0x11]  ;;  %v10473_v32 = vld [vmem:[#allocation2 + $0x2c] sm:$0xf]  ;;  %vm14434_vm10 = vmmov %vm14427_vm0 }
 0x4ea   : > { %5635 = vmatpush.bf16.msra.mxu2 %v5560_v46  ;;  %5649 = vmatpush.bf16.msra.mxu3 %v5563_v44  ;;  %v5575_v22 = vsel %vm14426_vm11, %v5525_v29, 0  ;;  %v9504_v46 = vld [vmem:[#allocation2 + $0x60] sm:$0xf0]  ;;  %v5527_v44 = vpack.c.b16 %v5495_v8, %v5495_v8  ;;  %v5498_v3 = vunpack.c.l.b16 %v4992_v20  ;;  %v9520_v29 = vld [vmem:[#allocation2 + $0x70] sm:$0xf0]  ;;  %vm14435_vm5 = vmmov %vm14427_vm0 }
 0x4eb   : > { %9468 = vmatmul.msk.bf16.vlgmr.msrb.gmra.mxu0 %vm5148_vm9, %v13127_v10  ;;  %9469 = vmatmul.msk.bf16.vlgmr.msrb.gmra.mxu1 %vm5148_vm9, %v13127_v10  ;;  %v9507_v5 = vor.u32 %v10471_v9, %v9504_v46  ;;  %v4993_v0 = vld [vmem:[#allocation2 + $0xc8] sm:$0x11]  ;;  %v9528_v9 = vld [vmem:[#allocation2 + $0x78] sm:$0xf0]  ;;  %vm14436_vm8 = vmmov %vm14427_vm0 }
 0x4ec   : > { %5608 = vmatpush.bf16.msra.mxu0 %v9479_v4  ;;  %5622 = vmatpush.bf16.msra.mxu1 %v9483_v6  ;;  %v10480_v4 = vld [vmem:[#allocation2 + $0x64] sm:$0xf0]  ;;  %v5581_v6 = vsel %vm14428_vm6, %v5527_v44, 0  ;;  %v5500_v44 = vunpack.c.l.b16 %v4993_v0  ;;  %vm14437_vm12 = vmmov %vm14427_vm0 }
 0x4ed   : > { %vm14438_vm4 = vmmov %vm14427_vm0 }
 0x4ee   : > { %5636 = vmatpush.bf16.msra.mxu2 %v9487_v40  ;;  %5650 = vmatpush.bf16.msra.mxu3 %v9491_v12  ;;  %v5496_v40 = vunpack.c.l.b16 %v4991_v59  ;;  %v5497_v12 = vunpack.c.h.b16 %v4991_v59  ;;  %vm14439_vm1 = vmmov %vm14427_vm0 }
 0x4ef   : > { %vm14440_vm11 = vmmov %vm14427_vm0 }
 0x4f0   : > { %5663 = vmatpush.bf16.msrb.mxu0 %v5566_v26  ;;  %5677 = vmatpush.bf16.msrb.mxu1 %v5569_v56  ;;  %v9511_v26 = vor.u32 %v10480_v4, %v9510_v19  ;;  %v10472_v56 = vld [vmem:[#allocation2 + $0x24] sm:$0xf]  ;;  %v5528_v37 = vpack.c.b16 %v5496_v40, %v5496_v40  ;;  %v5529_v55 = vpack.c.b16 %v5497_v12, %v5497_v12  ;;  %v5501_v4 = vunpack.c.h.b16 %v4993_v0  ;;  %v5841_v40 = vld [vmem:[#allocation2 + $0x98] sm:$0x11]  ;;  %v10483_v12 = vld [vmem:[#allocation2 + $0x7c] sm:$0xf0] }
 0x4f1   : > { %v9515_v24 = vor.u32 %v10472_v56, %v9512_v31  ;;  %v5532_v31 = vpack.c.b16 %v5500_v44, %v5500_v44  ;;  %v5843_v44 = vld [vmem:[#allocation2 + $0xa8] sm:$0x11]  ;;  %vm14441_vm6 = vmmov %vm14427_vm0 }
 0x4f2   : > { %9470 = vmatmul.msk.bf16.vlgmr.msrb.gmra.mxu2 %vm5148_vm9, %v13127_v10  ;;  %v5584_v23 = vsel %vm14429_vm3, %v5528_v37, 0  ;;  %v5587_v43 = vsel %vm14430_vm13, %v5529_v55, 0  ;;  %v5533_v19 = vpack.c.b16 %v5501_v4, %v5501_v4  ;;  %v9536_v55 = vld [vmem:[#allocation2 + $0x80] sm:$0xf0]  ;;  %v10511_v4 = vld [vmem:[#allocation2 + $0x54] sm:$0xf0]  ;;  %vm14442_vm3 = vmmov %vm14427_vm0 }
 0x4f3   : > { %5691 = vmatpush.bf16.msrb.mxu2 %v5572_v2  ;;  %v5530_v2 = vpack.c.b16 %v5498_v3, %v5498_v3  ;;  %v5596_v56 = vsel %vm14433_vm2, %v5532_v31, 0  ;;  %vm14443_vm13 = vmmov %vm14427_vm0 }
 0x4f4   : > { %5664 = vmatpush.bf16.msrb.mxu0 %v9495_v36  ;;  %5678 = vmatpush.bf16.msrb.mxu1 %v9499_v1  ;;  %v10481_v36 = vld [vmem:[#allocation2 + $0x6c] sm:$0xf0]  ;;  %v5499_v1 = vunpack.c.h.b16 %v4992_v20  ;;  %v5599_v37 = vsel %vm14434_vm10, %v5533_v19, 0  ;;  %v9534_v20 = vld [vmem:[#allocation2 + $0x38] sm:$0xf]  ;;  %vm14446_vm2 = vmmov %vm14427_vm0 }
 0x4f5   : > { %9471 = vmatmul.msk.bf16.vlgmr.msrb.gmra.mxu3 %vm5148_vm9, %v13127_v10  ;;  %v5578_v10 = vsel %vm14427_vm0, %v5526_v30, 0  ;;  %v9519_v58 = vor.u32 %v10481_v36, %v9518_v35  ;;  %v5590_v46 = vsel %vm14431_vm7, %v5530_v2, 0  ;;  %v9535_v3 = vor.u32 %v10483_v12, %v9534_v20  ;;  %v10475_v36 = vld [vmem:[#allocation2 + $0x3c] sm:$0xf]  ;;  %v5842_v35 = vld [vmem:[#allocation2 + $0xa0] sm:$0x11]  ;;  %vm14444_vm7 = vmmov %vm14427_vm0 }
 0x4f6   : > { %5705 = vmatpush.bf16.msrb.mxu3 %v5575_v22  ;;  %v5531_v8 = vpack.c.b16 %v5499_v1, %v5499_v1  ;;  %v9523_v22 = vor.u32 %v10473_v32, %v9520_v29  ;;  %v9566_v32 = vld [vmem:[#allocation2 + $0x50] sm:$0xf0]  ;;  %v9574_v19 = vld [vmem:[#allocation2 + $0x58] sm:$0xf0]  ;;  %vm14447_vm10 = vmmov %vm14427_vm0 }
 0x4f7   : > { %5692 = vmatpush.bf16.msrb.mxu2 %v9503_v16  ;;  %v10482_v16 = vld [vmem:[#allocation2 + $0x74] sm:$0xf0]  ;;  %v10503_v12 = vld [vmem:[#allocation2 + $0x14] sm:$0xf] }
 0x4f8   : > { %v5593_v30 = vsel %vm14432_vm15, %v5531_v8, 0  ;;  %v5915_v8 = vunpack.c.l.b16 %v5842_v35  ;;  %v5844_v20 = vld [vmem:[#allocation2 + $0xb0] sm:$0x11]  ;;  %vm14445_vm15 = vmmov %vm14427_vm0 }
 0x4fa   : > { %5706 = vmatpush.bf16.msrb.mxu3 %v9507_v5  ;;  %v9526_v5 = vld [vmem:[#allocation2 + $0x30] sm:$0xf] }
 0x4fb   : > { %9540 = vmatmul.msk.bf16.vlgmr.msra.gmra.mxu0 %vm5148_vm9, %v13240_v63  ;;  %9541 = vmatmul.msk.bf16.vlgmr.msra.gmra.mxu1 %vm5148_vm9, %v13240_v63  ;;  %v9527_v59 = vor.u32 %v10482_v16, %v9526_v5  ;;  %v5916_v16 = vunpack.c.h.b16 %v5842_v35 }
 0x4fc   : > { %5719 = vmatpush.bf16.msra.mxu0 %v5578_v10  ;;  %5733 = vmatpush.bf16.msra.mxu1 %v5581_v6  ;;  %v10474_v10 = vld [vmem:[#allocation2 + $0x34] sm:$0xf] }
 0x4fd   : > { %v9531_v6 = vor.u32 %v10474_v10, %v9528_v9  ;;  %v5947_v9 = vpack.c.b16 %v5915_v8, %v5915_v8  ;;  %v5948_v5 = vpack.c.b16 %v5916_v16, %v5916_v16  ;;  %v5845_v8 = vld [vmem:[#allocation2 + $0xb8] sm:$0x11]  ;;  %v10513_v16 = vld [vmem:[#allocation2 + $0x64] sm:$0xf0] }
 0x4ff   : > { %v5987_v10 = vsel %vm14437_vm12, %v5947_v9, 0  ;;  %v5990_v31 = vsel %vm14438_vm4, %v5948_v5, 0  ;;  %v9590_v5 = vld [vmem:[#allocation2 + $0x68] sm:$0xf0]  ;;  %vm14500_vm12 = vcmask 1039360  }
 0x500   : > { %5720 = vmatpush.bf16.msra.mxu0 %v9511_v26  ;;  %5734 = vmatpush.bf16.msra.mxu1 %v9515_v24  ;;  %v5913_v26 = vunpack.c.l.b16 %v5841_v40  ;;  %v5914_v24 = vunpack.c.h.b16 %v5841_v40  ;;  %v9572_v40 = vld [vmem:[#allocation2 + $0x10] sm:$0xf] }
 0x502   : > { %9542 = vmatmul.msk.bf16.vlgmr.msra.gmra.mxu2 %vm5148_vm9, %v13240_v63  ;;  %v5946_v1 = vpack.c.b16 %v5914_v24, %v5914_v24 }
 0x503   : > { %5747 = vmatpush.bf16.msra.mxu2 %v5584_v23  ;;  %v5945_v23 = vpack.c.b16 %v5913_v26, %v5913_v26  ;;  %v9573_v26 = vor.u32 %v10511_v4, %v9572_v40  ;;  %v13295_v4 = vld [vmem:[%s14100_s6 + $0x10] sm:$0xff]  ;;  %v10505_v40 = vld [vmem:[#allocation2 + $0x24] sm:$0xf] }
 0x504   : > { %v5984_v2 = vsel %vm14436_vm8, %v5946_v1, 0  ;;  %v5919_v1 = vunpack.c.l.b16 %v5844_v20  ;;  %vm14449_vm8 = vmmov %vm14427_vm0 }
 0x505   : > { %9543 = vmatmul.msk.bf16.vlgmr.msra.gmra.mxu3 %vm5148_vm9, %v13240_v63  ;;  %v5981_v29 = vsel %vm14435_vm5, %v5945_v23, 0  ;;  %vm14448_vm5 = vmmov %vm14427_vm0 }
 0x506   : > { %5761 = vmatpush.bf16.msra.mxu3 %v5587_v43  ;;  %v9539_v43 = vor.u32 %v10475_v36, %v9536_v55  ;;  %v9582_v36 = vld [vmem:[#allocation2 + $0x60] sm:$0xf0] }
 0x507   : > { %5748 = vmatpush.bf16.msra.mxu2 %v9519_v58  ;;  %v10510_v58 = vld [vmem:[#allocation2 + $0x4c] sm:$0xf0] }
 0x50a   : > { %5762 = vmatpush.bf16.msra.mxu3 %v9523_v22  ;;  %v9564_v22 = vld [vmem:[#allocation2 + $0x8] sm:$0xf] }
 0x50b   : > { %9544 = vmatmul.msk.bf16.vlgmr.msrb.gmra.mxu0 %vm5148_vm9, %v13240_v63  ;;  %9545 = vmatmul.msk.bf16.vlgmr.msrb.gmra.mxu1 %vm5148_vm9, %v13240_v63  ;;  %v9565_v0 = vor.u32 %v10510_v58, %v9564_v22  ;;  %v5920_v58 = vunpack.c.h.b16 %v5844_v20 }
 0x50c   : > { %5775 = vmatpush.bf16.msrb.mxu0 %v5590_v46  ;;  %5789 = vmatpush.bf16.msrb.mxu1 %v5593_v30  ;;  %v10502_v46 = vld [vmem:[#allocation2 + $0xc] sm:$0xf] }
 0x50d   : > { %v9569_v30 = vor.u32 %v10502_v46, %v9566_v32  ;;  %v5951_v32 = vpack.c.b16 %v5919_v1, %v5919_v1  ;;  %v5952_v22 = vpack.c.b16 %v5920_v58, %v5920_v58  ;;  %v5847_v58 = vld [vmem:[#allocation2 + $0xc8] sm:$0x11] }
 0x50f   : > { %v5999_v46 = vsel %vm14427_vm0, %v5951_v32, 0  ;;  %v6002_v9 = vsel %vm14441_vm6, %v5952_v22, 0  ;;  %v5925_v32 = vunpack.c.l.b16 %v5847_v58  ;;  %v10515_v22 = vld [vmem:[#allocation2 + $0x74] sm:$0xf0]  ;;  %vm14506_vm6 = vmmov %vm14500_vm12 }
 0x510   : > { %5776 = vmatpush.bf16.msrb.mxu0 %v9527_v59  ;;  %5790 = vmatpush.bf16.msrb.mxu1 %v9531_v6  ;;  %v5917_v59 = vunpack.c.l.b16 %v5843_v44  ;;  %v5918_v6 = vunpack.c.h.b16 %v5843_v44  ;;  %v9588_v44 = vld [vmem:[#allocation2 + $0x20] sm:$0xf] }
 0x512   : > { %9546 = vmatmul.msk.bf16.vlgmr.msrb.gmra.mxu2 %vm5148_vm9, %v13240_v63  ;;  %v5950_v24 = vpack.c.b16 %v5918_v6, %v5918_v6 }
 0x513   : > { %5803 = vmatpush.bf16.msrb.mxu2 %v5596_v56  ;;  %v5949_v56 = vpack.c.b16 %v5917_v59, %v5917_v59  ;;  %v9589_v59 = vor.u32 %v10513_v16, %v9588_v44  ;;  %v9604_v16 = vld [vmem:[#allocation2 + $0x30] sm:$0xf] }
 0x514   : > { %v5996_v23 = vsel %vm14440_vm11, %v5950_v24, 0  ;;  %v9605_v44 = vor.u32 %v10515_v22, %v9604_v16  ;;  %vm14504_vm11 = vcmask 1043456  }
 0x515   : > { %9547 = vmatmul.msk.bf16.vlgmr.msrb.gmra.mxu3 %vm5148_vm9, %v13240_v63  ;;  %v5993_v55 = vsel %vm14439_vm1, %v5949_v56, 0  ;;  %vm14505_vm0 = vmmov %vm14504_vm11 }
 0x516   : > { %5817 = vmatpush.bf16.msrb.mxu3 %v5599_v37  ;;  %v9577_v37 = vor.u32 %v10503_v12, %v9574_v19  ;;  %v10514_v12 = vld [vmem:[#allocation2 + $0x6c] sm:$0xf0] }
 0x517   : > { %5804 = vmatpush.bf16.msrb.mxu2 %v9535_v3  ;;  %v10512_v3 = vld [vmem:[#allocation2 + $0x5c] sm:$0xf0] }
 0x51a   : > { %5818 = vmatpush.bf16.msrb.mxu3 %v9539_v43  ;;  %v9580_v43 = vld [vmem:[#allocation2 + $0x18] sm:$0xf] }
 0x51b   : > { %9548 = vmatmul.msk.bf16.vlgmr.msra.gmra.mxu0 %vm5148_vm9, %v13240_v63  ;;  %9549 = vmatmul.msk.bf16.vlgmr.msra.gmra.mxu1 %vm5148_vm9, %v13240_v63  ;;  %v9581_v35 = vor.u32 %v10512_v3, %v9580_v43 }
 0x51c   : > { %6034 = vmatpush.bf16.msra.mxu0 %v5981_v29  ;;  %6048 = vmatpush.bf16.msra.mxu1 %v5984_v2  ;;  %v10504_v29 = vld [vmem:[#allocation2 + $0x1c] sm:$0xf] }
 0x51d   : > { %v9585_v2 = vor.u32 %v10504_v29, %v9582_v36 }
 0x520   : > { %6035 = vmatpush.bf16.msra.mxu0 %v9565_v0  ;;  %6049 = vmatpush.bf16.msra.mxu1 %v9569_v30  ;;  %v5921_v0 = vunpack.c.l.b16 %v5845_v8  ;;  %v5922_v30 = vunpack.c.h.b16 %v5845_v8 }
 0x522   : > { %9550 = vmatmul.msk.bf16.vlgmr.msra.gmra.mxu2 %vm5148_vm9, %v13240_v63  ;;  %v5953_v6 = vpack.c.b16 %v5921_v0, %v5921_v0  ;;  %v5954_v19 = vpack.c.b16 %v5922_v30, %v5922_v30  ;;  %v5926_v0 = vunpack.c.h.b16 %v5847_v58  ;;  %v9606_v30 = vld [vmem:[#allocation2 + $0x78] sm:$0xf0] }
 0x523   : > { %6062 = vmatpush.bf16.msra.mxu2 %v5987_v10 }
 0x524   : > { %v6005_v56 = vsel %vm14442_vm3, %v5953_v6, 0  ;;  %v6008_v24 = vsel %vm14443_vm13, %v5954_v19, 0  ;;  %v10507_v19 = vld [vmem:[#allocation2 + $0x34] sm:$0xf]  ;;  %vm14507_vm3 = vmmov %vm14506_vm6 }
 0x525   : > { %9551 = vmatmul.msk.bf16.vlgmr.msra.gmra.mxu3 %vm5148_vm9, %v13240_v63  ;;  %vm14509_vm13 = vmmov %vm14505_vm0 }
 0x526   : > { %6076 = vmatpush.bf16.msra.mxu3 %v5990_v31 }
 0x527   : > { %6063 = vmatpush.bf16.msra.mxu2 %v9573_v26  ;;  %v5846_v26 = vld [vmem:[#allocation2 + $0xc0] sm:$0x11] }
 0x528   : > { %v5923_v20 = vunpack.c.l.b16 %v5846_v26  ;;  %v5924_v36 = vunpack.c.h.b16 %v5846_v26 }
 0x52a   : > { %6077 = vmatpush.bf16.msra.mxu3 %v9577_v37  ;;  %v9598_v37 = vld [vmem:[#allocation2 + $0x70] sm:$0xf0]  ;;  %v5955_v29 = vpack.c.b16 %v5923_v20, %v5923_v20 }
 0x52b   : > { %9552 = vmatmul.msk.bf16.vlgmr.msrb.gmra.mxu0 %vm5148_vm9, %v13240_v63  ;;  %9553 = vmatmul.msk.bf16.vlgmr.msrb.gmra.mxu1 %vm5148_vm9, %v13240_v63 }
 0x52c   : > { %6090 = vmatpush.bf16.msrb.mxu0 %v5993_v55  ;;  %6104 = vmatpush.bf16.msrb.mxu1 %v5996_v23  ;;  %v9596_v55 = vld [vmem:[#allocation2 + $0x28] sm:$0xf]  ;;  %v10506_v23 = vld [vmem:[#allocation2 + $0x2c] sm:$0xf]  ;;  %v6011_v8 = vsel %vm14444_vm7, %v5955_v29, 0  ;;  %vm14510_vm7 = vmmov %vm14505_vm0 }
 0x52d   : > { %v9597_v3 = vor.u32 %v10514_v12, %v9596_v55  ;;  %v9601_v1 = vor.u32 %v10506_v23, %v9598_v37  ;;  %v10516_v37 = vld [vmem:[#allocation2 + $0x7c] sm:$0xf0]  ;;  %v9614_v55 = vld [vmem:[#allocation2 + $0x80] sm:$0xf0]  ;;  %v9612_v23 = vld [vmem:[#allocation2 + $0x38] sm:$0xf] }
 0x530   : > { %6091 = vmatpush.bf16.msrb.mxu0 %v9581_v35  ;;  %6105 = vmatpush.bf16.msrb.mxu1 %v9585_v2  ;;  %v5956_v2 = vpack.c.b16 %v5924_v36, %v5924_v36  ;;  %v9613_v36 = vor.u32 %v10516_v37, %v9612_v23 }
 0x532   : > { %9554 = vmatmul.msk.bf16.vlgmr.msrb.gmra.mxu2 %vm5148_vm9, %v13240_v63 }
 0x533   : > { %6118 = vmatpush.bf16.msrb.mxu2 %v5999_v46  ;;  %v6014_v46 = vsel %vm14445_vm15, %v5956_v2, 0 }
 0x535   : > { %9555 = vmatmul.msk.bf16.vlgmr.msrb.gmra.mxu3 %vm5148_vm9, %v13240_v63  ;;  %v9593_v63 = vor.u32 %v10505_v40, %v9590_v5  ;;  %v5957_v5 = vpack.c.b16 %v5925_v32, %v5925_v32 }
 0x536   : > { %6132 = vmatpush.bf16.msrb.mxu3 %v6002_v9  ;;  %v13290_v10 = vpop.f32.mrf.mxu0 }
 0x537   : > { %v13297_v31 = vpop.f32.mrf.mxu1  ;;  %6119 = vmatpush.bf16.msrb.mxu2 %v9589_v59  ;;  %v5848_v59 = vld [vmem:[#allocation2 + $0xd0] sm:$0x11] }
 0x538   : > { %v5927_v12 = vunpack.c.l.b16 %v5848_v59 }
 0x53a   : > { %6133 = vmatpush.bf16.msrb.mxu3 %v9593_v63  ;;  %v5958_v63 = vpack.c.b16 %v5926_v0, %v5926_v0  ;;  %v5959_v29 = vpack.c.b16 %v5927_v12, %v5927_v12  ;;  %v10509_v12 = vld [vmem:[#allocation2 + $0x44] sm:$0xf] }
 0x53b   : > { %9626 = vmatmul.msk.bf16.vlgmr.msra.gmra.mxu0 %vm5148_vm9, %v13295_v4  ;;  %9627 = vmatmul.msk.bf16.vlgmr.msra.gmra.mxu1 %vm5148_vm9, %v13295_v4 }
 0x53c   : > { %6146 = vmatpush.bf16.msra.mxu0 %v6005_v56  ;;  %6160 = vmatpush.bf16.msra.mxu1 %v6008_v24  ;;  %v9609_v56 = vor.u32 %v10507_v19, %v9606_v30  ;;  %v6017_v24 = vsel %vm14446_vm2, %v5957_v5, 0  ;;  %v6020_v20 = vsel %vm14447_vm10, %v5958_v63, 0  ;;  %v10517_v30 = vld [vmem:[#allocation2 + $0x84] sm:$0xf0]  ;;  %v9622_v5 = vld [vmem:[#allocation2 + $0x88] sm:$0xf0]  ;;  %vm14513_vm10 = vmmov %vm14505_vm0 }
 0x53d   : > { %v9625_v37 = vor.u32 %v10509_v12, %v9622_v5 }
 0x53e   : > { %v13305_v43 = vpop.f32.mrf.mxu0 }
 0x53f   : > { %v13307_v35 = vpop.f32.mrf.mxu1 }
 0x540   : > { %6147 = vmatpush.bf16.msra.mxu0 %v9597_v3  ;;  %6161 = vmatpush.bf16.msra.mxu1 %v9601_v1  ;;  %v5928_v3 = vunpack.c.h.b16 %v5848_v59  ;;  %v10508_v1 = vld [vmem:[#allocation2 + $0x3c] sm:$0xf] }
 0x541   : > { %v9617_v2 = vor.u32 %v10508_v1, %v9614_v55 }
 0x542   : > { %9628 = vmatmul.msk.bf16.vlgmr.msra.gmra.mxu2 %vm5148_vm9, %v13295_v4  ;;  %v5960_v22 = vpack.c.b16 %v5928_v3, %v5928_v3 }
 0x543   : > { %6174 = vmatpush.bf16.msra.mxu2 %v6011_v8 }
 0x544   : > { %v6026_v16 = vsel %vm14449_vm8, %v5960_v22, 0  ;;  %vm14515_vm8 = vmmov %vm14505_vm0 }
 0x545   : > { %9629 = vmatmul.msk.bf16.vlgmr.msra.gmra.mxu3 %vm5148_vm9, %v13295_v4  ;;  %v13315_v9 = vpop.f32.mrf.mxu2 }
 0x546   : > { %6188 = vmatpush.bf16.msra.mxu3 %v6014_v46  ;;  %v6023_v46 = vsel %vm14448_vm5, %v5959_v29, 0 }
 0x547   : > { %v13317_v6 = vpop.f32.mrf.mxu0  ;;  %v13319_v40 = vpop.f32.mrf.mxu1  ;;  %6175 = vmatpush.bf16.msra.mxu2 %v9605_v44  ;;  %v9620_v44 = vld [vmem:[#allocation2 + $0x40] sm:$0xf] }
 0x548   : > { %v13321_v26 = vpop.f32.mrf.mxu3  ;;  %v9621_v19 = vor.u32 %v10517_v30, %v9620_v44 }
 0x54a   : > { %6189 = vmatpush.bf16.msra.mxu3 %v9609_v56 }
 0x54b   : > { %9630 = vmatmul.msk.bf16.vlgmr.msrb.gmra.mxu0 %vm5148_vm9, %v13295_v4  ;;  %9631 = vmatmul.msk.bf16.vlgmr.msrb.gmra.mxu1 %vm5148_vm9, %v13295_v4 }
 0x54c   : > { %6202 = vmatpush.bf16.msrb.mxu0 %v6017_v24  ;;  %6216 = vmatpush.bf16.msrb.mxu1 %v6020_v20 }
 0x54d   : > { %v13329_v58 = vpop.f32.mrf.mxu2 }
 0x54f   : > { %v13331_v32 = vpop.f32.mrf.mxu0  ;;  %v13333_v8 = vpop.f32.mrf.mxu1 }
 0x550   : > { %6203 = vmatpush.bf16.msrb.mxu0 %v9613_v36  ;;  %6217 = vmatpush.bf16.msrb.mxu1 %v9617_v2  ;;  %v13335_v0 = vpop.f32.mrf.mxu3 }
 0x552   : > { %9632 = vmatmul.msk.bf16.vlgmr.msrb.gmra.mxu2 %vm5148_vm9, %v13295_v4 }
 0x553   : > { %6230 = vmatpush.bf16.msrb.mxu2 %v6023_v46 }
 0x555   : > { %9633 = vmatmul.msk.bf16.vlgmr.msrb.gmra.mxu3 %vm5148_vm9, %v13295_v4  ;;  %v13343_v59 = vpop.f32.mrf.mxu2 }
 0x556   : > { %6244 = vmatpush.bf16.msrb.mxu3 %v6026_v16 }
 0x557   : > { %v13345_v63 = vpop.f32.mrf.mxu0  ;;  %v13347_v56 = vpop.f32.mrf.mxu1  ;;  %6231 = vmatpush.bf16.msrb.mxu2 %v9621_v19 }
 0x558   : > { %v13349_v24 = vpop.f32.mrf.mxu3 }
 0x55a   : > { %6245 = vmatpush.bf16.msrb.mxu3 %v9625_v37 }
 0x55b   : > { %9634 = vmatmul.msk.bf16.vlgmr.msra.gmra.mxu0 %vm5148_vm9, %v13295_v4  ;;  %9635 = vmatmul.msk.bf16.vlgmr.msra.gmra.mxu1 %vm5148_vm9, %v13295_v4 }
 0x55d   : > { %v13355_v20 = vpop.f32.mrf.mxu2 }
 0x55f   : > { %v13357_v55 = vpop.f32.mrf.mxu0  ;;  %v13359_v3 = vpop.f32.mrf.mxu1 }
 0x560   : > { %v13361_v23 = vpop.f32.mrf.mxu3 }
 0x562   : > { %9636 = vmatmul.msk.bf16.vlgmr.msra.gmra.mxu2 %vm5148_vm9, %v13295_v4 }
 0x565   : > { %9637 = vmatmul.msk.bf16.vlgmr.msra.gmra.mxu3 %vm5148_vm9, %v13295_v4  ;;  %v13367_v36 = vpop.f32.mrf.mxu2 }
 0x568   : > { %v13369_v1 = vpop.f32.mrf.mxu0  ;;  %v13371_v29 = vpop.f32.mrf.mxu1 }
 0x569   : > { %14450 = vst [vmem:[#allocation9_spill] sm:$0xff] %v13369_v1  ;;  %v13373_v2 = vpop.f32.mrf.mxu3 }
 0x56a   : > { %14451 = vst [vmem:[#allocation34_spill] sm:$0xff] %v13371_v29 }
 0x56b   : > { %14452 = vst [vmem:[#allocation35_spill] sm:$0xff] %v13373_v2  ;;  %9638 = vmatmul.msk.bf16.vlgmr.msrb.gmra.mxu0 %vm5148_vm9, %v13295_v4  ;;  %9639 = vmatmul.msk.bf16.vlgmr.msrb.gmra.mxu1 %vm5148_vm9, %v13295_v4 }
 0x56d   : > { %v13379_v22 = vpop.f32.mrf.mxu2 }
 0x56e   : > { %14453 = vst [vmem:[#allocation36_spill] sm:$0xff] %v13379_v22 }
 0x570   : > { %v13381_v46 = vpop.f32.mrf.mxu0  ;;  %v13383_v16 = vpop.f32.mrf.mxu1 }
 0x571   : > { %14454 = vst [vmem:[#allocation37_spill] sm:$0xff] %v13381_v46  ;;  %v13385_v30 = vpop.f32.mrf.mxu3 }
 0x572   : > { %14455 = vst [vmem:[#allocation38_spill] sm:$0xff] %v13383_v16  ;;  %9640 = vmatmul.msk.bf16.vlgmr.msrb.gmra.mxu2 %vm5148_vm9, %v13295_v4 }
 0x573   : > { %14456 = vst [vmem:[#allocation39_spill] sm:$0xff] %v13385_v30 }
 0x575   : > { %9641 = vmatmul.msk.bf16.vlgmr.msrb.gmra.mxu3 %vm5148_vm9, %v13295_v4  ;;  %v13391_v44 = vpop.f32.mrf.mxu2  ;;  %vm14498_vm9 = vcmask 7168  }
 0x576   : > { %14457 = vst [vmem:[#allocation40_spill] sm:$0xff] %v13391_v44  ;;  %vm14503_vm1 = vmmov %vm14498_vm9 }
 0x577   : > { %vm14511_vm15 = vmmov %vm14503_vm1 }
 0x578   : > { %v5610_v5 = vpop.f32.mrf.mxu0  ;;  %v5624_v12 = vpop.f32.mrf.mxu1  ;;  %vm14512_vm2 = vmmov %vm14503_vm1 }
 0x579   : > { %v13393_v19 = vpop.f32.mrf.mxu3  ;;  %v5611_v30 = vadd.f32 %v5610_v5, %v13290_v10  ;;  %v5625_v29 = vadd.f32 %v5624_v12, %v13297_v31  ;;  %vm14514_vm5 = vmmov %vm14503_vm1 }
 0x57a   : > { %14458 = vst [vmem:[#allocation41_spill] sm:$0xff] %v13393_v19 }
 0x57d   : > { %v13395_v37 = vpop.f32.mrf.mxu2 }
 0x57e   : > { %14459 = vst [vmem:[#allocation42_spill] sm:$0xff] %v13395_v37 }
 0x580   : > { %v5612_v34 = vpop.f32.mrf.mxu0  ;;  %v5626_v18 = vpop.f32.mrf.mxu1 }
 0x581   : > { %v13397_v33 = vpop.f32.mrf.mxu3  ;;  %v5613_v10 = vadd.f32 %v5612_v34, %v13305_v43  ;;  %v5627_v31 = vadd.f32 %v5626_v18, %v13307_v35 }
 0x582   : > { %14460 = vst [vmem:[#allocation43_spill] sm:$0xff] %v13397_v33 }
 0x585   : > { %v5638_v25 = vpop.f32.mrf.mxu2 }
 0x586   : > { %v5639_v18 = vadd.f32 %v5638_v25, %v13315_v9 }
 0x588   : > { %v5666_v11 = vpop.f32.mrf.mxu0  ;;  %v5680_v28 = vpop.f32.mrf.mxu1 }
 0x589   : > { %v5652_v50 = vpop.f32.mrf.mxu3 }
 0x58d   : > { %v13399_v62 = vpop.f32.mrf.mxu2 }
 0x590   : > { %v13401_v52 = vpop.f32.mrf.mxu0  ;;  %v13405_v13 = vpop.f32.mrf.mxu1 }
 0x591   : > { %v13403_v4 = vpop.f32.mrf.mxu3 }
 0x595   : > { %v13407_v41 = vpop.f32.mrf.mxu2 }
 0x598   : > { %v13409_v61 = vpop.f32.mrf.mxu0  ;;  %v13413_v17 = vpop.f32.mrf.mxu1 }
 0x599   : > { %v13411_v49 = vpop.f32.mrf.mxu3 }
 0x59d   : > { %v13415_v39 = vpop.f32.mrf.mxu2 }
 0x5a0   : > { %v13417_v53 = vpop.f32.mrf.mxu0  ;;  %v13421_v37 = vpop.f32.mrf.mxu1 }
 0x5a1   : > { %v13419_v33 = vpop.f32.mrf.mxu3 }
 0x5a5   : > { %v13423_v19 = vpop.f32.mrf.mxu2 }
 0x5a6   : > { %14461 = vst [vmem:[#allocation44_spill] sm:$0xff] %v13423_v19 }
 0x5a8   : > { %v13425_v44 = vpop.f32.mrf.mxu0  ;;  %v13429_v57 = vpop.f32.mrf.mxu1 }
 0x5a9   : > { %14462 = vst [vmem:[#allocation45_spill] sm:$0xff] %v13425_v44  ;;  %v13427_v15 = vpop.f32.mrf.mxu3 }
 0x5aa   : > { %14463 = vst [vmem:[#allocation46_spill] sm:$0xff] %v13427_v15 }
 0x5ab   : > { %14464 = vst [vmem:[#allocation47_spill] sm:$0xff] %v13429_v57  ;;  %v13445_v57 = vpop.permute.xlu1 %6288 }
 0x5ad   : > { %v13431_v38 = vpop.f32.mrf.mxu2 }
 0x5ae   : > { %14465 = vst [vmem:[#allocation48_spill] sm:$0xff] %v13431_v38 }
 0x5b0   : > { %v13433_v45 = vpop.f32.mrf.mxu0  ;;  %v13437_v46 = vpop.f32.mrf.mxu1 }
 0x5b1   : > { %14466 = vst [vmem:[#allocation49_spill] sm:$0xff] %v13433_v45  ;;  %v13435_v16 = vpop.f32.mrf.mxu3 }
 0x5b2   : > { %14467 = vst [vmem:[#allocation50_spill] sm:$0xff] %v13435_v16 }
 0x5b3   : > { %14468 = vst [vmem:[#allocation51_spill] sm:$0xff] %v13437_v46 }
 0x5b5   : > { %v13440_v22 = vpop.f32.mrf.mxu2 }
 0x5b6   : > { %14469 = vst [vmem:[#allocation52_spill] sm:$0xff] %v13440_v22 }
 0x5b8   : > { %v6037_v1 = vpop.f32.mrf.mxu0  ;;  %v6051_v2 = vpop.f32.mrf.mxu1 }
 0x5b9   : > { %v13443_v44 = vpop.f32.mrf.mxu3  ;;  %v6252_v15 = vadd.f32 %v6037_v1, %v5611_v30  ;;  %v6253_v38 = vadd.f32 %v6051_v2, %v5625_v29 }
 0x5bb   : > { %v6296_v45 = vadd.f32 %v13445_v57, %v6252_v15  ;;  %v6297_v16 = vadd.f32 %v13445_v57, %v6253_v38  ;;  %v13457_v15 = vpop.permute.xlu2 %6293 }
 0x5bd   : > { %v6328_v19 = vmax.f32 %v6296_v45, 0.0  ;;  %v6329_v46 = vmax.f32 %v6297_v16, 0.0  ;;  %v13451_v22 = vpop.f32.mrf.mxu2 }
 0x5bf   : > { %v6360_v5 = vmul.f32 %v6328_v19, %v11526_v48  ;;  %v6361_v1 = vmul.f32 %v6329_v46, %v11529_v42  ;;  %v5667_v46 = vadd.f32 %v5666_v11, %v13317_v6 }
 0x5c0   : > { %v6039_v30 = vpop.f32.mrf.mxu0  ;;  %v6053_v2 = vpop.f32.mrf.mxu1 }
 0x5c1   : > { %v13455_v12 = vpop.f32.mrf.mxu3  ;;  %v6268_v29 = vadd.f32 %v6039_v30, %v5613_v10  ;;  %v6269_v38 = vadd.f32 %v6053_v2, %v5627_v31  ;;  %v6392_v45 = vpack.c.bf16 %v6361_v1, %v6360_v5  ;;  %v5653_v30 = vadd.f32 %v5652_v50, %v13321_v26 }
 0x5c2   : > { %14470 = vst [vmem:[#allocation53_spill] sm:$0xff] %v13455_v12  ;;  %v5681_v5 = vadd.f32 %v5680_v28, %v13319_v40  ;;  %v5641_v28 = vadd.f32 %v13399_v62, %v13329_v58 }
 0x5c3   : > { %v6312_v16 = vadd.f32 %v13457_v15, %v6268_v29  ;;  %v6313_v34 = vadd.f32 %v13457_v15, %v6269_v38  ;;  %6564 = vrot.lane.b32.xlu0 %v6392_v45, %s10849_s16  ;;  %6544 = vst [vmem:[#allocation4 + $0x94] sm:$0xff] %v6392_v45 }
 0x5c5   : > { %v6344_v43 = vmax.f32 %v6312_v16, 0.0  ;;  %v6345_v35 = vmax.f32 %v6313_v34, 0.0  ;;  %v6065_v19 = vpop.f32.mrf.mxu2 }
 0x5c6   : > { %v6254_v31 = vadd.f32 %v6065_v19, %v5639_v18  ;;  %v5683_v18 = vadd.f32 %v13405_v13, %v13333_v8 }
 0x5c7   : > { %v6376_v10 = vmul.f32 %v6344_v43, %v11526_v48  ;;  %v6377_v29 = vmul.f32 %v6345_v35, %v11529_v42  ;;  %v5669_v43 = vadd.f32 %v13401_v52, %v13331_v32 }
 0x5c8   : > { %v6093_v1 = vpop.f32.mrf.mxu0  ;;  %v6107_v12 = vpop.f32.mrf.mxu1  ;;  %v6298_v16 = vadd.f32 %v13445_v57, %v6254_v31 }
 0x5c9   : > { %v6079_v2 = vpop.f32.mrf.mxu3  ;;  %v6256_v38 = vadd.f32 %v6093_v1, %v5667_v46  ;;  %v6257_v9 = vadd.f32 %v6107_v12, %v5681_v5  ;;  %v6400_v34 = vpack.c.bf16 %v6377_v29, %v6376_v10  ;;  %v5655_v12 = vadd.f32 %v13403_v4, %v13335_v0 }
 0x5ca   : > { %v6255_v25 = vadd.f32 %v6079_v2, %v5653_v30  ;;  %v6330_v6 = vmax.f32 %v6298_v16, 0.0  ;;  %v5695_v16 = vadd.f32 %v13407_v41, %v13343_v59 }
 0x5cb   : > { %v6300_v11 = vadd.f32 %v13445_v57, %v6256_v38  ;;  %v6301_v50 = vadd.f32 %v13445_v57, %v6257_v9  ;;  %6426 = vrot.lane.b32.xlu0 %v6392_v45, %s10853_s26  ;;  %6442 = vrot.lane.b32.xlu2 %v6400_v34, %s10853_s26  ;;  %6552 = vst [vmem:[#allocation4 + $0xdc] sm:$0xff] %v6400_v34 }
 0x5cc   : > { %v6299_v48 = vadd.f32 %v13445_v57, %v6255_v25  ;;  %v6362_v46 = vmul.f32 %v6330_v6, %v11555_v7  ;;  %v5723_v6 = vadd.f32 %v13409_v61, %v13345_v63 }
 0x5cd   : > { %v6332_v42 = vmax.f32 %v6300_v11, 0.0  ;;  %v6333_v26 = vmax.f32 %v6301_v50, 0.0  ;;  %v6067_v35 = vpop.f32.mrf.mxu2  ;;  %v5709_v11 = vadd.f32 %v13411_v49, %v13349_v24  ;;  %v5737_v50 = vadd.f32 %v13413_v17, %v13347_v56 }
 0x5ce   : > { %v6331_v40 = vmax.f32 %v6299_v48, 0.0  ;;  %v6270_v58 = vadd.f32 %v6067_v35, %v5641_v28 }
 0x5cf   : > { %v6364_v45 = vmul.f32 %v6332_v42, %v11562_v14  ;;  %v6365_v62 = vmul.f32 %v6333_v26, %v11567_v51 }
 0x5d0   : > { %v6363_v19 = vmul.f32 %v6331_v40, %v11558_v54  ;;  %v6095_v10 = vpop.f32.mrf.mxu0  ;;  %v6109_v0 = vpop.f32.mrf.mxu1  ;;  %v6314_v4 = vadd.f32 %v13457_v15, %v6270_v58 }
 0x5d1   : > { %v6081_v30 = vpop.f32.mrf.mxu3  ;;  %v6272_v5 = vadd.f32 %v6095_v10, %v5669_v43  ;;  %v6273_v32 = vadd.f32 %v6109_v0, %v5683_v18  ;;  %v13488_v8 = vpack.c.bf16 %v6365_v62, %v6364_v45  ;;  %v5739_v62 = vadd.f32 %v13421_v37, %v13359_v3 }
 0x5d2   : > { %v6271_v52 = vadd.f32 %v6081_v30, %v5655_v12  ;;  %v6393_v31 = vpack.c.bf16 %v6363_v19, %v6362_v46  ;;  %v6346_v2 = vmax.f32 %v6314_v4, 0.0  ;;  %v5711_v46 = vadd.f32 %v13419_v33, %v13361_v23 }
 0x5d3   : > { %v6316_v13 = vadd.f32 %v13457_v15, %v6272_v5  ;;  %v6317_v29 = vadd.f32 %v13457_v15, %v6273_v32  ;;  %6580 = vrot.lane.b32.xlu0 %v6400_v34, %s10849_s16  ;;  %6546 = vst [vmem:[#allocation4 + $0xa4] sm:$0xff] %v13488_v8  ;;  %6568 = vrot.lane.b32.xlu2 %v13488_v8, %s10849_s16 }
 0x5d4   : > { %v6315_v1 = vadd.f32 %v13457_v15, %v6271_v52  ;;  %6566 = vrot.lane.b32.xlu1 %v6393_v31, %s10849_s16  ;;  %6545 = vst [vmem:[#allocation4 + $0x9c] sm:$0xff] %v6393_v31  ;;  %v6378_v49 = vmul.f32 %v6346_v2, %v11555_v7  ;;  %v5697_v7 = vadd.f32 %v13415_v39, %v13355_v20  ;;  %v14471_v2 = vld [vmem:[#allocation44_spill] sm:$0xff] }
 0x5d5   : > { %v6348_v38 = vmax.f32 %v6316_v13, 0.0  ;;  %v6349_v9 = vmax.f32 %v6317_v29, 0.0  ;;  %v6121_v48 = vpop.f32.mrf.mxu2  ;;  %v5725_v19 = vadd.f32 %v13417_v53, %v13357_v55 }
 0x5d6   : > { %v6347_v25 = vmax.f32 %v6315_v1, 0.0  ;;  %v6258_v42 = vadd.f32 %v6121_v48, %v5695_v16  ;;  %v14474_v48 = vld [vmem:[#allocation9_spill] sm:$0xff] }
 0x5d7   : > { %v6380_v34 = vmul.f32 %v6348_v38, %v11562_v14  ;;  %v6381_v40 = vmul.f32 %v6349_v9, %v11567_v51  ;;  %v5751_v38 = vadd.f32 %v14471_v2, %v13367_v36  ;;  %v14472_v9 = vld [vmem:[#allocation35_spill] sm:$0xff] }
 0x5d8   : > { %v6149_v28 = vpop.f32.mrf.mxu0  ;;  %v6379_v41 = vmul.f32 %v6347_v25, %v11558_v54  ;;  %v6163_v12 = vpop.f32.mrf.mxu1  ;;  %v6302_v24 = vadd.f32 %v13445_v57, %v6258_v42  ;;  %v14476_v42 = vld [vmem:[#allocation34_spill] sm:$0xff] }
 0x5d9   : > { %v6135_v59 = vpop.f32.mrf.mxu3  ;;  %v6260_v26 = vadd.f32 %v6149_v28, %v5723_v6  ;;  %v6261_v63 = vadd.f32 %v6163_v12, %v5737_v50  ;;  %v13510_v43 = vpack.c.bf16 %v6381_v40, %v6380_v34  ;;  %v14475_v34 = vld [vmem:[#allocation45_spill] sm:$0xff]  ;;  %v14477_v28 = vld [vmem:[#allocation47_spill] sm:$0xff] }
 0x5da   : > { %v6259_v61 = vadd.f32 %v6135_v59, %v5709_v11  ;;  %v6401_v17 = vpack.c.bf16 %v6379_v41, %v6378_v49  ;;  %v6334_v56 = vmax.f32 %v6302_v24, 0.0  ;;  %v14473_v11 = vld [vmem:[#allocation46_spill] sm:$0xff]  ;;  %v5779_v50 = vadd.f32 %v14475_v34, %v14474_v48 }
 0x5db   : > { %v6304_v14 = vadd.f32 %v13445_v57, %v6260_v26  ;;  %v6305_v51 = vadd.f32 %v13445_v57, %v6261_v63  ;;  %6554 = vst [vmem:[#allocation4 + $0xec] sm:$0xff] %v13510_v43  ;;  %6584 = vrot.lane.b32.xlu2 %v13510_v43, %s10849_s16  ;;  %v5765_v6 = vadd.f32 %v14473_v11, %v14472_v9 }
 0x5dc   : > { %v6303_v18 = vadd.f32 %v13445_v57, %v6259_v61  ;;  %6428 = vrot.lane.b32.xlu1 %v6393_v31, %s10853_s26  ;;  %6553 = vst [vmem:[#allocation4 + $0xe4] sm:$0xff] %v6401_v17  ;;  %6444 = vrot.lane.b32.xlu0 %v6401_v17, %s10853_s26  ;;  %v6366_v30 = vmul.f32 %v6334_v56, %v14314_v47 }
 0x5dd   : > { %v6336_v54 = vmax.f32 %v6304_v14, 0.0  ;;  %v6337_v35 = vmax.f32 %v6305_v51, 0.0  ;;  %v6123_v10 = vpop.f32.mrf.mxu2  ;;  %v5793_v40 = vadd.f32 %v14477_v28, %v14476_v42 }
 0x5de   : > { %v6335_v45 = vmax.f32 %v6303_v18, 0.0  ;;  %v6274_v20 = vadd.f32 %v6123_v10, %v5697_v7 }
 0x5df   : > { %v6368_v58 = vmul.f32 %v6336_v54, %v14320_v27  ;;  %v6369_v39 = vmul.f32 %v6337_v35, %v14321_v21 }
 0x5e0   : > { %v6367_v5 = vmul.f32 %v6335_v45, %v14315_v60  ;;  %v6151_v0 = vpop.f32.mrf.mxu0  ;;  %v6165_v33 = vpop.f32.mrf.mxu1  ;;  %v6318_v23 = vadd.f32 %v13457_v15, %v6274_v20  ;;  %v14479_v45 = vld [vmem:[#allocation48_spill] sm:$0xff]  ;;  %v14484_v20 = vld [vmem:[#allocation38_spill] sm:$0xff] }
 0x5e1   : > { %v6137_v4 = vpop.f32.mrf.mxu3  ;;  %v6276_v52 = vadd.f32 %v6151_v0, %v5725_v19  ;;  %v6277_v55 = vadd.f32 %v6165_v33, %v5739_v62  ;;  %v13534_v37 = vpack.c.bf16 %v6369_v39, %v6368_v58  ;;  %v14480_v62 = vld [vmem:[#allocation39_spill] sm:$0xff]  ;;  %v14481_v58 = vld [vmem:[#allocation50_spill] sm:$0xff] }
 0x5e2   : > { %v6275_v53 = vadd.f32 %v6137_v4, %v5711_v46  ;;  %v6395_v32 = vpack.c.bf16 %v6367_v5, %v6366_v30  ;;  %v6350_v31 = vmax.f32 %v6318_v23, 0.0  ;;  %v5767_v10 = vadd.f32 %v14481_v58, %v14480_v62  ;;  %v14482_v30 = vld [vmem:[#allocation37_spill] sm:$0xff]  ;;  %v14485_v0 = vld [vmem:[#allocation51_spill] sm:$0xff] }
 0x5e3   : > { %v6320_v3 = vadd.f32 %v13457_v15, %v6276_v52  ;;  %v6321_v1 = vadd.f32 %v13457_v15, %v6277_v55  ;;  %6430 = vrot.lane.b32.xlu2 %v13488_v8, %s10853_s26  ;;  %6548 = vst [vmem:[#allocation4 + $0xb4] sm:$0xff] %v13534_v37  ;;  %v14483_v5 = vld [vmem:[#allocation49_spill] sm:$0xff]  ;;  %v5795_v4 = vadd.f32 %v14485_v0, %v14484_v20  ;;  %v14496_v58 = vld [vmem:[#allocation11_spill] sm:$0xff] }
 0x5e4   : > { %v6319_v13 = vadd.f32 %v13457_v15, %v6275_v53  ;;  %6582 = vrot.lane.b32.xlu1 %v6401_v17, %s10849_s16  ;;  %6547 = vst [vmem:[#allocation4 + $0xac] sm:$0xff] %v6395_v32  ;;  %6432 = vrot.lane.b32.xlu0 %v6395_v32, %s10853_s26  ;;  %v6382_v12 = vmul.f32 %v6350_v31, %v14314_v47  ;;  %v14486_v52 = vld [vmem:[#allocation29_spill] sm:$0xff]  ;;  %v14487_v53 = vld [vmem:[#allocation10_spill] sm:$0xff] }
 0x5e5   : > { %v6352_v29 = vmax.f32 %v6320_v3, 0.0  ;;  %v6353_v25 = vmax.f32 %v6321_v1, 0.0  ;;  %v6177_v41 = vpop.f32.mrf.mxu2  ;;  %v5781_v39 = vadd.f32 %v14483_v5, %v14482_v30  ;;  %v14489_v31 = vld [vmem:[#allocation30_spill] sm:$0xff] }
 0x5e6   : > { %v6351_v16 = vmax.f32 %v6319_v13, 0.0  ;;  %v6262_v59 = vadd.f32 %v6177_v41, %v5751_v38  ;;  %v14490_v41 = vld [vmem:[#allocation40_spill] sm:$0xff] }
 0x5e7   : > { %v6384_v8 = vmul.f32 %v6352_v29, %v14320_v27  ;;  %v6385_v49 = vmul.f32 %v6353_v25, %v14321_v21  ;;  %v14478_v21 = vld [vmem:[#allocation36_spill] sm:$0xff] }
 0x5e8   : > { %v6205_v26 = vpop.f32.mrf.mxu0  ;;  %v6383_v36 = vmul.f32 %v6351_v16, %v14315_v60  ;;  %v6219_v63 = vpop.f32.mrf.mxu1  ;;  %v6306_v14 = vadd.f32 %v13445_v57, %v6262_v59  ;;  %v5753_v35 = vadd.f32 %v14479_v45, %v14478_v21 }
 0x5e9   : > { %v6191_v24 = vpop.f32.mrf.mxu3  ;;  %v6264_v61 = vadd.f32 %v6205_v26, %v5779_v50  ;;  %v6265_v56 = vadd.f32 %v6219_v63, %v5793_v40  ;;  %v13557_v54 = vpack.c.bf16 %v6385_v49, %v6384_v8  ;;  %v14491_v8 = vld [vmem:[#allocation52_spill] sm:$0xff] }
 0x5ea   : > { %v6263_v17 = vadd.f32 %v6191_v24, %v5765_v6  ;;  %v6403_v18 = vpack.c.bf16 %v6383_v36, %v6382_v12  ;;  %v6338_v27 = vmax.f32 %v6306_v14, 0.0  ;;  %v5807_v59 = vadd.f32 %v14491_v8, %v14490_v41  ;;  %v14492_v36 = vld [vmem:[#allocation41_spill] sm:$0xff] }
 0x5eb   : > { %v6308_v51 = vadd.f32 %v13445_v57, %v6264_v61  ;;  %v6309_v47 = vadd.f32 %v13445_v57, %v6265_v56  ;;  %6572 = vrot.lane.b32.xlu2 %v13534_v37, %s10849_s16  ;;  %6556 = vst [vmem:[#allocation4 + $0xfc] sm:$0xff] %v13557_v54  ;;  %v5821_v49 = vadd.f32 %v13443_v44, %v14492_v36  ;;  %v14493_v44 = vld [vmem:[#allocation42_spill] sm:$0xff] }
 0x5ec   : > { %v6307_v7 = vadd.f32 %v13445_v57, %v6263_v17  ;;  %6570 = vrot.lane.b32.xlu1 %v6395_v32, %s10849_s16  ;;  %6555 = vst [vmem:[#allocation4 + $0xf4] sm:$0xff] %v6403_v18  ;;  %6586 = vrot.lane.b32.xlu0 %v6403_v18, %s10849_s16  ;;  %v6370_v55 = vmul.f32 %v6338_v27, %v14487_v53  ;;  %v14488_v32 = vld [vmem:[#allocation18_spill] sm:$0xff] }
 0x5ed   : > { %v6340_v60 = vmax.f32 %v6308_v51, 0.0  ;;  %v6341_v19 = vmax.f32 %v6309_v47, 0.0  ;;  %v6179_v23 = vpop.f32.mrf.mxu2  ;;  %v5809_v21 = vadd.f32 %v13451_v22, %v14493_v44  ;;  %v9709_v44 = vld [vmem:[#allocation4 + $0x94] sm:$0xf] }
 0x5ee   : > { %v6339_v46 = vmax.f32 %v6307_v7, 0.0  ;;  %v6278_v1 = vadd.f32 %v6179_v23, %v5753_v35 }
 0x5ef   : > { %v6372_v33 = vmul.f32 %v6340_v60, %v14486_v52  ;;  %v6373_v13 = vmul.f32 %v6341_v19, %v14489_v31  ;;  %v14495_v19 = vld [vmem:[#allocation53_spill] sm:$0xff] }
 0x5f0   : > { %v6371_v3 = vmul.f32 %v6339_v46, %v14488_v32  ;;  %v6207_v29 = vpop.f32.mrf.mxu0  ;;  %v6221_v16 = vpop.f32.mrf.mxu1  ;;  %v6322_v25 = vadd.f32 %v13457_v15, %v6278_v1  ;;  %v14494_v46 = vld [vmem:[#allocation43_spill] sm:$0xff] }
 0x5f1   : > { %v6193_v2 = vpop.f32.mrf.mxu3  ;;  %v6280_v38 = vadd.f32 %v6207_v29, %v5781_v39  ;;  %v6281_v11 = vadd.f32 %v6221_v16, %v5795_v4  ;;  %v6398_v34 = vpack.c.bf16 %v6373_v13, %v6372_v33  ;;  %v5823_v62 = vadd.f32 %v14495_v19, %v14494_v46 }
 0x5f2   : > { %v6279_v9 = vadd.f32 %v6193_v2, %v5767_v10  ;;  %v6397_v6 = vpack.c.bf16 %v6371_v3, %v6370_v55  ;;  %v6354_v50 = vmax.f32 %v6322_v25, 0.0 }
 0x5f3   : > { %v6324_v48 = vadd.f32 %v13457_v15, %v6280_v38  ;;  %v6325_v28 = vadd.f32 %v13457_v15, %v6281_v11  ;;  %6448 = vrot.lane.b32.xlu2 %v6403_v18, %s10853_s26  ;;  %6550 = vst [vmem:[#allocation4 + $0xc4] sm:$0xff] %v6398_v34  ;;  %v14501_v38 = vld [vmem:[#allocation12_spill] sm:$0xff] }
 0x5f4   : > { %v6323_v42 = vadd.f32 %v13457_v15, %v6279_v9  ;;  %6446 = vrot.lane.b32.xlu1 %v13510_v43, %s10853_s26  ;;  %6549 = vst [vmem:[#allocation4 + $0xbc] sm:$0xff] %v6397_v6  ;;  %6574 = vrot.lane.b32.xlu0 %v6397_v6, %s10849_s16  ;;  %v6386_v43 = vmul.f32 %v6354_v50, %v14487_v53  ;;  %vm14502_vm4 = vnez %v14501_v38 }
 0x5f5   : > { %v6356_v40 = vmax.f32 %v6324_v48, 0.0  ;;  %v6357_v12 = vmax.f32 %v6325_v28, 0.0  ;;  %v6233_v24 = vpop.f32.mrf.mxu2 }
 0x5f6   : > { %v6355_v26 = vmax.f32 %v6323_v42, 0.0  ;;  %v6266_v63 = vadd.f32 %v6233_v24, %v5807_v59 }
 0x5f7   : > { %v6388_v61 = vmul.f32 %v6356_v40, %v14486_v52  ;;  %v6389_v17 = vmul.f32 %v6357_v12, %v14489_v31 }
 0x5f8   : > { %v6387_v14 = vmul.f32 %v6355_v26, %v14488_v32  ;;  %v6310_v18 = vadd.f32 %v13445_v57, %v6266_v63 }
 0x5f9   : > { %v6247_v56 = vpop.f32.mrf.mxu3  ;;  %v6406_v7 = vpack.c.bf16 %v6389_v17, %v6388_v61 }
 0x5fa   : > { %v6267_v51 = vadd.f32 %v6247_v56, %v5821_v49  ;;  %v6405_v27 = vpack.c.bf16 %v6387_v14, %v6386_v43  ;;  %v6342_v47 = vmax.f32 %v6310_v18, 0.0 }
 0x5fb   : > { %6558 = vst [vmem:[#allocation4 + $0x10c] sm:$0xff] %v6406_v7 }
 0x5fc   : > { %v6311_v60 = vadd.f32 %v13445_v57, %v6267_v51  ;;  %6588 = vrot.lane.b32.xlu1 %v13557_v54, %s10849_s16  ;;  %6557 = vst [vmem:[#allocation4 + $0x104] sm:$0xff] %v6405_v27  ;;  %6590 = vrot.lane.b32.xlu2 %v6405_v27, %s10849_s16  ;;  %v6374_v10 = vmul.f32 %v6342_v47, %v14496_v58  ;;  %v14497_v57 = vld [vmem:[#allocation19_spill] sm:$0xff] }
 0x5fd   : > { %6592 = vrot.lane.b32.xlu0 %v6406_v7, %s10849_s16  ;;  %v6235_v35 = vpop.f32.mrf.mxu2 }
 0x5fe   : > { %v6343_v45 = vmax.f32 %v6311_v60, 0.0  ;;  %v6282_v5 = vadd.f32 %v6235_v35, %v5809_v21  ;;  %v10591_v60 = vld [vmem:[#allocation4 + $0xd8] sm:$0xf0] }
 0x600   : > { %v6375_v30 = vmul.f32 %v6343_v45, %v14497_v57  ;;  %v6326_v20 = vadd.f32 %v13457_v15, %v6282_v5  ;;  %v9710_v45 = vor.u32 %v10591_v60, %v9709_v44 }
 0x601   : > { %v6249_v39 = vpop.f32.mrf.mxu3 }
 0x602   : > { %v6283_v0 = vadd.f32 %v6249_v39, %v5823_v62  ;;  %v6399_v4 = vpack.c.bf16 %v6375_v30, %v6374_v10  ;;  %v6358_v52 = vmax.f32 %v6326_v20, 0.0 }
 0x604   : > { %v6327_v33 = vadd.f32 %v13457_v15, %v6283_v0  ;;  %6434 = vrot.lane.b32.xlu1 %v13534_v37, %s10853_s26  ;;  %6551 = vst [vmem:[#allocation4 + $0xcc] sm:$0xff] %v6399_v4  ;;  %6436 = vrot.lane.b32.xlu2 %v6397_v6, %s10853_s26  ;;  %v6390_v23 = vmul.f32 %v6358_v52, %v14496_v58  ;;  %v8198_v15 = vld [vmem:[#allocation5] sm:$0x1] }
 0x605   : > { %6450 = vrot.lane.b32.xlu0 %v13557_v54, %s10853_s26 }
 0x606   : > { %v6359_v22 = vmax.f32 %v6327_v33, 0.0  ;;  %v13682_v33 = vld [vmem:[%s14102_s8 + $0x1] sm:$0x1] }
 0x608   : > { %v6391_v53 = vmul.f32 %v6359_v22, %v14497_v57 }
 0x60a   : > { %v6407_v55 = vpack.c.bf16 %v6391_v53, %v6390_v23 }
 0x60c   : > { %6576 = vrot.lane.b32.xlu1 %v6398_v34, %s10849_s16  ;;  %6559 = vst [vmem:[#allocation4 + $0x114] sm:$0xff] %v6407_v55  ;;  %6578 = vrot.lane.b32.xlu2 %v6399_v4, %s10849_s16 }
 0x60d   : > { %6594 = vrot.lane.b32.xlu0 %v6407_v55, %s10849_s16 }
 0x614   : > { %6452 = vrot.lane.b32.xlu1 %v6405_v27, %s10853_s26  ;;  %6440 = vrot.lane.b32.xlu2 %v6399_v4, %s10853_s26 }
 0x615   : > { %6454 = vrot.lane.b32.xlu0 %v6406_v7, %s10853_s26 }
 0x61c   : > { %6438 = vrot.lane.b32.xlu1 %v6398_v34, %s10853_s26  ;;  %8201 = vperm.xlu2 %10710, %v8198_v15  }
 0x624   : > { %6456 = vrot.lane.b32.xlu1 %v6407_v55, %s10853_s26  ;;  %s8407_s26 = scalar_lea.hbm %s14105_s11, %s10269_s18 }
 0x625   : > { %v6443_v37 = vpop.permute.xlu2 %6442  ;;  %s8411_s25 = sshll.u32 %s8407_s26, 4  ;;  %s8412_s25 = int_to_ptr.hbm [resolvable:$true] %s8411_s25 }
 0x626   : > { %v6466_v54 = vrot.slane %v6443_v37, 4  ;;  %s10799_s13 = sshra.s32 %s8412_s25, 4  ;;  %s10800_s13 = int_to_ptr.hbm [resolvable:$true] %s10799_s13 }
 0x627   : > { %s10801_s15 = scalar_lea.hbm %s10800_s13, 16  ;;  %p10806_p0 = scmp.lt.s32.totalorder %s10800_s13, %s14105_s11 }
 0x628   : > { %v6489_v32 = vsel %vm14498_vm9, %v6466_v54, %v6443_v37  ;;  %vm14516_vm9 = vmmov %vm14505_vm0  ;;  %p10802_p11 = scmp.ne.s32.totalorder %s10800_s13, %s10801_s15  ;;  %p10807_p1 = scmp.lt.s32.totalorder %s10805_s30, %s10801_s15 }
 0x629   : > { %6531 = vst.msk [vmem:[#allocation4 + $0x4c] sm:$0xff] %vm11783_vm14, %v6489_v32 }
 0x62a   : > { %p10803_p12 = pnand %p10802_p11, %p10955_p5  ;;  %p10808_p2 = por %p10807_p1, %p10806_p0 }
 0x62c   : > { %p10804_p13 = pneg %p10803_p12 }
 0x62d   : > { %v13626_v31 = vpop.permute.xlu2 %6568 }
 0x62e   : > { %v6598_v34 = vrot.slane %v13626_v31, 4  ;;  %p10809_p3 = pnand %p10808_p2, %p10804_p13 }
 0x630   : > { %v10575_v5 = vld [vmem:[#allocation4 + $0x48] sm:$0xf0] }
 0x635   : > { %v6565_v13 = vpop.permute.xlu0 %6564  ;;  %v13628_v29 = vpop.permute.xlu2 %6584 }
 0x636   : > { %v6596_v1 = vrot.slane %v6565_v13, 4  ;;  %v6606_v35 = vrot.slane %v13628_v29, 4 }
 0x638   : > { %v6612_v2 = vsel %vm14500_vm12, %v6596_v1, %v6565_v13  ;;  %vm14517_vm12 = vmmov %vm14507_vm3 }
 0x639   : > { %6660 = vst.msk [vmem:[#allocation4 + $0x120] sm:$0xff] %vm14502_vm4, %v6612_v2 }
 0x63d   : > { %v6427_v16 = vpop.permute.xlu0 %6426  ;;  %v6431_v9 = vpop.permute.xlu2 %6430 }
 0x63e   : > { %v6458_v25 = vrot.slane %v6427_v16, 4  ;;  %v6460_v36 = vrot.slane %v6431_v9, 4 }
 0x640   : > { %v6474_v11 = vsel %vm14503_vm1, %v6458_v25, %v6427_v16  ;;  %v9773_v17 = vld [vmem:[#allocation4 + $0x124] sm:$0xf]  ;;  %vm14518_vm1 = vmmov %vm14507_vm3 }
 0x641   : > { %6522 = vst.msk [vmem:[#allocation4 + $0x4] sm:$0xff] %vm11783_vm14, %v6474_v11  ;;  %vm14508_vm14 = vmmov %vm14507_vm3 }
 0x645   : > { %v6581_v48 = vpop.permute.xlu0 %6580  ;;  %v13637_v42 = vpop.permute.xlu2 %6572 }
 0x646   : > { %v6567_v6 = vpop.permute.xlu1 %6566  ;;  %v6604_v28 = vrot.slane %v6581_v48, 4  ;;  %v6600_v23 = vrot.slane %v13637_v42, 4 }
 0x647   : > { %v6597_v50 = vrot.slane %v6567_v6, 4 }
 0x648   : > { %v6627_v8 = vsel %vm14506_vm6, %v6604_v28, %v6581_v48  ;;  %v9645_v58 = vld [vmem:[#allocation4 + $0x4] sm:$0xf]  ;;  %vm14521_vm6 = vcmask 392192  }
 0x649   : > { %v6613_v40 = vsel %vm14504_vm11, %v6596_v1, %v6597_v50  ;;  %v6615_v41 = vsel %vm14505_vm0, %v6597_v50, %v6598_v34  ;;  %6669 = vst.msk [vmem:[#allocation4 + $0x168] sm:$0xff] %vm14502_vm4, %v6627_v8  ;;  %vm14519_vm11 = vmmov %vm14505_vm0  ;;  %v9646_v4 = vor.u32 %v10575_v5, %v9645_v58  ;;  %v10592_v8 = vld [vmem:[#allocation4 + $0xe0] sm:$0xf0] }
 0x64a   : > { %v6614_v59 = vsel %vm14507_vm3, %v6613_v40, %v6567_v6  ;;  %v6616_v26 = vsel %vm14508_vm14, %v6615_v41, %v13626_v31  ;;  %vm14520_vm0 = vmmov %vm14512_vm2  ;;  %v9711_v41 = vld [vmem:[#allocation4 + $0xdc] sm:$0xf0] }
 0x64b   : > { %6661 = vst [vmem:[#allocation4 + $0x128] sm:$0xff] %v6614_v59  ;;  %vm14522_vm3 = vmmov %vm14510_vm7  ;;  %v9719_v59 = vld [vmem:[#allocation4 + $0xe4] sm:$0xf0] }
 0x64c   : > { %6662 = vst [vmem:[#allocation4 + $0x130] sm:$0xff] %v6616_v26  ;;  %vm14523_vm14 = vmmov %vm14522_vm3  ;;  %v10593_v26 = vld [vmem:[#allocation4 + $0xe8] sm:$0xf0] }
 0x64d   : > { %v13649_v24 = vpop.permute.xlu2 %6448 }
 0x64e   : > { %v6429_v12 = vpop.permute.xlu1 %6428  ;;  %v13651_v61 = vpop.permute.xlu0 %6444 }
 0x64f   : > { %v6459_v49 = vrot.slane %v6429_v12, 4  ;;  %v6467_v63 = vrot.slane %v13651_v61, 4 }
 0x650   : > { %v10607_v56 = vld [vmem:[#allocation4 + $0x168] sm:$0xf0] }
 0x651   : > { %v6475_v43 = vsel %vm14509_vm13, %v6458_v25, %v6459_v49  ;;  %v6477_v14 = vsel %vm14510_vm7, %v6459_v49, %v6460_v36  ;;  %v6490_v27 = vsel %vm14513_vm10, %v6466_v54, %v6467_v63  ;;  %v9774_v7 = vor.u32 %v10607_v56, %v9773_v17  ;;  %vm14524_vm13 = vmmov %vm14518_vm1  ;;  %v9717_v49 = vld [vmem:[#allocation4 + $0x9c] sm:$0xf] }
 0x652   : > { %v6476_v18 = vsel %vm14511_vm15, %v6475_v43, %v6429_v12  ;;  %v6478_v51 = vsel %vm14512_vm2, %v6477_v14, %v6431_v9  ;;  %v6491_v47 = vsel %vm14514_vm5, %v6490_v27, %v13651_v61  ;;  %v10599_v3 = vld [vmem:[#allocation4 + $0x128] sm:$0xf]  ;;  %v9781_v13 = vld [vmem:[#allocation4 + $0x12c] sm:$0xf]  ;;  %vm14525_vm7 = vmmov %vm14518_vm1  ;;  %v6469_v14 = vrot.slane %v13649_v24, 4 }
 0x653   : > { %6523 = vst [vmem:[#allocation4 + $0xc] sm:$0xff] %v6476_v18  ;;  %7027 = vmatpush.bf16.msra.mxu0 %v9774_v7  ;;  %v10600_v1 = vld [vmem:[#allocation4 + $0x130] sm:$0xf]  ;;  %vm14526_vm15 = vmmov %vm14522_vm3  ;;  %v9789_v9 = vld [vmem:[#allocation4 + $0x134] sm:$0xf]  ;;  %v9718_v27 = vor.u32 %v10592_v8, %v9717_v49 }
 0x654   : > { %6524 = vst [vmem:[#allocation4 + $0x14] sm:$0xff] %v6478_v51  ;;  %vm14527_vm2 = vmmov %vm14518_vm1  ;;  %v10584_v43 = vld [vmem:[#allocation4 + $0xa0] sm:$0xf]  ;;  %v9725_v7 = vld [vmem:[#allocation4 + $0xa4] sm:$0xf] }
 0x655   : > { %6532 = vst [vmem:[#allocation4 + $0x54] sm:$0xff] %v6491_v47  ;;  %v10567_v47 = vld [vmem:[#allocation4 + $0x8] sm:$0xf]  ;;  %vm14528_vm10 = vmmov %vm14522_vm3 }
 0x656   : > { %v6583_v21 = vpop.permute.xlu1 %6582  ;;  %v13664_v19 = vpop.permute.xlu2 %6590  ;;  %vm14529_vm5 = vmmov %vm14522_vm3 }
 0x657   : > { %v6605_v46 = vrot.slane %v6583_v21, 4  ;;  %v13666_v62 = vpop.permute.xlu0 %6432  ;;  %7028 = vmatpush.bf16.msra.mxu0 %v9710_v45  ;;  %v9726_v45 = vor.u32 %v10593_v26, %v9725_v7 }
 0x658   : > { %v6461_v10 = vrot.slane %v13666_v62, 4 }
 0x659   : > { %v6628_v57 = vsel %vm14515_vm8, %v6604_v28, %v6605_v46  ;;  %v6630_v30 = vsel %vm14516_vm9, %v6605_v46, %v6606_v35  ;;  %vm14530_vm8 = vmmov %vm14520_vm0 }
 0x65a   : > { %v6629_v39 = vsel %vm14517_vm12, %v6628_v57, %v6583_v21  ;;  %v6631_v20 = vsel %vm14518_vm1, %v6630_v30, %v13628_v29  ;;  %v6479_v0 = vsel %vm14519_vm11, %v6460_v36, %v6461_v10  ;;  %v10583_v36 = vld [vmem:[#allocation4 + $0x98] sm:$0xf]  ;;  %v9722_v21 = vor.u32 %v10584_v43, %v9719_v59  ;;  %v9647_v30 = vld [vmem:[#allocation4 + $0x4c] sm:$0xf0]  ;;  %vm14531_vm9 = vmmov %vm14520_vm0 }
 0x65b   : > { %6670 = vst [vmem:[#allocation4 + $0x170] sm:$0xff] %v6629_v39  ;;  %v6480_v52 = vsel %vm14520_vm0, %v6479_v0, %v13666_v62  ;;  %7029 = vmatpush.bf16.msra.mxu0 %v9646_v4  ;;  %v9714_v51 = vor.u32 %v10583_v36, %v9711_v41  ;;  %v10568_v5 = vld [vmem:[#allocation4 + $0x10] sm:$0xf]  ;;  %vm14532_vm12 = vcmask 1035264   ;;  %vm14533_vm1 = vmmov %vm14522_vm3  ;;  %v9661_v8 = vld [vmem:[#allocation4 + $0x14] sm:$0xf] }
 0x65c   : > { %6671 = vst [vmem:[#allocation4 + $0x178] sm:$0xff] %v6631_v20  ;;  %v10576_v46 = vld [vmem:[#allocation4 + $0x50] sm:$0xf0]  ;;  %v9655_v39 = vld [vmem:[#allocation4 + $0x54] sm:$0xf0]  ;;  %vm14534_vm11 = vmmov %vm14527_vm2 }
 0x65d   : > { %6525 = vst [vmem:[#allocation4 + $0x1c] sm:$0xff] %v6480_v52  ;;  %vm14536_vm0 = vmmov %vm14521_vm6  ;;  %v10569_v59 = vld [vmem:[#allocation4 + $0x18] sm:$0xf] }
 0x65e   : > { %v6571_v22 = vpop.permute.xlu1 %6570  ;;  %v13685_v55 = vpop.permute.xlu2 %6436  ;;  %9835 = vmatmul.msk.bf16.vlgmr.msra.gmra.mxu0 %vm14521_vm6, %v13682_v33  ;;  %vm14537_vm6 = vmmov %vm14536_vm0 }
 0x65f   : > { %v6599_v53 = vrot.slane %v6571_v22, 4  ;;  %v13687_v15 = vpop.permute.xlu0 %6586 }
 0x660   : > { %v6607_v37 = vrot.slane %v13687_v15, 4 }
 0x661   : > { %v6617_v54 = vsel %vm14522_vm3, %v6598_v34, %v6599_v53  ;;  %v6619_v32 = vsel %vm14523_vm14, %v6599_v53, %v6600_v23  ;;  %vm14538_vm3 = vmmov %vm14533_vm1 }
 0x662   : > { %v6618_v29 = vsel %vm14524_vm13, %v6617_v54, %v6571_v22  ;;  %v6620_v2 = vsel %vm14525_vm7, %v6619_v32, %v13637_v42  ;;  %v6632_v16 = vsel %vm14526_vm15, %v6606_v35, %v6607_v37  ;;  %v9775_v25 = vld [vmem:[#allocation4 + $0x16c] sm:$0xf0]  ;;  %v10608_v31 = vld [vmem:[#allocation4 + $0x170] sm:$0xf0]  ;;  %v9653_v35 = vld [vmem:[#allocation4 + $0xc] sm:$0xf]  ;;  %v9650_v22 = vor.u32 %v10567_v47, %v9647_v30 }
 0x663   : > { %6663 = vst [vmem:[#allocation4 + $0x138] sm:$0xff] %v6618_v29  ;;  %v6633_v11 = vsel %vm14527_vm2, %v6632_v16, %v13687_v15  ;;  %v9778_v6 = vor.u32 %v10599_v3, %v9775_v25  ;;  %v9782_v48 = vor.u32 %v10608_v31, %v9781_v13  ;;  %v9783_v34 = vld [vmem:[#allocation4 + $0x174] sm:$0xf0]  ;;  %v10609_v50 = vld [vmem:[#allocation4 + $0x178] sm:$0xf0]  ;;  %v9654_v53 = vor.u32 %v10576_v46, %v9653_v35  ;;  %vm14539_vm14 = vmmov %vm14533_vm1 }
 0x664   : > { %6664 = vst [vmem:[#allocation4 + $0x140] sm:$0xff] %v6620_v2  ;;  %v9786_v28 = vor.u32 %v10600_v1, %v9783_v34  ;;  %v9790_v40 = vor.u32 %v10609_v50, %v9789_v9  ;;  %v9658_v54 = vor.u32 %v10568_v5, %v9655_v39  ;;  %v14535_v13 = vmov 0   ;;  %v9727_v29 = vld [vmem:[#allocation4 + $0xec] sm:$0xf0]  ;;  %v10594_v2 = vld [vmem:[#allocation4 + $0xf0] sm:$0xf0]  ;;  %vm14540_vm13 = vmmov %vm14536_vm0 }
 0x665   : > { %6672 = vst [vmem:[#allocation4 + $0x180] sm:$0xff] %v6633_v11  ;;  %7040 = vmatpush.bf16.msra.mxu1 %v9778_v6  ;;  %7053 = vmatpush.bf16.msra.mxu2 %v9782_v48  ;;  %v6609_v16 = vrot.slane %v13664_v19, 4  ;;  %v10585_v48 = vld [vmem:[#allocation4 + $0xa8] sm:$0xf]  ;;  %v9733_v34 = vld [vmem:[#allocation4 + $0xac] sm:$0xf]  ;;  %vm14541_vm7 = vmmov %vm14527_vm2 }
 0x666   : > { %7066 = vmatpush.bf16.msra.mxu3 %v9786_v28  ;;  %7079 = vmatpush.bf16.msrb.mxu0 %v9790_v40  ;;  %v6447_v12 = vpop.permute.xlu1 %6446  ;;  %v13707_v56 = vpop.permute.xlu2 %6578  ;;  %v9730_v40 = vor.u32 %v10585_v48, %v9727_v29  ;;  %v9734_v41 = vor.u32 %v10594_v2, %v9733_v34  ;;  %vm14542_vm15 = vmmov %vm14527_vm2  ;;  %vm14543_vm2 = vcmask 3072   ;;  %v6463_v47 = vrot.slane %v13685_v55, 4  ;;  %v9741_v29 = vld [vmem:[#allocation4 + $0xb4] sm:$0xf]  ;;  %v10587_v34 = vld [vmem:[#allocation4 + $0xb8] sm:$0xf] }
 0x667   : > { %v6468_v17 = vrot.slane %v6447_v12, 4  ;;  %v13709_v18 = vpop.permute.xlu0 %6574  ;;  %v6603_v60 = vrot.slane %v13707_v56, 4 }
 0x668   : > { %v6601_v44 = vrot.slane %v13709_v18, 4 }
 0x669   : > { %v6492_v58 = vsel %vm14528_vm10, %v6467_v63, %v6468_v17  ;;  %v6494_v57 = vsel %vm14529_vm5, %v6468_v17, %v6469_v14  ;;  %7041 = vmatpush.bf16.msra.mxu1 %v9714_v51  ;;  %7054 = vmatpush.bf16.msra.mxu2 %v9718_v27  ;;  %6668 = vst.msk [vmem:[#allocation4 + $0x160] sm:$0xf] %vm14532_vm12, %v6603_v60  ;;  %vm14544_vm10 = vmmov %vm14533_vm1  ;;  %v9669_v17 = vld [vmem:[#allocation4 + $0x1c] sm:$0xf] }
 0x66a   : > { %v6493_v20 = vsel %vm14530_vm8, %v6492_v58, %v6447_v12  ;;  %v6495_v0 = vsel %vm14531_vm9, %v6494_v57, %v13649_v24  ;;  %v6621_v61 = vsel %vm14533_vm1, %v6600_v23, %v6601_v44  ;;  %7067 = vmatpush.bf16.msra.mxu3 %v9722_v21  ;;  %7080 = vmatpush.bf16.msrb.mxu0 %v9726_v45  ;;  %v9797_v63 = vld [vmem:[#allocation4 + $0x13c] sm:$0xf]  ;;  %v10601_v4 = vld [vmem:[#allocation4 + $0x138] sm:$0xf]  ;;  %vm14545_vm5 = vmmov %vm14541_vm7  ;;  %vm14546_vm8 = vcmask 1043464  }
 0x66b   : > { %6533 = vst [vmem:[#allocation4 + $0x5c] sm:$0xff] %v6493_v20  ;;  %v6622_v52 = vsel %vm14534_vm11, %v6621_v61, %v13709_v18  ;;  %vm14547_vm9 = vmmov %vm14536_vm0  ;;  %v10602_v57 = vld [vmem:[#allocation4 + $0x140] sm:$0xf]  ;;  %v9805_v30 = vld [vmem:[#allocation4 + $0x144] sm:$0xf]  ;;  %vm14549_vm11 = vcmask 7168  }
 0x66c   : > { %6534 = vst [vmem:[#allocation4 + $0x64] sm:$0xff] %v6495_v0  ;;  %v10610_v32 = vld [vmem:[#allocation4 + $0x180] sm:$0xf0]  ;;  %v9791_v3 = vld [vmem:[#allocation4 + $0x17c] sm:$0xf0]  ;;  %vm14548_vm12 = vmmov %vm14533_vm1 }
 0x66d   : > { %6678 = vst.msk [vmem:[#allocation4 + $0x160] sm:$0xff] %vm14502_vm4, %v14535_v13  ;;  %7042 = vmatpush.bf16.msra.mxu1 %v9650_v22  ;;  %7055 = vmatpush.bf16.msra.mxu2 %v9654_v53  ;;  %v9798_v42 = vor.u32 %v10610_v32, %v9797_v63  ;;  %v9794_v23 = vor.u32 %v10601_v4, %v9791_v3  ;;  %v9735_v3 = vld [vmem:[#allocation4 + $0xf4] sm:$0xf0]  ;;  %v9743_v24 = vld [vmem:[#allocation4 + $0xfc] sm:$0xf0] }
 0x66e   : > { %6665 = vst [vmem:[#allocation4 + $0x148] sm:$0xff] %v6622_v52  ;;  %7068 = vmatpush.bf16.msra.mxu3 %v9658_v54  ;;  %v6589_v1 = vpop.permute.xlu1 %6588  ;;  %v13736_v31 = vpop.permute.xlu2 %6440 }
 0x66f   : > { %v6608_v25 = vrot.slane %v6589_v1, 4  ;;  %v13738_v9 = vpop.permute.xlu0 %6592  ;;  %v6465_v11 = vrot.slane %v13736_v31, 4 }
 0x670   : > { %v6610_v6 = vrot.slane %v13738_v9, 4  ;;  %9836 = vmatmul.msk.bf16.vlgmr.msra.gmra.mxu1 %vm14536_vm0, %v13682_v33  ;;  %9837 = vmatmul.msk.bf16.vlgmr.msra.gmra.mxu2 %vm14537_vm6, %v13682_v33  ;;  %vm14550_vm0 = vmmov %vm14549_vm11 }
 0x671   : > { %7105 = vmatpush.bf16.msrb.mxu2 %v9798_v42  ;;  %7092 = vmatpush.bf16.msrb.mxu1 %v9794_v23  ;;  %v6634_v50 = vsel %vm14538_vm3, %v6607_v37, %v6608_v25  ;;  %v6636_v28 = vsel %vm14539_vm14, %v6608_v25, %v6609_v16  ;;  %6530 = vst.msk [vmem:[#allocation4 + $0x44] sm:$0xf] %vm14543_vm2, %v6465_v11  ;;  %vm14551_vm6 = vmmov %vm14533_vm1  ;;  %v10595_v42 = vld [vmem:[#allocation4 + $0xf8] sm:$0xf0] }
 0x672   : > { %9838 = vmatmul.msk.bf16.vlgmr.msra.gmra.mxu3 %vm14540_vm13, %v13682_v33  ;;  %v6635_v26 = vsel %vm14541_vm7, %v6634_v50, %v6589_v1  ;;  %v6637_v12 = vsel %vm14542_vm15, %v6636_v28, %v13664_v19  ;;  %v6638_v15 = vsel %vm14544_vm10, %v6609_v16, %v6610_v6  ;;  %v10577_v37 = vld [vmem:[#allocation4 + $0x58] sm:$0xf0]  ;;  %v9663_v36 = vld [vmem:[#allocation4 + $0x5c] sm:$0xf0]  ;;  %6540 = vst.msk [vmem:[#allocation4 + $0x44] sm:$0xf] %vm14546_vm8, %v14535_v13  ;;  %vm14552_vm3 = vmmov %vm14550_vm0 }
 0x673   : > { %6673 = vst [vmem:[#allocation4 + $0x188] sm:$0xff] %v6635_v26  ;;  %v6639_v49 = vsel %vm14545_vm5, %v6638_v15, %v13738_v9  ;;  %v9662_v43 = vor.u32 %v10577_v37, %v9661_v8  ;;  %v10578_v51 = vld [vmem:[#allocation4 + $0x60] sm:$0xf0]  ;;  %v9666_v19 = vor.u32 %v10569_v59, %v9663_v36  ;;  %v10586_v1 = vld [vmem:[#allocation4 + $0xb0] sm:$0xf]  ;;  %v9742_v48 = vor.u32 %v10595_v42, %v9741_v29  ;;  %vm14553_vm14 = vmmov %vm14547_vm9 }
 0x674   : > { %6674 = vst [vmem:[#allocation4 + $0x190] sm:$0xff] %v6637_v12  ;;  %v9670_v27 = vor.u32 %v10578_v51, %v9669_v17  ;;  %v9738_v25 = vor.u32 %v10586_v1, %v9735_v3  ;;  %v9749_v50 = vld [vmem:[#allocation4 + $0xbc] sm:$0xf]  ;;  %v9671_v8 = vld [vmem:[#allocation4 + $0x64] sm:$0xf0]  ;;  %vm14554_vm13 = vmmov %vm14547_vm9  ;;  %vm14560_vm8 = vcmask 1035264  }
 0x675   : > { %7093 = vmatpush.bf16.msrb.mxu1 %v9730_v40  ;;  %7106 = vmatpush.bf16.msrb.mxu2 %v9734_v41  ;;  %6675 = vst [vmem:[#allocation4 + $0x198] sm:$0xff] %v6639_v49  ;;  %v10603_v5 = vld [vmem:[#allocation4 + $0x148] sm:$0xf]  ;;  %v9813_v61 = vld [vmem:[#allocation4 + $0x14c] sm:$0xf]  ;;  %v9746_v40 = vor.u32 %v10587_v34, %v9743_v24  ;;  %vm14555_vm7 = vmmov %vm14533_vm1 }
 0x676   : > { %7081 = vmatpush.bf16.msrb.mxu0 %v9662_v43  ;;  %v6435_v7 = vpop.permute.xlu1 %6434  ;;  %vm14556_vm15 = vmmov %vm14533_vm1  ;;  %v10570_v12 = vld [vmem:[#allocation4 + $0x20] sm:$0xf]  ;;  %v10589_v42 = vld [vmem:[#allocation4 + $0xc8] sm:$0xf] }
 0x677   : > { %v6462_v21 = vrot.slane %v6435_v7, 4  ;;  %v13766_v45 = vpop.permute.xlu0 %6450  ;;  %vm14557_vm2 = vmmov %vm14545_vm5  ;;  %v9674_v49 = vor.u32 %v10570_v12, %v9671_v8 }
 0x678   : > { %v6470_v35 = vrot.slane %v13766_v45, 4  ;;  %vm14558_vm10 = vmmov %vm14557_vm2 }
 0x679   : > { %7107 = vmatpush.bf16.msrb.mxu2 %v9670_v27  ;;  %7094 = vmatpush.bf16.msrb.mxu1 %v9666_v19  ;;  %v6481_v46 = vsel %vm14548_vm12, %v6461_v10, %v6462_v21  ;;  %v6483_v58 = vsel %vm14533_vm1, %v6462_v21, %v6463_v47  ;;  %vm14559_vm5 = vmmov %vm14533_vm1 }
 0x67a   : > { %9839 = vmatmul.msk.bf16.vlgmr.msrb.gmra.mxu0 %vm14547_vm9, %v13682_v33  ;;  %v6482_v39 = vsel %vm14549_vm11, %v6481_v46, %v6435_v7  ;;  %v6484_v20 = vsel %vm14550_vm0, %v6483_v58, %v13685_v55  ;;  %v6496_v62 = vsel %vm14551_vm6, %v6469_v14, %v6470_v35  ;;  %v9799_v0 = vld [vmem:[#allocation4 + $0x184] sm:$0xf0]  ;;  %v10611_v10 = vld [vmem:[#allocation4 + $0x188] sm:$0xf0]  ;;  %v10596_v14 = vld [vmem:[#allocation4 + $0x100] sm:$0xf0] }
 0x67b   : > { %6526 = vst [vmem:[#allocation4 + $0x24] sm:$0xff] %v6482_v39  ;;  %v6497_v63 = vsel %vm14552_vm3, %v6496_v62, %v13766_v45  ;;  %v9802_v4 = vor.u32 %v10602_v57, %v9799_v0  ;;  %v9806_v52 = vor.u32 %v10611_v10, %v9805_v30  ;;  %v9807_v22 = vld [vmem:[#allocation4 + $0x18c] sm:$0xf0]  ;;  %v10612_v53 = vld [vmem:[#allocation4 + $0x190] sm:$0xf0]  ;;  %v9750_v41 = vor.u32 %v10596_v14, %v9749_v50  ;;  %vm14561_vm9 = vmmov %vm14557_vm2 }
 0x67c   : > { %6527 = vst [vmem:[#allocation4 + $0x2c] sm:$0xff] %v6484_v20  ;;  %v9810_v54 = vor.u32 %v10603_v5, %v9807_v22  ;;  %v9814_v32 = vor.u32 %v10612_v53, %v9813_v61  ;;  %vm14562_vm12 = vmmov %vm14554_vm13  ;;  %v9815_v21 = vld [vmem:[#allocation4 + $0x194] sm:$0xf0]  ;;  %v10613_v30 = vld [vmem:[#allocation4 + $0x198] sm:$0xf0] }
 0x67d   : > { %6535 = vst [vmem:[#allocation4 + $0x6c] sm:$0xff] %v6497_v63  ;;  %7118 = vmatpush.bf16.msrb.mxu3 %v9802_v4  ;;  %7131 = vmatpush.bf16.msra.mxu0 %v9806_v52  ;;  %vm14563_vm11 = vmmov %vm14550_vm0  ;;  %v9751_v20 = vld [vmem:[#allocation4 + $0x104] sm:$0xf0]  ;;  %v10597_v0 = vld [vmem:[#allocation4 + $0x108] sm:$0xf0] }
 0x67e   : > { %7144 = vmatpush.bf16.msra.mxu1 %v9810_v54  ;;  %7157 = vmatpush.bf16.msra.mxu2 %v9814_v32  ;;  %v6577_v23 = vpop.permute.xlu1 %6576  ;;  %vm14565_vm0 = vmmov %vm14562_vm12  ;;  %v10588_v63 = vld [vmem:[#allocation4 + $0xc0] sm:$0xf]  ;;  %v9757_v4 = vld [vmem:[#allocation4 + $0xc4] sm:$0xf] }
 0x67f   : > { %v6602_v2 = vrot.slane %v6577_v23, 4  ;;  %v6595_v16 = vpop.permute.xlu0 %6594  ;;  %vm14566_vm6 = vmmov %vm14552_vm3  ;;  %v9759_v52 = vld [vmem:[#allocation4 + $0x10c] sm:$0xf0]  ;;  %v9754_v53 = vor.u32 %v10588_v63, %v9751_v20  ;;  %v9758_v54 = vor.u32 %v10597_v0, %v9757_v4  ;;  %v10606_v32 = vld [vmem:[#allocation4 + $0x160] sm:$0xf] }
 0x680   : > { %v6611_v28 = vrot.slane %v6595_v16, 4  ;;  %9840 = vmatmul.msk.bf16.vlgmr.msrb.gmra.mxu1 %vm14553_vm14, %v13682_v33  ;;  %9841 = vmatmul.msk.bf16.vlgmr.msrb.gmra.mxu2 %vm14554_vm13, %v13682_v33  ;;  %vm14567_vm3 = vmmov %vm14565_vm0  ;;  %v9855_v4 = vld [vmem:[#allocation4 + $0x48] sm:$0xf0] }
 0x681   : > { %v6623_v59 = vsel %vm14555_vm7, %v6601_v44, %v6602_v2  ;;  %v6625_v26 = vsel %vm14556_vm15, %v6602_v2, %v6603_v60  ;;  %7119 = vmatpush.bf16.msrb.mxu3 %v9738_v25  ;;  %7132 = vmatpush.bf16.msra.mxu0 %v9742_v48  ;;  %vm14568_vm14 = vmmov %vm14533_vm1 }
 0x682   : > { %v6624_v15 = vsel %vm14557_vm2, %v6623_v59, %v6577_v23  ;;  %v6626_v37 = vsel %vm14558_vm10, %v6625_v26, %v13707_v56  ;;  %v6640_v36 = vsel %vm14559_vm5, %v6610_v6, %v6611_v28  ;;  %6677 = vst.msk [vmem:[#allocation4 + $0x1a8] sm:$0xf] %vm14560_vm8, %v6611_v28  ;;  %7145 = vmatpush.bf16.msra.mxu1 %v9746_v40  ;;  %v9677_v18 = vld [vmem:[#allocation4 + $0x24] sm:$0xf]  ;;  %v10571_v44 = vld [vmem:[#allocation4 + $0x28] sm:$0xf]  ;;  %vm14569_vm13 = vmmov %vm14533_vm1 }
 0x683   : > { %7158 = vmatpush.bf16.msra.mxu2 %v9750_v41  ;;  %6666 = vst [vmem:[#allocation4 + $0x150] sm:$0xff] %v6624_v15  ;;  %v6641_v60 = vsel %vm14561_vm9, %v6640_v36, %v6595_v16  ;;  %v9762_v23 = vor.u32 %v10589_v42, %v9759_v52  ;;  %v9685_v1 = vld [vmem:[#allocation4 + $0x2c] sm:$0xf]  ;;  %vm14570_vm7 = vmmov %vm14566_vm6  ;;  %v10572_v34 = vld [vmem:[#allocation4 + $0x30] sm:$0xf]  ;;  %vm14575_vm8 = vcmask 3072  }
 0x684   : > { %6667 = vst [vmem:[#allocation4 + $0x158] sm:$0xff] %v6626_v37  ;;  %v10579_v43 = vld [vmem:[#allocation4 + $0x68] sm:$0xf0]  ;;  %v9679_v17 = vld [vmem:[#allocation4 + $0x6c] sm:$0xf0]  ;;  %vm14571_vm15 = vmmov %vm14566_vm6 }
 0x685   : > { %6676 = vst [vmem:[#allocation4 + $0x1a0] sm:$0xff] %v6641_v60  ;;  %7120 = vmatpush.bf16.msrb.mxu3 %v9674_v49  ;;  %v9678_v56 = vor.u32 %v10579_v43, %v9677_v18  ;;  %v9682_v51 = vor.u32 %v10571_v44, %v9679_v17  ;;  %v10598_v40 = vld [vmem:[#allocation4 + $0x110] sm:$0xf0]  ;;  %v9767_v41 = vld [vmem:[#allocation4 + $0x114] sm:$0xf0]  ;;  %vm14572_vm2 = vmmov %vm14565_vm0 }
 0x686   : > { %6679 = vst.msk [vmem:[#allocation4 + $0x1a8] sm:$0xff] %vm14502_vm4, %v14535_v13  ;;  %v6453_v9 = vpop.permute.xlu1 %6452  ;;  %vm14564_vm4 = vmmov %vm14533_vm1  ;;  %v9765_v26 = vld [vmem:[#allocation4 + $0xcc] sm:$0xf]  ;;  %v10559_v37 = vld [vmem:[#allocation4 + $0x164] sm:$0xf0] }
 0x687   : > { %7133 = vmatpush.bf16.msra.mxu0 %v9678_v56  ;;  %7146 = vmatpush.bf16.msra.mxu1 %v9682_v51  ;;  %v6471_v6 = vrot.slane %v6453_v9, 4  ;;  %v13808_v19 = vpop.permute.xlu0 %6454  ;;  %vm14573_vm10 = vmmov %vm14565_vm0  ;;  %v9766_v12 = vor.u32 %v10598_v40, %v9765_v26  ;;  %v9983_v36 = vld [vmem:[#allocation4 + $0x168] sm:$0xf0]  ;;  %v9981_v49 = vld [vmem:[#allocation4 + $0x120] sm:$0xf] }
 0x688   : > { %v6472_v27 = vrot.slane %v13808_v19, 4  ;;  %9842 = vmatmul.msk.bf16.vlgmr.msrb.gmra.mxu3 %vm14562_vm12, %v13682_v33  ;;  %vm14574_vm5 = vmmov %vm14533_vm1  ;;  %v10551_v43 = vld [vmem:[#allocation4 + $0x124] sm:$0xf]  ;;  %vm14577_vm12 = vcmask 1043464   ;;  %v10561_v52 = vld [vmem:[#allocation4 + $0x174] sm:$0xf0] }
 0x689   : > { %v6498_v7 = vsel %vm14533_vm1, %v6470_v35, %v6471_v6  ;;  %vm14576_vm9 = vmmov %vm14566_vm6  ;;  %v9863_v26 = vld [vmem:[#allocation4 + $0x50] sm:$0xf0] }
 0x68a   : > { %v6499_v46 = vsel %vm14563_vm11, %v6498_v7, %v6453_v9  ;;  %v6500_v38 = vsel %vm14564_vm4, %v6471_v6, %v6472_v27  ;;  %v10604_v58 = vld [vmem:[#allocation4 + $0x150] sm:$0xf]  ;;  %v9821_v57 = vld [vmem:[#allocation4 + $0x154] sm:$0xf]  ;;  %9843 = vmatmul.msk.bf16.vlgmr.msra.gmra.mxu0 %vm14565_vm0, %v13682_v33  ;;  %v9982_v7 = vor.u32 %v10559_v37, %v9981_v49  ;;  %vm14578_vm1 = vmmov %vm14565_vm0 }
 0x68b   : > { %6536 = vst [vmem:[#allocation4 + $0x74] sm:$0xff] %v6499_v46  ;;  %v6501_v5 = vsel %vm14566_vm6, %v6500_v38, %v13808_v19  ;;  %v9818_v45 = vor.u32 %v10604_v58, %v9815_v21  ;;  %v9822_v39 = vor.u32 %v10613_v30, %v9821_v57  ;;  %v10605_v35 = vld [vmem:[#allocation4 + $0x158] sm:$0xf]  ;;  %v9829_v29 = vld [vmem:[#allocation4 + $0x15c] sm:$0xf]  ;;  %v9986_v21 = vor.u32 %v10551_v43, %v9983_v36  ;;  %vm14579_vm11 = vmmov %vm14565_vm0 }
 0x68c   : > { %6537 = vst [vmem:[#allocation4 + $0x7c] sm:$0xff] %v6501_v5  ;;  %v9823_v62 = vld [vmem:[#allocation4 + $0x19c] sm:$0xf0]  ;;  %v10614_v2 = vld [vmem:[#allocation4 + $0x1a0] sm:$0xf0]  ;;  %vm14580_vm4 = vmmov %vm14565_vm0 }
 0x68d   : > { %7170 = vmatpush.bf16.msra.mxu3 %v9818_v45  ;;  %7183 = vmatpush.bf16.msrb.mxu0 %v9822_v39  ;;  %v9826_v10 = vor.u32 %v10605_v35, %v9823_v62  ;;  %v9831_v3 = vld [vmem:[#allocation4 + $0x1a4] sm:$0xf0]  ;;  %v9917_v19 = vld [vmem:[#allocation4 + $0x90] sm:$0xf]  ;;  %v9919_v46 = vld [vmem:[#allocation4 + $0xd8] sm:$0xf0] }
 0x68e   : > { %v6439_v61 = vpop.permute.xlu1 %6438  ;;  %v9834_v50 = vor.u32 %v10606_v32, %v9831_v3  ;;  %v10535_v58 = vld [vmem:[#allocation4 + $0x94] sm:$0xf]  ;;  %v9853_v57 = vld [vmem:[#allocation4] sm:$0xf]  ;;  %v10519_v5 = vld [vmem:[#allocation4 + $0x4] sm:$0xf] }
 0x68f   : > { %7196 = vmatpush.bf16.msrb.mxu1 %v9826_v10  ;;  %v6464_v22 = vrot.slane %v6439_v61, 4  ;;  %v9922_v30 = vor.u32 %v10535_v58, %v9919_v46  ;;  %v10560_v39 = vld [vmem:[#allocation4 + $0x16c] sm:$0xf0]  ;;  %v9991_v35 = vld [vmem:[#allocation4 + $0x170] sm:$0xf0]  ;;  %vm14581_vm6 = vmmov %vm14565_vm0 }
 0x690   : > { %9844 = vmatmul.msk.bf16.vlgmr.msra.gmra.mxu1 %vm14567_vm3, %v13682_v33  ;;  %v10552_v32 = vld [vmem:[#allocation4 + $0x12c] sm:$0xf]  ;;  %v10005_v37 = vld [vmem:[#allocation4 + $0x138] sm:$0xf]  ;;  %v10562_v36 = vld [vmem:[#allocation4 + $0x17c] sm:$0xf0] }
 0x691   : > { %v6485_v24 = vsel %vm14568_vm14, %v6463_v47, %v6464_v22  ;;  %v6487_v14 = vsel %vm14569_vm13, %v6464_v22, %v6465_v11  ;;  %7171 = vmatpush.bf16.msra.mxu3 %v9754_v53  ;;  %7184 = vmatpush.bf16.msrb.mxu0 %v9758_v54  ;;  %v9830_v11 = vor.u32 %v10614_v2, %v9829_v29  ;;  %v9999_v22 = vld [vmem:[#allocation4 + $0x178] sm:$0xf0]  ;;  %v9989_v54 = vld [vmem:[#allocation4 + $0x128] sm:$0xf]  ;;  %v10544_v29 = vld [vmem:[#allocation4 + $0xdc] sm:$0xf0] }
 0x692   : > { %v6486_v16 = vsel %vm14570_vm7, %v6485_v24, %v6439_v61  ;;  %v6488_v25 = vsel %vm14571_vm15, %v6487_v14, %v13736_v31  ;;  %v10580_v48 = vld [vmem:[#allocation4 + $0x70] sm:$0xf0]  ;;  %v9687_v55 = vld [vmem:[#allocation4 + $0x74] sm:$0xf0]  ;;  %v10590_v31 = vld [vmem:[#allocation4 + $0xd0] sm:$0xf]  ;;  %v9858_v53 = vor.u32 %v10519_v5, %v9855_v4  ;;  %v9990_v3 = vor.u32 %v10560_v39, %v9989_v54 }
 0x693   : > { %6528 = vst [vmem:[#allocation4 + $0x34] sm:$0xff] %v6486_v16  ;;  %7197 = vmatpush.bf16.msrb.mxu1 %v9762_v23  ;;  %v9686_v47 = vor.u32 %v10580_v48, %v9685_v1  ;;  %v9690_v28 = vor.u32 %v10572_v34, %v9687_v55  ;;  %v9770_v15 = vor.u32 %v10590_v31, %v9767_v41  ;;  %v10581_v44 = vld [vmem:[#allocation4 + $0x78] sm:$0xf0]  ;;  %v9695_v60 = vld [vmem:[#allocation4 + $0x7c] sm:$0xf0]  ;;  %vm14582_vm3 = vmmov %vm14565_vm0 }
 0x694   : > { %6529 = vst [vmem:[#allocation4 + $0x3c] sm:$0xff] %v6488_v25  ;;  %v9994_v42 = vor.u32 %v10552_v32, %v9991_v35  ;;  %v9997_v24 = vld [vmem:[#allocation4 + $0x130] sm:$0xf]  ;;  %v10553_v14 = vld [vmem:[#allocation4 + $0x134] sm:$0xf]  ;;  %vm14583_vm14 = vmmov %vm14565_vm0 }
 0x695   : > { %7159 = vmatpush.bf16.msra.mxu2 %v9686_v47  ;;  %7172 = vmatpush.bf16.msra.mxu3 %v9690_v28  ;;  %v9998_v23 = vor.u32 %v10561_v52, %v9997_v24  ;;  %v10002_v1 = vor.u32 %v10553_v14, %v9999_v22  ;;  %v9927_v2 = vld [vmem:[#allocation4 + $0xe0] sm:$0xf0]  ;;  %v10545_v16 = vld [vmem:[#allocation4 + $0xe4] sm:$0xf0]  ;;  %v9935_v25 = vld [vmem:[#allocation4 + $0xe8] sm:$0xf0] }
 0x696   : > { %v6457_v8 = vpop.permute.xlu1 %6456  ;;  %v9925_v48 = vld [vmem:[#allocation4 + $0x98] sm:$0xf]  ;;  %v10536_v34 = vld [vmem:[#allocation4 + $0x9c] sm:$0xf]  ;;  %v9933_v47 = vld [vmem:[#allocation4 + $0xa0] sm:$0xf] }
 0x697   : > { %v6473_v59 = vrot.slane %v6457_v8, 4  ;;  %v9926_v55 = vor.u32 %v10544_v29, %v9925_v48  ;;  %v10537_v28 = vld [vmem:[#allocation4 + $0xa4] sm:$0xf]  ;;  %v9934_v40 = vor.u32 %v10545_v16, %v9933_v47  ;;  %v9869_v31 = vld [vmem:[#allocation4 + $0x10] sm:$0xf]  ;;  %vm14584_vm13 = vmmov %vm14565_vm0 }
 0x698   : > { %9845 = vmatmul.msk.bf16.vlgmr.msra.gmra.mxu2 %vm14572_vm2, %v13682_v33  ;;  %9846 = vmatmul.msk.bf16.vlgmr.msra.gmra.mxu3 %vm14573_vm10, %v13682_v33  ;;  %v9938_v41 = vor.u32 %v10537_v28, %v9935_v25  ;;  %v10521_v49 = vld [vmem:[#allocation4 + $0x14] sm:$0xf]  ;;  %v9951_v5 = vld [vmem:[#allocation4 + $0xf8] sm:$0xf0]  ;;  %v9949_v35 = vld [vmem:[#allocation4 + $0xb0] sm:$0xf] }
 0x699   : > { %7209 = vmatpush.bf16.msrb.mxu2 %v9830_v11  ;;  %7222 = vmatpush.bf16.msrb.mxu3 %v9834_v50  ;;  %v6502_v18 = vsel %vm14574_vm5, %v6472_v27, %v6473_v59  ;;  %6539 = vst.msk [vmem:[#allocation4 + $0x8c] sm:$0xf] %vm14575_vm8, %v6473_v59  ;;  %v10543_v27 = vld [vmem:[#allocation4 + $0xd4] sm:$0xf0]  ;;  %v9930_v50 = vor.u32 %v10536_v34, %v9927_v2  ;;  %v9861_v11 = vld [vmem:[#allocation4 + $0x8] sm:$0xf]  ;;  %vm14585_vm7 = vmmov %vm14565_vm0 }
 0x69a   : > { %v6503_v17 = vsel %vm14576_vm9, %v6502_v18, %v6457_v8  ;;  %6541 = vst.msk [vmem:[#allocation4 + $0x8c] sm:$0xf] %vm14577_vm12, %v14535_v13  ;;  %v9693_v56 = vld [vmem:[#allocation4 + $0x34] sm:$0xf]  ;;  %v10573_v51 = vld [vmem:[#allocation4 + $0x38] sm:$0xf]  ;;  %v9918_v38 = vor.u32 %v10543_v27, %v9917_v19  ;;  %vm14586_vm15 = vmmov %vm14565_vm0 }
 0x69b   : > { %6538 = vst [vmem:[#allocation4 + $0x84] sm:$0xff] %v6503_v17  ;;  %v9694_v9 = vor.u32 %v10581_v44, %v9693_v56  ;;  %v9698_v6 = vor.u32 %v10573_v51, %v9695_v60  ;;  %v10527_v13 = vld [vmem:[#allocation4 + $0x44] sm:$0xf0]  ;;  %v9701_v45 = vld [vmem:[#allocation4 + $0x3c] sm:$0xf]  ;;  %vm14587_vm2 = vmmov %vm14565_vm0 }
 0x69c   : > { %v10574_v62 = vld [vmem:[#allocation4 + $0x40] sm:$0xf]  ;;  %v9854_v10 = vor.u32 %v10527_v13, %v9853_v57  ;;  %v10528_v8 = vld [vmem:[#allocation4 + $0x4c] sm:$0xf0]  ;;  %v10520_v59 = vld [vmem:[#allocation4 + $0xc] sm:$0xf] }
 0x69d   : > { %7210 = vmatpush.bf16.msrb.mxu2 %v9766_v12  ;;  %7223 = vmatpush.bf16.msrb.mxu3 %v9770_v15  ;;  %v10529_v12 = vld [vmem:[#allocation4 + $0x54] sm:$0xf0]  ;;  %v9871_v15 = vld [vmem:[#allocation4 + $0x58] sm:$0xf0]  ;;  %v10007_v18 = vld [vmem:[#allocation4 + $0x180] sm:$0xf0]  ;;  %v9862_v44 = vor.u32 %v10528_v8, %v9861_v11  ;;  %v9866_v60 = vor.u32 %v10520_v59, %v9863_v26 }
 0x69e   : > { %7185 = vmatpush.bf16.msrb.mxu0 %v9694_v9  ;;  %7198 = vmatpush.bf16.msrb.mxu1 %v9698_v6  ;;  %v9870_v43 = vor.u32 %v10529_v12, %v9869_v31  ;;  %v9874_v17 = vor.u32 %v10521_v49, %v9871_v15  ;;  %v10563_v56 = vld [vmem:[#allocation4 + $0x184] sm:$0xf0]  ;;  %v10015_v51 = vld [vmem:[#allocation4 + $0x188] sm:$0xf0]  ;;  %v10006_v9 = vor.u32 %v10562_v36, %v10005_v37  ;;  %v13857_v19 = vld [vmem:[%s14102_s8] sm:$0x1] }
 0x69f   : > { %v10546_v27 = vld [vmem:[#allocation4 + $0xec] sm:$0xf0]  ;;  %v9943_v46 = vld [vmem:[#allocation4 + $0xf0] sm:$0xf0]  ;;  %v9941_v57 = vld [vmem:[#allocation4 + $0xa8] sm:$0xf] }
 0x6a0   : > { %v10538_v13 = vld [vmem:[#allocation4 + $0xac] sm:$0xf]  ;;  %v10522_v4 = vld [vmem:[#allocation4 + $0x1c] sm:$0xf]  ;;  %v10531_v52 = vld [vmem:[#allocation4 + $0x64] sm:$0xf0] }
 0x6a1   : > { %9847 = vmatmul.msk.bf16.vlgmr.msrb.gmra.mxu0 %vm14578_vm1, %v13682_v33  ;;  %9848 = vmatmul.msk.bf16.vlgmr.msrb.gmra.mxu1 %vm14579_vm11, %v13682_v33  ;;  %v9946_v39 = vor.u32 %v10538_v13, %v9943_v46  ;;  %v10523_v22 = vld [vmem:[#allocation4 + $0x24] sm:$0xf]  ;;  %v9885_v24 = vld [vmem:[#allocation4 + $0x20] sm:$0xf]  ;;  %v10556_v29 = vld [vmem:[#allocation4 + $0x14c] sm:$0xf] }
 0x6a2   : > { %7478 = vmatpush.bf16.msra.mxu0 %v9982_v7  ;;  %7491 = vmatpush.bf16.msra.mxu1 %v9986_v21  ;;  %v10582_v20 = vld [vmem:[#allocation4 + $0x80] sm:$0xf0]  ;;  %v9703_v0 = vld [vmem:[#allocation4 + $0x84] sm:$0xf0]  ;;  %v10013_v7 = vld [vmem:[#allocation4 + $0x140] sm:$0xf]  ;;  %v9886_v14 = vor.u32 %v10531_v52, %v9885_v24 }
 0x6a3   : > { %v9702_v61 = vor.u32 %v10582_v20, %v9701_v45  ;;  %v9706_v63 = vor.u32 %v10574_v62, %v9703_v0  ;;  %v10555_v21 = vld [vmem:[#allocation4 + $0x144] sm:$0xf]  ;;  %v9942_v45 = vor.u32 %v10546_v27, %v9941_v57  ;;  %v10539_v20 = vld [vmem:[#allocation4 + $0xb4] sm:$0xf]  ;;  %v10530_v62 = vld [vmem:[#allocation4 + $0x5c] sm:$0xf0] }
 0x6a4   : > { %v10018_v58 = vor.u32 %v10555_v21, %v10015_v51  ;;  %v9879_v0 = vld [vmem:[#allocation4 + $0x60] sm:$0xf0]  ;;  %v10548_v25 = vld [vmem:[#allocation4 + $0xfc] sm:$0xf0]  ;;  %v9957_v34 = vld [vmem:[#allocation4 + $0xb8] sm:$0xf] }
 0x6a5   : > { %7211 = vmatpush.bf16.msrb.mxu2 %v9702_v61  ;;  %7224 = vmatpush.bf16.msrb.mxu3 %v9706_v63  ;;  %v9954_v61 = vor.u32 %v10539_v20, %v9951_v5  ;;  %v9877_v63 = vld [vmem:[#allocation4 + $0x18] sm:$0xf]  ;;  %v9882_v32 = vor.u32 %v10522_v4, %v9879_v0  ;;  %v9959_v48 = vld [vmem:[#allocation4 + $0x100] sm:$0xf0]  ;;  %v10029_v28 = vld [vmem:[#allocation4 + $0x150] sm:$0xf] }
 0x6a6   : > { %7479 = vmatpush.bf16.msra.mxu0 %v9918_v38  ;;  %7492 = vmatpush.bf16.msra.mxu1 %v9922_v30  ;;  %v10014_v38 = vor.u32 %v10563_v56, %v10013_v7  ;;  %v10547_v30 = vld [vmem:[#allocation4 + $0xf4] sm:$0xf0]  ;;  %v9878_v54 = vor.u32 %v10530_v62, %v9877_v63  ;;  %v10557_v11 = vld [vmem:[#allocation4 + $0x154] sm:$0xf]  ;;  %v10031_v26 = vld [vmem:[#allocation4 + $0x198] sm:$0xf0] }
 0x6a7   : > { %v9895_v8 = vld [vmem:[#allocation4 + $0x70] sm:$0xf0]  ;;  %v10565_v59 = vld [vmem:[#allocation4 + $0x194] sm:$0xf0]  ;;  %v10524_v31 = vld [vmem:[#allocation4 + $0x2c] sm:$0xf]  ;;  %v10034_v15 = vor.u32 %v10557_v11, %v10031_v26 }
 0x6a8   : > { %9849 = vmatmul.msk.bf16.vlgmr.msrb.gmra.mxu2 %vm14580_vm4, %v13682_v33  ;;  %9850 = vmatmul.msk.bf16.vlgmr.msrb.gmra.mxu3 %vm14565_vm0, %v13682_v33  ;;  %v10554_v33 = vld [vmem:[#allocation4 + $0x13c] sm:$0xf]  ;;  %v10030_v12 = vor.u32 %v10565_v59, %v10029_v28  ;;  %v9898_v36 = vor.u32 %v10524_v31, %v9895_v8  ;;  %v10525_v56 = vld [vmem:[#allocation4 + $0x34] sm:$0xf]  ;;  %v10037_v51 = vld [vmem:[#allocation4 + $0x158] sm:$0xf] }
 0x6a9   : > { %7504 = vmatpush.bf16.msra.mxu2 %v9990_v3  ;;  %7517 = vmatpush.bf16.msra.mxu3 %v9994_v42  ;;  %v10010_v6 = vor.u32 %v10554_v33, %v10007_v18  ;;  %v10564_v3 = vld [vmem:[#allocation4 + $0x18c] sm:$0xf0]  ;;  %v10023_v42 = vld [vmem:[#allocation4 + $0x190] sm:$0xf0]  ;;  %v10549_v33 = vld [vmem:[#allocation4 + $0x104] sm:$0xf0] }
 0x6aa   : > { %7480 = vmatpush.bf16.msra.mxu0 %v9854_v10  ;;  %7493 = vmatpush.bf16.msra.mxu1 %v9858_v53  ;;  %v9950_v10 = vor.u32 %v10547_v30, %v9949_v35  ;;  %v9887_v53 = vld [vmem:[#allocation4 + $0x68] sm:$0xf0]  ;;  %v10026_v16 = vor.u32 %v10556_v29, %v10023_v42  ;;  %v10039_v27 = vld [vmem:[#allocation4 + $0x1a0] sm:$0xf0]  ;;  %v9901_v7 = vld [vmem:[#allocation4 + $0x30] sm:$0xf] }
 0x6ab   : > { %v9967_v18 = vld [vmem:[#allocation4 + $0x108] sm:$0xf0]  ;;  %v9903_v21 = vld [vmem:[#allocation4 + $0x78] sm:$0xf0]  ;;  %vm14588_vm10 = vmmov %vm14565_vm0 }
 0x6ac   : > { %v10550_v13 = vld [vmem:[#allocation4 + $0x10c] sm:$0xf0]  ;;  %v9975_v30 = vld [vmem:[#allocation4 + $0x110] sm:$0xf0]  ;;  %v9973_v5 = vld [vmem:[#allocation4 + $0xc8] sm:$0xf] }
 0x6ad   : > { %7505 = vmatpush.bf16.msra.mxu2 %v9926_v55  ;;  %7518 = vmatpush.bf16.msra.mxu3 %v9930_v50  ;;  %v10540_v55 = vld [vmem:[#allocation4 + $0xbc] sm:$0xf]  ;;  %v9958_v50 = vor.u32 %v10548_v25, %v9957_v34  ;;  %v10655_v20 = vld [vmem:[#allocation4 + $0x16c] sm:$0xf0]  ;;  %v10192_v62 = vld [vmem:[#allocation4 + $0x170] sm:$0xf0] }
 0x6ae   : > { %7530 = vmatpush.bf16.msrb.mxu0 %v9998_v23  ;;  %7543 = vmatpush.bf16.msrb.mxu1 %v10002_v1  ;;  %v9890_v23 = vor.u32 %v10523_v22, %v9887_v53  ;;  %v10021_v1 = vld [vmem:[#allocation4 + $0x148] sm:$0xf]  ;;  %v9962_v47 = vor.u32 %v10540_v55, %v9959_v48  ;;  %v9909_v0 = vld [vmem:[#allocation4 + $0x38] sm:$0xf]  ;;  %v10647_v63 = vld [vmem:[#allocation4 + $0x12c] sm:$0xf] }
 0x6af   : > { %v10022_v2 = vor.u32 %v10564_v3, %v10021_v1  ;;  %v10534_v4 = vld [vmem:[#allocation4 + $0x7c] sm:$0xf0]  ;;  %v10526_v52 = vld [vmem:[#allocation4 + $0x3c] sm:$0xf]  ;;  %v10195_v53 = vor.u32 %v10647_v63, %v10192_v62  ;;  %vm14589_vm5 = vmmov %vm14565_vm0 }
 0x6b0   : > { %vm14590_vm8 = vmmov %vm14565_vm0  ;;  %v10639_v3 = vld [vmem:[#allocation4 + $0xdc] sm:$0xf0]  ;;  %v10128_v42 = vld [vmem:[#allocation4 + $0xe0] sm:$0xf0] }
 0x6b1   : > { %7506 = vmatpush.bf16.msra.mxu2 %v9862_v44  ;;  %7519 = vmatpush.bf16.msra.mxu3 %v9866_v60  ;;  %v9965_v44 = vld [vmem:[#allocation4 + $0xc0] sm:$0xf]  ;;  %v10541_v60 = vld [vmem:[#allocation4 + $0xc4] sm:$0xf]  ;;  %v10126_v24 = vld [vmem:[#allocation4 + $0x98] sm:$0xf] }
 0x6b2   : > { %7531 = vmatpush.bf16.msrb.mxu0 %v9934_v40  ;;  %7544 = vmatpush.bf16.msrb.mxu1 %v9938_v41  ;;  %v9893_v40 = vld [vmem:[#allocation4 + $0x28] sm:$0xf]  ;;  %v10532_v41 = vld [vmem:[#allocation4 + $0x6c] sm:$0xf0]  ;;  %v9966_v49 = vor.u32 %v10549_v33, %v9965_v44  ;;  %v10656_v25 = vld [vmem:[#allocation4 + $0x174] sm:$0xf0] }
 0x6b3   : > { %10043 = vmatmul.msk.bf16.vlgmr.msra.gmra.mxu0 %vm14581_vm6, %v13857_v19  ;;  %10044 = vmatmul.msk.bf16.vlgmr.msra.gmra.mxu1 %vm14582_vm3, %v13857_v19  ;;  %v9894_v37 = vor.u32 %v10532_v41, %v9893_v40  ;;  %v10062_v29 = vld [vmem:[#allocation4 + $0x8] sm:$0xf]  ;;  %v10200_v48 = vld [vmem:[#allocation4 + $0x178] sm:$0xf0]  ;;  %v10623_v34 = vld [vmem:[#allocation4 + $0x4c] sm:$0xf0] }
 0x6b4   : > { %v10063_v55 = vor.u32 %v10623_v34, %v10062_v29  ;;  %v10648_v28 = vld [vmem:[#allocation4 + $0x134] sm:$0xf]  ;;  %vm14591_vm9 = vmmov %vm14565_vm0  ;;  %v10640_v41 = vld [vmem:[#allocation4 + $0xe4] sm:$0xf0] }
 0x6b5   : > { %7556 = vmatpush.bf16.msrb.mxu2 %v10006_v9  ;;  %7569 = vmatpush.bf16.msrb.mxu3 %v10010_v6  ;;  %v10566_v9 = vld [vmem:[#allocation4 + $0x19c] sm:$0xf0]  ;;  %v10558_v6 = vld [vmem:[#allocation4 + $0x15c] sm:$0xf]  ;;  %vm14592_vm12 = vmmov %vm14565_vm0  ;;  %v10203_v40 = vor.u32 %v10648_v28, %v10200_v48 }
 0x6b6   : > { %7532 = vmatpush.bf16.msrb.mxu0 %v9870_v43  ;;  %7545 = vmatpush.bf16.msrb.mxu1 %v9874_v17  ;;  %v9970_v43 = vor.u32 %v10541_v60, %v9967_v18  ;;  %v10533_v17 = vld [vmem:[#allocation4 + $0x74] sm:$0xf0]  ;;  %v10042_v57 = vor.u32 %v10558_v6, %v10039_v27  ;;  %v10136_v8 = vld [vmem:[#allocation4 + $0xe8] sm:$0xf0]  ;;  %v10134_v26 = vld [vmem:[#allocation4 + $0xa0] sm:$0xf] }
 0x6b7   : > { %v9902_v46 = vor.u32 %v10533_v17, %v9901_v7  ;;  %v10632_v31 = vld [vmem:[#allocation4 + $0xa4] sm:$0xf]  ;;  %v10649_v33 = vld [vmem:[#allocation4 + $0x13c] sm:$0xf]  ;;  %v10070_v44 = vld [vmem:[#allocation4 + $0x10] sm:$0xf] }
 0x6b8   : > { %10045 = vmatmul.msk.bf16.vlgmr.msra.gmra.mxu2 %vm14583_vm14, %v13857_v19  ;;  %10046 = vmatmul.msk.bf16.vlgmr.msra.gmra.mxu3 %vm14584_vm13, %v13857_v19  ;;  %v10208_v18 = vld [vmem:[#allocation4 + $0x180] sm:$0xf0]  ;;  %v10624_v60 = vld [vmem:[#allocation4 + $0x54] sm:$0xf0]  ;;  %vm14593_vm1 = vmmov %vm14565_vm0 }
 0x6b9   : > { %7557 = vmatpush.bf16.msrb.mxu2 %v9942_v45  ;;  %7570 = vmatpush.bf16.msrb.mxu3 %v9946_v39  ;;  %v10542_v45 = vld [vmem:[#allocation4 + $0xcc] sm:$0xf]  ;;  %v9974_v39 = vor.u32 %v10550_v13, %v9973_v5  ;;  %vm14594_vm11 = vmmov %vm14565_vm0  ;;  %v10641_v6 = vld [vmem:[#allocation4 + $0xec] sm:$0xf0] }
 0x6ba   : > { %7582 = vmatpush.bf16.msra.mxu0 %v10014_v38  ;;  %7595 = vmatpush.bf16.msra.mxu1 %v10018_v58  ;;  %v9906_v38 = vor.u32 %v10525_v56, %v9903_v21  ;;  %v10038_v58 = vor.u32 %v10566_v9, %v10037_v51  ;;  %v9978_v35 = vor.u32 %v10542_v45, %v9975_v30  ;;  %v10144_v27 = vld [vmem:[#allocation4 + $0xf0] sm:$0xf0]  ;;  %v10142_v7 = vld [vmem:[#allocation4 + $0xa8] sm:$0xf]  ;;  %v10633_v21 = vld [vmem:[#allocation4 + $0xac] sm:$0xf] }
 0x6bb   : > { %v10211_v56 = vor.u32 %v10649_v33, %v10208_v18  ;;  %v10071_v51 = vor.u32 %v10624_v60, %v10070_v44  ;;  %v10080_v13 = vld [vmem:[#allocation4 + $0x60] sm:$0xf0]  ;;  %v10658_v30 = vld [vmem:[#allocation4 + $0x184] sm:$0xf0]  ;;  %v10216_v5 = vld [vmem:[#allocation4 + $0x188] sm:$0xf0] }
 0x6bc   : > { %v10078_v45 = vld [vmem:[#allocation4 + $0x18] sm:$0xf]  ;;  %v10214_v62 = vld [vmem:[#allocation4 + $0x140] sm:$0xf]  ;;  %vm14595_vm4 = vmmov %vm14565_vm0 }
 0x6bd   : > { %7558 = vmatpush.bf16.msrb.mxu2 %v9878_v54  ;;  %7571 = vmatpush.bf16.msrb.mxu3 %v9882_v32  ;;  %v9910_v54 = vor.u32 %v10534_v4, %v9909_v0  ;;  %v10650_v0 = vld [vmem:[#allocation4 + $0x144] sm:$0xf]  ;;  %v10642_v63 = vld [vmem:[#allocation4 + $0xf4] sm:$0xf0]  ;;  %v10152_v4 = vld [vmem:[#allocation4 + $0xf8] sm:$0xf0] }
 0x6be   : > { %7583 = vmatpush.bf16.msra.mxu0 %v9950_v10  ;;  %7596 = vmatpush.bf16.msra.mxu1 %v9954_v61  ;;  %v9911_v10 = vld [vmem:[#allocation4 + $0x80] sm:$0xf0]  ;;  %v10190_v61 = vld [vmem:[#allocation4 + $0x128] sm:$0xf]  ;;  %v10651_v29 = vld [vmem:[#allocation4 + $0x14c] sm:$0xf] }
 0x6bf   : > { %v10191_v22 = vor.u32 %v10655_v20, %v10190_v61  ;;  %v9914_v32 = vor.u32 %v10526_v52, %v9911_v10  ;;  %v10215_v10 = vor.u32 %v10658_v30, %v10214_v62  ;;  %v10219_v61 = vor.u32 %v10650_v0, %v10216_v5  ;;  %v10150_v52 = vld [vmem:[#allocation4 + $0xb0] sm:$0xf]  ;;  %vm14596_vm6 = vmmov %vm14565_vm0  ;;  %v10158_v28 = vld [vmem:[#allocation4 + $0xb8] sm:$0xf] }
 0x6c0   : > { %vm14597_vm3 = vmmov %vm14565_vm0  ;;  %v10652_v33 = vld [vmem:[#allocation4 + $0x154] sm:$0xf]  ;;  %v10619_v18 = vld [vmem:[#allocation4 + $0x2c] sm:$0xf] }
 0x6c1   : > { %7608 = vmatpush.bf16.msra.mxu2 %v10022_v2  ;;  %7621 = vmatpush.bf16.msra.mxu3 %v10026_v16  ;;  %v10615_v2 = vld [vmem:[#allocation4 + $0xc] sm:$0xf]  ;;  %v10064_v16 = vld [vmem:[#allocation4 + $0x50] sm:$0xf0]  ;;  %vm14598_vm14 = vmmov %vm14565_vm0 }
 0x6c2   : > { %7584 = vmatpush.bf16.msra.mxu0 %v9886_v14  ;;  %7597 = vmatpush.bf16.msra.mxu1 %v9890_v23  ;;  %v10631_v14 = vld [vmem:[#allocation4 + $0x9c] sm:$0xf]  ;;  %v10127_v23 = vor.u32 %v10639_v3, %v10126_v24  ;;  %v10626_v3 = vld [vmem:[#allocation4 + $0x64] sm:$0xf0]  ;;  %v10224_v24 = vld [vmem:[#allocation4 + $0x190] sm:$0xf0] }
 0x6c3   : > { %10047 = vmatmul.msk.bf16.vlgmr.msrb.gmra.mxu0 %vm14585_vm7, %v13857_v19  ;;  %10048 = vmatmul.msk.bf16.vlgmr.msrb.gmra.mxu1 %vm14586_vm15, %v13857_v19  ;;  %v10131_v1 = vor.u32 %v10631_v14, %v10128_v42  ;;  %v10659_v42 = vld [vmem:[#allocation4 + $0x18c] sm:$0xf0]  ;;  %v10618_v14 = vld [vmem:[#allocation4 + $0x24] sm:$0xf]  ;;  %vm14599_vm13 = vmmov %vm14565_vm0 }
 0x6c4   : > { %v10661_v30 = vld [vmem:[#allocation4 + $0x19c] sm:$0xf0]  ;;  %v10653_v5 = vld [vmem:[#allocation4 + $0x15c] sm:$0xf]  ;;  %vm14600_vm7 = vmmov %vm14565_vm0 }
 0x6c5   : > { %7609 = vmatpush.bf16.msra.mxu2 %v9958_v50  ;;  %7622 = vmatpush.bf16.msra.mxu3 %v9962_v47  ;;  %v10067_v50 = vor.u32 %v10615_v2, %v10064_v16  ;;  %v10198_v47 = vld [vmem:[#allocation4 + $0x130] sm:$0xf]  ;;  %v10086_v2 = vld [vmem:[#allocation4 + $0x20] sm:$0xf]  ;;  %v10104_v62 = vld [vmem:[#allocation4 + $0x78] sm:$0xf0] }
 0x6c6   : > { %7634 = vmatpush.bf16.msrb.mxu0 %v10030_v12  ;;  %7647 = vmatpush.bf16.msrb.mxu1 %v10034_v15  ;;  %v10199_v11 = vor.u32 %v10656_v25, %v10198_v47  ;;  %v10206_v12 = vld [vmem:[#allocation4 + $0x138] sm:$0xf]  ;;  %v10135_v15 = vor.u32 %v10640_v41, %v10134_v26  ;;  %v10227_v25 = vor.u32 %v10651_v29, %v10224_v24  ;;  %vm14601_vm15 = vmmov %vm14565_vm0  ;;  %v10248_v29 = vld [vmem:[#allocation4 + $0x1a8] sm:$0xf0] }
 0x6c7   : > { %v10087_v48 = vor.u32 %v10626_v3, %v10086_v2  ;;  %v10246_v3 = vld [vmem:[#allocation4 + $0x160] sm:$0xf]  ;;  %v10110_v2 = vld [vmem:[#allocation4 + $0x38] sm:$0xf] }
 0x6c8   : > { %10049 = vmatmul.msk.bf16.vlgmr.msrb.gmra.mxu2 %vm14587_vm2, %v13857_v19  ;;  %10050 = vmatmul.msk.bf16.vlgmr.msrb.gmra.mxu3 %vm14588_vm10, %v13857_v19  ;;  %vm14602_vm2 = vmmov %vm14565_vm0 }
 0x6c9   : > { %7610 = vmatpush.bf16.msra.mxu2 %v9894_v37  ;;  %7623 = vmatpush.bf16.msra.mxu3 %v9898_v36  ;;  %v10139_v37 = vor.u32 %v10632_v31, %v10136_v8  ;;  %v10657_v36 = vld [vmem:[#allocation4 + $0x17c] sm:$0xf0]  ;;  %vm14603_vm10 = vmmov %vm14565_vm0 }
 0x6ca   : > { %7635 = vmatpush.bf16.msrb.mxu0 %v9966_v49  ;;  %7648 = vmatpush.bf16.msrb.mxu1 %v9970_v43  ;;  %v10072_v49 = vld [vmem:[#allocation4 + $0x58] sm:$0xf0]  ;;  %v10616_v43 = vld [vmem:[#allocation4 + $0x14] sm:$0xf]  ;;  %v10207_v17 = vor.u32 %v10657_v36, %v10206_v12  ;;  %v10094_v12 = vld [vmem:[#allocation4 + $0x28] sm:$0xf] }
 0x6cb   : > { %v10075_v9 = vor.u32 %v10616_v43, %v10072_v49  ;;  %v10230_v36 = vld [vmem:[#allocation4 + $0x150] sm:$0xf]  ;;  %v10660_v49 = vld [vmem:[#allocation4 + $0x194] sm:$0xf0]  ;;  %v10232_v43 = vld [vmem:[#allocation4 + $0x198] sm:$0xf0] }
 0x6cd   : > { %7660 = vmatpush.bf16.msrb.mxu2 %v10038_v58  ;;  %7673 = vmatpush.bf16.msrb.mxu3 %v10042_v57  ;;  %v10147_v58 = vor.u32 %v10633_v21, %v10144_v27  ;;  %v10625_v57 = vld [vmem:[#allocation4 + $0x5c] sm:$0xf0]  ;;  %v10636_v21 = vld [vmem:[#allocation4 + $0xc4] sm:$0xf] }
 0x6ce   : > { %7636 = vmatpush.bf16.msrb.mxu0 %v9902_v46  ;;  %7649 = vmatpush.bf16.msrb.mxu1 %v9906_v38  ;;  %v10143_v38 = vor.u32 %v10641_v6, %v10142_v7  ;;  %v10166_v7 = vld [vmem:[#allocation4 + $0xc0] sm:$0xf] }
 0x6d1   : > { %7661 = vmatpush.bf16.msrb.mxu2 %v9974_v39  ;;  %7674 = vmatpush.bf16.msrb.mxu3 %v9978_v35  ;;  %v10617_v39 = vld [vmem:[#allocation4 + $0x1c] sm:$0xf]  ;;  %v10079_v35 = vor.u32 %v10625_v57, %v10078_v45  ;;  %v10240_v45 = vld [vmem:[#allocation4 + $0x1a0] sm:$0xf0] }
 0x6d2   : > { %v10083_v20 = vor.u32 %v10617_v39, %v10080_v13  ;;  %v10628_v39 = vld [vmem:[#allocation4 + $0x74] sm:$0xf0] }
 0x6d3   : > { %10051 = vmatmul.msk.bf16.vlgmr.msra.gmra.mxu0 %vm14589_vm5, %v13857_v19  ;;  %10052 = vmatmul.msk.bf16.vlgmr.msra.gmra.mxu1 %vm14590_vm8, %v13857_v19  ;;  %vm14604_vm5 = vmmov %vm14565_vm0 }
 0x6d4   : > { %7979 = vmatpush.bf16.msra.mxu0 %v10191_v22  ;;  %7992 = vmatpush.bf16.msra.mxu1 %v10195_v53  ;;  %v10634_v22 = vld [vmem:[#allocation4 + $0xb4] sm:$0xf]  ;;  %vm14605_vm8 = vmmov %vm14565_vm0 }
 0x6d5   : > { %7662 = vmatpush.bf16.msrb.mxu2 %v9910_v54  ;;  %7675 = vmatpush.bf16.msrb.mxu3 %v9914_v32  ;;  %v10151_v54 = vor.u32 %v10642_v63, %v10150_v52  ;;  %v10155_v32 = vor.u32 %v10634_v22, %v10152_v4  ;;  %v10645_v4 = vld [vmem:[#allocation4 + $0x10c] sm:$0xf0]  ;;  %v10176_v52 = vld [vmem:[#allocation4 + $0x110] sm:$0xf0] }
 0x6d8   : > { %7980 = vmatpush.bf16.msra.mxu0 %v10127_v23  ;;  %7993 = vmatpush.bf16.msra.mxu1 %v10131_v1  ;;  %v10088_v23 = vld [vmem:[#allocation4 + $0x68] sm:$0xf0]  ;;  %v10222_v1 = vld [vmem:[#allocation4 + $0x148] sm:$0xf] }
 0x6d9   : > { %10053 = vmatmul.msk.bf16.vlgmr.msra.gmra.mxu2 %vm14591_vm9, %v13857_v19  ;;  %10054 = vmatmul.msk.bf16.vlgmr.msra.gmra.mxu3 %vm14592_vm12, %v13857_v19  ;;  %v10223_v16 = vor.u32 %v10659_v42, %v10222_v1  ;;  %v10091_v34 = vor.u32 %v10618_v14, %v10088_v23  ;;  %v10662_v23 = vld [vmem:[#allocation4 + $0x1a4] sm:$0xf0]  ;;  %v10654_v1 = vld [vmem:[#allocation4 + $0x164] sm:$0xf]  ;;  %vm14606_vm9 = vmmov %vm14565_vm0 }
 0x6da   : > { %8005 = vmatpush.bf16.msra.mxu2 %v10199_v11  ;;  %8018 = vmatpush.bf16.msra.mxu3 %v10203_v40  ;;  %v10635_v11 = vld [vmem:[#allocation4 + $0xbc] sm:$0xf]  ;;  %vm14607_vm12 = vmmov %vm14565_vm0 }
 0x6db   : > { %v13883_v59 = vpop.f32.mrf.mxu0 }
 0x6dc   : > { %7981 = vmatpush.bf16.msra.mxu0 %v10063_v55  ;;  %7994 = vmatpush.bf16.msra.mxu1 %v10067_v50  ;;  %v10643_v55 = vld [vmem:[#allocation4 + $0xfc] sm:$0xf0]  ;;  %v10160_v50 = vld [vmem:[#allocation4 + $0x100] sm:$0xf0] }
 0x6dd   : > { %v10159_v41 = vor.u32 %v10643_v55, %v10158_v28  ;;  %v10163_v8 = vor.u32 %v10635_v11, %v10160_v50  ;;  %v10247_v55 = vor.u32 %v10662_v23, %v10246_v3  ;;  %v10251_v50 = vor.u32 %v10654_v1, %v10248_v29 }
 0x6de   : > { %8006 = vmatpush.bf16.msra.mxu2 %v10135_v15  ;;  %8019 = vmatpush.bf16.msra.mxu3 %v10139_v37  ;;  %v10627_v15 = vld [vmem:[#allocation4 + $0x6c] sm:$0xf0]  ;;  %v10096_v37 = vld [vmem:[#allocation4 + $0x70] sm:$0xf0] }
 0x6df   : > { %v10095_v44 = vor.u32 %v10627_v15, %v10094_v12  ;;  %v10099_v60 = vor.u32 %v10619_v18, %v10096_v37  ;;  %v10646_v12 = vld [vmem:[#allocation4 + $0x114] sm:$0xf0]  ;;  %v10622_v18 = vld [vmem:[#allocation4 + $0x44] sm:$0xf] }
 0x6e2   : > { %8007 = vmatpush.bf16.msra.mxu2 %v10071_v51  ;;  %8020 = vmatpush.bf16.msra.mxu3 %v10075_v9  ;;  %v10644_v51 = vld [vmem:[#allocation4 + $0x104] sm:$0xf0]  ;;  %v10168_v9 = vld [vmem:[#allocation4 + $0x108] sm:$0xf0] }
 0x6e3   : > { %10055 = vmatmul.msk.bf16.vlgmr.msrb.gmra.mxu0 %vm14593_vm1, %v13857_v19  ;;  %10056 = vmatmul.msk.bf16.vlgmr.msrb.gmra.mxu1 %vm14594_vm11, %v13857_v19  ;;  %v7033_v46 = vpop.f32.mrf.mxu0  ;;  %v10167_v57 = vor.u32 %v10644_v51, %v10166_v7  ;;  %v10171_v13 = vor.u32 %v10636_v21, %v10168_v9  ;;  %vm14608_vm1 = vmmov %vm14565_vm0 }
 0x6e4   : > { %8031 = vmatpush.bf16.msrb.mxu0 %v10207_v17  ;;  %8044 = vmatpush.bf16.msrb.mxu1 %v10211_v56  ;;  %v10231_v17 = vor.u32 %v10660_v49, %v10230_v36  ;;  %v10235_v56 = vor.u32 %v10652_v33, %v10232_v43  ;;  %v10182_v36 = vld [vmem:[#allocation4 + $0xd0] sm:$0xf]  ;;  %v10630_v49 = vld [vmem:[#allocation4 + $0x84] sm:$0xf0]  ;;  %vm14609_vm11 = vmmov %vm14565_vm0 }
 0x6e8   : > { %8032 = vmatpush.bf16.msrb.mxu0 %v10143_v38  ;;  %8045 = vmatpush.bf16.msrb.mxu1 %v10147_v58  ;;  %v10238_v38 = vld [vmem:[#allocation4 + $0x158] sm:$0xf] }
 0x6e9   : > { %10057 = vmatmul.msk.bf16.vlgmr.msrb.gmra.mxu2 %vm14595_vm4, %v13857_v19  ;;  %10058 = vmatmul.msk.bf16.vlgmr.msrb.gmra.mxu3 %vm14565_vm0, %v13857_v19  ;;  %v13898_v19 = vld [vmem:[%s14102_s8 + $0x2] sm:$0x1]  ;;  %v10239_v0 = vor.u32 %v10661_v30, %v10238_v38  ;;  %vm14610_vm4 = vmmov %vm14565_vm0 }
 0x6ea   : > { %8057 = vmatpush.bf16.msrb.mxu2 %v10215_v10  ;;  %8070 = vmatpush.bf16.msrb.mxu3 %v10219_v61  ;;  %v10243_v10 = vor.u32 %v10653_v5, %v10240_v45 }
 0x6ec   : > { %8033 = vmatpush.bf16.msrb.mxu0 %v10079_v35  ;;  %8046 = vmatpush.bf16.msrb.mxu1 %v10083_v20  ;;  %v10620_v35 = vld [vmem:[#allocation4 + $0x34] sm:$0xf]  ;;  %v10102_v20 = vld [vmem:[#allocation4 + $0x30] sm:$0xf] }
 0x6ed   : > { %v13893_v53 = vpop.f32.mrf.mxu1  ;;  %v10103_v61 = vor.u32 %v10628_v39, %v10102_v20  ;;  %v10107_v63 = vor.u32 %v10620_v35, %v10104_v62 }
 0x6ee   : > { %8058 = vmatpush.bf16.msrb.mxu2 %v10151_v54  ;;  %8071 = vmatpush.bf16.msrb.mxu3 %v10155_v32  ;;  %v10174_v54 = vld [vmem:[#allocation4 + $0xc8] sm:$0xf]  ;;  %v10637_v32 = vld [vmem:[#allocation4 + $0xcc] sm:$0xf] }
 0x6ef   : > { %v10175_v42 = vor.u32 %v10645_v4, %v10174_v54  ;;  %v10179_v24 = vor.u32 %v10637_v32, %v10176_v52 }
 0x6f2   : > { %8059 = vmatpush.bf16.msrb.mxu2 %v10087_v48  ;;  %8072 = vmatpush.bf16.msrb.mxu3 %v10091_v34  ;;  %v10629_v48 = vld [vmem:[#allocation4 + $0x7c] sm:$0xf0]  ;;  %v10621_v34 = vld [vmem:[#allocation4 + $0x3c] sm:$0xf] }
 0x6f3   : > { %10252 = vmatmul.msk.bf16.vlgmr.msra.gmra.mxu0 %vm14596_vm6, %v13898_v19  ;;  %10253 = vmatmul.msk.bf16.vlgmr.msra.gmra.mxu1 %vm14597_vm3, %v13898_v19  ;;  %v13904_v47 = vpop.f32.mrf.mxu2  ;;  %v10111_v28 = vor.u32 %v10629_v48, %v10110_v2 }
 0x6f4   : > { %8083 = vmatpush.bf16.msra.mxu0 %v10223_v16  ;;  %8096 = vmatpush.bf16.msra.mxu1 %v10227_v25  ;;  %v10112_v16 = vld [vmem:[#allocation4 + $0x80] sm:$0xf0] }
 0x6f5   : > { %v13906_v40 = vpop.f32.mrf.mxu3  ;;  %v7046_v26 = vpop.f32.mrf.mxu1  ;;  %v10115_v11 = vor.u32 %v10621_v34, %v10112_v16 }
 0x6f7   : > { %v13908_v31 = vpop.f32.mrf.mxu0 }
 0x6f8   : > { %8084 = vmatpush.bf16.msra.mxu0 %v10159_v41  ;;  %8097 = vmatpush.bf16.msra.mxu1 %v10163_v8  ;;  %v10638_v41 = vld [vmem:[#allocation4 + $0xd4] sm:$0xf]  ;;  %v10184_v8 = vld [vmem:[#allocation4 + $0x118] sm:$0xf0] }
 0x6f9   : > { %10254 = vmatmul.msk.bf16.vlgmr.msra.gmra.mxu2 %vm14598_vm14, %v13898_v19  ;;  %10255 = vmatmul.msk.bf16.vlgmr.msra.gmra.mxu3 %vm14599_vm13, %v13898_v19  ;;  %v10187_v37 = vor.u32 %v10638_v41, %v10184_v8 }
 0x6fa   : > { %8109 = vmatpush.bf16.msra.mxu2 %v10231_v17  ;;  %8122 = vmatpush.bf16.msra.mxu3 %v10235_v56  ;;  %v10118_v56 = vld [vmem:[#allocation4 + $0x40] sm:$0xf] }
 0x6fb   : > { %v7059_v6 = vpop.f32.mrf.mxu2  ;;  %v10119_v51 = vor.u32 %v10630_v49, %v10118_v56 }
 0x6fc   : > { %8085 = vmatpush.bf16.msra.mxu0 %v10095_v44  ;;  %8098 = vmatpush.bf16.msra.mxu1 %v10099_v60  ;;  %v10120_v44 = vld [vmem:[#allocation4 + $0x88] sm:$0xf0]  ;;  %v10183_v60 = vor.u32 %v10646_v12, %v10182_v36 }
 0x6fd   : > { %v7072_v27 = vpop.f32.mrf.mxu3  ;;  %v13914_v46 = vpop.f32.mrf.mxu1  ;;  %v10123_v17 = vor.u32 %v10622_v18, %v10120_v44 }
 0x6fe   : > { %8110 = vmatpush.bf16.msra.mxu2 %v10167_v57  ;;  %8123 = vmatpush.bf16.msra.mxu3 %v10171_v13 }
 0x6ff   : > { %v7085_v58 = vpop.f32.mrf.mxu0 }
 0x702   : > { %8111 = vmatpush.bf16.msra.mxu2 %v10103_v61  ;;  %8124 = vmatpush.bf16.msra.mxu3 %v10107_v63 }
 0x703   : > { %10256 = vmatmul.msk.bf16.vlgmr.msrb.gmra.mxu0 %vm14600_vm7, %v13898_v19  ;;  %10257 = vmatmul.msk.bf16.vlgmr.msrb.gmra.mxu1 %vm14601_vm15, %v13898_v19  ;;  %v13920_v22 = vpop.f32.mrf.mxu2 }
 0x704   : > { %8135 = vmatpush.bf16.msrb.mxu0 %v10239_v0  ;;  %8148 = vmatpush.bf16.msrb.mxu1 %v10243_v10 }
 0x705   : > { %v7098_v14 = vpop.f32.mrf.mxu1 }
 0x707   : > { %v13922_v25 = vpop.f32.mrf.mxu0 }
 0x708   : > { %8136 = vmatpush.bf16.msrb.mxu0 %v10175_v42  ;;  %8149 = vmatpush.bf16.msrb.mxu1 %v10179_v24 }
 0x709   : > { %10258 = vmatmul.msk.bf16.vlgmr.msrb.gmra.mxu2 %vm14602_vm2, %v13898_v19  ;;  %10259 = vmatmul.msk.bf16.vlgmr.msrb.gmra.mxu3 %vm14603_vm10, %v13898_v19 }
 0x70a   : > { %8161 = vmatpush.bf16.msrb.mxu2 %v10247_v55  ;;  %8174 = vmatpush.bf16.msrb.mxu3 %v10251_v50 }
 0x70b   : > { %v13928_v26 = vpop.f32.mrf.mxu3  ;;  %v7111_v15 = vpop.f32.mrf.mxu2 }
 0x70c   : > { %8137 = vmatpush.bf16.msrb.mxu0 %v10111_v28  ;;  %8150 = vmatpush.bf16.msrb.mxu1 %v10115_v11  ;;  %v8202_v15 = vpop.permute.xlu2 %8201 }
 0x70d   : > { %v7148_v33 = vpop.f32.mrf.mxu1  ;;  %v13980_v49 = vperm.slane %v8202_v15, 0 }
 0x70e   : > { %8162 = vmatpush.bf16.msrb.mxu2 %v10183_v60  ;;  %8175 = vmatpush.bf16.msrb.mxu3 %v10187_v37 }
 0x70f   : > { %v7137_v43 = vpop.f32.mrf.mxu0 }
 0x712   : > { %8163 = vmatpush.bf16.msrb.mxu2 %v10119_v51  ;;  %8176 = vmatpush.bf16.msrb.mxu3 %v10123_v17 }
 0x713   : > { %10260 = vmatmul.msk.bf16.vlgmr.msra.gmra.mxu0 %vm14604_vm5, %v13898_v19  ;;  %10261 = vmatmul.msk.bf16.vlgmr.msra.gmra.mxu1 %vm14605_vm8, %v13898_v19  ;;  %v7124_v9 = vpop.f32.mrf.mxu3 }
 0x715   : > { %v7150_v6 = vpop.f32.mrf.mxu1 }
 0x719   : > { %10262 = vmatmul.msk.bf16.vlgmr.msra.gmra.mxu2 %vm14606_vm9, %v13898_v19  ;;  %10263 = vmatmul.msk.bf16.vlgmr.msra.gmra.mxu3 %vm14607_vm12, %v13898_v19 }
 0x71b   : > { %v13938_v27 = vpop.f32.mrf.mxu2  ;;  %v13940_v7 = vpop.f32.mrf.mxu3 }
 0x71e   : > { %v13942_v21 = vpop.f32.mrf.mxu0  ;;  %v13944_v38 = vpop.f32.mrf.mxu1 }
 0x723   : > { %10264 = vmatmul.msk.bf16.vlgmr.msrb.gmra.mxu0 %vm14608_vm1, %v13898_v19  ;;  %10265 = vmatmul.msk.bf16.vlgmr.msrb.gmra.mxu1 %vm14609_vm11, %v13898_v19  ;;  %v7163_v58 = vpop.f32.mrf.mxu2  ;;  %v7176_v57 = vpop.f32.mrf.mxu3 }
 0x726   : > { %v7189_v13 = vpop.f32.mrf.mxu0  ;;  %v7202_v30 = vpop.f32.mrf.mxu1 }
 0x727   : > { %v14611_v13 = vld [vmem:[#allocation31_spill] sm:$0xff] }
 0x729   : > { %10266 = vmatmul.msk.bf16.vlgmr.msrb.gmra.mxu2 %vm14610_vm4, %v13898_v19  ;;  %10267 = vmatmul.msk.bf16.vlgmr.msrb.gmra.mxu3 %vm14565_vm0, %v13898_v19 }
 0x72b   : > { %v13954_v5 = vpop.f32.mrf.mxu2  ;;  %v13956_v45 = vpop.f32.mrf.mxu3 }
 0x730   : > { %v7482_v39 = vpop.f32.mrf.mxu0  ;;  %v7495_v35 = vpop.f32.mrf.mxu1 }
 0x731   : > { %v7496_v18 = vadd.f32 %v7495_v35, %v13893_v53 }
 0x733   : > { %v7215_v20 = vpop.f32.mrf.mxu2  ;;  %v7228_v62 = vpop.f32.mrf.mxu3 }
 0x734   : > { %v14612_v20 = vld [vmem:[#allocation32_spill] sm:$0xff] }
 0x738   : > { %v7484_v0 = vpop.f32.mrf.mxu0  ;;  %v7497_v10 = vpop.f32.mrf.mxu1 }
 0x73b   : > { %v7508_v61 = vpop.f32.mrf.mxu2  ;;  %v7521_v63 = vpop.f32.mrf.mxu3 }
 0x740   : > { %v7534_v4 = vpop.f32.mrf.mxu0  ;;  %v7547_v52 = vpop.f32.mrf.mxu1 }
 0x743   : > { %v7510_v54 = vpop.f32.mrf.mxu2  ;;  %v7523_v32 = vpop.f32.mrf.mxu3 }
 0x744   : > { %v7509_v54 = vadd.f32 %v7508_v61, %v13904_v47  ;;  %v7522_v32 = vadd.f32 %v7521_v63, %v13906_v40 }
 0x748   : > { %v7536_v3 = vpop.f32.mrf.mxu0  ;;  %v7549_v42 = vpop.f32.mrf.mxu1 }
 0x74b   : > { %v13958_v24 = vpop.f32.mrf.mxu2  ;;  %v13960_v19 = vpop.f32.mrf.mxu3 }
 0x750   : > { %v13962_v14 = vpop.f32.mrf.mxu0  ;;  %v7599_v23 = vpop.f32.mrf.mxu1 }
 0x751   : > { %v13964_v1 = vadd.f32 %v7599_v23, %v7148_v33  ;;  %v7483_v33 = vadd.f32 %v7482_v39, %v13883_v59  ;;  %v7535_v23 = vadd.f32 %v7534_v4, %v13908_v31  ;;  %v14614_v4 = vld [vmem:[#allocation21_spill] sm:$0xff] }
 0x753   : > { %v7562_v29 = vpop.f32.mrf.mxu2  ;;  %v7575_v2 = vpop.f32.mrf.mxu3 }
 0x754   : > { %v7548_v29 = vadd.f32 %v7547_v52, %v13914_v46 }
 0x758   : > { %v7588_v16 = vpop.f32.mrf.mxu0  ;;  %v7601_v48 = vpop.f32.mrf.mxu1 }
 0x75c   : > { %v13966_v34 = vpop.f32.mrf.mxu2  ;;  %v13968_v55 = vpop.f32.mrf.mxu3 }
 0x760   : > { %v13970_v50 = vpop.f32.mrf.mxu0  ;;  %v13972_v28 = vpop.f32.mrf.mxu1 }
 0x764   : > { %v7614_v11 = vpop.f32.mrf.mxu2  ;;  %v7627_v41 = vpop.f32.mrf.mxu3 }
 0x768   : > { %v7640_v8 = vpop.f32.mrf.mxu0  ;;  %v7653_v12 = vpop.f32.mrf.mxu1 }
 0x76c   : > { %v13974_v37 = vpop.f32.mrf.mxu2  ;;  %v13976_v36 = vpop.f32.mrf.mxu3 }
 0x770   : > { %v7983_v44 = vpop.f32.mrf.mxu0  ;;  %v7996_v60 = vpop.f32.mrf.mxu1 }
 0x771   : > { %v8182_v43 = vadd.f32 %v7983_v44, %v7483_v33  ;;  %v8183_v17 = vadd.f32 %v7996_v60, %v7496_v18  ;;  %v14613_v33 = vld [vmem:[#allocation13_spill] sm:$0xff] }
 0x773   : > { %v8205_v56 = vadd.f32 %v13980_v49, %v8182_v43  ;;  %v8206_v51 = vadd.f32 %v13980_v49, %v8183_v17 }
 0x774   : > { %v7666_v58 = vpop.f32.mrf.mxu2  ;;  %v7679_v57 = vpop.f32.mrf.mxu3 }
 0x775   : > { %v8237_v9 = vrot.slane %v8205_v56, 7  ;;  %v8238_v6 = vrot.slane %v8206_v51, 7  ;;  %v14615_v56 = vld [vmem:[#allocation14_spill] sm:$0xff] }
 0x777   : > { %v8269_v30 = vmul.f32 %v8237_v9, %v14611_v13  ;;  %v8270_v59 = vmul.f32 %v8238_v6, %v14612_v20  ;;  %v14616_v9 = vld [vmem:[#allocation22_spill] sm:$0xff] }
 0x778   : > { %v7985_v39 = vpop.f32.mrf.mxu0  ;;  %v7998_v53 = vpop.f32.mrf.mxu1 }
 0x779   : > { %v8301_v35 = vrot.slane %v8269_v30, 7  ;;  %v8302_v62 = vrot.slane %v8270_v59, 7 }
 0x77b   : > { %v8333_v0 = vadd.f32 %v8301_v35, %v14611_v13  ;;  %v8334_v10 = vadd.f32 %v8302_v62, %v14612_v20  ;;  %v7561_v35 = vadd.f32 %v13958_v24, %v13920_v22  ;;  %v7574_v62 = vadd.f32 %v13960_v19, %v13928_v26 }
 0x77c   : > { %v8009_v3 = vpop.f32.mrf.mxu2  ;;  %v8022_v42 = vpop.f32.mrf.mxu3 }
 0x77d   : > { %8365 = vst [vmem:[#allocation1] sm:$0xff] %v8333_v0  ;;  %v8184_v2 = vadd.f32 %v8009_v3, %v7509_v54  ;;  %v8185_v16 = vadd.f32 %v8022_v42, %v7522_v32  ;;  %v7587_v54 = vadd.f32 %v13962_v14, %v13922_v25  ;;  %v14618_v25 = vld [vmem:[#allocation23_spill] sm:$0xff] }
 0x77e   : > { %8366 = vst [vmem:[#allocation1 + $0x9] sm:$0xff] %v8334_v10 }
 0x77f   : > { %v8207_v41 = vadd.f32 %v13980_v49, %v8184_v2  ;;  %v8208_v8 = vadd.f32 %v13980_v49, %v8185_v16 }
 0x780   : > { %v8035_v48 = vpop.f32.mrf.mxu0  ;;  %v8048_v11 = vpop.f32.mrf.mxu1 }
 0x781   : > { %v8186_v12 = vadd.f32 %v8035_v48, %v7535_v23  ;;  %v8187_v47 = vadd.f32 %v8048_v11, %v7548_v29  ;;  %v8239_v61 = vrot.slane %v8207_v41, 7  ;;  %v8240_v40 = vrot.slane %v8208_v8, 7  ;;  %v14617_v11 = vld [vmem:[#allocation15_spill] sm:$0xff] }
 0x783   : > { %v8209_v63 = vadd.f32 %v13980_v49, %v8186_v12  ;;  %v8210_v15 = vadd.f32 %v13980_v49, %v8187_v47  ;;  %v8271_v31 = vmul.f32 %v8239_v61, %v14613_v33  ;;  %v8272_v46 = vmul.f32 %v8240_v40, %v14614_v4 }
 0x784   : > { %v8011_v44 = vpop.f32.mrf.mxu2  ;;  %v8024_v60 = vpop.f32.mrf.mxu3 }
 0x785   : > { %v8241_v52 = vrot.slane %v8209_v63, 7  ;;  %v8242_v18 = vrot.slane %v8210_v15, 7  ;;  %v8303_v43 = vrot.slane %v8271_v31, 7  ;;  %v8304_v17 = vrot.slane %v8272_v46, 7 }
 0x786   : > { %v7613_v44 = vadd.f32 %v13966_v34, %v13938_v27  ;;  %v7626_v60 = vadd.f32 %v13968_v55, %v13940_v7 }
 0x787   : > { %v8273_v51 = vmul.f32 %v8241_v52, %v14615_v56  ;;  %v8274_v6 = vmul.f32 %v8242_v18, %v14616_v9  ;;  %v8335_v13 = vadd.f32 %v8303_v43, %v14613_v33  ;;  %v8336_v30 = vadd.f32 %v8304_v17, %v14614_v4  ;;  %v14619_v4 = vld [vmem:[#allocation16_spill] sm:$0xff] }
 0x788   : > { %v8037_v58 = vpop.f32.mrf.mxu0  ;;  %v8050_v57 = vpop.f32.mrf.mxu1  ;;  %v14620_v52 = vld [vmem:[#allocation24_spill] sm:$0xff] }
 0x789   : > { %v8305_v20 = vrot.slane %v8273_v51, 7  ;;  %v8306_v59 = vrot.slane %v8274_v6, 7  ;;  %8367 = vst [vmem:[#allocation1 + $0x12] sm:$0xff] %v8335_v13  ;;  %v7652_v6 = vadd.f32 %v13972_v28, %v13944_v38 }
 0x78a   : > { %8368 = vst [vmem:[#allocation1 + $0x1b] sm:$0xff] %v8336_v30 }
 0x78b   : > { %v8337_v39 = vadd.f32 %v8305_v20, %v14615_v56  ;;  %v8338_v53 = vadd.f32 %v8306_v59, %v14616_v9  ;;  %v7639_v9 = vadd.f32 %v13970_v50, %v13942_v21 }
 0x78c   : > { %v8061_v0 = vpop.f32.mrf.mxu2  ;;  %v8074_v10 = vpop.f32.mrf.mxu3 }
 0x78d   : > { %8369 = vst [vmem:[#allocation1 + $0x24] sm:$0xff] %v8337_v39  ;;  %v8188_v32 = vadd.f32 %v8061_v0, %v7561_v35  ;;  %v8189_v3 = vadd.f32 %v8074_v10, %v7574_v62  ;;  %v14622_v62 = vld [vmem:[#allocation25_spill] sm:$0xff] }
 0x78e   : > { %8370 = vst [vmem:[#allocation1 + $0x2d] sm:$0xff] %v8338_v53  ;;  %v14621_v53 = vld [vmem:[#allocation17_spill] sm:$0xff] }
 0x78f   : > { %v8211_v29 = vadd.f32 %v13980_v49, %v8188_v32  ;;  %v8212_v2 = vadd.f32 %v13980_v49, %v8189_v3 }
 0x790   : > { %v8087_v42 = vpop.f32.mrf.mxu0  ;;  %v8100_v23 = vpop.f32.mrf.mxu1 }
 0x791   : > { %v8190_v16 = vadd.f32 %v8087_v42, %v7587_v54  ;;  %v8191_v22 = vadd.f32 %v8100_v23, %v13964_v1  ;;  %v8243_v24 = vrot.slane %v8211_v29, 7  ;;  %v8244_v26 = vrot.slane %v8212_v2, 7  ;;  %v14623_v29 = vld [vmem:[#allocation26_spill] sm:$0xff] }
 0x793   : > { %v8213_v19 = vadd.f32 %v13980_v49, %v8190_v16  ;;  %v8214_v48 = vadd.f32 %v13980_v49, %v8191_v22  ;;  %v8275_v41 = vmul.f32 %v8243_v24, %v14617_v11  ;;  %v8276_v14 = vmul.f32 %v8244_v26, %v14618_v25  ;;  %v14624_v16 = vld [vmem:[#allocation27_spill] sm:$0xff] }
 0x794   : > { %v8063_v47 = vpop.f32.mrf.mxu2  ;;  %v8076_v61 = vpop.f32.mrf.mxu3 }
 0x795   : > { %v8245_v8 = vrot.slane %v8213_v19, 7  ;;  %v8246_v12 = vrot.slane %v8214_v48, 7  ;;  %v8307_v40 = vrot.slane %v8275_v41, 7  ;;  %v8308_v63 = vrot.slane %v8276_v14, 7 }
 0x797   : > { %v8339_v1 = vadd.f32 %v8307_v40, %v14617_v11  ;;  %v8340_v31 = vadd.f32 %v8308_v63, %v14618_v25  ;;  %v8277_v46 = vmul.f32 %v8245_v8, %v14619_v4  ;;  %v8278_v18 = vmul.f32 %v8246_v12, %v14620_v52 }
 0x798   : > { %v8089_v15 = vpop.f32.mrf.mxu0  ;;  %v8102_v33 = vpop.f32.mrf.mxu1  ;;  %v7665_v8 = vadd.f32 %v13974_v37, %v13954_v5  ;;  %v7678_v12 = vadd.f32 %v13976_v36, %v13956_v45  ;;  %v14626_v5 = vld [vmem:[#allocation33_spill] sm:$0xff] }
 0x799   : > { %8371 = vst [vmem:[#allocation1 + $0x36] sm:$0xff] %v8339_v1  ;;  %v8309_v43 = vrot.slane %v8277_v46, 7  ;;  %v8310_v17 = vrot.slane %v8278_v18, 7 }
 0x79a   : > { %8372 = vst [vmem:[#allocation1 + $0x3f] sm:$0xff] %v8340_v31 }
 0x79b   : > { %v8341_v20 = vadd.f32 %v8309_v43, %v14619_v4  ;;  %v8342_v59 = vadd.f32 %v8310_v17, %v14620_v52  ;;  %v14625_v4 = vld [vmem:[#allocation28_spill] sm:$0xff] }
 0x79c   : > { %v8113_v56 = vpop.f32.mrf.mxu2  ;;  %v8126_v51 = vpop.f32.mrf.mxu3 }
 0x79d   : > { %v8192_v58 = vadd.f32 %v8113_v56, %v7613_v44  ;;  %v8193_v57 = vadd.f32 %v8126_v51, %v7626_v60 }
 0x79f   : > { %v8215_v27 = vadd.f32 %v13980_v49, %v8192_v58  ;;  %v8216_v7 = vadd.f32 %v13980_v49, %v8193_v57 }
 0x7a0   : > { %v8139_v13 = vpop.f32.mrf.mxu0  ;;  %v8152_v30 = vpop.f32.mrf.mxu1 }
 0x7a1   : > { %v8194_v34 = vadd.f32 %v8139_v13, %v7639_v9  ;;  %v8195_v55 = vadd.f32 %v8152_v30, %v7652_v6  ;;  %v8374_v21 = vld [vmem:[#allocation1 + $0x2] ss:$9 sm:$0xff]  ;;  %v8247_v50 = vrot.slane %v8215_v27, 7  ;;  %v8248_v39 = vrot.slane %v8216_v7, 7 }
 0x7a2   : > { %8375 = vst [vmem:[#allocation1] sm:$0xff] %v8341_v20 }
 0x7a3   : > { %v8217_v38 = vadd.f32 %v13980_v49, %v8194_v34  ;;  %v8218_v28 = vadd.f32 %v13980_v49, %v8195_v55  ;;  %8376 = vst [vmem:[#allocation1 + $0x9] sm:$0xff] %v8342_v59  ;;  %v8279_v35 = vmul.f32 %v8247_v50, %v14621_v53  ;;  %v8280_v0 = vmul.f32 %v8248_v39, %v14622_v62 }
 0x7a4   : > { %v8115_v32 = vpop.f32.mrf.mxu2  ;;  %v8128_v3 = vpop.f32.mrf.mxu3  ;;  %8386 = vst [vmem:[%s14040_s17] sm:$0xff] %v8374_v21 }
 0x7a5   : > { %v8249_v10 = vrot.slane %v8217_v38, 7  ;;  %v8250_v54 = vrot.slane %v8218_v28, 7  ;;  %v8311_v42 = vrot.slane %v8279_v35, 7  ;;  %v8312_v23 = vrot.slane %v8280_v0, 7 }
 0x7a7   : > { %v8281_v2 = vmul.f32 %v8249_v10, %v14623_v29  ;;  %v8282_v22 = vmul.f32 %v8250_v54, %v14624_v16  ;;  %v8343_v19 = vadd.f32 %v8311_v42, %v14621_v53  ;;  %v8344_v48 = vadd.f32 %v8312_v23, %v14622_v62 }
 0x7a8   : > { %v8141_v24 = vpop.f32.mrf.mxu0  ;;  %v8154_v26 = vpop.f32.mrf.mxu1 }
 0x7a9   : > { %v8313_v11 = vrot.slane %v8281_v2, 7  ;;  %v8314_v41 = vrot.slane %v8282_v22, 7  ;;  %8377 = vst [vmem:[#allocation1 + $0x12] sm:$0xff] %v8343_v19 }
 0x7aa   : > { %8378 = vst [vmem:[#allocation1 + $0x1b] sm:$0xff] %v8344_v48 }
 0x7ab   : > { %v8345_v25 = vadd.f32 %v8313_v11, %v14623_v29  ;;  %v8346_v14 = vadd.f32 %v8314_v41, %v14624_v16 }
 0x7ac   : > { %v8165_v47 = vpop.f32.mrf.mxu2  ;;  %v8178_v61 = vpop.f32.mrf.mxu3 }
 0x7ad   : > { %8379 = vst [vmem:[#allocation1 + $0x24] sm:$0xff] %v8345_v25  ;;  %v8196_v40 = vadd.f32 %v8165_v47, %v7665_v8  ;;  %v8197_v63 = vadd.f32 %v8178_v61, %v7678_v12 }
 0x7ae   : > { %8380 = vst [vmem:[#allocation1 + $0x2d] sm:$0xff] %v8346_v14 }
 0x7af   : > { %v8219_v15 = vadd.f32 %v13980_v49, %v8196_v40  ;;  %v8220_v33 = vadd.f32 %v13980_v49, %v8197_v63 }
 0x7b1   : > { %v8251_v1 = vrot.slane %v8219_v15, 7  ;;  %v8252_v31 = vrot.slane %v8220_v33, 7 }
 0x7b3   : > { %v8283_v46 = vmul.f32 %v8251_v1, %v14625_v4  ;;  %v8284_v37 = vmul.f32 %v8252_v31, %v14626_v5 }
 0x7b4   : > { %v8167_v45 = vpop.f32.mrf.mxu2  ;;  %v8180_v36 = vpop.f32.mrf.mxu3 }
 0x7b5   : > { %v8315_v52 = vrot.slane %v8283_v46, 7  ;;  %v8316_v18 = vrot.slane %v8284_v37, 7 }
 0x7b7   : > { %v8347_v44 = vadd.f32 %v8315_v52, %v14625_v4  ;;  %v8348_v60 = vadd.f32 %v8316_v18, %v14626_v5 }
 0x7b9   : > { %8381 = vst [vmem:[#allocation1 + $0x36] sm:$0xff] %v8347_v44 }
 0x7ba   : > { %8382 = vst [vmem:[#allocation1 + $0x3f] sm:$0xff] %v8348_v60 }
 0x7c1   : > { %v8383_v49 = vld [vmem:[#allocation1 + $0x2] ss:$9 sm:$0xff] }
 0x7c2   : > { %8387 = vst [vmem:[%s14040_s17 + $0x8] sm:$0xff] %v8383_v49 }
 0x7c3   : > { %10812 = shalt.err (!%p10809_p3)
}
 0x7c4   : > { %10664 = dma.vmem_to_hbm [thread:$0]  (%p10955_p5), %s8410_s23, 256, %s8412_s25, %s8394_s12  }
 0x7c5 PF: > { %p10670_p4 = scmp.ge.s32.totalorder %s10847_s22, 2  ;;  %s8431_s14 = sand.u32 1, %s10835_s19  }
 0x7c6   : > { %s8432_s0 = scalar_lea.sflag [#allocation7], %s8431_s14 }
 0x7c7   : > { %p10667_p7 = pnand %p10670_p4, %p10959_p6 }
 0x7c9   : > { %p10668_p8 = pneg %p10667_p7 }
 0x7cb   : > { %10830 = dma.done.wait (%p10668_p8), %s8432_s0, 256  }
 0x7cc   : > { %10832 = vsyncadd (%p10668_p8), %s8432_s0, 4294967040  ;;  %p24_p9 = scmp.ge.s32.totalorder %s10942_s24, 4   ;;  %s14627_s19 = smov %s10839_s20 }
 0x7cd   : > { %s14628_s20 = smov %s10843_s21  ;;  %s14629_s21 = smov %s10953_s27 }
 0x7ce   : > { %s14630_s22 = smov %s10942_s24  ;;  %26 = sbr.rel (!%p24_p9) target bundleno = 6 (0x6), region = 125 }
 0x7d3   :  { %8438 = vsyncpa [#allocation7], 1 }
 0x7d4   :  { %8440 = vsyncpa [#allocation7 + $0x1], 1 }

</bundles_post_ra>
